<compile_context>
chip_gen: v5e
topology: v5e:2x2
jax: 0.10.0
libtpu: 0.0.40
codegen_flags: <defaults>
</compile_context>

<pallas_src>
import functools

import jax
import jax.numpy as jnp
from jax.experimental import pallas as pl
from jax.experimental.pallas import tpu as pltpu


def fdn_kernel(x_ref, t_ref, noise_ref,
               wb_ref, bb_ref,
               w1f_ref, w1t_ref, b1_ref,
               w2c_ref, b2c_ref,
               logits_ref, *, num_timesteps):
    """Fused: backbone Linear -> q_sample -> denoiser L1 + ReLU -> (denoiser L2 ∘ classifier)."""
    mm_dtype = w1f_ref.dtype  # bf16 in perf mode, f32 in validation mode

    # ---- backbone stub: flatten (in wrapper) + Linear ----
    # TODO(synk): `backbone` is an injected nn.Module in the spec; modeled as flatten+Linear.
    feat = jnp.dot(x_ref[...], wb_ref[...],
                   preferred_element_type=jnp.float32) + bb_ref[...]          # (TB, D) f32

    # ---- FeatureDiffusion.q_sample (elementwise kept in f32) ----
    t_norm = t_ref[...] * (1.0 / num_timesteps)                               # (TB, 1) f32
    # clip is a no-op for valid t in [0, T); keeps sqrt() finite on padded tail rows.
    beta = jnp.clip(0.02 + 0.98 * t_norm, 0.0, 1.0)
    noisy = (jnp.sqrt(1.0 - beta) * feat
             + jnp.sqrt(beta) * noise_ref[...].astype(jnp.float32))

    # ---- denoiser L1: cat([noisy, t_norm]) @ W1 == noisy @ W1[:D] + t_norm * W1[D] ----
    h = jnp.dot(noisy.astype(mm_dtype), w1f_ref[...],
                preferred_element_type=jnp.float32)
    h = jnp.maximum(h + t_norm * w1t_ref[...] + b1_ref[...], 0.0)

    # ---- denoiser L2 folded with classifier (return_feature=False): W2c = W2 @ Wc ----
    logits = jnp.dot(h.astype(mm_dtype), w2c_ref[...],
                     preferred_element_type=jnp.float32) + b2c_ref[...]
    logits_ref[...] = logits.astype(logits_ref.dtype)


def _choose_block_b(B):
    """Batch tile: prefer a 256-row multiple (fills v6e/v7x MXU rows) with >= 2 grid steps."""
    if B >= 512 and B % 256 == 0:
        return 256
    if B >= 256 and B % 128 == 0:
        return 128
    if B >= 16:
        return max(8, (B // 2) // 8 * 8)
    return B


def feature_diffusion_net_forward(x, t, noise, params, *, num_timesteps,
                                  block_b=None, compute_dtype=jnp.bfloat16):
    """x: (B, C, H, W) image; t: (B,) int timesteps; noise: (B, feature_dim).

    compute_dtype: dtype of the matmul operands (x / weights / activations at the dot
    boundaries). Accumulation, biases, q_sample and ReLU stay in f32.
    """
    wb, bb, w1f, w1t, b1, w2, b2, wc, bc = params
    B = x.shape[0]
    x_flat = x.reshape(B, -1)
    in_dim = x_flat.shape[1]
    D = wb.shape[1]
    Hd = w1f.shape[1]
    C = wc.shape[1]

    hi = jax.lax.Precision.HIGHEST
    # Fold classifier into denoiser L2 on the host: (h@W2 + b2)@Wc + bc == h@(W2@Wc) + (b2@Wc + bc)
    w2c = jnp.dot(w2, wc, precision=hi)
    b2c = jnp.dot(b2, wc, precision=hi) + bc

    # Matmul operands in compute_dtype; t column and biases stay f32.
    x_c = x_flat.astype(compute_dtype)
    noise_c = noise.astype(compute_dtype)
    wb_c = wb.astype(compute_dtype)
    w1f_c = w1f.astype(compute_dtype)
    w2c_c = w2c.astype(compute_dtype)
    bb_f = bb.astype(jnp.float32)
    w1t_f = w1t.astype(jnp.float32)
    b1_f = b1.astype(jnp.float32)
    b2c_f = b2c.astype(jnp.float32)
    t_col = t.astype(jnp.float32).reshape(B, 1)

    if block_b is None:
        block_b = _choose_block_b(B)
    block_b = min(block_b, B)
    n_steps = pl.cdiv(B, block_b)

    itemsize = jnp.dtype(compute_dtype).itemsize
    weight_bytes = (in_dim * D + D * Hd + Hd * C) * itemsize + (D + Hd + C) * 4
    tile_bytes = block_b * ((in_dim + D) * itemsize + (1 + C) * 4)
    interm_bytes = block_b * (D + Hd + C) * 4
    vmem_est = 2 * weight_bytes + 2 * tile_bytes + interm_bytes   # double-buffered streams
    # Default scoped VMEM limits (16/32 MiB) are well below physical; 48 MiB still leaves
    # headroom on v7x's 64 MiB per-TC VMEM.
    vmem_limit = int(min(48 << 20, max(32 << 20, int(1.5 * vmem_est))))

    cost = pl.CostEstimate(
        flops=int(2 * B * (in_dim * D + D * Hd + Hd * C) + 12 * B * D),
        bytes_accessed=int(x_c.size * itemsize + noise_c.size * itemsize + B * 4
                           + weight_bytes + B * C * 4),
        transcendentals=0)

    row = lambda i: (i, 0)   # batch-tiled operands
    rep = lambda i: (0, 0)   # weights: constant index_map -> fetched once, stay resident
    # TODO(synk): pipeline_mode=pl.Buffered(1) on the replicated-weight specs would drop the
    #   second weight buffer; bf16 weights already keep the footprint small at these sizes.

    out = pl.pallas_call(
        functools.partial(fdn_kernel, num_timesteps=num_timesteps),
        out_shape=jax.ShapeDtypeStruct((B, C), jnp.float32),
        grid=(n_steps,),
        in_specs=[
            pl.BlockSpec((block_b, in_dim), row),   # x_flat
            pl.BlockSpec((block_b, 1), row),        # t column
            pl.BlockSpec((block_b, D), row),        # noise
            pl.BlockSpec((in_dim, D), rep),         # backbone W
            pl.BlockSpec((1, D), rep),              # backbone b
            pl.BlockSpec((D, Hd), rep),             # denoiser W1 (feature part)
            pl.BlockSpec((1, Hd), rep),             # denoiser W1 (t_norm row)
            pl.BlockSpec((1, Hd), rep),             # denoiser b1
            pl.BlockSpec((Hd, C), rep),             # folded W2 @ Wc
            pl.BlockSpec((1, C), rep),              # folded b2 @ Wc + bc
        ],
        out_specs=pl.BlockSpec((block_b, C), row),
        compiler_params=pltpu.CompilerParams(
            dimension_semantics=("parallel",),
            vmem_limit_bytes=vmem_limit),
        cost_estimate=cost,
    )(x_c, t_col, noise_c, wb_c, bb_f, w1f_c, w1t_f, b1_f, w2c_c, b2c_f)
    return out


def reference_forward(x, t, noise, params, *, num_timesteps):
    """Pure-JAX f32 reference mirroring the PyTorch module (concat-based denoiser input,
    separate classifier matmul)."""
    wb, bb, w1f, w1t, b1, w2, b2, wc, bc = params
    hi = jax.lax.Precision.HIGHEST
    B = x.shape[0]
    x_flat = x.reshape(B, -1).astype(jnp.float32)

    feat = jnp.dot(x_flat, wb, precision=hi) + bb
    t_col = t.astype(jnp.float32).reshape(B, 1)
    t_norm = t_col / num_timesteps
    beta = 0.02 + 0.98 * t_norm
    noisy = jnp.sqrt(1.0 - beta) * feat + jnp.sqrt(beta) * noise

    w1_full = jnp.concatenate([w1f, w1t], axis=0)          # (D+1, H) as in the module
    inp = jnp.concatenate([noisy, t_norm], axis=1)         # (B, D+1)
    h = jax.nn.relu(jnp.dot(inp, w1_full, precision=hi) + b1)
    den = jnp.dot(h, w2, precision=hi) + b2
    return jnp.dot(den, wc, precision=hi) + bc


def make_params(key, in_dim, feature_dim, hidden_dim, num_classes):
    ks = jax.random.split(key, 9)

    def lin(k, fan_in, shape, scale=1.0):
        return jax.random.normal(k, shape, jnp.float32) * (scale / jnp.sqrt(fan_in))

    wb  = lin(ks[0], in_dim, (in_dim, feature_dim))
    bb  = lin(ks[1], in_dim, (1, feature_dim), 0.1)
    w1f = lin(ks[2], feature_dim + 1, (feature_dim, hidden_dim))
    w1t = lin(ks[3], feature_dim + 1, (1, hidden_dim))
    b1  = lin(ks[4], feature_dim + 1, (1, hidden_dim), 0.1)
    w2  = lin(ks[5], hidden_dim, (hidden_dim, feature_dim))
    b2  = lin(ks[6], hidden_dim, (1, feature_dim), 0.1)
    wc  = lin(ks[7], feature_dim, (feature_dim, num_classes))
    bc  = lin(ks[8], feature_dim, (1, num_classes), 0.1)
    return (wb, bb, w1f, w1t, b1, w2, b2, wc, bc)


if __name__ == "__main__":
    # Lane/MXU-friendly toy shapes: in_dim=1024, feature_dim=256, hidden_dim=512 (module
    # default), num_classes=128. B=1024 -> batch grid of 4 steps x 256 rows: pipelined and
    # even, so it also shards across v7x's 2 TensorCores.
    B, Cimg, Himg, Wimg = 1024, 4, 16, 16
    feature_dim, hidden_dim, num_classes, diffusion_steps = 256, 512, 128, 100

    key = jax.random.PRNGKey(0)
    kx, kt, kn, kp = jax.random.split(key, 4)
    x = jax.random.normal(kx, (B, Cimg, Himg, Wimg), jnp.float32)
    # TODO(synk): torch.randint / randn_like inside forward (when t/noise are None) are
    # host-side RNG bookkeeping; deterministic t and noise are passed in, which the module's
    # forward also supports.
    t = jax.random.randint(kt, (B,), 0, diffusion_steps)
    noise = jax.random.normal(kn, (B, feature_dim), jnp.float32)
    params = make_params(kp, Cimg * Himg * Wimg, feature_dim, hidden_dim, num_classes)

    ref = jax.block_until_ready(
        reference_forward(x, t, noise, params, num_timesteps=diffusion_steps))

    # 1) f32 matmul operands: tight check against the f32/HIGHEST reference (also validates
    #    the classifier fold and the W1 split).
    logits_f32 = jax.block_until_ready(feature_diffusion_net_forward(
        x, t, noise, params, num_timesteps=diffusion_steps, compute_dtype=jnp.float32))
    assert logits_f32.shape == (B, num_classes)
    err32 = jnp.max(jnp.abs(logits_f32 - ref))
    assert jnp.allclose(logits_f32, ref, rtol=2e-3, atol=2e-3), f"f32 max abs err {err32}"

    # 2) bf16 matmul operands (default perf mode): f32 accumulation; looser tolerance covers
    #    bf16 operand quantization across the 3 fused matmuls.
    logits_bf16 = jax.block_until_ready(feature_diffusion_net_forward(
        x, t, noise, params, num_timesteps=diffusion_steps))
    errbf = jnp.max(jnp.abs(logits_bf16 - ref))
    assert jnp.allclose(logits_bf16, ref, rtol=5e-2, atol=5e-2), f"bf16 max abs err {errbf}"

    # TODO(synk): multi_scale=True branch (per-scale diffusions + scale_weights) not modeled.
    # TODO(synk): for much larger in_dim (real backbone inputs) add a K grid axis over in_dim
    #   ("arbitrary", last) with an f32 accumulator scratch + pl.when init/finalize so the
    #   (block_b, in_dim) x tile still fits v7x's 64 MiB VMEM.
    print("KERNEL_OK")
</pallas_src>

<mosaic_0001>
module attributes {stable_mosaic.version = 11 : i64} {
  func.func @fdn_kernel(%arg0: i32, %arg1: memref<256x1024xf32, #tpu.memory_space<vmem>>, %arg2: memref<256x1xf32, #tpu.memory_space<vmem>>, %arg3: memref<256x256xf32, #tpu.memory_space<vmem>>, %arg4: memref<1024x256xf32, #tpu.memory_space<vmem>>, %arg5: memref<1x256xf32, #tpu.memory_space<vmem>>, %arg6: memref<256x512xf32, #tpu.memory_space<vmem>>, %arg7: memref<1x512xf32, #tpu.memory_space<vmem>>, %arg8: memref<1x512xf32, #tpu.memory_space<vmem>>, %arg9: memref<512x128xf32, #tpu.memory_space<vmem>>, %arg10: memref<1x128xf32, #tpu.memory_space<vmem>>, %arg11: memref<256x128xf32, #tpu.memory_space<vmem>>) attributes {dimension_semantics = [#tpu.dimension_semantics<parallel>], iteration_bounds = array<i64: 4>, scalar_prefetch = 0 : i64, scratch_operands = 0 : i64, tpu.core_type = #tpu.core_type<tc>, window_params = [{transform_indices = @transform_0, window_bounds = array<i64: 256, 1024>}, {transform_indices = @transform_1, window_bounds = array<i64: 256, 1>}, {transform_indices = @transform_2, window_bounds = array<i64: 256, 256>}, {pipeline_mode = #tpu.pipeline_mode<synchronous>, transform_indices = @transform_3, window_bounds = array<i64: 1024, 256>}, {pipeline_mode = #tpu.pipeline_mode<synchronous>, transform_indices = @transform_4, window_bounds = array<i64: 1, 256>}, {pipeline_mode = #tpu.pipeline_mode<synchronous>, transform_indices = @transform_5, window_bounds = array<i64: 256, 512>}, {pipeline_mode = #tpu.pipeline_mode<synchronous>, transform_indices = @transform_6, window_bounds = array<i64: 1, 512>}, {pipeline_mode = #tpu.pipeline_mode<synchronous>, transform_indices = @transform_7, window_bounds = array<i64: 1, 512>}, {pipeline_mode = #tpu.pipeline_mode<synchronous>, transform_indices = @transform_8, window_bounds = array<i64: 512, 128>}, {pipeline_mode = #tpu.pipeline_mode<synchronous>, transform_indices = @transform_9, window_bounds = array<i64: 1, 128>}, {transform_indices = @transform_10, window_bounds = array<i64: 256, 128>}]} {
    %c0 = arith.constant 0 : index
    %c0_0 = arith.constant 0 : index
    %0 = vector.load %arg1[%c0, %c0_0] : memref<256x1024xf32, #tpu.memory_space<vmem>>, vector<256x1024xf32>
    %c0_1 = arith.constant 0 : index
    %c0_2 = arith.constant 0 : index
    %1 = vector.load %arg4[%c0_1, %c0_2] : memref<1024x256xf32, #tpu.memory_space<vmem>>, vector<1024x256xf32>
    %cst = arith.constant dense<0.000000e+00> : vector<256x256xf32>
    %2 = tpu.matmul %0, %1, %cst {dimension_numbers = #tpu.dot_dimension_numbers<[1], [0], [0], [1], [0, 0, 1, 1], [], []>} : vector<256x1024xf32>, vector<1024x256xf32>, vector<256x256xf32> -> vector<256x256xf32>
    %c0_3 = arith.constant 0 : index
    %c0_4 = arith.constant 0 : index
    %3 = vector.load %arg5[%c0_3, %c0_4] : memref<1x256xf32, #tpu.memory_space<vmem>>, vector<1x256xf32>
    %4 = vector.broadcast %3 : vector<1x256xf32> to vector<256x256xf32>
    %5 = arith.addf %2, %4 : vector<256x256xf32>
    %c0_5 = arith.constant 0 : index
    %c0_6 = arith.constant 0 : index
    %6 = vector.load %arg2[%c0_5, %c0_6] : memref<256x1xf32, #tpu.memory_space<vmem>>, vector<256x1xf32>
    %cst_7 = arith.constant 0.00999999977 : f32
    %7 = vector.broadcast %cst_7 : f32 to vector<256x1xf32>
    %8 = arith.mulf %6, %7 : vector<256x1xf32>
    %cst_8 = arith.constant 9.800000e-01 : f32
    %9 = vector.broadcast %cst_8 : f32 to vector<256x1xf32>
    %10 = arith.mulf %9, %8 : vector<256x1xf32>
    %cst_9 = arith.constant 2.000000e-02 : f32
    %11 = vector.broadcast %cst_9 : f32 to vector<256x1xf32>
    %12 = arith.addf %11, %10 : vector<256x1xf32>
    %cst_10 = arith.constant 0.000000e+00 : f32
    %cst_11 = arith.constant 1.000000e+00 : f32
    %13 = vector.broadcast %cst_10 : f32 to vector<256x1xf32>
    %14 = arith.maximumf %13, %12 : vector<256x1xf32>
    %15 = vector.broadcast %cst_11 : f32 to vector<256x1xf32>
    %16 = arith.minimumf %15, %14 : vector<256x1xf32>
    %cst_12 = arith.constant 1.000000e+00 : f32
    %17 = vector.broadcast %cst_12 : f32 to vector<256x1xf32>
    %18 = arith.subf %17, %16 : vector<256x1xf32>
    %19 = math.sqrt %18 : vector<256x1xf32>
    %20 = vector.broadcast %19 : vector<256x1xf32> to vector<256x256xf32>
    %21 = arith.mulf %20, %5 : vector<256x256xf32>
    %22 = math.sqrt %16 : vector<256x1xf32>
    %c0_13 = arith.constant 0 : index
    %c0_14 = arith.constant 0 : index
    %23 = vector.load %arg3[%c0_13, %c0_14] : memref<256x256xf32, #tpu.memory_space<vmem>>, vector<256x256xf32>
    %24 = vector.broadcast %22 : vector<256x1xf32> to vector<256x256xf32>
    %25 = arith.mulf %24, %23 : vector<256x256xf32>
    %26 = arith.addf %21, %25 : vector<256x256xf32>
    %c0_15 = arith.constant 0 : index
    %c0_16 = arith.constant 0 : index
    %27 = vector.load %arg6[%c0_15, %c0_16] : memref<256x512xf32, #tpu.memory_space<vmem>>, vector<256x512xf32>
    %cst_17 = arith.constant dense<0.000000e+00> : vector<256x512xf32>
    %28 = tpu.matmul %26, %27, %cst_17 {dimension_numbers = #tpu.dot_dimension_numbers<[1], [0], [0], [1], [0, 0, 1, 1], [], []>} : vector<256x256xf32>, vector<256x512xf32>, vector<256x512xf32> -> vector<256x512xf32>
    %c0_18 = arith.constant 0 : index
    %c0_19 = arith.constant 0 : index
    %29 = vector.load %arg7[%c0_18, %c0_19] : memref<1x512xf32, #tpu.memory_space<vmem>>, vector<1x512xf32>
    %30 = vector.broadcast %8 : vector<256x1xf32> to vector<256x512xf32>
    %31 = vector.broadcast %29 : vector<1x512xf32> to vector<256x512xf32>
    %32 = arith.mulf %30, %31 : vector<256x512xf32>
    %33 = arith.addf %28, %32 : vector<256x512xf32>
    %c0_20 = arith.constant 0 : index
    %c0_21 = arith.constant 0 : index
    %34 = vector.load %arg8[%c0_20, %c0_21] : memref<1x512xf32, #tpu.memory_space<vmem>>, vector<1x512xf32>
    %35 = vector.broadcast %34 : vector<1x512xf32> to vector<256x512xf32>
    %36 = arith.addf %33, %35 : vector<256x512xf32>
    %cst_22 = arith.constant 0.000000e+00 : f32
    %37 = vector.broadcast %cst_22 : f32 to vector<256x512xf32>
    %38 = arith.maximumf %36, %37 : vector<256x512xf32>
    %c0_23 = arith.constant 0 : index
    %c0_24 = arith.constant 0 : index
    %39 = vector.load %arg9[%c0_23, %c0_24] : memref<512x128xf32, #tpu.memory_space<vmem>>, vector<512x128xf32>
    %cst_25 = arith.constant dense<0.000000e+00> : vector<256x128xf32>
    %40 = tpu.matmul %38, %39, %cst_25 {dimension_numbers = #tpu.dot_dimension_numbers<[1], [0], [0], [1], [0, 0, 1, 1], [], []>} : vector<256x512xf32>, vector<512x128xf32>, vector<256x128xf32> -> vector<256x128xf32>
    %c0_26 = arith.constant 0 : index
    %c0_27 = arith.constant 0 : index
    %41 = vector.load %arg10[%c0_26, %c0_27] : memref<1x128xf32, #tpu.memory_space<vmem>>, vector<1x128xf32>
    %42 = vector.broadcast %41 : vector<1x128xf32> to vector<256x128xf32>
    %43 = arith.addf %40, %42 : vector<256x128xf32>
    %c0_28 = arith.constant 0 : index
    %c0_29 = arith.constant 0 : index
    %44 = vector.load %arg11[%c0_28, %c0_29] : memref<256x128xf32, #tpu.memory_space<vmem>>, vector<256x128xf32>
    tpu.vector_store %arg11[%c0_28, %c0_29], %43 {strides = array<i32>} : memref<256x128xf32, #tpu.memory_space<vmem>>, vector<256x128xf32>,
    return
  }
  func.func @transform_0(%arg0: i32) -> (i32, i32) {
    %c0_i32 = arith.constant 0 : i32
    %c0_i32_0 = arith.constant 0 : i32
    return %arg0, %c0_i32 : i32, i32
  }
  func.func @transform_1(%arg0: i32) -> (i32, i32) {
    %c0_i32 = arith.constant 0 : i32
    %c0_i32_0 = arith.constant 0 : i32
    return %arg0, %c0_i32 : i32, i32
  }
  func.func @transform_2(%arg0: i32) -> (i32, i32) {
    %c0_i32 = arith.constant 0 : i32
    %c0_i32_0 = arith.constant 0 : i32
    return %arg0, %c0_i32 : i32, i32
  }
  func.func @transform_3(%arg0: i32) -> (i32, i32) {
    %c0_i32 = arith.constant 0 : i32
    %c0_i32_0 = arith.constant 0 : i32
    %c0_i32_1 = arith.constant 0 : i32
    return %c0_i32, %c0_i32_0 : i32, i32
  }
  func.func @transform_4(%arg0: i32) -> (i32, i32) {
    %c0_i32 = arith.constant 0 : i32
    %c0_i32_0 = arith.constant 0 : i32
    %c0_i32_1 = arith.constant 0 : i32
    return %c0_i32, %c0_i32_0 : i32, i32
  }
  func.func @transform_5(%arg0: i32) -> (i32, i32) {
    %c0_i32 = arith.constant 0 : i32
    %c0_i32_0 = arith.constant 0 : i32
    %c0_i32_1 = arith.constant 0 : i32
    return %c0_i32, %c0_i32_0 : i32, i32
  }
  func.func @transform_6(%arg0: i32) -> (i32, i32) {
    %c0_i32 = arith.constant 0 : i32
    %c0_i32_0 = arith.constant 0 : i32
    %c0_i32_1 = arith.constant 0 : i32
    return %c0_i32, %c0_i32_0 : i32, i32
  }
  func.func @transform_7(%arg0: i32) -> (i32, i32) {
    %c0_i32 = arith.constant 0 : i32
    %c0_i32_0 = arith.constant 0 : i32
    %c0_i32_1 = arith.constant 0 : i32
    return %c0_i32, %c0_i32_0 : i32, i32
  }
  func.func @transform_8(%arg0: i32) -> (i32, i32) {
    %c0_i32 = arith.constant 0 : i32
    %c0_i32_0 = arith.constant 0 : i32
    %c0_i32_1 = arith.constant 0 : i32
    return %c0_i32, %c0_i32_0 : i32, i32
  }
  func.func @transform_9(%arg0: i32) -> (i32, i32) {
    %c0_i32 = arith.constant 0 : i32
    %c0_i32_0 = arith.constant 0 : i32
    %c0_i32_1 = arith.constant 0 : i32
    return %c0_i32, %c0_i32_0 : i32, i32
  }
  func.func @transform_10(%arg0: i32) -> (i32, i32) {
    %c0_i32 = arith.constant 0 : i32
    %c0_i32_0 = arith.constant 0 : i32
    return %arg0, %c0_i32 : i32, i32
  }
}

</mosaic_0001>

<bundles_post_ra>
// kernel: tpu_custom_call.1
= control target key start
LH: loop header
LB: loop body
LE: loop exit
PB: predicated region body
PF: predicated region fallthrough
CT: control target
= control target key end

     0   :  { %s11803_s0 = inlined_call_operand.hbm [shape: f32[1024,1024], index: 0, kind: input, shape index: {}]   ;;  %s11804_s1 = inlined_call_operand.vmem [shape: f32[1024,1], index: 1, kind: input, shape index: {}]   ;;  %s11805_s2 = inlined_call_operand.hbm [shape: f32[1024,256], index: 2, kind: input, shape index: {}]   ;;  %s11806_s3 = inlined_call_operand.hbm [shape: f32[1024,256], index: 3, kind: input, shape index: {}]   ;;  %s11807_s4 = inlined_call_operand.hbm [shape: f32[1,256], index: 4, kind: input, shape index: {}]   ;;  %s11808_s5 = inlined_call_operand.hbm [shape: f32[256,512], index: 5, kind: input, shape index: {}]   ;;  %s11809_s6 = inlined_call_operand.hbm [shape: f32[1,512], index: 6, kind: input, shape index: {}]   ;;  %s11810_s7 = inlined_call_operand.hbm [shape: f32[1,512], index: 7, kind: input, shape index: {}]   ;;  %s11811_s8 = inlined_call_operand.hbm [shape: f32[512,128], index: 8, kind: input, shape index: {}]   ;;  %s11812_s9 = inlined_call_operand.hbm [shape: f32[1,128], index: 9, kind: input, shape index: {}]   ;;  %s11813_s10 = inlined_call_operand.hbm [shape: f32[1024,128], index: 10, kind: output, shape index: {}]  }
   0x1   :  { %11933 = sst [smem:[#allocation124_spill]] %s11803_s0 }
   0x2   :  { %11934 = sst [smem:[#allocation125_spill]] %s11806_s3 }
   0x3   :  { %11935 = sst [smem:[#allocation126_spill]] %s11807_s4 }
   0x4   :  { %11936 = sst [smem:[#allocation127_spill]] %s11808_s5 }
   0x5   :  { %11937 = sst [smem:[#allocation128_spill]] %s11809_s6 }
   0x6   :  { %11938 = sst [smem:[#allocation129_spill]] %s11810_s7 }
   0x7   :  { %11939 = sst [smem:[#allocation130_spill]] %s11811_s8 }
   0x8   :  { %11940 = sst [smem:[#allocation131_spill]] %s11812_s9 }
   0x9   :  { %15 = vsyncpa [#allocation3], 0 }
   0xa   :  { %17 = vsyncpa [#allocation3 + $0x1], 0 }
   0xb   :  { %18 = vsyncpa [#allocation6], 0 }
   0xc   :  { %20 = vsyncpa [#allocation6 + $0x1], 0 }
   0xd   :  { %21 = vsyncpa [#allocation9], 0 }
   0xe   :  { %22 = vsyncpa [#allocation12], 0 }
   0xf   :  { %23 = vsyncpa [#allocation15], 0 }
  0x10   :  { %24 = vsyncpa [#allocation4], 0 }
  0x11   :  { %26 = vsyncpa [#allocation4 + $0x1], 0  ;;  %s7783_s13 = smov 0   ;;  %s7785_s14 = smov 0  }
  0x12   :  { %s7787_s15 = smov 0   ;;  %s7789_s16 = smov 0  }
  0x13 LB: > { %11941 = sst [smem:[#allocation25_spill]] %s7704_s15  ;;  %s7807_s20 = sadd.s32 4294967295, %s7708_s16   ;;  %s7708_s16 = sphi %s7789_s16, %s12348_s16   ;;  %s7704_s15 = sphi %s7787_s15, %s12345_s15   ;;  %s7700_s14 = sphi %s7785_s14, %s12347_s14   ;;  %s7696_s13 = sphi %s7783_s13, %s12346_s13  }
  0x14   : > { %s11942_s3 = sld [smem:[#allocation125_spill]]  ;;  %p6789_p0 = scmp.ge.s32.totalorder %s7708_s16, 1 }
  0x15   : > { %p53_p1 = scmp.eq.s32.totalorder %s7807_s20, 0  ;;  %p288_p2 = scmp.lt.s32.totalorder %s7708_s16, 5 }
  0x16   : > { %s7710_s22 = smov [#allocation7]   ;;  %s11944_s4 = sld [smem:[#allocation126_spill]] }
  0x17   : > { %p7812_p3 = pnand %p6789_p0, %p288_p2  ;;  %s301_s23 = sshll.u32 %s7710_s22, 4  ;;  %s302_s23 = int_to_ptr.vmem [resolvable:$true] %s301_s23 }
  0x18   : > { %s11946_s6 = sld [smem:[#allocation128_spill]]  ;;  %s7711_s11 = smov [#allocation8]  }
  0x19   : > { %p6863_p4 = pneg %p7812_p3  ;;  %s316_s12 = sshll.u32 %s7711_s11, 4  ;;  %s317_s12 = int_to_ptr.vmem [resolvable:$true] %s316_s12 }
  0x1a   : > { %s299_s19 = sshll.u32 %s11942_s3, 4  ;;  %s11814_s17 = smov 256   ;;  %s300_s19 = int_to_ptr.hbm [resolvable:$true] %s299_s19 }
  0x1b   : > { %p7823_p5 = pnand %p6863_p4, %p53_p1  ;;  %s11815_s18 = smov 16  }
  0x1c   : > { %s314_s26 = sshll.u32 %s11944_s4, 4  ;;  %s11947_s8 = sld [smem:[#allocation130_spill]]  ;;  %s315_s26 = int_to_ptr.hbm [resolvable:$true] %s314_s26 }
  0x1d   : > { %6866 = dma.hbm_to_vmem [thread:$0]  (!%p7823_p5), %s300_s19, 32768, %s302_s23, [#allocation6], %s11814_s17, %s11814_s17, %s11815_s18  }
  0x1e   : > { %s340_s30 = sshll.u32 %s11946_s6, 4  ;;  %s7714_s28 = smov [#allocation11]   ;;  %s341_s30 = int_to_ptr.hbm [resolvable:$true] %s340_s30 }
  0x1f   : > { %6869 = dma.hbm_to_vmem [thread:$0]  (!%p7823_p5), %s315_s26, 32, %s317_s12, [#allocation9]  }
  0x20   : > { %s342_s29 = sshll.u32 %s7714_s28, 4  ;;  %s7715_s11 = smov [#allocation14]   ;;  %s343_s29 = int_to_ptr.vmem [resolvable:$true] %s342_s29 }
  0x21   : > { %6875 = dma.hbm_to_vmem [thread:$0]  (!%p7823_p5), %s341_s30, 64, %s343_s29, [#allocation12]  }
  0x22   : > { %s363_s25 = sshll.u32 %s11947_s8, 4  ;;  %s365_s3 = sshll.u32 %s7715_s11, 4  ;;  %s364_s25 = int_to_ptr.hbm [resolvable:$true] %s363_s25  ;;  %s366_s3 = int_to_ptr.vmem [resolvable:$true] %s365_s3 }
  0x23   : > { %s7716_s4 = smov 128   ;;  %s7717_s19 = smov 8  }
  0x24   : > { %6881 = dma.hbm_to_vmem [thread:$0]  (!%p7823_p5), %s364_s25, 8192, %s366_s3, [#allocation15], %s7716_s4, %s7716_s4, %s7717_s19  }
  0x25   : > { %s11948_s5 = sld [smem:[#allocation127_spill]]  ;;  %s7718_s22 = smov [#allocation10]  }
  0x26   : > { %s327_s24 = sshll.u32 %s7718_s22, 4  ;;  %s11949_s7 = sld [smem:[#allocation129_spill]]  ;;  %s328_s24 = int_to_ptr.vmem [resolvable:$true] %s327_s24 }
  0x27   : > { %s7719_s29 = smov 512   ;;  %s7720_s11 = smov 32  }
  0x28   : > { %s7721_s3 = smov [#allocation13]   ;;  %s11950_s9 = sld [smem:[#allocation131_spill]] }
  0x29   : > { %s354_s4 = sshll.u32 %s7721_s3, 4  ;;  %s7722_s23 = smov [#allocation16]   ;;  %s355_s4 = int_to_ptr.vmem [resolvable:$true] %s354_s4 }
  0x2a   : > { %s380_s26 = sshll.u32 %s7722_s23, 4  ;;  %s7861_s22 = sadd.s32 1, %s7708_s16   ;;  %s381_s26 = int_to_ptr.vmem [resolvable:$true] %s380_s26 }
  0x2b   : > { %s325_s12 = sshll.u32 %s11948_s5, 4  ;;  %s36_s28 = ssub.s32 %s7708_s16, %s7861_s22  ;;  %s326_s12 = int_to_ptr.hbm [resolvable:$true] %s325_s12 }
  0x2c   : > { %s352_s30 = sshll.u32 %s11949_s7, 4  ;;  %p46_p6 = scmp.ne.s32.totalorder %s7704_s15, %s7700_s14  ;;  %s353_s30 = int_to_ptr.hbm [resolvable:$true] %s352_s30 }
  0x2d   : > { %6872 = dma.hbm_to_vmem [thread:$0]  (!%p7823_p5), %s326_s12, 16384, %s328_s24, [#allocation9], %s7719_s29, %s7719_s29, %s7720_s11  }
  0x2e   : > { %s378_s17 = sshll.u32 %s11950_s9, 4  ;;  %s6788_s12 = sadd.s32 4294967294, %s7708_s16   ;;  %s379_s17 = int_to_ptr.hbm [resolvable:$true] %s378_s17 }
  0x2f   : > { %6878 = dma.hbm_to_vmem [thread:$0]  (!%p7823_p5), %s353_s30, 64, %s355_s4, [#allocation12]  }
  0x30   : > { %6884 = dma.hbm_to_vmem [thread:$0]  (!%p7823_p5), %s379_s17, 16, %s381_s26, [#allocation15]  }
  0x31   : > { %s39_s24 = sadd.s32 1, %s7704_s15  ;;  %p37_p7 = scmp.eq.s32.totalorder %s36_s28, 0 }
  0x32   : > { %p47_p8 = scmp.eq.s32.totalorder %s7708_s16, 0  ;;  %p52_p9 = scmp.ne.s32.totalorder %s7700_s14, %s7696_s13 }
  0x33   : > { %p275_p10 = scmp.eq.s32.totalorder %s7807_s20, 3  ;;  %p281_p0 = scmp.eq.s32.totalorder %s6788_s12, 3 }
  0x34   : > { %s7873_s30 = scalar_select %p37_p7, %s7704_s15, %s39_s24  }
  0x35   : > { %p7875_p11 = por %p47_p8, %p46_p6  ;;  %p7881_p12 = por %p53_p1, %p52_p9 }
  0x36   : > { %11951 = sst [smem:[#allocation26_spill]] %s7873_s30  ;;  %p7885_p13 = por %p275_p10, %p46_p6 }
  0x37   : > { %p6903_p2 = scmp.lt.s32.totalorder %s7708_s16, 4  ;;  %s7891_s3 = sand.u32 1, %s7704_s15  }
  0x38   : > { %p7893_p4 = por %p281_p0, %p52_p9  ;;  %s6798_s25 = sshll.u32 %s7891_s3, 11 }
  0x39   : > { %s6825_s19 = sshll.u32 %s7708_s16, 11  ;;  %s11956_s0 = sld [smem:[#allocation124_spill]] }
  0x3a   : > { %s395_s28 = scalar_lea.vmem [#allocation2], %s6798_s25  ;;  %p7904_p5 = pnand %p6903_p2, %p7875_p11 }
  0x3b   : > { %s404_s18 = sshll.u32 %s395_s28, 4  ;;  %s423_s5 = sand.u32 1, %s7708_s16   ;;  %s405_s18 = int_to_ptr.vmem [resolvable:$true] %s404_s18 }
  0x3c   : > { %s392_s6 = scalar_lea.sflag [#allocation3], %s7891_s3  ;;  %p7566_p7 = pneg %p7904_p5 }
  0x3f   : > { %s401_s26 = scalar_lea.hbm %s11956_s0, %s6825_s19  ;;  %s7569_s19 = scalar_lea.hbm %s11956_s0, 8192 }
  0x40   : > { %s402_s24 = sshll.u32 %s401_s26, 4  ;;  %s403_s24 = int_to_ptr.hbm [resolvable:$true] %s402_s24 }
  0x41   : > { %s7562_s7 = sshra.s32 %s403_s24, 4  ;;  %s7563_s7 = int_to_ptr.hbm [resolvable:$true] %s7562_s7 }
  0x42   : > { %s7564_s8 = scalar_lea.hbm %s7563_s7, 2048  ;;  %p7570_p10 = scmp.lt.s32.totalorder %s7563_s7, %s11956_s0 }
  0x43   : > { %p7565_p6 = scmp.ne.s32.totalorder %s7563_s7, %s7564_s8  ;;  %p7571_p11 = scmp.lt.s32.totalorder %s7569_s19, %s7564_s8 }
  0x45   : > { %p7567_p8 = pnand %p7566_p7, %p7565_p6  ;;  %p7572_p0 = por %p7571_p11, %p7570_p10 }
  0x47   : > { %p7568_p9 = pneg %p7567_p8 }
  0x49   : > { %p7573_p2 = pnand %p7572_p0, %p7568_p9 }
  0x4b   : > { %7576 = shalt.err (!%p7573_p2)
}
  0x4c   : > { %s7723_s26 = smov 1024   ;;  %s7724_s28 = smov 64  }
  0x4d   : > { %6888 = dma.hbm_to_vmem [thread:$0]  (!%p7904_p5), %s403_s24, 32768, %s405_s18, %s392_s6, %s7723_s26, %s7723_s26, %s7724_s28  }
  0x4e   : > { %s6802_s9 = sshll.u32 %s7891_s3, 9  ;;  %s6827_s30 = sshll.u32 %s7708_s16, 9 }
  0x4f   : > { %s433_s15 = scalar_lea.hbm %s11805_s2, %s6827_s30  ;;  %s427_s7 = scalar_lea.vmem [#allocation5], %s6802_s9 }
  0x50   : > { %s434_s17 = sshll.u32 %s433_s15, 4  ;;  %s436_s8 = sshll.u32 %s427_s7, 4  ;;  %s435_s17 = int_to_ptr.hbm [resolvable:$true] %s434_s17  ;;  %s437_s8 = int_to_ptr.vmem [resolvable:$true] %s436_s8 }
  0x51   : > { %s424_s19 = scalar_lea.sflag [#allocation6], %s423_s5  ;;  %s7592_s23 = sshra.s32 %s435_s17, 4  ;;  %s7593_s23 = int_to_ptr.hbm [resolvable:$true] %s7592_s23 }
  0x52   : > { %s7594_s0 = scalar_lea.hbm %s7593_s23, 512  ;;  %s7599_s3 = scalar_lea.hbm %s11805_s2, 2048 }
  0x53   : > { %p7595_p6 = scmp.ne.s32.totalorder %s7593_s23, %s7594_s0  ;;  %p7600_p10 = scmp.lt.s32.totalorder %s7593_s23, %s11805_s2 }
  0x54   : > { %p7601_p11 = scmp.lt.s32.totalorder %s7599_s3, %s7594_s0 }
  0x55   : > { %p7597_p8 = pnand %p7595_p6, %p7566_p7 }
  0x56   : > { %p7602_p0 = por %p7601_p11, %p7600_p10 }
  0x57   : > { %p7598_p9 = pneg %p7597_p8 }
  0x59   : > { %p7603_p2 = pnand %p7602_p0, %p7598_p9 }
  0x5b   : > { %7606 = shalt.err (!%p7603_p2)
}
  0x5c   : > { %s11958_s5 = smov 16   ;;  %s11959_s9 = smov 256  }
  0x5d   : > { %6891 = dma.hbm_to_vmem [thread:$0]  (!%p7904_p5), %s435_s17, 8192, %s437_s8, %s424_s19, %s11959_s9, %s11959_s9, %s11958_s5  }
  0x5e   : > { %448 = sbr.rel (%p7812_p3) target bundleno = 2073 (0x819), region = 60 }
  0x63   : > { %s7945_s15 = sand.u32 1, %s7700_s14  }
  0x64   : > { %s6807_s26 = sshll.u32 %s7945_s15, 11  ;;  %s451_s0 = scalar_lea.sflag [#allocation3], %s7945_s15 }
  0x65   : > { %s7949_s28 = scalar_lea.vmem [#allocation2], %s6807_s26 }
  0x66   : > { %7667 = dma.done.wait (%p7881_p12), %s451_s0, 32768  }
  0x67   : > { %7669 = vsyncadd (%p7881_p12), %s451_s0, 4294934528  ;;  %s460_s21 = sand.u32 1, %s7807_s20   ;;  %s6808_s12 = sshll.u32 %s7945_s15, 9 }
  0x68   : > { %s461_s25 = scalar_lea.sflag [#allocation6], %s460_s21  ;;  %s7957_s29 = scalar_lea.vmem [#allocation5], %s6808_s12 }
  0x69   : > { %7671 = dma.done.wait (%p7881_p12), %s461_s25, 8192  }
  0x6a   : > { %7673 = vsyncadd (%p7881_p12), %s461_s25, 4294959104 }
  0x6b   : > { %7675 = dma.done.wait (%p53_p1), [#allocation6], 32768  }
  0x6c   : > { %7677 = vsyncadd (%p53_p1), [#allocation6], 4294934528 }
  0x6d   : > { %7679 = dma.done.wait (%p53_p1), [#allocation9], 16416  }
  0x6e   : > { %7681 = vsyncadd (%p53_p1), [#allocation9], 4294950880 }
  0x6f   : > { %7683 = dma.done.wait (%p53_p1), [#allocation12], 128  }
  0x70   : > { %7685 = vsyncadd (%p53_p1), [#allocation12], 4294967168 }
  0x71   : > { %7687 = dma.done.wait (%p53_p1), [#allocation15], 8208  }
  0x72   : > { %7689 = vsyncadd (%p53_p1), [#allocation15], 4294959088  ;;  %v842_v0 = vld [vmem:[#allocation7 + $0xf0] sm:$0xff]  ;;  %v840_v4 = vld [vmem:[#allocation7 + $0xe0] sm:$0xff]  ;;  %s6817_s27 = sshll.u32 %s7807_s20, 5  ;;  %s6816_s23 = sshll.u32 %s7945_s15, 8 }
  0x73   : > { %v874_v1 = vld [vmem:[#allocation7 + $0x1f0] sm:$0xff]  ;;  %1074 = vmatpush.msra.mxu0 %v842_v0  ;;  %v872_v5 = vld [vmem:[#allocation7 + $0x1e0] sm:$0xff]  ;;  %p549_p1 = scmp.lt.s32.totalorder %s6817_s27, 127  ;;  %s11596_s6 = scalar_lea.vmem [#allocation17], %s6816_s23 }
  0x74   : > { %v906_v2 = vld [vmem:[#allocation7 + $0x2f0] sm:$0xff]  ;;  %1187 = vmatpush.msra.mxu1 %v874_v1  ;;  %v904_v6 = vld [vmem:[#allocation7 + $0x2e0] sm:$0xff]  ;;  %v557_v1 = vld [vmem:[%s7949_s28 + $0x8] sm:$0xff]  ;;  %s6828_s18 = sshll.u32 %s7807_s20, 8  ;;  %s6611_s5 = sshll.u32 %s11596_s6, 4  ;;  %s6612_s5 = int_to_ptr.vmem [resolvable:$true] %s6611_s5 }
  0x75   : > { %v938_v3 = vld [vmem:[#allocation7 + $0x3f0] sm:$0xff]  ;;  %1300 = vmatpush.msra.mxu2 %v906_v2  ;;  %v936_v7 = vld [vmem:[#allocation7 + $0x3e0] sm:$0xff]  ;;  %1075 = vmatpush.msra.mxu0 %v840_v4  ;;  %s12350_s27 = smov (!%p549_p1, %s6817_s27), 127  ;;  %s6610_s30 = scalar_lea.hbm %s11813_s10, %s6828_s18 }
  0x76   : > { %1413 = vmatpush.msra.mxu3 %v938_v3  ;;  %v838_v8 = vld [vmem:[#allocation7 + $0xd0] sm:$0xff]  ;;  %1188 = vmatpush.msra.mxu1 %v872_v5  ;;  %v836_v12 = vld [vmem:[#allocation7 + $0xc0] sm:$0xff]  ;;  %v559_v3 = vld [vmem:[%s7949_s28 + $0x18] sm:$0xff]  ;;  %s6818_s17 = sshll.u32 %s12350_s27, 3  ;;  %s6613_s9 = sshll.u32 %s6610_s30, 4  ;;  %s6614_s9 = int_to_ptr.hbm [resolvable:$true] %s6613_s9 }
  0x77   : > { %v870_v9 = vld [vmem:[#allocation7 + $0x1d0] sm:$0xff]  ;;  %1301 = vmatpush.msra.mxu2 %v904_v6  ;;  %v868_v13 = vld [vmem:[#allocation7 + $0x1c0] sm:$0xff]  ;;  %1076 = vmatpush.msra.mxu0 %v838_v8  ;;  %s8117_s19 = scalar_lea.vmem %s11804_s1, %s6818_s17  ;;  %s6599_s20 = scalar_lea.sflag [#allocation4], %s7945_s15 }
  0x78   : > { %v902_v10 = vld [vmem:[#allocation7 + $0x2d0] sm:$0xff]  ;;  %1414 = vmatpush.msra.mxu3 %v936_v7  ;;  %1189 = vmatpush.msra.mxu1 %v870_v9  ;;  %v900_v14 = vld [vmem:[#allocation7 + $0x2c0] sm:$0xff]  ;;  %s7636_s26 = sshra.s32 %s6614_s9, 4  ;;  %s7642_s12 = scalar_lea.hbm %s11813_s10, 1024  ;;  %s7637_s26 = int_to_ptr.hbm [resolvable:$true] %s7636_s26 }
  0x79   : > { %v934_v11 = vld [vmem:[#allocation7 + $0x3d0] sm:$0xff]  ;;  %v932_v15 = vld [vmem:[#allocation7 + $0x3c0] sm:$0xff]  ;;  %1302 = vmatpush.msra.mxu2 %v902_v10  ;;  %1077 = vmatpush.msra.mxu0 %v836_v12  ;;  %s7638_s0 = scalar_lea.hbm %s7637_s26, 256  ;;  %p7643_p7 = scmp.lt.s32.totalorder %s7637_s26, %s11813_s10 }
  0x7a   : > { %1415 = vmatpush.msra.mxu3 %v934_v11  ;;  %v834_v16 = vld [vmem:[#allocation7 + $0xb0] sm:$0xff]  ;;  %1190 = vmatpush.msra.mxu1 %v868_v13  ;;  %v832_v20 = vld [vmem:[#allocation7 + $0xa0] sm:$0xff]  ;;  %p7639_p3 = scmp.ne.s32.totalorder %s7637_s26, %s7638_s0  ;;  %p7644_p6 = scmp.lt.s32.totalorder %s7642_s12, %s7638_s0 }
  0x7b   : > { %v866_v17 = vld [vmem:[#allocation7 + $0x1b0] sm:$0xff]  ;;  %1303 = vmatpush.msra.mxu2 %v900_v14  ;;  %v864_v21 = vld [vmem:[#allocation7 + $0x1a0] sm:$0xff]  ;;  %1078 = vmatpush.msra.mxu0 %v834_v16 }
  0x7c   : > { %v898_v18 = vld [vmem:[#allocation7 + $0x2b0] sm:$0xff]  ;;  %1416 = vmatpush.msra.mxu3 %v932_v15  ;;  %1191 = vmatpush.msra.mxu1 %v866_v17  ;;  %v896_v22 = vld [vmem:[#allocation7 + $0x2a0] sm:$0xff]  ;;  %v565_v17 = vld [vmem:[%s7949_s28 + $0x48] sm:$0xff]  ;;  %p7640_p12 = pnand %p7639_p3, %p7885_p13  ;;  %p7645_p8 = por %p7644_p6, %p7643_p7 }
  0x7d   : > { %v930_v19 = vld [vmem:[#allocation7 + $0x3b0] sm:$0xff]  ;;  %v928_v23 = vld [vmem:[#allocation7 + $0x3a0] sm:$0xff]  ;;  %1304 = vmatpush.msra.mxu2 %v898_v18  ;;  %1079 = vmatpush.msra.mxu0 %v832_v20 }
  0x7e   : > { %1417 = vmatpush.msra.mxu3 %v930_v19  ;;  %v830_v24 = vld [vmem:[#allocation7 + $0x90] sm:$0xff]  ;;  %1192 = vmatpush.msra.mxu1 %v864_v21  ;;  %v828_v28 = vld [vmem:[#allocation7 + $0x80] sm:$0xff]  ;;  %v567_v19 = vld [vmem:[%s7949_s28 + $0x58] sm:$0xff]  ;;  %p7641_p5 = pneg %p7640_p12 }
  0x7f   : > { %v862_v25 = vld [vmem:[#allocation7 + $0x190] sm:$0xff]  ;;  %1305 = vmatpush.msra.mxu2 %v896_v22  ;;  %v860_v29 = vld [vmem:[#allocation7 + $0x180] sm:$0xff]  ;;  %1080 = vmatpush.msra.mxu0 %v830_v24  ;;  %v573_v21 = vld [vmem:[%s7949_s28 + $0x88] sm:$0xff] }
  0x80   : > { %v894_v26 = vld [vmem:[#allocation7 + $0x290] sm:$0xff]  ;;  %1418 = vmatpush.msra.mxu3 %v928_v23  ;;  %1193 = vmatpush.msra.mxu1 %v862_v25  ;;  %v892_v30 = vld [vmem:[#allocation7 + $0x280] sm:$0xff]  ;;  %v575_v23 = vld [vmem:[%s7949_s28 + $0x98] sm:$0xff]  ;;  %p7646_p9 = pnand %p7645_p8, %p7641_p5 }
  0x81   : > { %v926_v27 = vld [vmem:[#allocation7 + $0x390] sm:$0xff]  ;;  %v924_v31 = vld [vmem:[#allocation7 + $0x380] sm:$0xff]  ;;  %1306 = vmatpush.msra.mxu2 %v894_v26  ;;  %1081 = vmatpush.msra.mxu0 %v828_v28 }
  0x82   : > { %1419 = vmatpush.msra.mxu3 %v926_v27  ;;  %v826_v32 = vld [vmem:[#allocation7 + $0x70] sm:$0xff]  ;;  %1194 = vmatpush.msra.mxu1 %v860_v29  ;;  %v824_v36 = vld [vmem:[#allocation7 + $0x60] sm:$0xff]  ;;  %v581_v29 = vld [vmem:[%s7949_s28 + $0xc8] sm:$0xff] }
  0x83   : > { %v858_v33 = vld [vmem:[#allocation7 + $0x170] sm:$0xff]  ;;  %1307 = vmatpush.msra.mxu2 %v892_v30  ;;  %v856_v37 = vld [vmem:[#allocation7 + $0x160] sm:$0xff]  ;;  %1082 = vmatpush.msra.mxu0 %v826_v32 }
  0x84   : > { %v890_v34 = vld [vmem:[#allocation7 + $0x270] sm:$0xff]  ;;  %1420 = vmatpush.msra.mxu3 %v924_v31  ;;  %1195 = vmatpush.msra.mxu1 %v858_v33  ;;  %v888_v38 = vld [vmem:[#allocation7 + $0x260] sm:$0xff]  ;;  %v583_v31 = vld [vmem:[%s7949_s28 + $0xd8] sm:$0xff] }
  0x85   : > { %v922_v35 = vld [vmem:[#allocation7 + $0x370] sm:$0xff]  ;;  %v920_v39 = vld [vmem:[#allocation7 + $0x360] sm:$0xff]  ;;  %1308 = vmatpush.msra.mxu2 %v890_v34  ;;  %1083 = vmatpush.msra.mxu0 %v824_v36  ;;  %v589_v33 = vld [vmem:[%s7949_s28 + $0x108] sm:$0xff] }
  0x86   : > { %1421 = vmatpush.msra.mxu3 %v922_v35  ;;  %v822_v40 = vld [vmem:[#allocation7 + $0x50] sm:$0xff]  ;;  %1196 = vmatpush.msra.mxu1 %v856_v37  ;;  %v820_v44 = vld [vmem:[#allocation7 + $0x40] sm:$0xff]  ;;  %v591_v35 = vld [vmem:[%s7949_s28 + $0x118] sm:$0xff] }
  0x87   : > { %v854_v41 = vld [vmem:[#allocation7 + $0x150] sm:$0xff]  ;;  %1309 = vmatpush.msra.mxu2 %v888_v38  ;;  %v852_v45 = vld [vmem:[#allocation7 + $0x140] sm:$0xff]  ;;  %1084 = vmatpush.msra.mxu0 %v822_v40 }
  0x88   : > { %v886_v42 = vld [vmem:[#allocation7 + $0x250] sm:$0xff]  ;;  %1422 = vmatpush.msra.mxu3 %v920_v39  ;;  %1197 = vmatpush.msra.mxu1 %v854_v41  ;;  %v884_v46 = vld [vmem:[#allocation7 + $0x240] sm:$0xff]  ;;  %v597_v41 = vld [vmem:[%s7949_s28 + $0x148] sm:$0xff] }
  0x89   : > { %v918_v43 = vld [vmem:[#allocation7 + $0x350] sm:$0xff]  ;;  %v916_v47 = vld [vmem:[#allocation7 + $0x340] sm:$0xff]  ;;  %1310 = vmatpush.msra.mxu2 %v886_v42  ;;  %1085 = vmatpush.msra.mxu0 %v820_v44 }
  0x8a   : > { %1423 = vmatpush.msra.mxu3 %v918_v43  ;;  %v818_v48 = vld [vmem:[#allocation7 + $0x30] sm:$0xff]  ;;  %1198 = vmatpush.msra.mxu1 %v852_v45  ;;  %v816_v52 = vld [vmem:[#allocation7 + $0x20] sm:$0xff]  ;;  %v599_v43 = vld [vmem:[%s7949_s28 + $0x158] sm:$0xff] }
  0x8b   : > { %v850_v49 = vld [vmem:[#allocation7 + $0x130] sm:$0xff]  ;;  %1311 = vmatpush.msra.mxu2 %v884_v46  ;;  %v848_v53 = vld [vmem:[#allocation7 + $0x120] sm:$0xff]  ;;  %1086 = vmatpush.msra.mxu0 %v818_v48  ;;  %v605_v45 = vld [vmem:[%s7949_s28 + $0x188] sm:$0xff] }
  0x8c   : > { %v882_v50 = vld [vmem:[#allocation7 + $0x230] sm:$0xff]  ;;  %1424 = vmatpush.msra.mxu3 %v916_v47  ;;  %1199 = vmatpush.msra.mxu1 %v850_v49  ;;  %v880_v54 = vld [vmem:[#allocation7 + $0x220] sm:$0xff]  ;;  %v607_v47 = vld [vmem:[%s7949_s28 + $0x198] sm:$0xff] }
  0x8d   : > { %v914_v51 = vld [vmem:[#allocation7 + $0x330] sm:$0xff]  ;;  %v912_v55 = vld [vmem:[#allocation7 + $0x320] sm:$0xff]  ;;  %1312 = vmatpush.msra.mxu2 %v882_v50  ;;  %1087 = vmatpush.msra.mxu0 %v816_v52 }
  0x8e   : > { %1425 = vmatpush.msra.mxu3 %v914_v51  ;;  %v814_v56 = vld [vmem:[#allocation7 + $0x10] sm:$0xff]  ;;  %1200 = vmatpush.msra.mxu1 %v848_v53  ;;  %v812_v60 = vld [vmem:[#allocation7] sm:$0xff]  ;;  %v613_v53 = vld [vmem:[%s7949_s28 + $0x1c8] sm:$0xff] }
  0x8f   : > { %v846_v57 = vld [vmem:[#allocation7 + $0x110] sm:$0xff]  ;;  %1313 = vmatpush.msra.mxu2 %v880_v54  ;;  %v844_v61 = vld [vmem:[#allocation7 + $0x100] sm:$0xff]  ;;  %1088 = vmatpush.msra.mxu0 %v814_v56 }
  0x90   : > { %v878_v58 = vld [vmem:[#allocation7 + $0x210] sm:$0xff]  ;;  %1426 = vmatpush.msra.mxu3 %v912_v55  ;;  %1201 = vmatpush.msra.mxu1 %v846_v57  ;;  %v876_v62 = vld [vmem:[#allocation7 + $0x200] sm:$0xff]  ;;  %v615_v55 = vld [vmem:[%s7949_s28 + $0x1d8] sm:$0xff] }
  0x91   : > { %v910_v59 = vld [vmem:[#allocation7 + $0x310] sm:$0xff]  ;;  %v908_v63 = vld [vmem:[#allocation7 + $0x300] sm:$0xff]  ;;  %1314 = vmatpush.msra.mxu2 %v878_v58  ;;  %1089 = vmatpush.msra.mxu0 %v812_v60  ;;  %v621_v57 = vld [vmem:[%s7949_s28 + $0x208] sm:$0xff] }
  0x92   : > { %1427 = vmatpush.msra.mxu3 %v910_v59  ;;  %v556_v0 = vld [vmem:[%s7949_s28] sm:$0xff]  ;;  %1202 = vmatpush.msra.mxu1 %v844_v61  ;;  %v558_v2 = vld [vmem:[%s7949_s28 + $0x10] sm:$0xff]  ;;  %v623_v59 = vld [vmem:[%s7949_s28 + $0x218] sm:$0xff] }
  0x93   : > { %1315 = vmatpush.msra.mxu2 %v876_v62  ;;  %v1034_v4 = vld [vmem:[#allocation7 + $0x6f0] sm:$0xff]  ;;  %1090 = vmatmul.f32.vlgmr.msra.gmra.mxu0 %v556_v0  ;;  %v1032_v8 = vld [vmem:[#allocation7 + $0x6e0] sm:$0xff] }
  0x94   : > { %1428 = vmatpush.msra.mxu3 %v908_v63  ;;  %v970_v5 = vld [vmem:[#allocation7 + $0x4f0] sm:$0xff]  ;;  %1203 = vmatmul.f32.vlgmr.msra.gmra.mxu1 %v557_v1  ;;  %v968_v9 = vld [vmem:[#allocation7 + $0x4e0] sm:$0xff]  ;;  %v629_v1 = vld [vmem:[%s7949_s28 + $0x248] sm:$0xff] }
  0x95   : > { %v1066_v6 = vld [vmem:[#allocation7 + $0x7f0] sm:$0xff]  ;;  %1316 = vmatmul.f32.vlgmr.msra.gmra.mxu2 %v558_v2  ;;  %1429 = vmatmul.f32.vlgmr.msra.gmra.mxu3 %v559_v3  ;;  %v1064_v10 = vld [vmem:[#allocation7 + $0x7e0] sm:$0xff]  ;;  %v631_v3 = vld [vmem:[%s7949_s28 + $0x258] sm:$0xff] }
  0x96   : > { %v1002_v7 = vld [vmem:[#allocation7 + $0x5f0] sm:$0xff]  ;;  %1752 = vmatpush.msrb.mxu2 %v1034_v4  ;;  %1526 = vmatpush.msrb.mxu0 %v970_v5  ;;  %v1000_v11 = vld [vmem:[#allocation7 + $0x5e0] sm:$0xff]  ;;  %v637_v5 = vld [vmem:[%s7949_s28 + $0x288] sm:$0xff] }
  0x97   : > { %1865 = vmatpush.msrb.mxu3 %v1066_v6  ;;  %1639 = vmatpush.msrb.mxu1 %v1002_v7  ;;  %v1030_v12 = vld [vmem:[#allocation7 + $0x6d0] sm:$0xff]  ;;  %v564_v16 = vld [vmem:[%s7949_s28 + $0x40] sm:$0xff]  ;;  %v639_v7 = vld [vmem:[%s7949_s28 + $0x298] sm:$0xff] }
  0x98   : > { %v966_v13 = vld [vmem:[#allocation7 + $0x4d0] sm:$0xff]  ;;  %1753 = vmatpush.msrb.mxu2 %v1032_v8  ;;  %1527 = vmatpush.msrb.mxu0 %v968_v9  ;;  %v572_v20 = vld [vmem:[%s7949_s28 + $0x80] sm:$0xff] }
  0x99   : > { %v1062_v14 = vld [vmem:[#allocation7 + $0x7d0] sm:$0xff]  ;;  %1866 = vmatpush.msrb.mxu3 %v1064_v10  ;;  %1640 = vmatpush.msrb.mxu1 %v1000_v11  ;;  %v1028_v24 = vld [vmem:[#allocation7 + $0x6c0] sm:$0xff] }
  0x9a   : > { %v998_v15 = vld [vmem:[#allocation7 + $0x5d0] sm:$0xff]  ;;  %1754 = vmatpush.msrb.mxu2 %v1030_v12  ;;  %1528 = vmatpush.msrb.mxu0 %v966_v13  ;;  %v964_v25 = vld [vmem:[#allocation7 + $0x4c0] sm:$0xff]  ;;  %v645_v13 = vld [vmem:[%s7949_s28 + $0x2c8] sm:$0xff] }
  0x9b   : > { %v566_v18 = vld [vmem:[%s7949_s28 + $0x50] sm:$0xff]  ;;  %1867 = vmatpush.msrb.mxu3 %v1062_v14  ;;  %1641 = vmatpush.msrb.mxu1 %v998_v15  ;;  %v1060_v26 = vld [vmem:[#allocation7 + $0x7c0] sm:$0xff]  ;;  %v647_v15 = vld [vmem:[%s7949_s28 + $0x2d8] sm:$0xff] }
  0x9c   : > { %1093 = vmatmul.f32.gmra.mxu0 %v564_v16  ;;  %1206 = vmatmul.f32.gmra.mxu1 %v565_v17  ;;  %v574_v22 = vld [vmem:[%s7949_s28 + $0x90] sm:$0xff]  ;;  %v996_v27 = vld [vmem:[#allocation7 + $0x5c0] sm:$0xff]  ;;  %v653_v17 = vld [vmem:[%s7949_s28 + $0x308] sm:$0xff] }
  0x9d   : > { %1319 = vmatmul.f32.gmra.mxu2 %v566_v18  ;;  %1432 = vmatmul.f32.gmra.mxu3 %v567_v19  ;;  %v580_v28 = vld [vmem:[%s7949_s28 + $0xc0] sm:$0xff]  ;;  %v582_v30 = vld [vmem:[%s7949_s28 + $0xd0] sm:$0xff]  ;;  %v655_v19 = vld [vmem:[%s7949_s28 + $0x318] sm:$0xff] }
  0x9e   : > { %1755 = vmatpush.msrb.mxu2 %v1028_v24  ;;  %1529 = vmatpush.msrb.mxu0 %v964_v25  ;;  %v588_v32 = vld [vmem:[%s7949_s28 + $0x100] sm:$0xff]  ;;  %v590_v34 = vld [vmem:[%s7949_s28 + $0x110] sm:$0xff]  ;;  %v661_v24 = vld [vmem:[%s7949_s28 + $0x348] sm:$0xff] }
  0x9f   : > { %1868 = vmatpush.msrb.mxu3 %v1060_v26  ;;  %1642 = vmatpush.msrb.mxu1 %v996_v27  ;;  %v1026_v36 = vld [vmem:[#allocation7 + $0x6b0] sm:$0xff]  ;;  %v596_v40 = vld [vmem:[%s7949_s28 + $0x140] sm:$0xff]  ;;  %v663_v26 = vld [vmem:[%s7949_s28 + $0x358] sm:$0xff] }
  0xa0   : > { %v962_v37 = vld [vmem:[#allocation7 + $0x4b0] sm:$0xff]  ;;  %1756 = vmatpush.msrb.mxu2 %v1026_v36  ;;  %v604_v44 = vld [vmem:[%s7949_s28 + $0x180] sm:$0xff]  ;;  %v677_v36 = vld [vmem:[%s7949_s28 + $0x3c8] sm:$0xff] }
  0xa1   : > { %v1058_v38 = vld [vmem:[#allocation7 + $0x7b0] sm:$0xff]  ;;  %1530 = vmatpush.msrb.mxu0 %v962_v37  ;;  %v1024_v48 = vld [vmem:[#allocation7 + $0x6a0] sm:$0xff] }
  0xa2   : > { %v994_v39 = vld [vmem:[#allocation7 + $0x5b0] sm:$0xff]  ;;  %1869 = vmatpush.msrb.mxu3 %v1058_v38  ;;  %v960_v49 = vld [vmem:[#allocation7 + $0x4a0] sm:$0xff]  ;;  %1757 = vmatpush.msrb.mxu2 %v1024_v48  ;;  %v679_v38 = vld [vmem:[%s7949_s28 + $0x3d8] sm:$0xff] }
  0xa3   : > { %1643 = vmatpush.msrb.mxu1 %v994_v39  ;;  %v598_v42 = vld [vmem:[%s7949_s28 + $0x150] sm:$0xff]  ;;  %v1056_v50 = vld [vmem:[#allocation7 + $0x7a0] sm:$0xff]  ;;  %1531 = vmatpush.msrb.mxu0 %v960_v49  ;;  %v687_v48 = vld [vmem:[%s7949_s28 + $0x418] sm:$0xff] }
  0xa4   : > { %1096 = vmatmul.f32.gmra.mxu0 %v572_v20  ;;  %1209 = vmatmul.f32.gmra.mxu1 %v573_v21  ;;  %v606_v46 = vld [vmem:[%s7949_s28 + $0x190] sm:$0xff]  ;;  %v992_v51 = vld [vmem:[#allocation7 + $0x5a0] sm:$0xff] }
  0xa5   : > { %1322 = vmatmul.f32.gmra.mxu2 %v574_v22  ;;  %1435 = vmatmul.f32.gmra.mxu3 %v575_v23  ;;  %v612_v52 = vld [vmem:[%s7949_s28 + $0x1c0] sm:$0xff]  ;;  %v614_v54 = vld [vmem:[%s7949_s28 + $0x1d0] sm:$0xff] }
  0xa6   : > { %1870 = vmatpush.msrb.mxu3 %v1056_v50  ;;  %1644 = vmatpush.msrb.mxu1 %v992_v51  ;;  %v620_v56 = vld [vmem:[%s7949_s28 + $0x200] sm:$0xff]  ;;  %v622_v58 = vld [vmem:[%s7949_s28 + $0x210] sm:$0xff] }
  0xa7   : > { %v1022_v60 = vld [vmem:[#allocation7 + $0x690] sm:$0xff]  ;;  %v628_v0 = vld [vmem:[%s7949_s28 + $0x240] sm:$0xff] }
  0xa8   : > { %v958_v61 = vld [vmem:[#allocation7 + $0x490] sm:$0xff]  ;;  %1758 = vmatpush.msrb.mxu2 %v1022_v60  ;;  %v636_v4 = vld [vmem:[%s7949_s28 + $0x280] sm:$0xff] }
  0xa9   : > { %v1054_v62 = vld [vmem:[#allocation7 + $0x790] sm:$0xff]  ;;  %1532 = vmatpush.msrb.mxu0 %v958_v61  ;;  %v1020_v8 = vld [vmem:[#allocation7 + $0x680] sm:$0xff] }
  0xaa   : > { %v990_v63 = vld [vmem:[#allocation7 + $0x590] sm:$0xff]  ;;  %1871 = vmatpush.msrb.mxu3 %v1054_v62  ;;  %v956_v9 = vld [vmem:[#allocation7 + $0x480] sm:$0xff]  ;;  %1759 = vmatpush.msrb.mxu2 %v1020_v8  ;;  %v695_v62 = vld [vmem:[%s7949_s28 + $0x458] sm:$0xff] }
  0xab   : > { %1645 = vmatpush.msrb.mxu1 %v990_v63  ;;  %v630_v2 = vld [vmem:[%s7949_s28 + $0x250] sm:$0xff]  ;;  %v1052_v10 = vld [vmem:[#allocation7 + $0x780] sm:$0xff]  ;;  %1533 = vmatpush.msrb.mxu0 %v956_v9  ;;  %v701_v8 = vld [vmem:[%s7949_s28 + $0x488] sm:$0xff] }
  0xac   : > { %1099 = vmatmul.f32.gmra.mxu0 %v580_v28  ;;  %1212 = vmatmul.f32.gmra.mxu1 %v581_v29  ;;  %v638_v6 = vld [vmem:[%s7949_s28 + $0x290] sm:$0xff]  ;;  %v988_v11 = vld [vmem:[#allocation7 + $0x580] sm:$0xff]  ;;  %v669_v29 = vld [vmem:[%s7949_s28 + $0x388] sm:$0xff] }
  0xad   : > { %1325 = vmatmul.f32.gmra.mxu2 %v582_v30  ;;  %1438 = vmatmul.f32.gmra.mxu3 %v583_v31  ;;  %v644_v12 = vld [vmem:[%s7949_s28 + $0x2c0] sm:$0xff]  ;;  %v646_v14 = vld [vmem:[%s7949_s28 + $0x2d0] sm:$0xff]  ;;  %v671_v31 = vld [vmem:[%s7949_s28 + $0x398] sm:$0xff] }
  0xae   : > { %1872 = vmatpush.msrb.mxu3 %v1052_v10  ;;  %1646 = vmatpush.msrb.mxu1 %v988_v11  ;;  %v652_v16 = vld [vmem:[%s7949_s28 + $0x300] sm:$0xff]  ;;  %v654_v18 = vld [vmem:[%s7949_s28 + $0x310] sm:$0xff]  ;;  %v703_v11 = vld [vmem:[%s7949_s28 + $0x498] sm:$0xff] }
  0xaf   : > { %v1018_v20 = vld [vmem:[#allocation7 + $0x670] sm:$0xff]  ;;  %v660_v23 = vld [vmem:[%s7949_s28 + $0x340] sm:$0xff] }
  0xb0   : > { %v954_v21 = vld [vmem:[#allocation7 + $0x470] sm:$0xff]  ;;  %1760 = vmatpush.msrb.mxu2 %v1018_v20  ;;  %v668_v28 = vld [vmem:[%s7949_s28 + $0x380] sm:$0xff] }
  0xb1   : > { %1534 = vmatpush.msrb.mxu0 %v954_v21  ;;  %v1050_v22 = vld [vmem:[#allocation7 + $0x770] sm:$0xff]  ;;  %v1068_v39 = vld [vmem:[#allocation8] sm:$0x3] }
  0xb2   : > { %1873 = vmatpush.msrb.mxu3 %v1050_v22  ;;  %v662_v25 = vld [vmem:[%s7949_s28 + $0x350] sm:$0xff]  ;;  %v708_v22 = vld [vmem:[%s7949_s28 + $0x4c0] sm:$0xff] }
  0xb3   : > { %v986_v27 = vld [vmem:[#allocation7 + $0x570] sm:$0xff] }
  0xb4   : > { %1102 = vmatmul.f32.gmra.mxu0 %v588_v32  ;;  %1215 = vmatmul.f32.gmra.mxu1 %v589_v33  ;;  %v670_v30 = vld [vmem:[%s7949_s28 + $0x390] sm:$0xff]  ;;  %v1016_v32 = vld [vmem:[#allocation7 + $0x660] sm:$0xff] }
  0xb5   : > { %1328 = vmatmul.f32.gmra.mxu2 %v590_v34  ;;  %1441 = vmatmul.f32.gmra.mxu3 %v591_v35  ;;  %v952_v33 = vld [vmem:[#allocation7 + $0x460] sm:$0xff]  ;;  %v678_v37 = vld [vmem:[%s7949_s28 + $0x3d0] sm:$0xff] }
  0xb6   : > { %1647 = vmatpush.msrb.mxu1 %v986_v27  ;;  %1761 = vmatpush.msrb.mxu2 %v1016_v32  ;;  %v1048_v34 = vld [vmem:[#allocation7 + $0x760] sm:$0xff]  ;;  %v1014_v50 = vld [vmem:[#allocation7 + $0x650] sm:$0xff] }
  0xb7   : > { %1535 = vmatpush.msrb.mxu0 %v952_v33  ;;  %1874 = vmatpush.msrb.mxu3 %v1048_v34  ;;  %v676_v35 = vld [vmem:[%s7949_s28 + $0x3c0] sm:$0xff]  ;;  %v950_v51 = vld [vmem:[#allocation7 + $0x450] sm:$0xff] }
  0xb8   : > { %1762 = vmatpush.msrb.mxu2 %v1014_v50  ;;  %v694_v61 = vld [vmem:[%s7949_s28 + $0x450] sm:$0xff] }
  0xb9   : > { %1536 = vmatpush.msrb.mxu0 %v950_v51  ;;  %v702_v10 = vld [vmem:[%s7949_s28 + $0x490] sm:$0xff]  ;;  %v724_v51 = vld [vmem:[%s7949_s28 + $0x540] sm:$0xff] }
  0xbc   : > { %1105 = vmatmul.f32.gmra.mxu0 %v596_v40  ;;  %1218 = vmatmul.f32.gmra.mxu1 %v597_v41  ;;  %v984_v40 = vld [vmem:[#allocation7 + $0x560] sm:$0xff]  ;;  %v8043_v41 = vperm.slane %v1068_v39, 0  ;;  %v719_v39 = vld [vmem:[%s7949_s28 + $0x518] sm:$0xff] }
  0xbd   : > { %1331 = vmatmul.f32.gmra.mxu2 %v598_v42  ;;  %1444 = vmatmul.f32.gmra.mxu3 %v599_v43 }
  0xbe   : > { %1648 = vmatpush.msrb.mxu1 %v984_v40 }
  0xc4   : > { %1108 = vmatmul.f32.gmra.mxu0 %v604_v44  ;;  %1221 = vmatmul.f32.gmra.mxu1 %v605_v45  ;;  %v684_v44 = vld [vmem:[%s7949_s28 + $0x400] sm:$0xff]  ;;  %v685_v45 = vld [vmem:[%s7949_s28 + $0x408] sm:$0xff] }
  0xc5   : > { %1334 = vmatmul.f32.gmra.mxu2 %v606_v46  ;;  %1447 = vmatmul.f32.gmra.mxu3 %v607_v47  ;;  %v686_v47 = vld [vmem:[%s7949_s28 + $0x410] sm:$0xff] }
  0xcc   : > { %1111 = vmatmul.f32.gmra.mxu0 %v612_v52  ;;  %1224 = vmatmul.f32.gmra.mxu1 %v613_v53  ;;  %v1046_v52 = vld [vmem:[#allocation7 + $0x750] sm:$0xff] }
  0xcd   : > { %1337 = vmatmul.f32.gmra.mxu2 %v614_v54  ;;  %1450 = vmatmul.f32.gmra.mxu3 %v615_v55 }
  0xce   : > { %1875 = vmatpush.msrb.mxu3 %v1046_v52  ;;  %v725_v52 = vld [vmem:[%s7949_s28 + $0x548] sm:$0xff] }
  0xd4   : > { %1114 = vmatmul.f32.gmra.mxu0 %v620_v56  ;;  %1227 = vmatmul.f32.gmra.mxu1 %v621_v57 }
  0xd5   : > { %1340 = vmatmul.f32.gmra.mxu2 %v622_v58  ;;  %1453 = vmatmul.f32.gmra.mxu3 %v623_v59  ;;  %v692_v58 = vld [vmem:[%s7949_s28 + $0x440] sm:$0xff]  ;;  %v693_v59 = vld [vmem:[%s7949_s28 + $0x448] sm:$0xff] }
  0xdc   : > { %1117 = vmatmul.f32.gmra.mxu0 %v628_v0  ;;  %1230 = vmatmul.f32.gmra.mxu1 %v629_v1  ;;  %v982_v0 = vld [vmem:[#allocation7 + $0x550] sm:$0xff] }
  0xdd   : > { %1343 = vmatmul.f32.gmra.mxu2 %v630_v2  ;;  %1456 = vmatmul.f32.gmra.mxu3 %v631_v3 }
  0xde   : > { %1649 = vmatpush.msrb.mxu1 %v982_v0 }
  0xe4   : > { %1120 = vmatmul.f32.gmra.mxu0 %v636_v4  ;;  %1233 = vmatmul.f32.gmra.mxu1 %v637_v5 }
  0xe5   : > { %1346 = vmatmul.f32.gmra.mxu2 %v638_v6  ;;  %1459 = vmatmul.f32.gmra.mxu3 %v639_v7  ;;  %v700_v7 = vld [vmem:[%s7949_s28 + $0x480] sm:$0xff] }
  0xec   : > { %1123 = vmatmul.f32.gmra.mxu0 %v644_v12  ;;  %1236 = vmatmul.f32.gmra.mxu1 %v645_v13 }
  0xed   : > { %1349 = vmatmul.f32.gmra.mxu2 %v646_v14  ;;  %1462 = vmatmul.f32.gmra.mxu3 %v647_v15  ;;  %v1012_v14 = vld [vmem:[#allocation7 + $0x640] sm:$0xff] }
  0xee   : > { %v948_v15 = vld [vmem:[#allocation7 + $0x440] sm:$0xff]  ;;  %1763 = vmatpush.msrb.mxu2 %v1012_v14 }
  0xef   : > { %1537 = vmatpush.msrb.mxu0 %v948_v15 }
  0xf4   : > { %1126 = vmatmul.f32.gmra.mxu0 %v652_v16  ;;  %1239 = vmatmul.f32.gmra.mxu1 %v653_v17  ;;  %v1044_v16 = vld [vmem:[#allocation7 + $0x740] sm:$0xff] }
  0xf5   : > { %1352 = vmatmul.f32.gmra.mxu2 %v654_v18  ;;  %1465 = vmatmul.f32.gmra.mxu3 %v655_v19 }
  0xf6   : > { %1876 = vmatpush.msrb.mxu3 %v1044_v16 }
  0xfc   : > { %1129 = vmatmul.f32.gmra.mxu0 %v660_v23  ;;  %1242 = vmatmul.f32.gmra.mxu1 %v661_v24  ;;  %v709_v23 = vld [vmem:[%s7949_s28 + $0x4c8] sm:$0xff] }
  0xfd   : > { %1355 = vmatmul.f32.gmra.mxu2 %v662_v25  ;;  %1468 = vmatmul.f32.gmra.mxu3 %v663_v26  ;;  %v710_v25 = vld [vmem:[%s7949_s28 + $0x4d0] sm:$0xff]  ;;  %v711_v26 = vld [vmem:[%s7949_s28 + $0x4d8] sm:$0xff] }
 0x104   : > { %1132 = vmatmul.f32.gmra.mxu0 %v668_v28  ;;  %1245 = vmatmul.f32.gmra.mxu1 %v669_v29  ;;  %v980_v28 = vld [vmem:[#allocation7 + $0x540] sm:$0xff] }
 0x105   : > { %1358 = vmatmul.f32.gmra.mxu2 %v670_v30  ;;  %1471 = vmatmul.f32.gmra.mxu3 %v671_v31 }
 0x106   : > { %1650 = vmatpush.msrb.mxu1 %v980_v28 }
 0x10c   : > { %1135 = vmatmul.f32.gmra.mxu0 %v676_v35  ;;  %1248 = vmatmul.f32.gmra.mxu1 %v677_v36  ;;  %v716_v35 = vld [vmem:[%s7949_s28 + $0x500] sm:$0xff]  ;;  %v717_v36 = vld [vmem:[%s7949_s28 + $0x508] sm:$0xff] }
 0x10d   : > { %1361 = vmatmul.f32.gmra.mxu2 %v678_v37  ;;  %1474 = vmatmul.f32.gmra.mxu3 %v679_v38  ;;  %v718_v38 = vld [vmem:[%s7949_s28 + $0x510] sm:$0xff] }
 0x110   : > { %v1091_v42 = vpop.f32.mrf.mxu0 }
 0x111   : > { %v1204_v43 = vpop.f32.mrf.mxu1  ;;  %v1092_v46 = vadd.f32 %v1091_v42, %v8043_v41 }
 0x113   : > { %v1205_v49 = vadd.f32 %v1204_v43, %v1092_v46  ;;  %v1010_v43 = vld [vmem:[#allocation7 + $0x630] sm:$0xff] }
 0x114   : > { %1138 = vmatmul.f32.gmra.mxu0 %v684_v44  ;;  %1251 = vmatmul.f32.gmra.mxu1 %v685_v45  ;;  %v946_v44 = vld [vmem:[#allocation7 + $0x430] sm:$0xff] }
 0x115   : > { %1364 = vmatmul.f32.gmra.mxu2 %v686_v47  ;;  %1477 = vmatmul.f32.gmra.mxu3 %v687_v48  ;;  %v1042_v45 = vld [vmem:[#allocation7 + $0x730] sm:$0xff] }
 0x116   : > { %1764 = vmatpush.msrb.mxu2 %v1010_v43  ;;  %1538 = vmatpush.msrb.mxu0 %v946_v44 }
 0x117   : > { %1877 = vmatpush.msrb.mxu3 %v1042_v45 }
 0x118   : > { %v1317_v53 = vpop.f32.mrf.mxu2  ;;  %v1430_v54 = vpop.f32.mrf.mxu3 }
 0x119   : > { %v1318_v55 = vadd.f32 %v1317_v53, %v1205_v49  ;;  %v1094_v56 = vpop.f32.mrf.mxu0  ;;  %v1207_v57 = vpop.f32.mrf.mxu1 }
 0x11a   : > { %v1095_v60 = vadd.f32 %v1094_v56, %v8043_v41 }
 0x11b   : > { %v8055_v63 = vadd.f32 %v1430_v54, %v1318_v55  ;;  %v726_v54 = vld [vmem:[%s7949_s28 + $0x550] sm:$0xff]  ;;  %v727_v55 = vld [vmem:[%s7949_s28 + $0x558] sm:$0xff] }
 0x11c   : > { %1141 = vmatmul.f32.gmra.mxu0 %v692_v58  ;;  %1254 = vmatmul.f32.gmra.mxu1 %v693_v59  ;;  %v1208_v1 = vadd.f32 %v1207_v57, %v1095_v60  ;;  %v978_v57 = vld [vmem:[#allocation7 + $0x530] sm:$0xff] }
 0x11d   : > { %1367 = vmatmul.f32.gmra.mxu2 %v694_v61  ;;  %1480 = vmatmul.f32.gmra.mxu3 %v695_v62 }
 0x11e   : > { %1651 = vmatpush.msrb.mxu1 %v978_v57 }
 0x120   : > { %v1320_v2 = vpop.f32.mrf.mxu2  ;;  %v1433_v3 = vpop.f32.mrf.mxu3 }
 0x121   : > { %v1321_v4 = vadd.f32 %v1320_v2, %v1208_v1  ;;  %v1097_v5 = vpop.f32.mrf.mxu0  ;;  %v1210_v6 = vpop.f32.mrf.mxu1  ;;  %v732_v1 = vld [vmem:[%s7949_s28 + $0x580] sm:$0xff]  ;;  %v733_v2 = vld [vmem:[%s7949_s28 + $0x588] sm:$0xff] }
 0x122   : > { %v1098_v9 = vadd.f32 %v1097_v5, %v8043_v41  ;;  %v735_v5 = vld [vmem:[%s7949_s28 + $0x598] sm:$0xff] }
 0x123   : > { %v8062_v12 = vadd.f32 %v1433_v3, %v1321_v4  ;;  %v734_v4 = vld [vmem:[%s7949_s28 + $0x590] sm:$0xff] }
 0x124   : > { %1144 = vmatmul.f32.gmra.mxu0 %v700_v7  ;;  %1257 = vmatmul.f32.gmra.mxu1 %v701_v8  ;;  %v1211_v13 = vadd.f32 %v1210_v6, %v1098_v9  ;;  %v1008_v8 = vld [vmem:[#allocation7 + $0x620] sm:$0xff] }
 0x125   : > { %1370 = vmatmul.f32.gmra.mxu2 %v702_v10  ;;  %1483 = vmatmul.f32.gmra.mxu3 %v703_v11  ;;  %v944_v9 = vld [vmem:[#allocation7 + $0x420] sm:$0xff] }
 0x126   : > { %1765 = vmatpush.msrb.mxu2 %v1008_v8  ;;  %1539 = vmatpush.msrb.mxu0 %v944_v9  ;;  %v1040_v10 = vld [vmem:[#allocation7 + $0x720] sm:$0xff] }
 0x127   : > { %1878 = vmatpush.msrb.mxu3 %v1040_v10  ;;  %v1004_v10 = vld [vmem:[#allocation7 + $0x600] sm:$0xff] }
 0x128   : > { %v1323_v17 = vpop.f32.mrf.mxu2  ;;  %v1436_v18 = vpop.f32.mrf.mxu3 }
 0x129   : > { %v1324_v19 = vadd.f32 %v1323_v17, %v1211_v13  ;;  %v1100_v20 = vpop.f32.mrf.mxu0  ;;  %v1213_v21 = vpop.f32.mrf.mxu1  ;;  %v740_v17 = vld [vmem:[%s7949_s28 + $0x5c0] sm:$0xff] }
 0x12a   : > { %v1101_v24 = vadd.f32 %v1100_v20, %v8043_v41  ;;  %v742_v20 = vld [vmem:[%s7949_s28 + $0x5d0] sm:$0xff] }
 0x12b   : > { %v8069_v27 = vadd.f32 %v1436_v18, %v1324_v19  ;;  %v741_v18 = vld [vmem:[%s7949_s28 + $0x5c8] sm:$0xff] }
 0x12c   : > { %1147 = vmatmul.f32.gmra.mxu0 %v708_v22  ;;  %1260 = vmatmul.f32.gmra.mxu1 %v709_v23  ;;  %v1214_v29 = vadd.f32 %v1213_v21, %v1101_v24  ;;  %v743_v21 = vld [vmem:[%s7949_s28 + $0x5d8] sm:$0xff]  ;;  %v976_v23 = vld [vmem:[#allocation7 + $0x520] sm:$0xff] }
 0x12d   : > { %1373 = vmatmul.f32.gmra.mxu2 %v710_v25  ;;  %1486 = vmatmul.f32.gmra.mxu3 %v711_v26 }
 0x12e   : > { %1652 = vmatpush.msrb.mxu1 %v976_v23  ;;  %v772_v23 = vld [vmem:[%s7949_s28 + $0x6c0] sm:$0xff] }
 0x130   : > { %v1326_v30 = vpop.f32.mrf.mxu2  ;;  %v1439_v31 = vpop.f32.mrf.mxu3 }
 0x131   : > { %v1327_v32 = vadd.f32 %v1326_v30, %v1214_v29  ;;  %v1103_v33 = vpop.f32.mrf.mxu0  ;;  %v1216_v34 = vpop.f32.mrf.mxu1 }
 0x132   : > { %v1104_v37 = vadd.f32 %v1103_v33, %v8043_v41 }
 0x133   : > { %v8076_v40 = vadd.f32 %v1439_v31, %v1327_v32  ;;  %v748_v31 = vld [vmem:[%s7949_s28 + $0x600] sm:$0xff]  ;;  %v749_v32 = vld [vmem:[%s7949_s28 + $0x608] sm:$0xff] }
 0x134   : > { %1150 = vmatmul.f32.gmra.mxu0 %v716_v35  ;;  %1263 = vmatmul.f32.gmra.mxu1 %v717_v36  ;;  %v1217_v42 = vadd.f32 %v1216_v34, %v1104_v37  ;;  %v750_v34 = vld [vmem:[%s7949_s28 + $0x610] sm:$0xff]  ;;  %v751_v35 = vld [vmem:[%s7949_s28 + $0x618] sm:$0xff] }
 0x135   : > { %1376 = vmatmul.f32.gmra.mxu2 %v718_v38  ;;  %1489 = vmatmul.f32.gmra.mxu3 %v719_v39  ;;  %v1006_v38 = vld [vmem:[#allocation7 + $0x610] sm:$0xff] }
 0x136   : > { %v942_v39 = vld [vmem:[#allocation7 + $0x410] sm:$0xff]  ;;  %1766 = vmatpush.msrb.mxu2 %v1006_v38 }
 0x137   : > { %1540 = vmatpush.msrb.mxu0 %v942_v39 }
 0x138   : > { %v1329_v46 = vpop.f32.mrf.mxu2  ;;  %v1442_v47 = vpop.f32.mrf.mxu3  ;;  %1767 = vmatpush.msrb.mxu2 %v1004_v10  ;;  %v789_v10 = vld [vmem:[%s7949_s28 + $0x748] sm:$0xff] }
 0x139   : > { %v1330_v48 = vadd.f32 %v1329_v46, %v1217_v42  ;;  %v1106_v49 = vpop.f32.mrf.mxu0  ;;  %v1219_v50 = vpop.f32.mrf.mxu1  ;;  %v1038_v42 = vld [vmem:[#allocation7 + $0x710] sm:$0xff] }
 0x13a   : > { %v1107_v53 = vadd.f32 %v1106_v49, %v8043_v41  ;;  %1879 = vmatpush.msrb.mxu3 %v1038_v42  ;;  %v757_v49 = vld [vmem:[%s7949_s28 + $0x648] sm:$0xff] }
 0x13b   : > { %v8083_v56 = vadd.f32 %v1442_v47, %v1330_v48  ;;  %v756_v48 = vld [vmem:[%s7949_s28 + $0x640] sm:$0xff] }
 0x13c   : > { %1153 = vmatmul.f32.gmra.mxu0 %v724_v51  ;;  %1266 = vmatmul.f32.gmra.mxu1 %v725_v52  ;;  %v1220_v58 = vadd.f32 %v1219_v50, %v1107_v53  ;;  %v758_v51 = vld [vmem:[%s7949_s28 + $0x650] sm:$0xff]  ;;  %v759_v52 = vld [vmem:[%s7949_s28 + $0x658] sm:$0xff] }
 0x13d   : > { %1379 = vmatmul.f32.gmra.mxu2 %v726_v54  ;;  %1492 = vmatmul.f32.gmra.mxu3 %v727_v55  ;;  %v974_v54 = vld [vmem:[#allocation7 + $0x510] sm:$0xff] }
 0x13e   : > { %1653 = vmatpush.msrb.mxu1 %v974_v54 }
 0x140   : > { %v1332_v59 = vpop.f32.mrf.mxu2  ;;  %v1445_v60 = vpop.f32.mrf.mxu3 }
 0x141   : > { %v1333_v61 = vadd.f32 %v1332_v59, %v1220_v58  ;;  %v1109_v62 = vpop.f32.mrf.mxu0  ;;  %v1222_v0 = vpop.f32.mrf.mxu1  ;;  %v2882_v59 = vld [vmem:[%s8117_s19] sm:$0xff] }
 0x142   : > { %v1110_v3 = vadd.f32 %v1109_v62, %v8043_v41 }
 0x143   : > { %v8090_v6 = vadd.f32 %v1445_v60, %v1333_v61 }
 0x144   : > { %1156 = vmatmul.f32.gmra.mxu0 %v732_v1  ;;  %1269 = vmatmul.f32.gmra.mxu1 %v733_v2  ;;  %v1223_v7 = vadd.f32 %v1222_v0, %v1110_v3  ;;  %v764_v0 = vld [vmem:[%s7949_s28 + $0x680] sm:$0xff]  ;;  %v765_v1 = vld [vmem:[%s7949_s28 + $0x688] sm:$0xff]  ;;  %v8122_v2 = vmul.f32 0.01, %v2882_v59  ;;  %v907_v59 = vld [vmem:[#allocation7 + $0x2f8] sm:$0xff] }
 0x145   : > { %1382 = vmatmul.f32.gmra.mxu2 %v734_v4  ;;  %1495 = vmatmul.f32.gmra.mxu3 %v735_v5  ;;  %v766_v4 = vld [vmem:[%s7949_s28 + $0x690] sm:$0xff]  ;;  %v767_v5 = vld [vmem:[%s7949_s28 + $0x698] sm:$0xff] }
 0x146   : > { %v2946_v8 = vmul.f32 0.98, %v8122_v2  ;;  %2204 = vmatpush.msra.mxu2 %v907_v59 }
 0x148   : > { %v1335_v11 = vpop.f32.mrf.mxu2  ;;  %v1448_v13 = vpop.f32.mrf.mxu3 }
 0x149   : > { %v1336_v14 = vadd.f32 %v1335_v11, %v1223_v7  ;;  %v1112_v15 = vpop.f32.mrf.mxu0  ;;  %v1225_v16 = vpop.f32.mrf.mxu1  ;;  %v940_v11 = vld [vmem:[#allocation7 + $0x400] sm:$0xff] }
 0x14a   : > { %v1113_v19 = vadd.f32 %v1112_v15, %v8043_v41  ;;  %1541 = vmatpush.msrb.mxu0 %v940_v11 }
 0x14b   : > { %v8097_v22 = vadd.f32 %v1448_v13, %v1336_v14  ;;  %v2978_v13 = vadd.f32 0.02, %v2946_v8  ;;  %v1036_v14 = vld [vmem:[#allocation7 + $0x700] sm:$0xff] }
 0x14c   : > { %1159 = vmatmul.f32.gmra.mxu0 %v740_v17  ;;  %1272 = vmatmul.f32.gmra.mxu1 %v741_v18  ;;  %v1226_v24 = vadd.f32 %v1225_v16, %v1113_v19  ;;  %v2883_v18 = vld [vmem:[%s8117_s19 + $0x8] sm:$0xff] }
 0x14d   : > { %1385 = vmatmul.f32.gmra.mxu2 %v742_v20  ;;  %1498 = vmatmul.f32.gmra.mxu3 %v743_v21  ;;  %v3010_v15 = vmax.f32 %v2978_v13, 0.0  ;;  %v790_v13 = vld [vmem:[%s7949_s28 + $0x750] sm:$0xff] }
 0x14e   : > { %1880 = vmatpush.msrb.mxu3 %v1036_v14  ;;  %v791_v14 = vld [vmem:[%s7949_s28 + $0x758] sm:$0xff] }
 0x150   : > { %v1338_v25 = vpop.f32.mrf.mxu2  ;;  %v1451_v26 = vpop.f32.mrf.mxu3 }
 0x151   : > { %v1339_v28 = vadd.f32 %v1338_v25, %v1226_v24  ;;  %v1115_v29 = vpop.f32.mrf.mxu0  ;;  %v1228_v30 = vpop.f32.mrf.mxu1  ;;  %v773_v24 = vld [vmem:[%s7949_s28 + $0x6c8] sm:$0xff]  ;;  %v8133_v25 = vmin.f32 %v3010_v15, 1.0 }
 0x152   : > { %v1116_v33 = vadd.f32 %v1115_v29, %v8043_v41  ;;  %v774_v29 = vld [vmem:[%s7949_s28 + $0x6d0] sm:$0xff] }
 0x153   : > { %v8105_v36 = vadd.f32 %v1451_v26, %v1339_v28  ;;  %v8135_v26 = vmul.f32 0.01, %v2883_v18  ;;  %v875_v18 = vld [vmem:[#allocation7 + $0x1f8] sm:$0xff]  ;;  %vm3721_vm3 = vcmp.eq.f32.partialorder %v8133_v25, inf  ;;  %vm3723_vm5 = vcmp.eq.f32.partialorder %v8133_v25, 0.0 }
 0x154   : > { %1162 = vmatmul.f32.gmra.mxu0 %v748_v31  ;;  %1275 = vmatmul.f32.gmra.mxu1 %v749_v32  ;;  %v1229_v37 = vadd.f32 %v1228_v30, %v1116_v33  ;;  %v775_v30 = vld [vmem:[%s7949_s28 + $0x6d8] sm:$0xff]  ;;  %v972_v32 = vld [vmem:[#allocation7 + $0x500] sm:$0xff]  ;;  %v8143_v33 = vsub.f32 1.0, %v8133_v25 }
 0x155   : > { %1388 = vmatmul.f32.gmra.mxu2 %v750_v34  ;;  %1501 = vmatmul.f32.gmra.mxu3 %v751_v35  ;;  %11960 = vst [vmem:[#allocation27_spill] sm:$0xff] %v8135_v26  ;;  %v2947_v34 = vmul.f32 0.98, %v8135_v26 }
 0x156   : > { %6966 = vrsqrt.f32 %v8143_v33  ;;  %1654 = vmatpush.msrb.mxu1 %v972_v32  ;;  %vm3113_vm0 = vcmp.eq.f32.partialorder %v8143_v33, inf  ;;  %vm3115_vm1 = vcmp.eq.f32.partialorder %v8143_v33, 0.0 }
 0x158   : > { %v1341_v43 = vpop.f32.mrf.mxu2  ;;  %v1454_v44 = vpop.f32.mrf.mxu3  ;;  %2091 = vmatpush.msra.mxu1 %v875_v18 }
 0x159   : > { %v1342_v45 = vadd.f32 %v1341_v43, %v1229_v37  ;;  %v1118_v46 = vpop.f32.mrf.mxu0  ;;  %v1231_v47 = vpop.f32.mrf.mxu1  ;;  %v2979_v37 = vadd.f32 0.02, %v2947_v34 }
 0x15a   : > { %v1119_v50 = vadd.f32 %v1118_v46, %v8043_v41  ;;  %v780_v46 = vld [vmem:[%s7949_s28 + $0x700] sm:$0xff] }
 0x15b   : > { %v8112_v53 = vadd.f32 %v1454_v44, %v1342_v45  ;;  %v3011_v38 = vmax.f32 %v2979_v37, 0.0 }
 0x15c   : > { %1165 = vmatmul.f32.gmra.mxu0 %v756_v48  ;;  %1278 = vmatmul.f32.gmra.mxu1 %v757_v49  ;;  %v1232_v55 = vadd.f32 %v1231_v47, %v1119_v50  ;;  %v781_v47 = vld [vmem:[%s7949_s28 + $0x708] sm:$0xff]  ;;  %v782_v50 = vld [vmem:[%s7949_s28 + $0x710] sm:$0xff] }
 0x15d   : > { %1391 = vmatmul.f32.gmra.mxu2 %v758_v51  ;;  %1504 = vmatmul.f32.gmra.mxu3 %v759_v52  ;;  %v8149_v48 = vmin.f32 %v3011_v38, 1.0  ;;  %v783_v51 = vld [vmem:[%s7949_s28 + $0x718] sm:$0xff]  ;;  %v6967_v52 = vpop.eup %6966 }
 0x15f   : > { %vm3733_vm6 = vcmp.eq.f32.partialorder %v8149_v48, inf  ;;  %vm3735_vm7 = vcmp.eq.f32.partialorder %v8149_v48, 0.0 }
 0x160   : > { %v1344_v57 = vpop.f32.mrf.mxu2  ;;  %v1457_v58 = vpop.f32.mrf.mxu3 }
 0x161   : > { %v1345_v60 = vadd.f32 %v1344_v57, %v1232_v55  ;;  %v1121_v61 = vpop.f32.mrf.mxu0  ;;  %v1234_v62 = vpop.f32.mrf.mxu1  ;;  %v8157_v55 = vsub.f32 1.0, %v8149_v48  ;;  %v3107_v57 = vmul.f32 %v6967_v52, %v8143_v33 }
 0x162   : > { %v1122_v3 = vadd.f32 %v1121_v61, %v8043_v41  ;;  %v939_v61 = vld [vmem:[#allocation7 + $0x3f8] sm:$0xff] }
 0x163   : > { %v8127_v7 = vadd.f32 %v1457_v58, %v1345_v60  ;;  %v843_v60 = vld [vmem:[#allocation7 + $0xf8] sm:$0xff]  ;;  %6968 = vrsqrt.f32 %v8157_v55  ;;  %2317 = vmatpush.msra.mxu3 %v939_v61  ;;  %vm3125_vm2 = vcmp.eq.f32.partialorder %v8157_v55, inf  ;;  %vm3127_vm4 = vcmp.eq.f32.partialorder %v8157_v55, 0.0 }
 0x164   : > { %1168 = vmatmul.f32.gmra.mxu0 %v764_v0  ;;  %1281 = vmatmul.f32.gmra.mxu1 %v765_v1  ;;  %v1235_v9 = vadd.f32 %v1234_v62, %v1122_v3  ;;  %v3108_v62 = vmul.f32 %v6967_v52, %v3107_v57  ;;  %6970 = vrsqrt.f32 %v8133_v25  ;;  %v798_v57 = vld [vmem:[%s7949_s28 + $0x790] sm:$0xff] }
 0x165   : > { %1394 = vmatmul.f32.gmra.mxu2 %v766_v4  ;;  %1507 = vmatmul.f32.gmra.mxu3 %v767_v5  ;;  %6972 = vrsqrt.f32 %v8149_v48 }
 0x166   : > { %1978 = vmatpush.msra.mxu0 %v843_v60  ;;  %v3109_v3 = vmul.f32 0.5, %v3108_v62 }
 0x168   : > { %v1347_v16 = vpop.f32.mrf.mxu2  ;;  %v1460_v17 = vpop.f32.mrf.mxu3  ;;  %v3110_v15 = vsub.f32 1.5, %v3109_v3 }
 0x169   : > { %v1348_v19 = vadd.f32 %v1347_v16, %v1235_v9  ;;  %v1124_v20 = vpop.f32.mrf.mxu0  ;;  %v1237_v21 = vpop.f32.mrf.mxu1  ;;  %v788_v9 = vld [vmem:[%s7949_s28 + $0x740] sm:$0xff] }
 0x16a   : > { %v1125_v28 = vadd.f32 %v1124_v20, %v8043_v41  ;;  %v6969_v16 = vpop.eup %6968  ;;  %v3111_v20 = vmul.f32 %v6967_v52, %v3110_v15 }
 0x16b   : > { %v8140_v31 = vadd.f32 %v1460_v17, %v1348_v19  ;;  %v6971_v19 = vpop.eup %6970 }
 0x16c   : > { %1171 = vmatmul.f32.gmra.mxu0 %v772_v23  ;;  %1284 = vmatmul.f32.gmra.mxu1 %v773_v24  ;;  %v1238_v35 = vadd.f32 %v1237_v21, %v1125_v28  ;;  %v3119_v21 = vmul.f32 %v6969_v16, %v8157_v55  ;;  %v3715_v24 = vmul.f32 %v6971_v19, %v8133_v25  ;;  %v6973_v59 = vpop.eup %6972 }
 0x16d   : > { %1397 = vmatmul.f32.gmra.mxu2 %v774_v29  ;;  %1510 = vmatmul.f32.gmra.mxu3 %v775_v30  ;;  %v3112_v28 = vmul.f32 %v3111_v20, %v8143_v33  ;;  %v3116_v30 = vand.u32 2147483648, %v8143_v33  ;;  %v3724_v20 = vand.u32 2147483648, %v8133_v25 }
 0x16e   : > { %v3120_v29 = vmul.f32 %v6969_v16, %v3119_v21  ;;  %v3716_v32 = vmul.f32 %v6971_v19, %v3715_v24  ;;  %v2884_v21 = vld [vmem:[%s8117_s19 + $0x10] sm:$0xff] }
 0x16f   : > { %v3114_v37 = vsel %vm3113_vm0, %v8143_v33, %v3112_v28 }
 0x170   : > { %v1350_v39 = vpop.f32.mrf.mxu2  ;;  %v1463_v42 = vpop.f32.mrf.mxu3  ;;  %v3121_v38 = vmul.f32 0.5, %v3120_v29  ;;  %v804_v29 = vld [vmem:[%s7949_s28 + $0x7c0] sm:$0xff] }
 0x171   : > { %v1351_v43 = vadd.f32 %v1350_v39, %v1238_v35  ;;  %v1127_v44 = vpop.f32.mrf.mxu0  ;;  %v1240_v45 = vpop.f32.mrf.mxu1  ;;  %v2885_v39 = vld [vmem:[%s8117_s19 + $0x18] sm:$0xff] }
 0x172   : > { %v1128_v49 = vadd.f32 %v1127_v44, %v8043_v41  ;;  %v3122_v33 = vsub.f32 1.5, %v3121_v38  ;;  %v806_v38 = vld [vmem:[%s7949_s28 + $0x7d0] sm:$0xff] }
 0x173   : > { %v8154_v54 = vadd.f32 %v1463_v42, %v1351_v43 }
 0x174   : > { %1174 = vmatmul.f32.gmra.mxu0 %v780_v46  ;;  %1287 = vmatmul.f32.gmra.mxu1 %v781_v47  ;;  %v1241_v58 = vadd.f32 %v1240_v45, %v1128_v49  ;;  %v796_v45 = vld [vmem:[%s7949_s28 + $0x780] sm:$0xff]  ;;  %v797_v46 = vld [vmem:[%s7949_s28 + $0x788] sm:$0xff]  ;;  %v7725_v47 = vmov 0   ;;  %v3117_v49 = vsel %vm3115_vm1, %v3116_v30, %v3114_v37 }
 0x175   : > { %1400 = vmatmul.f32.gmra.mxu2 %v782_v50  ;;  %1513 = vmatmul.f32.gmra.mxu3 %v783_v51  ;;  %v3717_v50 = vmul.f32 0.5, %v3716_v32  ;;  %v8180_v51 = vmul.f32 0.01, %v2885_v39  ;;  %v805_v30 = vld [vmem:[%s7949_s28 + $0x7c8] sm:$0xff]  ;;  %v807_v39 = vld [vmem:[%s7949_s28 + $0x7d8] sm:$0xff] }
 0x176   : > { %6962 = vset.pattern.permute.xlu0 %v7725_v47  ;;  %6963 = vset.pattern.permute.xlu1 %v7725_v47 }
 0x177   : > { %3492 = vperm.xlu0 %6962, %v3117_v49   ;;  %6964 = vset.pattern.permute.xlu2 %v7725_v47  ;;  %v3718_v61 = vsub.f32 1.5, %v3717_v50  ;;  %v2949_v62 = vmul.f32 0.98, %v8180_v51 }
 0x178   : > { %v1353_v0 = vpop.f32.mrf.mxu2  ;;  %v1466_v1 = vpop.f32.mrf.mxu3 }
 0x179   : > { %v1354_v4 = vadd.f32 %v1353_v0, %v1241_v58  ;;  %v1130_v5 = vpop.f32.mrf.mxu0  ;;  %v1243_v8 = vpop.f32.mrf.mxu1  ;;  %v799_v58 = vld [vmem:[%s7949_s28 + $0x798] sm:$0xff]  ;;  %v3123_v0 = vmul.f32 %v6969_v16, %v3122_v33 }
 0x17a   : > { %v1131_v11 = vadd.f32 %v1130_v5, %v8043_v41  ;;  %v841_v5 = vld [vmem:[#allocation7 + $0xe8] sm:$0xff] }
 0x17b   : > { %v8167_v17 = vadd.f32 %v1466_v1, %v1354_v4  ;;  %v3727_v1 = vmul.f32 %v6973_v59, %v8149_v48  ;;  %v905_v4 = vld [vmem:[#allocation7 + $0x2e8] sm:$0xff]  ;;  %1979 = vmatpush.msra.mxu0 %v841_v5 }
 0x17c   : > { %1177 = vmatmul.f32.gmra.mxu0 %v788_v9  ;;  %1290 = vmatmul.f32.gmra.mxu1 %v789_v10  ;;  %v1244_v23 = vadd.f32 %v1243_v8, %v1131_v11  ;;  %v3719_v8 = vmul.f32 %v6971_v19, %v3718_v61  ;;  %v937_v9 = vld [vmem:[#allocation7 + $0x3e8] sm:$0xff]  ;;  %v3124_v10 = vmul.f32 %v3123_v0, %v8157_v55  ;;  %v3736_v0 = vand.u32 2147483648, %v8149_v48 }
 0x17d   : > { %1403 = vmatmul.f32.gmra.mxu2 %v790_v13  ;;  %1516 = vmatmul.f32.gmra.mxu3 %v791_v14  ;;  %v3728_v11 = vmul.f32 %v6973_v59, %v3727_v1  ;;  %v2981_v13 = vadd.f32 0.02, %v2949_v62  ;;  %v3128_v14 = vand.u32 2147483648, %v8157_v55  ;;  %v2887_v5 = vld [vmem:[%s8117_s19 + $0x28] sm:$0xff] }
 0x17e   : > { %2205 = vmatpush.msra.mxu2 %v905_v4  ;;  %2318 = vmatpush.msra.mxu3 %v937_v9  ;;  %v3720_v15 = vmul.f32 %v3719_v8, %v8133_v25  ;;  %v3126_v19 = vsel %vm3125_vm2, %v8157_v55, %v3124_v10 }
 0x17f   : > { %v3129_v32 = vsel %vm3127_vm4, %v3128_v14, %v3126_v19  ;;  %v562_v19 = vld [vmem:[%s7949_s28 + $0x30] sm:$0xff] }
 0x180   : > { %v1356_v34 = vpop.f32.mrf.mxu2  ;;  %v1469_v35 = vpop.f32.mrf.mxu3  ;;  %3497 = vperm.xlu1 %6963, %v3129_v32  }
 0x181   : > { %v1357_v42 = vadd.f32 %v1356_v34, %v1244_v23  ;;  %v1133_v43 = vpop.f32.mrf.mxu0  ;;  %v1246_v44 = vpop.f32.mrf.mxu1  ;;  %v3722_v34 = vsel %vm3721_vm3, %v8133_v25, %v3720_v15 }
 0x182   : > { %v1134_v52 = vadd.f32 %v1133_v43, %v8043_v41  ;;  %v3725_v55 = vsel %vm3723_vm5, %v3724_v20, %v3722_v34  ;;  %v8205_v43 = vmul.f32 0.01, %v2884_v21  ;;  %v563_v20 = vld [vmem:[%s7949_s28 + $0x38] sm:$0xff] }
 0x183   : > { %v8185_v60 = vadd.f32 %v1469_v35, %v1357_v42  ;;  %v3729_v35 = vmul.f32 0.5, %v3728_v11  ;;  %v3013_v42 = vmax.f32 %v2981_v13, 0.0  ;;  %4164 = vperm.xlu0 %6962, %v3725_v55   ;;  %v560_v11 = vld [vmem:[%s7949_s28 + $0x20] sm:$0xff]  ;;  %v561_v13 = vld [vmem:[%s7949_s28 + $0x28] sm:$0xff]  ;;  %v903_v34 = vld [vmem:[#allocation7 + $0x2d8] sm:$0xff] }
 0x184   : > { %1180 = vmatmul.f32.gmra.mxu0 %v796_v45  ;;  %1293 = vmatmul.f32.gmra.mxu1 %v797_v46  ;;  %v1247_v3 = vadd.f32 %v1246_v44, %v1134_v52  ;;  %v2886_v44 = vld [vmem:[%s8117_s19 + $0x20] sm:$0xff]  ;;  %v873_v46 = vld [vmem:[#allocation7 + $0x1e8] sm:$0xff]  ;;  %v2948_v50 = vmul.f32 0.98, %v8205_v43  ;;  %v935_v55 = vld [vmem:[#allocation7 + $0x3d8] sm:$0xff] }
 0x185   : > { %1406 = vmatmul.f32.gmra.mxu2 %v798_v57  ;;  %1519 = vmatmul.f32.gmra.mxu3 %v799_v58  ;;  %v3730_v47 = vsub.f32 1.5, %v3729_v35  ;;  %v8210_v49 = vmul.f32 0.01, %v2886_v44  ;;  %v8212_v25 = vmin.f32 %v3013_v42, 1.0  ;;  %v839_v35 = vld [vmem:[#allocation7 + $0xd8] sm:$0xff] }
 0x186   : > { %2092 = vmatpush.msra.mxu1 %v873_v46  ;;  %v2980_v61 = vadd.f32 0.02, %v2948_v50  ;;  %2206 = vmatpush.msra.mxu2 %v903_v34 }
 0x187   : > { %11961 = vst [vmem:[#allocation28_spill] sm:$0xff] %v8210_v49  ;;  %v3731_v57 = vmul.f32 %v6973_v59, %v3730_v47  ;;  %v2950_v58 = vmul.f32 0.98, %v8210_v49  ;;  %6974 = vrsqrt.f32 %v8212_v25  ;;  %v8218_v33 = vsub.f32 1.0, %v8212_v25  ;;  %1980 = vmatpush.msra.mxu0 %v839_v35  ;;  %2319 = vmatpush.msra.mxu3 %v935_v55 }
 0x188   : > { %v1359_v16 = vpop.f32.mrf.mxu2  ;;  %v1472_v18 = vpop.f32.mrf.mxu3  ;;  %v3012_v4 = vmax.f32 %v2980_v61, 0.0  ;;  %vm3757_vm8 = vcmp.eq.f32.partialorder %v8212_v25, inf  ;;  %vm3759_vm9 = vcmp.eq.f32.partialorder %v8212_v25, 0.0 }
 0x189   : > { %v1360_v23 = vadd.f32 %v1359_v16, %v1247_v3  ;;  %v1136_v24 = vpop.f32.mrf.mxu0  ;;  %v1249_v28 = vpop.f32.mrf.mxu1  ;;  %v3732_v62 = vmul.f32 %v3731_v57, %v8149_v48  ;;  %v2982_v1 = vadd.f32 0.02, %v2950_v58  ;;  %6976 = vrsqrt.f32 %v8218_v33 }
 0x18a   : > { %v1137_v37 = vadd.f32 %v1136_v24, %v8043_v41  ;;  %v8229_v16 = vmul.f32 0.01, %v2887_v5  ;;  %v570_v5 = vld [vmem:[%s7949_s28 + $0x70] sm:$0xff]  ;;  %vm3149_vm10 = vcmp.eq.f32.partialorder %v8218_v33, inf  ;;  %vm3151_vm11 = vcmp.eq.f32.partialorder %v8218_v33, 0.0 }
 0x18b   : > { %v8208_v45 = vadd.f32 %v1472_v18, %v1360_v23  ;;  %v3734_v14 = vsel %vm3733_vm6, %v8149_v48, %v3732_v62  ;;  %v3014_v15 = vmax.f32 %v2982_v1, 0.0  ;;  %v8234_v23 = vmin.f32 %v3012_v4, 1.0  ;;  %v568_v62 = vld [vmem:[%s7949_s28 + $0x60] sm:$0xff] }
 0x18c   : > { %1183 = vmatmul.f32.gmra.mxu0 %v804_v29  ;;  %1296 = vmatmul.f32.gmra.mxu1 %v805_v30  ;;  %v1250_v52 = vadd.f32 %v1249_v28, %v1137_v37  ;;  %11962 = vst [vmem:[#allocation29_spill] sm:$0xff] %v8229_v16  ;;  %v3737_v21 = vsel %vm3735_vm7, %v3736_v0, %v3734_v14  ;;  %v2951_v29 = vmul.f32 0.98, %v8229_v16  ;;  %v569_v0 = vld [vmem:[%s7949_s28 + $0x68] sm:$0xff] }
 0x18d   : > { %1409 = vmatmul.f32.gmra.mxu2 %v806_v38  ;;  %1522 = vmatmul.f32.gmra.mxu3 %v807_v39  ;;  %v8238_v28 = vmin.f32 %v3014_v15, 1.0  ;;  %v6975_v30 = vpop.eup %6974  ;;  %v8242_v48 = vsub.f32 1.0, %v8234_v23  ;;  %vm3745_vm0 = vcmp.eq.f32.partialorder %v8234_v23, inf  ;;  %vm3747_vm2 = vcmp.eq.f32.partialorder %v8234_v23, 0.0 }
 0x18e   : > { %4169 = vperm.xlu1 %6963, %v3737_v21   ;;  %v3751_v37 = vmul.f32 %v6975_v30, %v8212_v25  ;;  %v2983_v38 = vadd.f32 0.02, %v2951_v29 }
 0x18f   : > { %6978 = vrsqrt.f32 %v8238_v28  ;;  %v6977_v39 = vpop.eup %6976  ;;  %vm3137_vm12 = vcmp.eq.f32.partialorder %v8242_v48, inf  ;;  %vm3769_vm13 = vcmp.eq.f32.partialorder %v8238_v28, inf  ;;  %vm3139_vm14 = vcmp.eq.f32.partialorder %v8242_v48, 0.0 }
 0x190   : > { %v1362_v59 = vpop.f32.mrf.mxu2  ;;  %v1475_v3 = vpop.f32.mrf.mxu3  ;;  %6980 = vrsqrt.f32 %v8242_v48  ;;  %v3752_v42 = vmul.f32 %v6975_v30, %v3751_v37  ;;  %v3143_v44 = vmul.f32 %v6977_v39, %v8218_v33  ;;  %v3015_v46 = vmax.f32 %v2983_v38, 0.0 }
 0x191   : > { %v1363_v8 = vadd.f32 %v1362_v59, %v1250_v52  ;;  %v1139_v9 = vpop.f32.mrf.mxu0  ;;  %v1252_v10 = vpop.f32.mrf.mxu1  ;;  %v2888_v52 = vld [vmem:[%s8117_s19 + $0x30] sm:$0xff]  ;;  %6982 = vrsqrt.f32 %v8234_v23  ;;  %vm3771_vm15 = vcmp.eq.f32.partialorder %v8238_v28, 0.0 }
 0x192   : > { %v1140_v18 = vadd.f32 %v1139_v9, %v8043_v41  ;;  %v3753_v1 = vmul.f32 0.5, %v3752_v42  ;;  %v3144_v59 = vmul.f32 %v6977_v39, %v3143_v44  ;;  %v8256_v9 = vmul.f32 0.01, %v2888_v52 }
 0x193   : > { %v8236_v24 = vadd.f32 %v1475_v3, %v1363_v8  ;;  %v8251_v3 = vmin.f32 %v3015_v46, 1.0  ;;  %v571_v8 = vld [vmem:[%s7949_s28 + $0x78] sm:$0xff] }
 0x194   : > { %1542 = vmatmul.f32.vlgmr.msrb.gmra.mxu0 %v560_v11  ;;  %1655 = vmatmul.f32.vlgmr.msrb.gmra.mxu1 %v561_v13  ;;  %v1253_v32 = vadd.f32 %v1252_v10, %v1140_v18  ;;  %11963 = vst [vmem:[#allocation30_spill] sm:$0xff] %v8256_v9  ;;  %v871_v13 = vld [vmem:[#allocation7 + $0x1d8] sm:$0xff]  ;;  %v3754_v14 = vsub.f32 1.5, %v3753_v1  ;;  %v3145_v15 = vmul.f32 0.5, %v3144_v59  ;;  %v2952_v29 = vmul.f32 0.98, %v8256_v9 }
 0x195   : > { %1768 = vmatmul.f32.vlgmr.msrb.gmra.mxu2 %v562_v19  ;;  %1881 = vmatmul.f32.vlgmr.msrb.gmra.mxu3 %v563_v20  ;;  %v8258_v10 = vpop.eup %6978  ;;  %v8263_v18 = vsub.f32 1.0, %v8251_v3  ;;  %v578_v59 = vld [vmem:[%s7949_s28 + $0xb0] sm:$0xff] }
 0x196   : > { %v8265_v19 = vpop.eup %6980  ;;  %v3763_v21 = vmul.f32 %v8258_v10, %v8238_v28  ;;  %v3146_v34 = vsub.f32 1.5, %v3145_v15  ;;  %2093 = vmatpush.msra.mxu1 %v871_v13  ;;  %v2984_v38 = vadd.f32 0.02, %v2952_v29 }
 0x197   : > { %v3131_v35 = vmul.f32 %v8265_v19, %v8242_v48  ;;  %6984 = vrsqrt.f32 %v8263_v18  ;;  %v8291_v15 = vpop.eup %6982  ;;  %vm3173_vm1 = vcmp.eq.f32.partialorder %v8263_v18, inf  ;;  %vm3175_vm3 = vcmp.eq.f32.partialorder %v8263_v18, 0.0 }
 0x198   : > { %v1365_v47 = vpop.f32.mrf.mxu2  ;;  %v1478_v50 = vpop.f32.mrf.mxu3  ;;  %v3764_v37 = vmul.f32 %v8258_v10, %v3763_v21  ;;  %v3147_v42 = vmul.f32 %v6977_v39, %v3146_v34  ;;  %v3016_v13 = vmax.f32 %v2984_v38, 0.0 }
 0x199   : > { %v1366_v57 = vadd.f32 %v1365_v47, %v1253_v32  ;;  %v1142_v58 = vpop.f32.mrf.mxu0  ;;  %v1255_v61 = vpop.f32.mrf.mxu1  ;;  %v3755_v32 = vmul.f32 %v6975_v30, %v3754_v14  ;;  %v3760_v30 = vand.u32 2147483648, %v8212_v25  ;;  %v3152_v47 = vand.u32 2147483648, %v8218_v33  ;;  %v2889_v14 = vld [vmem:[%s8117_s19 + $0x38] sm:$0xff] }
 0x19a   : > { %v1143_v4 = vadd.f32 %v1142_v58, %v8043_v41  ;;  %v576_v58 = vld [vmem:[%s7949_s28 + $0xa0] sm:$0xff]  ;;  %v8298_v29 = vmul.f32 0.01, %v2889_v14 }
 0x19b   : > { %v8260_v11 = vadd.f32 %v1478_v50, %v1366_v57  ;;  %v3756_v55 = vmul.f32 %v3755_v32, %v8212_v25 }
 0x19c   : > { %v1256_v20 = vadd.f32 %v1255_v61, %v1143_v4  ;;  %1545 = vmatmul.f32.gmra.mxu0 %v568_v62  ;;  %1658 = vmatmul.f32.gmra.mxu1 %v569_v0  ;;  %v577_v61 = vld [vmem:[%s7949_s28 + $0xa8] sm:$0xff]  ;;  %v3148_v62 = vmul.f32 %v3147_v42, %v8218_v33  ;;  %v3132_v0 = vmul.f32 %v8265_v19, %v3131_v35  ;;  %v579_v4 = vld [vmem:[%s7949_s28 + $0xb8] sm:$0xff] }
 0x19d   : > { %1771 = vmatmul.f32.gmra.mxu2 %v570_v5  ;;  %1884 = vmatmul.f32.gmra.mxu3 %v571_v8  ;;  %v3758_v39 = vsel %vm3757_vm8, %v8212_v25, %v3756_v55  ;;  %v3765_v8 = vmul.f32 0.5, %v3764_v37  ;;  %11964 = vst [vmem:[#allocation31_spill] sm:$0xff] %v8298_v29  ;;  %v8300_v32 = vpop.eup %6984  ;;  %v3739_v37 = vmul.f32 %v8291_v15, %v8234_v23  ;;  %v901_v55 = vld [vmem:[#allocation7 + $0x2c8] sm:$0xff] }
 0x19e   : > { %v3761_v5 = vsel %vm3759_vm9, %v3760_v30, %v3758_v39  ;;  %v3150_v25 = vsel %vm3149_vm10, %v8218_v33, %v3148_v62  ;;  %v3133_v21 = vmul.f32 0.5, %v3132_v0  ;;  %v837_v30 = vld [vmem:[#allocation7 + $0xc8] sm:$0xff]  ;;  %2207 = vmatpush.msra.mxu2 %v901_v55  ;;  %v3772_v62 = vand.u32 2147483648, %v8238_v28 }
 0x19f   : > { %4179 = vperm.xlu1 %6963, %v3761_v5   ;;  %v3153_v34 = vsel %vm3151_vm11, %v3152_v47, %v3150_v25  ;;  %v3766_v35 = vsub.f32 1.5, %v3765_v8  ;;  %v3740_v33 = vmul.f32 %v8291_v15, %v3739_v37  ;;  %v8310_v47 = vmin.f32 %v3016_v13, 1.0  ;;  %1981 = vmatpush.msra.mxu0 %v837_v30  ;;  %v586_v25 = vld [vmem:[%s7949_s28 + $0xf0] sm:$0xff] }
 0x1a0   : > { %v1368_v44 = vpop.f32.mrf.mxu2  ;;  %v1481_v46 = vpop.f32.mrf.mxu3  ;;  %v3134_v42 = vsub.f32 1.5, %v3133_v21  ;;  %3507 = vperm.xlu0 %6962, %v3153_v34   ;;  %v587_v21 = vld [vmem:[%s7949_s28 + $0xf8] sm:$0xff] }
 0x1a1   : > { %v1369_v50 = vadd.f32 %v1368_v44, %v1256_v20  ;;  %v1145_v52 = vpop.f32.mrf.mxu0  ;;  %v1258_v57 = vpop.f32.mrf.mxu1  ;;  %v3167_v44 = vmul.f32 %v8300_v32, %v8263_v18  ;;  %v3741_v8 = vmul.f32 0.5, %v3740_v33  ;;  %6986 = vrsqrt.f32 %v8310_v47 }
 0x1a2   : > { %v1146_v1 = vadd.f32 %v1145_v52, %v8043_v41  ;;  %v2953_v52 = vmul.f32 0.98, %v8298_v29  ;;  %vm3793_vm4 = vcmp.eq.f32.partialorder %v8310_v47, inf  ;;  %vm3795_vm5 = vcmp.eq.f32.partialorder %v8310_v47, 0.0 }
 0x1a3   : > { %v8293_v20 = vadd.f32 %v1481_v46, %v1369_v50  ;;  %v933_v46 = vld [vmem:[#allocation7 + $0x3c8] sm:$0xff]  ;;  %v3767_v50 = vmul.f32 %v8258_v10, %v3766_v35  ;;  %v3168_v13 = vmul.f32 %v8300_v32, %v3167_v44  ;;  %v8333_v35 = vsub.f32 1.0, %v8310_v47 }
 0x1a4   : > { %1548 = vmatmul.f32.gmra.mxu0 %v576_v58  ;;  %1661 = vmatmul.f32.gmra.mxu1 %v577_v61  ;;  %v1259_v38 = vadd.f32 %v1258_v57, %v1146_v1  ;;  %v3135_v57 = vmul.f32 %v8265_v19, %v3134_v42  ;;  %v3140_v58 = vand.u32 2147483648, %v8242_v48  ;;  %v3742_v30 = vsub.f32 1.5, %v3741_v8  ;;  %v2890_v42 = vld [vmem:[%s8117_s19 + $0x40] sm:$0xff]  ;;  %v593_v8 = vld [vmem:[%s7949_s28 + $0x128] sm:$0xff] }
 0x1a5   : > { %1774 = vmatmul.f32.gmra.mxu2 %v578_v59  ;;  %1887 = vmatmul.f32.gmra.mxu3 %v579_v4  ;;  %v3768_v39 = vmul.f32 %v3767_v50, %v8238_v28  ;;  %v584_v59 = vld [vmem:[%s7949_s28 + $0xe0] sm:$0xff]  ;;  %v585_v4 = vld [vmem:[%s7949_s28 + $0xe8] sm:$0xff]  ;;  %v3169_v50 = vmul.f32 0.5, %v3168_v13  ;;  %6988 = vrsqrt.f32 %v8333_v35  ;;  %vm3185_vm6 = vcmp.eq.f32.partialorder %v8333_v35, inf }
 0x1a6   : > { %2320 = vmatpush.msra.mxu3 %v933_v46  ;;  %v3136_v5 = vmul.f32 %v3135_v57, %v8242_v48  ;;  %v3743_v57 = vmul.f32 %v8291_v15, %v3742_v30  ;;  %vm3187_vm7 = vcmp.eq.f32.partialorder %v8333_v35, 0.0 }
 0x1a7   : > { %v3770_v34 = vsel %vm3769_vm13, %v8238_v28, %v3768_v39  ;;  %v2985_v39 = vadd.f32 0.02, %v2953_v52  ;;  %vm3783_vm13 = vcmp.eq.f32.partialorder %v8251_v3, 0.0 }
 0x1a8   : > { %v1371_v10 = vpop.f32.mrf.mxu2  ;;  %v1484_v61 = vpop.f32.mrf.mxu3  ;;  %v3138_v55 = vsel %vm3137_vm12, %v8242_v48, %v3136_v5  ;;  %v3773_v46 = vsel %vm3771_vm15, %v3772_v62, %v3770_v34  ;;  %v8350_v48 = vmul.f32 0.01, %v2890_v42  ;;  %v3748_v62 = vand.u32 2147483648, %v8234_v23  ;;  %v592_v5 = vld [vmem:[%s7949_s28 + $0x120] sm:$0xff]  ;;  %v594_v34 = vld [vmem:[%s7949_s28 + $0x130] sm:$0xff] }
 0x1a9   : > { %v1372_v0 = vadd.f32 %v1371_v10, %v1259_v38  ;;  %v1148_v19 = vpop.f32.mrf.mxu0  ;;  %v1261_v1 = vpop.f32.mrf.mxu1  ;;  %v869_v38 = vld [vmem:[#allocation7 + $0x1c8] sm:$0xff]  ;;  %v3141_v44 = vsel %vm3139_vm14, %v3140_v58, %v3138_v55  ;;  %v8348_v10 = vsub.f32 1.0, %v8238_v28  ;;  %4184 = vperm.xlu0 %6962, %v3773_v46   ;;  %v3744_v58 = vmul.f32 %v3743_v57, %v8234_v23 }
 0x1aa   : > { %v1149_v14 = vadd.f32 %v1148_v19, %v8043_v41  ;;  %2094 = vmatpush.msra.mxu1 %v869_v38  ;;  %3502 = vperm.xlu2 %6964, %v3141_v44   ;;  %11965 = vst [vmem:[#allocation32_spill] sm:$0xff] %v8350_v48  ;;  %v8356_v28 = vpop.eup %6986  ;;  %v3176_v19 = vand.u32 2147483648, %v8263_v18  ;;  %v595_v38 = vld [vmem:[%s7949_s28 + $0x138] sm:$0xff]  ;;  %v3017_v42 = vmax.f32 %v2985_v39, 0.0  ;;  %vm3781_vm12 = vcmp.eq.f32.partialorder %v8251_v3, inf }
 0x1ab   : > { %v8335_v37 = vadd.f32 %v1484_v61, %v1372_v0  ;;  %v3170_v61 = vsub.f32 1.5, %v3169_v50  ;;  %v3746_v13 = vsel %vm3745_vm0, %v8234_v23, %v3744_v58  ;;  %6990 = vrsqrt.f32 %v8348_v10 }
 0x1ac   : > { %1551 = vmatmul.f32.gmra.mxu0 %v584_v59  ;;  %1664 = vmatmul.f32.gmra.mxu1 %v585_v4  ;;  %v1262_v33 = vadd.f32 %v1261_v1, %v1149_v14  ;;  %v3787_v14 = vmul.f32 %v8356_v28, %v8310_v47  ;;  %v3749_v55 = vsel %vm3747_vm2, %v3748_v62, %v3746_v13  ;;  %v8383_v23 = vmin.f32 %v3017_v42, 1.0  ;;  %v899_v62 = vld [vmem:[#allocation7 + $0x2b8] sm:$0xff] }
 0x1ad   : > { %1777 = vmatmul.f32.gmra.mxu2 %v586_v25  ;;  %1890 = vmatmul.f32.gmra.mxu3 %v587_v21  ;;  %v3171_v52 = vmul.f32 %v8300_v32, %v3170_v61  ;;  %v2891_v25 = vld [vmem:[%s8117_s19 + $0x48] sm:$0xff]  ;;  %v6989_v21 = vpop.eup %6988  ;;  %6992 = vrsqrt.f32 %v8251_v3  ;;  %vm3161_vm8 = vcmp.eq.f32.partialorder %v8348_v10, inf  ;;  %vm3163_vm9 = vcmp.eq.f32.partialorder %v8348_v10, 0.0 }
 0x1ae   : > { %v3788_v46 = vmul.f32 %v8356_v28, %v3787_v14  ;;  %v3179_v50 = vmul.f32 %v6989_v21, %v8333_v35  ;;  %v8385_v58 = vmul.f32 0.01, %v2891_v25  ;;  %6994 = vrsqrt.f32 %v8383_v23  ;;  %2208 = vmatpush.msra.mxu2 %v899_v62 }
 0x1af   : > { %v3172_v30 = vmul.f32 %v3171_v52, %v8263_v18  ;;  %v3796_v14 = vand.u32 2147483648, %v8310_v47  ;;  %vm3805_vm10 = vcmp.eq.f32.partialorder %v8383_v23, inf  ;;  %vm3807_vm11 = vcmp.eq.f32.partialorder %v8383_v23, 0.0 }
 0x1b0   : > { %v1374_v15 = vpop.f32.mrf.mxu2  ;;  %v1487_v0 = vpop.f32.mrf.mxu3  ;;  %11966 = vst [vmem:[#allocation33_spill] sm:$0xff] %v8385_v58  ;;  %v3180_v52 = vmul.f32 %v6989_v21, %v3179_v50 }
 0x1b1   : > { %v1375_v1 = vadd.f32 %v1374_v15, %v1262_v33  ;;  %v1151_v59 = vpop.f32.mrf.mxu0  ;;  %v1264_v4 = vpop.f32.mrf.mxu1  ;;  %v2954_v33 = vmul.f32 0.98, %v8350_v48  ;;  %v3174_v61 = vsel %vm3173_vm1, %v8263_v18, %v3172_v30  ;;  %v835_v15 = vld [vmem:[#allocation7 + $0xb8] sm:$0xff] }
 0x1b2   : > { %v1152_v32 = vadd.f32 %v1151_v59, %v8043_v41  ;;  %v3177_v39 = vsel %vm3175_vm3, %v3176_v19, %v3174_v61  ;;  %4174 = vperm.xlu2 %6964, %v3749_v55   ;;  %1982 = vmatpush.msra.mxu0 %v835_v15  ;;  %v3181_v19 = vmul.f32 0.5, %v3180_v52  ;;  %v601_v55 = vld [vmem:[%s7949_s28 + $0x168] sm:$0xff]  ;;  %v603_v61 = vld [vmem:[%s7949_s28 + $0x178] sm:$0xff] }
 0x1b3   : > { %v8375_v44 = vadd.f32 %v1487_v0, %v1375_v1  ;;  %v3789_v0 = vmul.f32 0.5, %v3788_v46  ;;  %3517 = vperm.xlu1 %6963, %v3177_v39   ;;  %v931_v1 = vld [vmem:[#allocation7 + $0x3b8] sm:$0xff]  ;;  %v2986_v59 = vadd.f32 0.02, %v2954_v33  ;;  %v602_v33 = vld [vmem:[%s7949_s28 + $0x170] sm:$0xff]  ;;  %v3188_v39 = vand.u32 2147483648, %v8333_v35 }
 0x1b4   : > { %v1265_v57 = vadd.f32 %v1264_v4, %v1152_v32  ;;  %1554 = vmatmul.f32.gmra.mxu0 %v592_v5  ;;  %1667 = vmatmul.f32.gmra.mxu1 %v593_v8  ;;  %v2955_v4 = vmul.f32 0.98, %v8385_v58  ;;  %v8392_v5 = vpop.eup %6990  ;;  %v3182_v42 = vsub.f32 1.5, %v3181_v19  ;;  %v867_v52 = vld [vmem:[#allocation7 + $0x1b8] sm:$0xff] }
 0x1b5   : > { %1780 = vmatmul.f32.gmra.mxu2 %v594_v34  ;;  %1893 = vmatmul.f32.gmra.mxu3 %v595_v38  ;;  %v3790_v18 = vsub.f32 1.5, %v3789_v0  ;;  %v600_v38 = vld [vmem:[%s7949_s28 + $0x160] sm:$0xff]  ;;  %v3155_v46 = vmul.f32 %v8392_v5, %v8348_v10  ;;  %v3018_v62 = vmax.f32 %v2986_v59, 0.0  ;;  %v8408_v0 = vpop.eup %6992 }
 0x1b6   : > { %2321 = vmatpush.msra.mxu3 %v931_v1  ;;  %v2987_v15 = vadd.f32 0.02, %v2955_v4  ;;  %v6995_v19 = vpop.eup %6994  ;;  %2095 = vmatpush.msra.mxu1 %v867_v52  ;;  %v608_v52 = vld [vmem:[%s7949_s28 + $0x1a0] sm:$0xff] }
 0x1b7   : > { %v3791_v30 = vmul.f32 %v8356_v28, %v3790_v18  ;;  %v3183_v28 = vmul.f32 %v6989_v21, %v3182_v42  ;;  %v3156_v18 = vmul.f32 %v8392_v5, %v3155_v46  ;;  %v8416_v29 = vmin.f32 %v3018_v62, 1.0 }
 0x1b8   : > { %v1377_v8 = vpop.f32.mrf.mxu2  ;;  %v1490_v13 = vpop.f32.mrf.mxu3  ;;  %v3019_v59 = vmax.f32 %v2987_v15, 0.0 }
 0x1b9   : > { %v1378_v25 = vadd.f32 %v1377_v8, %v1265_v57  ;;  %v1154_v32 = vpop.f32.mrf.mxu0  ;;  %v1267_v34 = vpop.f32.mrf.mxu1  ;;  %v3792_v1 = vmul.f32 %v3791_v30, %v8310_v47  ;;  %v3184_v21 = vmul.f32 %v3183_v28, %v8333_v35 }
 0x1ba   : > { %v1155_v50 = vadd.f32 %v1154_v32, %v8043_v41  ;;  %v3775_v32 = vmul.f32 %v8408_v0, %v8251_v3  ;;  %v8432_v46 = vmin.f32 %v3019_v59, 1.0 }
 0x1bb   : > { %v8410_v57 = vadd.f32 %v1490_v13, %v1378_v25  ;;  %v3794_v4 = vsel %vm3793_vm4, %v8310_v47, %v3792_v1  ;;  %v3157_v13 = vmul.f32 0.5, %v3156_v18  ;;  %v3799_v25 = vmul.f32 %v6995_v19, %v8383_v23  ;;  %v609_v1 = vld [vmem:[%s7949_s28 + $0x1a8] sm:$0xff] }
 0x1bc   : > { %v1268_v8 = vadd.f32 %v1267_v34, %v1155_v50  ;;  %1557 = vmatmul.f32.gmra.mxu0 %v600_v38  ;;  %1670 = vmatmul.f32.gmra.mxu1 %v601_v55  ;;  %v3797_v34 = vsel %vm3795_vm5, %v3796_v14, %v3794_v4  ;;  %v3776_v38 = vmul.f32 %v8408_v0, %v3775_v32  ;;  %v8427_v55 = vsub.f32 1.0, %v8416_v29 }
 0x1bd   : > { %1783 = vmatmul.f32.gmra.mxu2 %v602_v33  ;;  %1896 = vmatmul.f32.gmra.mxu3 %v603_v61  ;;  %v3186_v30 = vsel %vm3185_vm6, %v8333_v35, %v3184_v21  ;;  %v3158_v42 = vsub.f32 1.5, %v3157_v13  ;;  %v3800_v33 = vmul.f32 %v6995_v19, %v3799_v25  ;;  %v3164_v18 = vand.u32 2147483648, %v8348_v10  ;;  %v610_v35 = vld [vmem:[%s7949_s28 + $0x1b0] sm:$0xff] }
 0x1be   : > { %4194 = vperm.xlu1 %6963, %v3797_v34   ;;  %v3189_v14 = vsel %vm3187_vm7, %v3188_v39, %v3186_v30  ;;  %v611_v39 = vld [vmem:[%s7949_s28 + $0x1b8] sm:$0xff]  ;;  %v3777_v4 = vmul.f32 0.5, %v3776_v38  ;;  %6996 = vrsqrt.f32 %v8427_v55  ;;  %v8456_v38 = vsub.f32 1.0, %v8383_v23 }
 0x1bf   : > { %3522 = vperm.xlu0 %6962, %v3189_v14   ;;  %v3159_v28 = vmul.f32 %v8392_v5, %v3158_v42  ;;  %v3801_v59 = vmul.f32 0.5, %v3800_v33  ;;  %6998 = vrsqrt.f32 %v8432_v46  ;;  %v8452_v5 = vsub.f32 1.0, %v8432_v46 }
 0x1c0   : > { %v1380_v50 = vpop.f32.mrf.mxu2  ;;  %v1493_v47 = vpop.f32.mrf.mxu3  ;;  %v3778_v34 = vsub.f32 1.5, %v3777_v4  ;;  %vm3209_vm14 = vcmp.eq.f32.partialorder %v8427_v55, inf  ;;  %vm3211_vm15 = vcmp.eq.f32.partialorder %v8427_v55, 0.0  ;;  %vm3829_vm0 = vcmp.eq.f32.partialorder %v8432_v46, inf }
 0x1c1   : > { %v1381_v61 = vadd.f32 %v1380_v50, %v1268_v8  ;;  %v1157_v62 = vpop.f32.mrf.mxu0  ;;  %v1270_v15 = vpop.f32.mrf.mxu1  ;;  %v2892_v8 = vld [vmem:[%s8117_s19 + $0x50] sm:$0xff]  ;;  %v3160_v13 = vmul.f32 %v3159_v28, %v8348_v10  ;;  %v3802_v25 = vsub.f32 1.5, %v3801_v59  ;;  %v897_v50 = vld [vmem:[#allocation7 + $0x2a8] sm:$0xff]  ;;  %7000 = vrsqrt.f32 %v8452_v5 }
 0x1c2   : > { %v1158_v32 = vadd.f32 %v1157_v62, %v8043_v41  ;;  %v8462_v14 = vmul.f32 0.01, %v2892_v8  ;;  %2209 = vmatpush.msra.mxu2 %v897_v50  ;;  %v929_v62 = vld [vmem:[#allocation7 + $0x3a8] sm:$0xff]  ;;  %7002 = vrsqrt.f32 %v8456_v38  ;;  %vm3221_vm1 = vcmp.eq.f32.partialorder %v8452_v5, inf }
 0x1c3   : > { %v8447_v21 = vadd.f32 %v1493_v47, %v1381_v61  ;;  %v3162_v42 = vsel %vm3161_vm8, %v8348_v10, %v3160_v13  ;;  %v833_v47 = vld [vmem:[#allocation7 + $0xa8] sm:$0xff]  ;;  %v3803_v61 = vmul.f32 %v6995_v19, %v3802_v25  ;;  %2322 = vmatpush.msra.mxu3 %v929_v62  ;;  %v3784_v10 = vand.u32 2147483648, %v8251_v3  ;;  %v616_v13 = vld [vmem:[%s7949_s28 + $0x1e0] sm:$0xff] }
 0x1c4   : > { %1560 = vmatmul.f32.gmra.mxu0 %v608_v52  ;;  %1673 = vmatmul.f32.gmra.mxu1 %v609_v1  ;;  %v1271_v30 = vadd.f32 %v1270_v15, %v1158_v32  ;;  %11967 = vst [vmem:[#allocation34_spill] sm:$0xff] %v8462_v14  ;;  %v3165_v33 = vsel %vm3163_vm9, %v3164_v18, %v3162_v42  ;;  %v2893_v52 = vld [vmem:[%s8117_s19 + $0x58] sm:$0xff]  ;;  %v3808_v1 = vand.u32 2147483648, %v8383_v23  ;;  %v8473_v19 = vpop.eup %6996  ;;  %v617_v25 = vld [vmem:[%s7949_s28 + $0x1e8] sm:$0xff]  ;;  %v2956_v42 = vmul.f32 0.98, %v8462_v14 }
 0x1c5   : > { %1786 = vmatmul.f32.gmra.mxu2 %v610_v35  ;;  %1899 = vmatmul.f32.gmra.mxu3 %v611_v39  ;;  %v3779_v15 = vmul.f32 %v8408_v0, %v3778_v34  ;;  %v3804_v18 = vmul.f32 %v3803_v61, %v8383_v23  ;;  %v8479_v39 = vpop.eup %6998  ;;  %v3203_v34 = vmul.f32 %v8473_v19, %v8427_v55  ;;  %v8486_v50 = vmul.f32 0.01, %v2893_v52  ;;  %v619_v61 = vld [vmem:[%s7949_s28 + $0x1f8] sm:$0xff]  ;;  %v865_v35 = vld [vmem:[#allocation7 + $0x1a8] sm:$0xff] }
 0x1c6   : > { %1983 = vmatpush.msra.mxu0 %v833_v47  ;;  %3512 = vperm.xlu2 %6964, %v3165_v33   ;;  %v618_v33 = vld [vmem:[%s7949_s28 + $0x1f0] sm:$0xff]  ;;  %7004 = vrsqrt.f32 %v8416_v29  ;;  %vm3831_vm2 = vcmp.eq.f32.partialorder %v8432_v46, 0.0  ;;  %vm3223_vm3 = vcmp.eq.f32.partialorder %v8452_v5, 0.0  ;;  %vm3197_vm4 = vcmp.eq.f32.partialorder %v8456_v38, inf }
 0x1c7   : > { %v3780_v32 = vmul.f32 %v3779_v15, %v8251_v3  ;;  %11968 = vst [vmem:[#allocation35_spill] sm:$0xff] %v8486_v50  ;;  %v3823_v15 = vmul.f32 %v8479_v39, %v8432_v46  ;;  %2096 = vmatpush.msra.mxu1 %v865_v35  ;;  %vm3199_vm5 = vcmp.eq.f32.partialorder %v8456_v38, 0.0  ;;  %vm3817_vm8 = vcmp.eq.f32.partialorder %v8416_v29, inf }
 0x1c8   : > { %v1383_v28 = vpop.f32.mrf.mxu2  ;;  %v1496_v0 = vpop.f32.mrf.mxu3  ;;  %vm3819_vm9 = vcmp.eq.f32.partialorder %v8416_v29, 0.0 }
 0x1c9   : > { %v1384_v59 = vadd.f32 %v1383_v28, %v1271_v30  ;;  %v1160_v4 = vpop.f32.mrf.mxu0  ;;  %v1273_v8 = vpop.f32.mrf.mxu1  ;;  %v3806_v30 = vsel %vm3805_vm10, %v8383_v23, %v3804_v18  ;;  %v3782_v62 = vsel %vm3781_vm12, %v8251_v3, %v3780_v32  ;;  %v3204_v18 = vmul.f32 %v8473_v19, %v3203_v34  ;;  %v2894_v32 = vld [vmem:[%s8117_s19 + $0x60] sm:$0xff] }
 0x1ca   : > { %v1161_v47 = vadd.f32 %v1160_v4, %v8043_v41  ;;  %v7001_v28 = vpop.eup %7000  ;;  %v3809_v4 = vsel %vm3807_vm11, %v3808_v1, %v3806_v30  ;;  %v3785_v14 = vsel %vm3783_vm13, %v3784_v10, %v3782_v62  ;;  %v2988_v23 = vadd.f32 0.02, %v2956_v42 }
 0x1cb   : > { %v8500_v52 = vadd.f32 %v1496_v0, %v1384_v59  ;;  %v8509_v48 = vpop.eup %7002  ;;  %v3824_v0 = vmul.f32 %v8479_v39, %v3823_v15  ;;  %v3215_v59 = vmul.f32 %v7001_v28, %v8452_v5  ;;  %v3205_v1 = vmul.f32 0.5, %v3204_v18  ;;  %4199 = vperm.xlu0 %6962, %v3809_v4   ;;  %v624_v4 = vld [vmem:[%s7949_s28 + $0x220] sm:$0xff]  ;;  %v625_v18 = vld [vmem:[%s7949_s28 + $0x228] sm:$0xff] }
 0x1cc   : > { %v1274_v58 = vadd.f32 %v1273_v8, %v1161_v47  ;;  %1563 = vmatmul.f32.gmra.mxu0 %v616_v13  ;;  %1676 = vmatmul.f32.gmra.mxu1 %v617_v25  ;;  %v3191_v3 = vmul.f32 %v8509_v48, %v8456_v38  ;;  %v2957_v10 = vmul.f32 0.98, %v8486_v50  ;;  %v3020_v25 = vmax.f32 %v2988_v23, 0.0 }
 0x1cd   : > { %1789 = vmatmul.f32.gmra.mxu2 %v618_v33  ;;  %1902 = vmatmul.f32.gmra.mxu3 %v619_v61  ;;  %v3825_v8 = vmul.f32 0.5, %v3824_v0  ;;  %v3216_v13 = vmul.f32 %v7001_v28, %v3215_v59  ;;  %v8517_v34 = vmul.f32 0.01, %v2894_v32  ;;  %v3206_v42 = vsub.f32 1.5, %v3205_v1  ;;  %v626_v1 = vld [vmem:[%s7949_s28 + $0x230] sm:$0xff] }
 0x1ce   : > { %4189 = vperm.xlu2 %6964, %v3785_v14   ;;  %v3832_v47 = vand.u32 2147483648, %v8432_v46  ;;  %v3224_v0 = vand.u32 2147483648, %v8452_v5  ;;  %v3192_v59 = vmul.f32 %v8509_v48, %v3191_v3  ;;  %v8533_v49 = vmin.f32 %v3020_v25, 1.0  ;;  %v895_v25 = vld [vmem:[#allocation7 + $0x298] sm:$0xff] }
 0x1cf   : > { %11969 = vst [vmem:[#allocation36_spill] sm:$0xff] %v8517_v34  ;;  %v3826_v35 = vsub.f32 1.5, %v3825_v8  ;;  %v3217_v30 = vmul.f32 0.5, %v3216_v13  ;;  %v3207_v32 = vmul.f32 %v8473_v19, %v3206_v42  ;;  %v627_v8 = vld [vmem:[%s7949_s28 + $0x238] sm:$0xff]  ;;  %v2989_v42 = vadd.f32 0.02, %v2957_v10  ;;  %2210 = vmatpush.msra.mxu2 %v895_v25 }
 0x1d0   : > { %v1386_v33 = vpop.f32.mrf.mxu2  ;;  %v1499_v61 = vpop.f32.mrf.mxu3  ;;  %v3193_v19 = vmul.f32 0.5, %v3192_v59  ;;  %7006 = vrsqrt.f32 %v8533_v49  ;;  %v635_v25 = vld [vmem:[%s7949_s28 + $0x278] sm:$0xff]  ;;  %vm3841_vm6 = vcmp.eq.f32.partialorder %v8533_v49, inf  ;;  %vm3843_vm7 = vcmp.eq.f32.partialorder %v8533_v49, 0.0 }
 0x1d1   : > { %v1387_v62 = vadd.f32 %v1386_v33, %v1274_v58  ;;  %v1163_v15 = vpop.f32.mrf.mxu0  ;;  %v1276_v14 = vpop.f32.mrf.mxu1  ;;  %v3827_v50 = vmul.f32 %v8479_v39, %v3826_v35  ;;  %v3218_v13 = vsub.f32 1.5, %v3217_v30  ;;  %v3208_v16 = vmul.f32 %v3207_v32, %v8427_v55 }
 0x1d2   : > { %v1164_v23 = vadd.f32 %v1163_v15, %v8043_v41  ;;  %v8535_v58 = vpop.eup %7004  ;;  %v3194_v35 = vsub.f32 1.5, %v3193_v19  ;;  %v3021_v30 = vmax.f32 %v2989_v42, 0.0  ;;  %v633_v42 = vld [vmem:[%s7949_s28 + $0x268] sm:$0xff] }
 0x1d3   : > { %v8537_v33 = vadd.f32 %v1499_v61, %v1387_v62  ;;  %v3828_v3 = vmul.f32 %v3827_v50, %v8432_v46  ;;  %v3219_v15 = vmul.f32 %v7001_v28, %v3218_v13  ;;  %v3210_v39 = vsel %vm3209_vm14, %v8427_v55, %v3208_v16  ;;  %v831_v61 = vld [vmem:[#allocation7 + $0x98] sm:$0xff] }
 0x1d4   : > { %v1277_v9 = vadd.f32 %v1276_v14, %v1164_v23  ;;  %1566 = vmatmul.f32.gmra.mxu0 %v624_v4  ;;  %1679 = vmatmul.f32.gmra.mxu1 %v625_v18  ;;  %v3811_v10 = vmul.f32 %v8535_v58, %v8416_v29  ;;  %v11971_v62 = vand.u32 2147483648, %v8427_v55  ;;  %v927_v16 = vld [vmem:[#allocation7 + $0x398] sm:$0xff]  ;;  %v2958_v4 = vmul.f32 0.98, %v8517_v34  ;;  %v658_v34 = vld [vmem:[%s7949_s28 + $0x330] sm:$0xff] }
 0x1d5   : > { %11970 = vst [vmem:[#allocation37_spill] sm:$0xff] %v8537_v33  ;;  %1792 = vmatmul.f32.gmra.mxu2 %v626_v1  ;;  %1905 = vmatmul.f32.gmra.mxu3 %v627_v8  ;;  %v3830_v28 = vsel %vm3829_vm0, %v8432_v46, %v3828_v3  ;;  %v3220_v14 = vmul.f32 %v3219_v15, %v8452_v5  ;;  %v3200_v1 = vand.u32 2147483648, %v8456_v38 }
 0x1d6   : > { %v3213_v50 = vsel %vm3211_vm15, %v11971_v62, %v3210_v39  ;;  %1984 = vmatpush.msra.mxu0 %v831_v61  ;;  %2323 = vmatpush.msra.mxu3 %v927_v16  ;;  %v3195_v18 = vmul.f32 %v8509_v48, %v3194_v35  ;;  %v3833_v59 = vsel %vm3831_vm2, %v3832_v47, %v3830_v28  ;;  %v632_v48 = vld [vmem:[%s7949_s28 + $0x260] sm:$0xff]  ;;  %v7007_v47 = vpop.eup %7006  ;;  %v634_v39 = vld [vmem:[%s7949_s28 + $0x270] sm:$0xff]  ;;  %v8574_v61 = vmin.f32 %v3021_v30, 1.0  ;;  %v2895_v62 = vld [vmem:[%s8117_s19 + $0x68] sm:$0xff] }
 0x1d7   : > { %3532 = vperm.xlu1 %6963, %v3213_v50   ;;  %v3222_v23 = vsel %vm3221_vm1, %v8452_v5, %v3220_v14  ;;  %v2990_v35 = vadd.f32 0.02, %v2958_v4  ;;  %v863_v5 = vld [vmem:[#allocation7 + $0x198] sm:$0xff]  ;;  %v3835_v28 = vmul.f32 %v7007_v47, %v8533_v49  ;;  %v8584_v14 = vsub.f32 1.0, %v8533_v49  ;;  %v2896_v16 = vld [vmem:[%s8117_s19 + $0x70] sm:$0xff] }
 0x1d8   : > { %v1389_v32 = vpop.f32.mrf.mxu2  ;;  %v1502_v55 = vpop.f32.mrf.mxu3  ;;  %v3225_v3 = vsel %vm3223_vm3, %v3224_v0, %v3222_v23  ;;  %v3196_v46 = vmul.f32 %v3195_v18, %v8456_v38  ;;  %v8590_v4 = vsub.f32 1.0, %v8574_v61  ;;  %v8593_v23 = vmul.f32 0.01, %v2895_v62  ;;  %2097 = vmatpush.msra.mxu1 %v863_v5 }
 0x1d9   : > { %v1390_v8 = vadd.f32 %v1389_v32, %v1277_v9  ;;  %v1166_v13 = vpop.f32.mrf.mxu0  ;;  %v1279_v19 = vpop.f32.mrf.mxu1  ;;  %3537 = vperm.xlu0 %6962, %v3225_v3   ;;  %v3812_v9 = vmul.f32 %v8535_v58, %v3811_v10  ;;  %v3836_v32 = vmul.f32 %v7007_v47, %v3835_v28  ;;  %7008 = vrsqrt.f32 %v8584_v14  ;;  %v643_v28 = vld [vmem:[%s7949_s28 + $0x2b8] sm:$0xff] }
 0x1da   : > { %v1167_v15 = vadd.f32 %v1166_v13, %v8043_v41  ;;  %v3198_v0 = vsel %vm3197_vm4, %v8456_v38, %v3196_v46  ;;  %11973 = vst [vmem:[#allocation39_spill] sm:$0xff] %v8593_v23  ;;  %7010 = vrsqrt.f32 %v8590_v4  ;;  %v8596_v38 = vmul.f32 0.01, %v2896_v16 }
 0x1db   : > { %v8577_v50 = vadd.f32 %v1502_v55, %v1390_v8  ;;  %v3201_v10 = vsel %vm3199_vm5, %v3200_v1, %v3198_v0  ;;  %v3813_v30 = vmul.f32 0.5, %v3812_v9  ;;  %v3022_v55 = vmax.f32 %v2990_v35, 0.0  ;;  %v642_v0 = vld [vmem:[%s7949_s28 + $0x2b0] sm:$0xff] }
 0x1dc   : > { %v1280_v18 = vadd.f32 %v1279_v19, %v1167_v15  ;;  %1569 = vmatmul.f32.gmra.mxu0 %v632_v48  ;;  %1682 = vmatmul.f32.gmra.mxu1 %v633_v42  ;;  %11974 = vst [vmem:[#allocation40_spill] sm:$0xff] %v8596_v38  ;;  %v3837_v1 = vmul.f32 0.5, %v3836_v32  ;;  %v3844_v48 = vand.u32 2147483648, %v8533_v49  ;;  %v3820_v3 = vand.u32 2147483648, %v8416_v29 }
 0x1dd   : > { %11972 = vst [vmem:[#allocation38_spill] sm:$0xff] %v8577_v50  ;;  %1795 = vmatmul.f32.gmra.mxu2 %v634_v39  ;;  %1908 = vmatmul.f32.gmra.mxu3 %v635_v25  ;;  %v3814_v8 = vsub.f32 1.5, %v3813_v30  ;;  %v640_v39 = vld [vmem:[%s7949_s28 + $0x2a0] sm:$0xff]  ;;  %v641_v25 = vld [vmem:[%s7949_s28 + $0x2a8] sm:$0xff]  ;;  %v8606_v35 = vmin.f32 %v3022_v55, 1.0  ;;  %vm3245_vm10 = vcmp.eq.f32.partialorder %v8590_v4, inf }
 0x1de   : > { %3527 = vperm.xlu2 %6964, %v3201_v10   ;;  %v3838_v9 = vsub.f32 1.5, %v3837_v1  ;;  %v2959_v62 = vmul.f32 0.98, %v8593_v23  ;;  %v2960_v16 = vmul.f32 0.98, %v8596_v38  ;;  %vm3247_vm11 = vcmp.eq.f32.partialorder %v8590_v4, 0.0 }
 0x1df   : > { %4209 = vperm.xlu1 %6963, %v3833_v59   ;;  %v3815_v42 = vmul.f32 %v8535_v58, %v3814_v8  ;;  %7012 = vrsqrt.f32 %v8606_v35  ;;  %v8621_v32 = vsub.f32 1.0, %v8606_v35  ;;  %vm3865_vm12 = vcmp.eq.f32.partialorder %v8606_v35, inf  ;;  %v659_v50 = vld [vmem:[%s7949_s28 + $0x338] sm:$0xff] }
 0x1e0   : > { %v1392_v13 = vpop.f32.mrf.mxu2  ;;  %v1505_v19 = vpop.f32.mrf.mxu3  ;;  %v3839_v30 = vmul.f32 %v7007_v47, %v3838_v9  ;;  %vm3867_vm13 = vcmp.eq.f32.partialorder %v8606_v35, 0.0  ;;  %vm3233_vm0 = vcmp.eq.f32.partialorder %v8584_v14, inf  ;;  %vm3235_vm1 = vcmp.eq.f32.partialorder %v8584_v14, 0.0 }
 0x1e1   : > { %v1393_v46 = vadd.f32 %v1392_v13, %v1280_v18  ;;  %v1169_v15 = vpop.f32.mrf.mxu0  ;;  %v1282_v59 = vpop.f32.mrf.mxu1  ;;  %v3816_v58 = vmul.f32 %v3815_v42, %v8416_v29  ;;  %7014 = vrsqrt.f32 %v8621_v32  ;;  %vm3257_vm14 = vcmp.eq.f32.partialorder %v8621_v32, inf }
 0x1e2   : > { %v1170_v5 = vadd.f32 %v1169_v15, %v8043_v41  ;;  %v8615_v18 = vpop.eup %7008  ;;  %v3840_v47 = vmul.f32 %v3839_v30, %v8533_v49  ;;  %v893_v15 = vld [vmem:[#allocation7 + $0x288] sm:$0xff]  ;;  %7016 = vrsqrt.f32 %v8574_v61  ;;  %vm3259_vm15 = vcmp.eq.f32.partialorder %v8621_v32, 0.0 }
 0x1e3   : > { %v8617_v10 = vadd.f32 %v1505_v19, %v1393_v46  ;;  %v8623_v55 = vpop.eup %7010  ;;  %v3818_v1 = vsel %vm3817_vm8, %v8416_v29, %v3816_v58  ;;  %v3227_v13 = vmul.f32 %v8615_v18, %v8584_v14  ;;  %v2991_v19 = vadd.f32 0.02, %v2959_v62  ;;  %2211 = vmatpush.msra.mxu2 %v893_v15  ;;  %v2897_v62 = vld [vmem:[%s8117_s19 + $0x78] sm:$0xff] }
 0x1e4   : > { %v1283_v8 = vadd.f32 %v1282_v59, %v1170_v5  ;;  %1572 = vmatmul.f32.gmra.mxu0 %v640_v39  ;;  %1685 = vmatmul.f32.gmra.mxu1 %v641_v25  ;;  %v3821_v42 = vsel %vm3819_vm9, %v3820_v3, %v3818_v1  ;;  %v3239_v46 = vmul.f32 %v8623_v55, %v8590_v4  ;;  %v829_v59 = vld [vmem:[#allocation7 + $0x88] sm:$0xff]  ;;  %v2992_v58 = vadd.f32 0.02, %v2960_v16 }
 0x1e5   : > { %11975 = vst [vmem:[#allocation41_spill] sm:$0xff] %v8617_v10  ;;  %1798 = vmatmul.f32.gmra.mxu2 %v642_v0  ;;  %1911 = vmatmul.f32.gmra.mxu3 %v643_v28  ;;  %v925_v39 = vld [vmem:[#allocation7 + $0x388] sm:$0xff]  ;;  %v3228_v25 = vmul.f32 %v8615_v18, %v3227_v13  ;;  %v3023_v9 = vmax.f32 %v2991_v19, 0.0  ;;  %v3842_v29 = vsel %vm3841_vm6, %v8533_v49, %v3840_v47  ;;  %v8647_v30 = vpop.eup %7012  ;;  %v648_v47 = vld [vmem:[%s7949_s28 + $0x2e0] sm:$0xff]  ;;  %vm3853_vm4 = vcmp.eq.f32.partialorder %v8574_v61, inf }
 0x1e6   : > { %4204 = vperm.xlu2 %6964, %v3821_v42   ;;  %v3240_v3 = vmul.f32 %v8623_v55, %v3239_v46  ;;  %1985 = vmatpush.msra.mxu0 %v829_v59  ;;  %v3845_v28 = vsel %vm3843_vm7, %v3844_v48, %v3842_v29  ;;  %v649_v42 = vld [vmem:[%s7949_s28 + $0x2e8] sm:$0xff]  ;;  %v8651_v59 = vmul.f32 0.01, %v2897_v62  ;;  %v650_v48 = vld [vmem:[%s7949_s28 + $0x2f0] sm:$0xff]  ;;  %v3248_v29 = vand.u32 2147483648, %v8590_v4 }
 0x1e7   : > { %2324 = vmatpush.msra.mxu3 %v925_v39  ;;  %4214 = vperm.xlu0 %6962, %v3845_v28   ;;  %v3229_v15 = vmul.f32 0.5, %v3228_v25  ;;  %v651_v39 = vld [vmem:[%s7949_s28 + $0x2f8] sm:$0xff]  ;;  %v3859_v16 = vmul.f32 %v8647_v30, %v8606_v35  ;;  %v8659_v23 = vmin.f32 %v3023_v9, 1.0  ;;  %v861_v28 = vld [vmem:[#allocation7 + $0x188] sm:$0xff]  ;;  %v3024_v9 = vmax.f32 %v2992_v58, 0.0  ;;  %v656_v58 = vld [vmem:[%s7949_s28 + $0x320] sm:$0xff] }
 0x1e8   : > { %v1395_v5 = vpop.f32.mrf.mxu2  ;;  %v1508_v0 = vpop.f32.mrf.mxu3  ;;  %v3241_v46 = vmul.f32 0.5, %v3240_v3  ;;  %11976 = vst [vmem:[#allocation42_spill] sm:$0xff] %v8651_v59  ;;  %2098 = vmatpush.msra.mxu1 %v861_v28  ;;  %v2898_v28 = vld [vmem:[%s8117_s19 + $0x80] sm:$0xff]  ;;  %vm3855_vm5 = vcmp.eq.f32.partialorder %v8574_v61, 0.0 }
 0x1e9   : > { %v1396_v1 = vadd.f32 %v1395_v5, %v1283_v8  ;;  %v1172_v13 = vpop.f32.mrf.mxu0  ;;  %v1285_v19 = vpop.f32.mrf.mxu1  ;;  %v3230_v62 = vsub.f32 1.5, %v3229_v15  ;;  %7018 = vrsqrt.f32 %v8659_v23  ;;  %vm3877_vm2 = vcmp.eq.f32.partialorder %v8659_v23, inf }
 0x1ea   : > { %v1173_v49 = vadd.f32 %v1172_v13, %v8043_v41  ;;  %v7015_v8 = vpop.eup %7014  ;;  %v3242_v38 = vsub.f32 1.5, %v3241_v46  ;;  %v3860_v13 = vmul.f32 %v8647_v30, %v3859_v16  ;;  %v8684_v16 = vmin.f32 %v3024_v9, 1.0 }
 0x1eb   : > { %v8661_v5 = vadd.f32 %v1508_v0, %v1396_v1  ;;  %v8665_v3 = vpop.eup %7016  ;;  %v3251_v10 = vmul.f32 %v7015_v8, %v8621_v32  ;;  %v3231_v46 = vmul.f32 %v8615_v18, %v3230_v62  ;;  %v3236_v18 = vand.u32 2147483648, %v8584_v14 }
 0x1ec   : > { %1575 = vmatmul.f32.gmra.mxu0 %v648_v47  ;;  %1688 = vmatmul.f32.gmra.mxu1 %v649_v42  ;;  %v1286_v0 = vadd.f32 %v1285_v19, %v1173_v49  ;;  %v3243_v1 = vmul.f32 %v8623_v55, %v3242_v38  ;;  %v2961_v47 = vmul.f32 0.98, %v8651_v59  ;;  %v3861_v42 = vmul.f32 0.5, %v3860_v13 }
 0x1ed   : > { %11977 = vst [vmem:[#allocation43_spill] sm:$0xff] %v8661_v5  ;;  %1801 = vmatmul.f32.gmra.mxu2 %v650_v48  ;;  %1914 = vmatmul.f32.gmra.mxu3 %v651_v39  ;;  %v3252_v15 = vmul.f32 %v7015_v8, %v3251_v10  ;;  %v3847_v38 = vmul.f32 %v8665_v3, %v8574_v61  ;;  %vm3879_vm3 = vcmp.eq.f32.partialorder %v8659_v23, 0.0 }
 0x1ee   : > { %v3244_v55 = vmul.f32 %v3243_v1, %v8590_v4  ;;  %v3232_v19 = vmul.f32 %v3231_v46, %v8584_v14  ;;  %v3862_v10 = vsub.f32 1.5, %v3861_v42  ;;  %v657_v46 = vld [vmem:[%s7949_s28 + $0x328] sm:$0xff]  ;;  %v2993_v59 = vadd.f32 0.02, %v2961_v47 }
 0x1ef   : > { %v3253_v39 = vmul.f32 0.5, %v3252_v15  ;;  %v7019_v42 = vpop.eup %7018  ;;  %v8704_v47 = vmul.f32 0.01, %v2898_v28  ;;  %v11980_v28 = vand.u32 2147483648, %v8606_v35 }
 0x1f0   : > { %v1398_v49 = vpop.f32.mrf.mxu2  ;;  %v1511_v48 = vpop.f32.mrf.mxu3  ;;  %v3246_v25 = vsel %vm3245_vm10, %v8590_v4, %v3244_v55  ;;  %v3234_v5 = vsel %vm3233_vm0, %v8584_v14, %v3232_v19  ;;  %v3871_v19 = vmul.f32 %v7019_v42, %v8659_v23  ;;  %v8709_v4 = vsub.f32 1.0, %v8684_v16  ;;  %v891_v14 = vld [vmem:[#allocation7 + $0x278] sm:$0xff] }
 0x1f1   : > { %v1399_v62 = vadd.f32 %v1398_v49, %v1286_v0  ;;  %v1175_v13 = vpop.f32.mrf.mxu0  ;;  %v1288_v1 = vpop.f32.mrf.mxu1  ;;  %v3249_v9 = vsel %vm3247_vm11, %v3248_v29, %v3246_v25  ;;  %v3863_v0 = vmul.f32 %v8647_v30, %v3862_v10  ;;  %v3254_v49 = vsub.f32 1.5, %v3253_v39  ;;  %11979 = vst [vmem:[#allocation45_spill] sm:$0xff] %v8704_v47  ;;  %2212 = vmatpush.msra.mxu2 %v891_v14  ;;  %v666_v14 = vld [vmem:[%s7949_s28 + $0x370] sm:$0xff] }
 0x1f2   : > { %v1176_v15 = vadd.f32 %v1175_v13, %v8043_v41  ;;  %3547 = vperm.xlu1 %6963, %v3249_v9   ;;  %v3237_v55 = vsel %vm3235_vm1, %v3236_v18, %v3234_v5  ;;  %v3872_v29 = vmul.f32 %v7019_v42, %v3871_v19  ;;  %v827_v5 = vld [vmem:[#allocation7 + $0x78] sm:$0xff]  ;;  %v3848_v25 = vmul.f32 %v8665_v3, %v3847_v38 }
 0x1f3   : > { %v8699_v33 = vadd.f32 %v1511_v48, %v1399_v62  ;;  %v3864_v13 = vmul.f32 %v3863_v0, %v8606_v35  ;;  %v3255_v26 = vmul.f32 %v7015_v8, %v3254_v49  ;;  %3542 = vperm.xlu2 %6964, %v3237_v55   ;;  %v923_v18 = vld [vmem:[#allocation7 + $0x378] sm:$0xff]  ;;  %7020 = vrsqrt.f32 %v8709_v4  ;;  %1986 = vmatpush.msra.mxu0 %v827_v5  ;;  %v664_v0 = vld [vmem:[%s7949_s28 + $0x360] sm:$0xff]  ;;  %v665_v49 = vld [vmem:[%s7949_s28 + $0x368] sm:$0xff] }
 0x1f4   : > { %1578 = vmatmul.f32.gmra.mxu0 %v656_v58  ;;  %1691 = vmatmul.f32.gmra.mxu1 %v657_v46  ;;  %v1289_v30 = vadd.f32 %v1288_v1, %v1176_v15  ;;  %v3880_v48 = vand.u32 2147483648, %v8659_v23  ;;  %v3849_v38 = vmul.f32 0.5, %v3848_v25  ;;  %v8720_v10 = vsub.f32 1.0, %v8659_v23  ;;  %v667_v5 = vld [vmem:[%s7949_s28 + $0x378] sm:$0xff] }
 0x1f5   : > { %11978 = vst [vmem:[#allocation44_spill] sm:$0xff] %v8699_v33  ;;  %1804 = vmatmul.f32.gmra.mxu2 %v658_v34  ;;  %1917 = vmatmul.f32.gmra.mxu3 %v659_v50  ;;  %v3866_v58 = vsel %vm3865_vm12, %v8606_v35, %v3864_v13  ;;  %v3256_v8 = vmul.f32 %v3255_v26, %v8621_v32  ;;  %v3025_v34 = vmax.f32 %v2993_v59, 0.0  ;;  %v3873_v50 = vmul.f32 0.5, %v3872_v29 }
 0x1f6   : > { %2325 = vmatpush.msra.mxu3 %v923_v18  ;;  %v3869_v59 = vsel %vm3867_vm13, %v11980_v28, %v3866_v58  ;;  %v2962_v1 = vmul.f32 0.98, %v8704_v47  ;;  %v11981_v55 = vand.u32 2147483648, %v8621_v32  ;;  %v3850_v13 = vsub.f32 1.5, %v3849_v38 }
 0x1f7   : > { %v3258_v62 = vsel %vm3257_vm14, %v8621_v32, %v3256_v8  ;;  %v3874_v35 = vsub.f32 1.5, %v3873_v50  ;;  %v8742_v25 = vmin.f32 %v3025_v34, 1.0  ;;  %7022 = vrsqrt.f32 %v8720_v10 }
 0x1f8   : > { %v1401_v39 = vpop.f32.mrf.mxu2  ;;  %v1514_v26 = vpop.f32.mrf.mxu3  ;;  %v3261_v19 = vsel %vm3259_vm15, %v11981_v55, %v3258_v62  ;;  %v3851_v32 = vmul.f32 %v8665_v3, %v3850_v13  ;;  %vm3281_vm6 = vcmp.eq.f32.partialorder %v8709_v4, inf  ;;  %vm3283_vm7 = vcmp.eq.f32.partialorder %v8709_v4, 0.0 }
 0x1f9   : > { %v1402_v46 = vadd.f32 %v1401_v39, %v1289_v30  ;;  %v1178_v15 = vpop.f32.mrf.mxu0  ;;  %v1291_v9 = vpop.f32.mrf.mxu1  ;;  %3552 = vperm.xlu0 %6962, %v3261_v19   ;;  %v3856_v30 = vand.u32 2147483648, %v8574_v61  ;;  %v3875_v8 = vmul.f32 %v7019_v42, %v3874_v35  ;;  %7024 = vrsqrt.f32 %v8742_v25  ;;  %v859_v42 = vld [vmem:[#allocation7 + $0x178] sm:$0xff] }
 0x1fa   : > { %v1179_v29 = vadd.f32 %v1178_v15, %v8043_v41  ;;  %4224 = vperm.xlu1 %6963, %v3869_v59   ;;  %v7021_v18 = vpop.eup %7020  ;;  %v8750_v38 = vsub.f32 1.0, %v8742_v25  ;;  %v2994_v39 = vadd.f32 0.02, %v2962_v1  ;;  %v3852_v3 = vmul.f32 %v3851_v32, %v8574_v61  ;;  %2099 = vmatpush.msra.mxu1 %v859_v42 }
 0x1fb   : > { %v8744_v58 = vadd.f32 %v1514_v26, %v1402_v46  ;;  %v3876_v34 = vmul.f32 %v3875_v8, %v8659_v23  ;;  %v3275_v26 = vmul.f32 %v7021_v18, %v8709_v4  ;;  %7026 = vrsqrt.f32 %v8684_v16 }
 0x1fc   : > { %v1292_v50 = vadd.f32 %v1291_v9, %v1179_v29  ;;  %1581 = vmatmul.f32.gmra.mxu0 %v664_v0  ;;  %1694 = vmatmul.f32.gmra.mxu1 %v665_v49  ;;  %7028 = vrsqrt.f32 %v8750_v38  ;;  %v3026_v28 = vmax.f32 %v2994_v39, 0.0  ;;  %v3854_v62 = vsel %vm3853_vm4, %v8574_v61, %v3852_v3  ;;  %v2899_v49 = vld [vmem:[%s8117_s19 + $0x88] sm:$0xff]  ;;  %v672_v29 = vld [vmem:[%s7949_s28 + $0x3a0] sm:$0xff] }
 0x1fd   : > { %11982 = vst [vmem:[#allocation46_spill] sm:$0xff] %v8744_v58  ;;  %1807 = vmatmul.f32.gmra.mxu2 %v666_v14  ;;  %1920 = vmatmul.f32.gmra.mxu3 %v667_v5  ;;  %v3878_v59 = vsel %vm3877_vm2, %v8659_v23, %v3876_v34  ;;  %v3276_v1 = vmul.f32 %v7021_v18, %v3275_v26  ;;  %v8768_v55 = vpop.eup %7022  ;;  %v673_v14 = vld [vmem:[%s7949_s28 + $0x3a8] sm:$0xff]  ;;  %v3284_v8 = vand.u32 2147483648, %v8709_v4  ;;  %v8790_v26 = vmul.f32 0.01, %v2899_v49  ;;  %v683_v58 = vld [vmem:[%s7949_s28 + $0x3f8] sm:$0xff] }
 0x1fe   : > { %v3881_v9 = vsel %vm3879_vm3, %v3880_v48, %v3878_v59  ;;  %v3857_v0 = vsel %vm3855_vm5, %v3856_v30, %v3854_v62  ;;  %v674_v48 = vld [vmem:[%s7949_s28 + $0x3b0] sm:$0xff]  ;;  %v675_v30 = vld [vmem:[%s7949_s28 + $0x3b8] sm:$0xff]  ;;  %v3263_v32 = vmul.f32 %v8768_v55, %v8720_v10  ;;  %vm3901_vm8 = vcmp.eq.f32.partialorder %v8742_v25, inf }
 0x1ff   : > { %4219 = vperm.xlu2 %6964, %v3857_v0   ;;  %v3277_v5 = vmul.f32 0.5, %v3276_v1  ;;  %v8774_v23 = vpop.eup %7024  ;;  %vm3903_vm9 = vcmp.eq.f32.partialorder %v8742_v25, 0.0  ;;  %vm3293_vm10 = vcmp.eq.f32.partialorder %v8750_v38, inf  ;;  %vm3295_vm11 = vcmp.eq.f32.partialorder %v8750_v38, 0.0 }
 0x200   : > { %v1404_v46 = vpop.f32.mrf.mxu2  ;;  %v1517_v15 = vpop.f32.mrf.mxu3  ;;  %v3895_v3 = vmul.f32 %v8774_v23, %v8742_v25  ;;  %vm3269_vm12 = vcmp.eq.f32.partialorder %v8720_v10, inf  ;;  %vm3271_vm13 = vcmp.eq.f32.partialorder %v8720_v10, 0.0  ;;  %vm3889_vm15 = vcmp.eq.f32.partialorder %v8684_v16, inf }
 0x201   : > { %v1405_v19 = vadd.f32 %v1404_v46, %v1292_v50  ;;  %v1181_v35 = vpop.f32.mrf.mxu0  ;;  %v1294_v13 = vpop.f32.mrf.mxu1  ;;  %4229 = vperm.xlu0 %6962, %v3881_v9   ;;  %v8782_v50 = vmin.f32 %v3026_v28, 1.0  ;;  %v3278_v42 = vsub.f32 1.5, %v3277_v5  ;;  %v3264_v28 = vmul.f32 %v8768_v55, %v3263_v32  ;;  %v921_v5 = vld [vmem:[#allocation7 + $0x368] sm:$0xff] }
 0x202   : > { %v1182_v61 = vadd.f32 %v1181_v35, %v8043_v41  ;;  %v8784_v39 = vpop.eup %7026  ;;  %2326 = vmatpush.msra.mxu3 %v921_v5  ;;  %v2900_v5 = vld [vmem:[%s8117_s19 + $0x90] sm:$0xff]  ;;  %vm3891_vm0 = vcmp.eq.f32.partialorder %v8684_v16, 0.0 }
 0x203   : > { %v8786_v34 = vadd.f32 %v1517_v15, %v1405_v19  ;;  %v8792_v59 = vpop.eup %7028  ;;  %7030 = vrsqrt.f32 %v8782_v50  ;;  %v3883_v1 = vmul.f32 %v8784_v39, %v8684_v16  ;;  %v3279_v46 = vmul.f32 %v7021_v18, %v3278_v42  ;;  %v889_v18 = vld [vmem:[#allocation7 + $0x268] sm:$0xff] }
 0x204   : > { %v1295_v62 = vadd.f32 %v1294_v13, %v1182_v61  ;;  %1584 = vmatmul.f32.gmra.mxu0 %v672_v29  ;;  %1697 = vmatmul.f32.gmra.mxu1 %v673_v14  ;;  %v3896_v15 = vmul.f32 %v8774_v23, %v3895_v3  ;;  %v3287_v9 = vmul.f32 %v8792_v59, %v8750_v38  ;;  %v3265_v19 = vmul.f32 0.5, %v3264_v28  ;;  %v825_v14 = vld [vmem:[#allocation7 + $0x68] sm:$0xff] }
 0x205   : > { %11983 = vst [vmem:[#allocation47_spill] sm:$0xff] %v8786_v34  ;;  %1810 = vmatmul.f32.gmra.mxu2 %v674_v48  ;;  %1923 = vmatmul.f32.gmra.mxu3 %v675_v30  ;;  %v3280_v35 = vmul.f32 %v3279_v46, %v8709_v4  ;;  %v2963_v61 = vmul.f32 0.98, %v8790_v26  ;;  %v3884_v42 = vmul.f32 %v8784_v39, %v3883_v1  ;;  %v682_v34 = vld [vmem:[%s7949_s28 + $0x3f0] sm:$0xff]  ;;  %vm3913_vm14 = vcmp.eq.f32.partialorder %v8782_v50, inf }
 0x206   : > { %v3897_v13 = vmul.f32 0.5, %v3896_v15  ;;  %v3288_v29 = vmul.f32 %v8792_v59, %v3287_v9  ;;  %2213 = vmatpush.msra.mxu2 %v889_v18  ;;  %1987 = vmatpush.msra.mxu0 %v825_v14  ;;  %v3266_v32 = vsub.f32 1.5, %v3265_v19  ;;  %v680_v15 = vld [vmem:[%s7949_s28 + $0x3e0] sm:$0xff]  ;;  %v681_v9 = vld [vmem:[%s7949_s28 + $0x3e8] sm:$0xff]  ;;  %vm3915_vm1 = vcmp.eq.f32.partialorder %v8782_v50, 0.0 }
 0x207   : > { %v3282_v49 = vsel %vm3281_vm6, %v8709_v4, %v3280_v35  ;;  %v3885_v4 = vmul.f32 0.5, %v3884_v42  ;;  %v8840_v42 = vsub.f32 1.0, %v8782_v50 }
 0x208   : > { %v1407_v48 = vpop.f32.mrf.mxu2  ;;  %v1520_v30 = vpop.f32.mrf.mxu3  ;;  %v3898_v18 = vsub.f32 1.5, %v3897_v13  ;;  %v3289_v14 = vmul.f32 0.5, %v3288_v29  ;;  %v3267_v1 = vmul.f32 %v8768_v55, %v3266_v32 }
 0x209   : > { %v1408_v3 = vadd.f32 %v1407_v48, %v1295_v62  ;;  %v1184_v28 = vpop.f32.mrf.mxu0  ;;  %v1297_v46 = vpop.f32.mrf.mxu1  ;;  %v3285_v62 = vsel %vm3283_vm7, %v3284_v8, %v3282_v49  ;;  %v3272_v48 = vand.u32 2147483648, %v8720_v10  ;;  %v857_v49 = vld [vmem:[#allocation7 + $0x168] sm:$0xff]  ;;  %v3886_v32 = vsub.f32 1.5, %v3885_v4 }
 0x20a   : > { %v7031_v19 = vpop.eup %7030  ;;  %v1185_v0 = vadd.f32 %v1184_v28, %v8043_v41  ;;  %3562 = vperm.xlu1 %6963, %v3285_v62   ;;  %v3899_v35 = vmul.f32 %v8774_v23, %v3898_v18  ;;  %v3290_v13 = vsub.f32 1.5, %v3289_v14  ;;  %v3268_v41 = vmul.f32 %v3267_v1, %v8720_v10  ;;  %2100 = vmatpush.msra.mxu1 %v857_v49  ;;  %v688_v1 = vld [vmem:[%s7949_s28 + $0x420] sm:$0xff] }
 0x20b   : > { %v8825_v47 = vadd.f32 %v1520_v30, %v1408_v3  ;;  %v3907_v29 = vmul.f32 %v7031_v19, %v8782_v50  ;;  %v2995_v30 = vadd.f32 0.02, %v2963_v61  ;;  %v8837_v3 = vmul.f32 0.01, %v2900_v5  ;;  %v691_v5 = vld [vmem:[%s7949_s28 + $0x438] sm:$0xff] }
 0x20c   : > { %v1298_v33 = vadd.f32 %v1297_v46, %v1185_v0  ;;  %1587 = vmatmul.f32.gmra.mxu0 %v680_v15  ;;  %1700 = vmatmul.f32.gmra.mxu1 %v681_v9  ;;  %v3900_v55 = vmul.f32 %v3899_v35, %v8742_v25  ;;  %v3291_v8 = vmul.f32 %v8792_v59, %v3290_v13  ;;  %v11984_v15 = vand.u32 2147483648, %v8742_v25 }
 0x20d   : > { %1813 = vmatmul.f32.gmra.mxu2 %v682_v34  ;;  %1926 = vmatmul.f32.gmra.mxu3 %v683_v58  ;;  %v3908_v23 = vmul.f32 %v7031_v19, %v3907_v29  ;;  %v3270_v0 = vsel %vm3269_vm12, %v8720_v10, %v3268_v41  ;;  %v3887_v18 = vmul.f32 %v8784_v39, %v3886_v32  ;;  %v3892_v13 = vand.u32 2147483648, %v8684_v16  ;;  %v690_v39 = vld [vmem:[%s7949_s28 + $0x430] sm:$0xff] }
 0x20e   : > { %v3902_v58 = vsel %vm3901_vm8, %v8742_v25, %v3900_v55  ;;  %v3292_v34 = vmul.f32 %v3291_v8, %v8750_v38  ;;  %v3273_v59 = vsel %vm3271_vm13, %v3272_v48, %v3270_v0  ;;  %v689_v48 = vld [vmem:[%s7949_s28 + $0x428] sm:$0xff]  ;;  %v11985_v41 = vand.u32 2147483648, %v8750_v38 }
 0x20f   : > { %v3909_v61 = vmul.f32 0.5, %v3908_v23  ;;  %v3905_v9 = vsel %vm3903_vm9, %v11984_v15, %v3902_v58  ;;  %3557 = vperm.xlu2 %6964, %v3273_v59   ;;  %v3888_v4 = vmul.f32 %v3887_v18, %v8684_v16  ;;  %v3027_v55 = vmax.f32 %v2995_v30, 0.0  ;;  %v823_v15 = vld [vmem:[#allocation7 + $0x58] sm:$0xff] }
 0x210   : > { %v1410_v28 = vpop.f32.mrf.mxu2  ;;  %v1523_v46 = vpop.f32.mrf.mxu3  ;;  %v3294_v35 = vsel %vm3293_vm10, %v8750_v38, %v3292_v34  ;;  %v2964_v23 = vmul.f32 0.98, %v8837_v3  ;;  %v3916_v32 = vand.u32 2147483648, %v8782_v50  ;;  %7032 = vrsqrt.f32 %v8840_v42  ;;  %1988 = vmatpush.msra.mxu0 %v823_v15 }
 0x211   : > { %v1411_v14 = vadd.f32 %v1410_v28, %v1298_v33  ;;  %v1543_v10 = vpop.f32.mrf.mxu0  ;;  %v1656_v62 = vpop.f32.mrf.mxu1  ;;  %v3910_v25 = vsub.f32 1.5, %v3909_v61  ;;  %v3297_v33 = vsel %vm3295_vm11, %v11985_v41, %v3294_v35  ;;  %v3890_v38 = vsel %vm3889_vm15, %v8684_v16, %v3888_v4  ;;  %v696_v35 = vld [vmem:[%s7949_s28 + $0x460] sm:$0xff]  ;;  %v855_v4 = vld [vmem:[#allocation7 + $0x158] sm:$0xff] }
 0x212   : > { %v1544_v29 = vadd.f32 %v1543_v10, %v8055_v63  ;;  %4239 = vperm.xlu1 %6963, %v3905_v9   ;;  %3567 = vperm.xlu0 %6962, %v3297_v33   ;;  %v2901_v63 = vld [vmem:[%s8117_s19 + $0x98] sm:$0xff]  ;;  %v8878_v30 = vmin.f32 %v3027_v55, 1.0  ;;  %v3893_v58 = vsel %vm3891_vm0, %v3892_v13, %v3890_v38  ;;  %v2996_v34 = vadd.f32 0.02, %v2964_v23 }
 0x213   : > { %v8869_v8 = vadd.f32 %v1523_v46, %v1411_v14  ;;  %v3911_v49 = vmul.f32 %v7031_v19, %v3910_v25  ;;  %v8887_v61 = vmul.f32 0.01, %v2901_v63  ;;  %v887_v46 = vld [vmem:[#allocation7 + $0x258] sm:$0xff]  ;;  %v697_v25 = vld [vmem:[%s7949_s28 + $0x468] sm:$0xff]  ;;  %v2902_v63 = vld [vmem:[%s8117_s19 + $0xa0] sm:$0xff]  ;;  %2101 = vmatpush.msra.mxu1 %v855_v4  ;;  %vm3305_vm5 = vcmp.eq.f32.partialorder %v8840_v42, inf }
 0x214   : > { %v1657_v0 = vadd.f32 %v1656_v62, %v1544_v29  ;;  %1590 = vmatmul.f32.gmra.mxu0 %v688_v1  ;;  %1703 = vmatmul.f32.gmra.mxu1 %v689_v48  ;;  %v8885_v59 = vsub.f32 1.0, %v8878_v30  ;;  %v919_v9 = vld [vmem:[#allocation7 + $0x358] sm:$0xff]  ;;  %v3028_v18 = vmax.f32 %v2996_v34, 0.0  ;;  %7034 = vrsqrt.f32 %v8878_v30  ;;  %v2903_v4 = vld [vmem:[%s8117_s19 + $0xa8] sm:$0xff] }
 0x215   : > { %1816 = vmatmul.f32.gmra.mxu2 %v690_v39  ;;  %1929 = vmatmul.f32.gmra.mxu3 %v691_v5  ;;  %v3912_v19 = vmul.f32 %v3911_v49, %v8782_v50  ;;  %v2965_v29 = vmul.f32 0.98, %v8887_v61  ;;  %v698_v39 = vld [vmem:[%s7949_s28 + $0x470] sm:$0xff]  ;;  %v699_v5 = vld [vmem:[%s7949_s28 + $0x478] sm:$0xff]  ;;  %vm3307_vm7 = vcmp.eq.f32.partialorder %v8840_v42, 0.0  ;;  %vm3925_vm10 = vcmp.eq.f32.partialorder %v8878_v30, inf }
 0x216   : > { %7036 = vrsqrt.f32 %v8885_v59  ;;  %2214 = vmatpush.msra.mxu2 %v887_v46  ;;  %2327 = vmatpush.msra.mxu3 %v919_v9  ;;  %v8898_v13 = vmin.f32 %v3028_v18, 1.0  ;;  %v7033_v41 = vpop.eup %7032  ;;  %vm3317_vm2 = vcmp.eq.f32.partialorder %v8885_v59, inf  ;;  %vm3319_vm3 = vcmp.eq.f32.partialorder %v8885_v59, 0.0 }
 0x217   : > { %v3914_v28 = vsel %vm3913_vm14, %v8782_v50, %v3912_v19  ;;  %4234 = vperm.xlu2 %6964, %v3893_v58   ;;  %v3299_v23 = vmul.f32 %v7033_v41, %v8840_v42  ;;  %v8916_v58 = vmul.f32 0.01, %v2902_v63  ;;  %vm3927_vm11 = vcmp.eq.f32.partialorder %v8878_v30, 0.0 }
 0x218   : > { %v1769_v16 = vpop.f32.mrf.mxu2  ;;  %v1882_v14 = vpop.f32.mrf.mxu3  ;;  %v3917_v10 = vsel %vm3915_vm1, %v3916_v32, %v3914_v28  ;;  %7038 = vrsqrt.f32 %v8898_v13  ;;  %v8908_v49 = vsub.f32 1.0, %v8898_v13  ;;  %vm3937_vm4 = vcmp.eq.f32.partialorder %v8898_v13, inf }
 0x219   : > { %v1770_v62 = vadd.f32 %v1769_v16, %v1657_v0  ;;  %v1546_v1 = vpop.f32.mrf.mxu0  ;;  %v1659_v48 = vpop.f32.mrf.mxu1  ;;  %v3300_v19 = vmul.f32 %v7033_v41, %v3299_v23  ;;  %vm3939_vm6 = vcmp.eq.f32.partialorder %v8898_v13, 0.0 }
 0x21a   : > { %v1547_v50 = vadd.f32 %v1546_v1, %v8062_v12  ;;  %4244 = vperm.xlu0 %6962, %v3917_v10   ;;  %v8912_v0 = vpop.eup %7034  ;;  %v2997_v12 = vadd.f32 0.02, %v2965_v29  ;;  %7040 = vrsqrt.f32 %v8908_v49  ;;  %v704_v10 = vld [vmem:[%s7949_s28 + $0x4a0] sm:$0xff]  ;;  %v707_v29 = vld [vmem:[%s7949_s28 + $0x4b8] sm:$0xff]  ;;  %vm3329_vm8 = vcmp.eq.f32.partialorder %v8908_v49, inf }
 0x21b   : > { %v8904_v33 = vadd.f32 %v1882_v14, %v1770_v62  ;;  %v3919_v15 = vmul.f32 %v8912_v0, %v8878_v30  ;;  %v705_v62 = vld [vmem:[%s7949_s28 + $0x4a8] sm:$0xff]  ;;  %vm3331_vm9 = vcmp.eq.f32.partialorder %v8908_v49, 0.0 }
 0x21c   : > { %v1660_v55 = vadd.f32 %v1659_v48, %v1547_v50  ;;  %1593 = vmatmul.f32.gmra.mxu0 %v696_v35  ;;  %1706 = vmatmul.f32.gmra.mxu1 %v697_v25  ;;  %v7037_v32 = vpop.eup %7036  ;;  %v3029_v46 = vmax.f32 %v2997_v12, 0.0  ;;  %v3301_v48 = vmul.f32 0.5, %v3300_v19  ;;  %v706_v25 = vld [vmem:[%s7949_s28 + $0x4b0] sm:$0xff]  ;;  %v2966_v12 = vmul.f32 0.98, %v8916_v58 }
 0x21d   : > { %11986 = vst [vmem:[#allocation48_spill] sm:$0xff] %v8904_v33  ;;  %1819 = vmatmul.f32.gmra.mxu2 %v698_v39  ;;  %1932 = vmatmul.f32.gmra.mxu3 %v699_v5  ;;  %v3311_v38 = vmul.f32 %v7037_v32, %v8885_v59  ;;  %v3920_v63 = vmul.f32 %v8912_v0, %v3919_v15  ;;  %v715_v33 = vld [vmem:[%s7949_s28 + $0x4f8] sm:$0xff] }
 0x21e   : > { %v8921_v9 = vpop.eup %7038  ;;  %v8932_v5 = vmin.f32 %v3029_v46, 1.0 }
 0x21f   : > { %v3312_v1 = vmul.f32 %v7037_v32, %v3311_v38  ;;  %v3931_v39 = vmul.f32 %v8921_v9, %v8898_v13 }
 0x220   : > { %v1772_v34 = vpop.f32.mrf.mxu2  ;;  %v1885_v28 = vpop.f32.mrf.mxu3  ;;  %7042 = vrsqrt.f32 %v8932_v5  ;;  %vm3949_vm12 = vcmp.eq.f32.partialorder %v8932_v5, inf  ;;  %vm3951_vm13 = vcmp.eq.f32.partialorder %v8932_v5, 0.0 }
 0x221   : > { %v1773_v18 = vadd.f32 %v1772_v34, %v1660_v55  ;;  %v1549_v16 = vpop.f32.mrf.mxu0  ;;  %v1662_v14 = vpop.f32.mrf.mxu1  ;;  %v3313_v23 = vmul.f32 0.5, %v3312_v1  ;;  %v3302_v34 = vsub.f32 1.5, %v3301_v48  ;;  %v3308_v1 = vand.u32 2147483648, %v8840_v42  ;;  %v885_v48 = vld [vmem:[#allocation7 + $0x248] sm:$0xff] }
 0x222   : > { %v1550_v35 = vadd.f32 %v1549_v16, %v8069_v27  ;;  %v7041_v38 = vpop.eup %7040  ;;  %v3932_v27 = vmul.f32 %v8921_v9, %v3931_v39  ;;  %2215 = vmatpush.msra.mxu2 %v885_v48  ;;  %v713_v16 = vld [vmem:[%s7949_s28 + $0x4e8] sm:$0xff] }
 0x223   : > { %v8935_v55 = vadd.f32 %v1885_v28, %v1773_v18  ;;  %v3314_v46 = vsub.f32 1.5, %v3313_v23  ;;  %v3323_v28 = vmul.f32 %v7041_v38, %v8908_v49  ;;  %v8943_v18 = vmul.f32 0.01, %v2903_v4 }
 0x224   : > { %v1663_v19 = vadd.f32 %v1662_v14, %v1550_v35  ;;  %1596 = vmatmul.f32.gmra.mxu0 %v704_v10  ;;  %1709 = vmatmul.f32.gmra.mxu1 %v705_v62  ;;  %v3933_v15 = vmul.f32 0.5, %v3932_v27  ;;  %v3303_v14 = vmul.f32 %v7033_v41, %v3302_v34  ;;  %v821_v35 = vld [vmem:[#allocation7 + $0x48] sm:$0xff]  ;;  %v2998_v41 = vadd.f32 0.02, %v2966_v12 }
 0x225   : > { %11987 = vst [vmem:[#allocation49_spill] sm:$0xff] %v8935_v55  ;;  %1822 = vmatmul.f32.gmra.mxu2 %v706_v25  ;;  %1935 = vmatmul.f32.gmra.mxu3 %v707_v29  ;;  %v3315_v10 = vmul.f32 %v7037_v32, %v3314_v46  ;;  %v3324_v62 = vmul.f32 %v7041_v38, %v3323_v28  ;;  %v917_v25 = vld [vmem:[#allocation7 + $0x348] sm:$0xff]  ;;  %v3921_v29 = vmul.f32 0.5, %v3920_v63  ;;  %v712_v28 = vld [vmem:[%s7949_s28 + $0x4e0] sm:$0xff]  ;;  %v714_v55 = vld [vmem:[%s7949_s28 + $0x4f0] sm:$0xff] }
 0x226   : > { %v3934_v4 = vsub.f32 1.5, %v3933_v15  ;;  %v3304_v27 = vmul.f32 %v3303_v14, %v8840_v42  ;;  %1989 = vmatpush.msra.mxu0 %v821_v35  ;;  %2328 = vmatpush.msra.mxu3 %v917_v25  ;;  %v8955_v15 = vpop.eup %7042 }
 0x227   : > { %v3316_v63 = vmul.f32 %v3315_v10, %v8885_v59  ;;  %v3325_v50 = vmul.f32 0.5, %v3324_v62 }
 0x228   : > { %v1775_v39 = vpop.f32.mrf.mxu2  ;;  %v1888_v23 = vpop.f32.mrf.mxu3  ;;  %v3935_v48 = vmul.f32 %v8921_v9, %v3934_v4  ;;  %v3306_v12 = vsel %vm3305_vm5, %v8840_v42, %v3304_v27  ;;  %v11989_v9 = vand.u32 2147483648, %v8885_v59  ;;  %v3030_v4 = vmax.f32 %v2998_v41, 0.0 }
 0x229   : > { %v1776_v32 = vadd.f32 %v1775_v39, %v1663_v19  ;;  %v1552_v34 = vpop.f32.mrf.mxu0  ;;  %v1665_v46 = vpop.f32.mrf.mxu1  ;;  %v3922_v19 = vsub.f32 1.5, %v3921_v29  ;;  %v3318_v10 = vsel %vm3317_vm2, %v8885_v59, %v3316_v63  ;;  %v3326_v62 = vsub.f32 1.5, %v3325_v50 }
 0x22a   : > { %v1553_v14 = vadd.f32 %v1552_v34, %v8076_v40  ;;  %v3309_v25 = vsel %vm3307_vm7, %v3308_v1, %v3306_v12  ;;  %v3321_v39 = vsel %vm3319_vm3, %v11989_v9, %v3318_v10  ;;  %v3936_v29 = vmul.f32 %v3935_v48, %v8898_v13 }
 0x22b   : > { %v8964_v35 = vadd.f32 %v1888_v23, %v1776_v32  ;;  %v853_v23 = vld [vmem:[#allocation7 + $0x148] sm:$0xff]  ;;  %v3327_v27 = vmul.f32 %v7041_v38, %v3326_v62  ;;  %v3943_v42 = vmul.f32 %v8955_v15, %v8932_v5  ;;  %v2967_v50 = vmul.f32 0.98, %v8943_v18  ;;  %3577 = vperm.xlu1 %6963, %v3321_v39   ;;  %3572 = vperm.xlu2 %6964, %v3309_v25   ;;  %v720_v62 = vld [vmem:[%s7949_s28 + $0x520] sm:$0xff] }
 0x22c   : > { %v1666_v40 = vadd.f32 %v1665_v46, %v1553_v14  ;;  %1599 = vmatmul.f32.gmra.mxu0 %v712_v28  ;;  %1712 = vmatmul.f32.gmra.mxu1 %v713_v16  ;;  %v3332_v16 = vand.u32 2147483648, %v8908_v49  ;;  %v8983_v59 = vmin.f32 %v3030_v4, 1.0  ;;  %v3928_v41 = vand.u32 2147483648, %v8878_v30  ;;  %v721_v25 = vld [vmem:[%s7949_s28 + $0x528] sm:$0xff] }
 0x22d   : > { %11988 = vst [vmem:[#allocation50_spill] sm:$0xff] %v8964_v35  ;;  %1825 = vmatmul.f32.gmra.mxu2 %v714_v55  ;;  %1938 = vmatmul.f32.gmra.mxu3 %v715_v33  ;;  %v2904_v33 = vld [vmem:[%s8117_s19 + $0xb0] sm:$0xff]  ;;  %v3938_v55 = vsel %vm3937_vm4, %v8898_v13, %v3936_v29  ;;  %v3328_v38 = vmul.f32 %v3327_v27, %v8908_v49  ;;  %v2999_v63 = vadd.f32 0.02, %v2967_v50  ;;  %v8997_v14 = vsub.f32 1.0, %v8932_v5 }
 0x22e   : > { %v3944_v1 = vmul.f32 %v8955_v15, %v3943_v42  ;;  %2102 = vmatpush.msra.mxu1 %v853_v23  ;;  %v3923_v46 = vmul.f32 %v8912_v0, %v3922_v19  ;;  %v8994_v28 = vsub.f32 1.0, %v8983_v59  ;;  %v9004_v29 = vmul.f32 0.01, %v2904_v33  ;;  %v722_v19 = vld [vmem:[%s7949_s28 + $0x530] sm:$0xff]  ;;  %v723_v23 = vld [vmem:[%s7949_s28 + $0x538] sm:$0xff] }
 0x22f   : > { %v3330_v9 = vsel %vm3329_vm8, %v8908_v49, %v3328_v38  ;;  %v11991_v42 = vand.u32 2147483648, %v8898_v13  ;;  %v3952_v13 = vand.u32 2147483648, %v8932_v5  ;;  %vm3341_vm0 = vcmp.eq.f32.partialorder %v8997_v14, inf }
 0x230   : > { %v1778_v32 = vpop.f32.mrf.mxu2  ;;  %v1891_v34 = vpop.f32.mrf.mxu3  ;;  %v3945_v39 = vmul.f32 0.5, %v3944_v1  ;;  %v3333_v4 = vsel %vm3331_vm9, %v3332_v16, %v3330_v9  ;;  %7044 = vrsqrt.f32 %v8994_v28  ;;  %v3031_v1 = vmax.f32 %v2999_v63, 0.0  ;;  %v728_v9 = vld [vmem:[%s7949_s28 + $0x560] sm:$0xff] }
 0x231   : > { %v1779_v48 = vadd.f32 %v1778_v32, %v1666_v40  ;;  %v1555_v12 = vpop.f32.mrf.mxu0  ;;  %v1668_v10 = vpop.f32.mrf.mxu1  ;;  %v3924_v40 = vmul.f32 %v3923_v46, %v8878_v30  ;;  %v3941_v50 = vsel %vm3939_vm6, %v11991_v42, %v3938_v55  ;;  %3582 = vperm.xlu0 %6962, %v3333_v4   ;;  %7046 = vrsqrt.f32 %v8997_v14  ;;  %v730_v4 = vld [vmem:[%s7949_s28 + $0x570] sm:$0xff] }
 0x232   : > { %v1556_v0 = vadd.f32 %v1555_v12, %v8083_v56  ;;  %v3946_v33 = vsub.f32 1.5, %v3945_v39  ;;  %v2968_v55 = vmul.f32 0.98, %v9004_v29  ;;  %7048 = vrsqrt.f32 %v8983_v59  ;;  %v729_v39 = vld [vmem:[%s7949_s28 + $0x568] sm:$0xff] }
 0x233   : > { %v9013_v27 = vadd.f32 %v1891_v34, %v1779_v48  ;;  %v3926_v56 = vsel %vm3925_vm10, %v8878_v30, %v3924_v40  ;;  %4254 = vperm.xlu1 %6963, %v3941_v50   ;;  %v883_v30 = vld [vmem:[#allocation7 + $0x238] sm:$0xff]  ;;  %vm3353_vm14 = vcmp.eq.f32.partialorder %v8994_v28, inf  ;;  %vm3355_vm15 = vcmp.eq.f32.partialorder %v8994_v28, 0.0 }
 0x234   : > { %v1669_v38 = vadd.f32 %v1668_v10, %v1556_v0  ;;  %1602 = vmatmul.f32.gmra.mxu0 %v720_v62  ;;  %1715 = vmatmul.f32.gmra.mxu1 %v721_v25  ;;  %v3947_v49 = vmul.f32 %v8955_v15, %v3946_v33  ;;  %v3929_v16 = vsel %vm3927_vm11, %v3928_v41, %v3926_v56  ;;  %v9031_v15 = vmin.f32 %v3031_v1, 1.0  ;;  %v819_v41 = vld [vmem:[#allocation7 + $0x38] sm:$0xff] }
 0x235   : > { %11990 = vst [vmem:[#allocation51_spill] sm:$0xff] %v9013_v27  ;;  %1828 = vmatmul.f32.gmra.mxu2 %v722_v19  ;;  %1941 = vmatmul.f32.gmra.mxu3 %v723_v23  ;;  %v915_v34 = vld [vmem:[#allocation7 + $0x338] sm:$0xff]  ;;  %v3000_v12 = vadd.f32 0.02, %v2968_v55  ;;  %vm3343_vm1 = vcmp.eq.f32.partialorder %v8997_v14, 0.0  ;;  %vm3961_vm6 = vcmp.eq.f32.partialorder %v8983_v59, inf }
 0x236   : > { %4249 = vperm.xlu2 %6964, %v3929_v16   ;;  %v3948_v32 = vmul.f32 %v3947_v49, %v8932_v5  ;;  %v7045_v46 = vpop.eup %7044  ;;  %2216 = vmatpush.msra.mxu2 %v883_v30  ;;  %7050 = vrsqrt.f32 %v9031_v15  ;;  %v731_v40 = vld [vmem:[%s7949_s28 + $0x578] sm:$0xff]  ;;  %vm3973_vm2 = vcmp.eq.f32.partialorder %v9031_v15, inf  ;;  %vm3975_vm3 = vcmp.eq.f32.partialorder %v9031_v15, 0.0 }
 0x237   : > { %1990 = vmatpush.msra.mxu0 %v819_v41  ;;  %v3347_v19 = vmul.f32 %v7045_v46, %v8994_v28  ;;  %2329 = vmatpush.msra.mxu3 %v915_v34  ;;  %v851_v56 = vld [vmem:[#allocation7 + $0x138] sm:$0xff]  ;;  %v7047_v49 = vpop.eup %7046  ;;  %v3032_v1 = vmax.f32 %v3000_v12, 0.0  ;;  %v3356_v12 = vand.u32 2147483648, %v8994_v28  ;;  %vm3963_vm8 = vcmp.eq.f32.partialorder %v8983_v59, 0.0 }
 0x238   : > { %v1781_v63 = vpop.f32.mrf.mxu2  ;;  %v1894_v48 = vpop.f32.mrf.mxu3  ;;  %v3950_v0 = vsel %vm3949_vm12, %v8932_v5, %v3948_v32  ;;  %2103 = vmatpush.msra.mxu1 %v851_v56  ;;  %v2905_v32 = vld [vmem:[%s8117_s19 + $0xb8] sm:$0xff] }
 0x239   : > { %v1782_v10 = vadd.f32 %v1781_v63, %v1669_v38  ;;  %v1558_v62 = vpop.f32.mrf.mxu0  ;;  %v1671_v25 = vpop.f32.mrf.mxu1  ;;  %v3953_v42 = vsel %vm3951_vm13, %v3952_v13, %v3950_v0  ;;  %v3348_v33 = vmul.f32 %v7045_v46, %v3347_v19  ;;  %v9049_v38 = vsub.f32 1.0, %v9031_v15  ;;  %v736_v0 = vld [vmem:[%s7949_s28 + $0x5a0] sm:$0xff]  ;;  %v737_v19 = vld [vmem:[%s7949_s28 + $0x5a8] sm:$0xff] }
 0x23a   : > { %v1559_v23 = vadd.f32 %v1558_v62, %v8090_v6  ;;  %4259 = vperm.xlu0 %6962, %v3953_v42   ;;  %v9052_v5 = vpop.eup %7048  ;;  %v3335_v13 = vmul.f32 %v7047_v49, %v8997_v14  ;;  %v9055_v55 = vmin.f32 %v3032_v1, 1.0  ;;  %v738_v42 = vld [vmem:[%s7949_s28 + $0x5b0] sm:$0xff] }
 0x23b   : > { %v9046_v50 = vadd.f32 %v1894_v48, %v1782_v10  ;;  %v3349_v6 = vmul.f32 0.5, %v3348_v33  ;;  %7052 = vrsqrt.f32 %v9049_v38  ;;  %v3955_v34 = vmul.f32 %v9052_v5, %v8983_v59  ;;  %v739_v33 = vld [vmem:[%s7949_s28 + $0x5b8] sm:$0xff] }
 0x23c   : > { %v1672_v16 = vadd.f32 %v1671_v25, %v1559_v23  ;;  %1605 = vmatmul.f32.gmra.mxu0 %v728_v9  ;;  %1718 = vmatmul.f32.gmra.mxu1 %v729_v39  ;;  %v7051_v30 = vpop.eup %7050  ;;  %v3336_v62 = vmul.f32 %v7047_v49, %v3335_v13  ;;  %7054 = vrsqrt.f32 %v9055_v55  ;;  %vm3365_vm4 = vcmp.eq.f32.partialorder %v9049_v38, inf }
 0x23d   : > { %11992 = vst [vmem:[#allocation52_spill] sm:$0xff] %v9046_v50  ;;  %1831 = vmatmul.f32.gmra.mxu2 %v730_v4  ;;  %1944 = vmatmul.f32.gmra.mxu3 %v731_v40  ;;  %v3350_v41 = vsub.f32 1.5, %v3349_v6  ;;  %v3967_v10 = vmul.f32 %v7051_v30, %v9031_v15  ;;  %v9068_v4 = vmul.f32 0.01, %v2905_v32  ;;  %v3956_v6 = vmul.f32 %v9052_v5, %v3955_v34 }
 0x23e   : > { %v3337_v1 = vmul.f32 0.5, %v3336_v62  ;;  %vm3367_vm5 = vcmp.eq.f32.partialorder %v9049_v38, 0.0  ;;  %vm3985_vm7 = vcmp.eq.f32.partialorder %v9055_v55, inf  ;;  %vm3987_vm9 = vcmp.eq.f32.partialorder %v9055_v55, 0.0 }
 0x23f   : > { %v3351_v23 = vmul.f32 %v7045_v46, %v3350_v41  ;;  %v3968_v56 = vmul.f32 %v7051_v30, %v3967_v10  ;;  %v3344_v46 = vand.u32 2147483648, %v8997_v14 }
 0x240   : > { %v1784_v63 = vpop.f32.mrf.mxu2  ;;  %v1897_v48 = vpop.f32.mrf.mxu3 }
 0x241   : > { %v1785_v25 = vadd.f32 %v1784_v63, %v1672_v16  ;;  %v1561_v9 = vpop.f32.mrf.mxu0  ;;  %v1674_v39 = vpop.f32.mrf.mxu1  ;;  %v3352_v16 = vmul.f32 %v3351_v23, %v8994_v28  ;;  %v3969_v32 = vmul.f32 0.5, %v3968_v56  ;;  %v3338_v63 = vsub.f32 1.5, %v3337_v1 }
 0x242   : > { %v1562_v40 = vadd.f32 %v1561_v9, %v8097_v22  ;;  %v7053_v13 = vpop.eup %7052 }
 0x243   : > { %v9074_v50 = vadd.f32 %v1897_v48, %v1785_v25  ;;  %v3359_v22 = vmul.f32 %v7053_v13, %v9049_v38  ;;  %v3354_v34 = vsel %vm3353_vm14, %v8994_v28, %v3352_v16  ;;  %v3957_v48 = vmul.f32 0.5, %v3956_v6  ;;  %v7055_v10 = vpop.eup %7054  ;;  %v744_v16 = vld [vmem:[%s7949_s28 + $0x5e0] sm:$0xff] }
 0x244   : > { %v1675_v41 = vadd.f32 %v1674_v39, %v1562_v40  ;;  %1608 = vmatmul.f32.gmra.mxu0 %v736_v0  ;;  %1721 = vmatmul.f32.gmra.mxu1 %v737_v19  ;;  %v3357_v62 = vsel %vm3355_vm15, %v3356_v12, %v3354_v34  ;;  %v3970_v25 = vsub.f32 1.5, %v3969_v32  ;;  %v3339_v39 = vmul.f32 %v7047_v49, %v3338_v63  ;;  %v745_v32 = vld [vmem:[%s7949_s28 + $0x5e8] sm:$0xff] }
 0x245   : > { %11993 = vst [vmem:[#allocation53_spill] sm:$0xff] %v9074_v50  ;;  %1834 = vmatmul.f32.gmra.mxu2 %v738_v42  ;;  %1947 = vmatmul.f32.gmra.mxu3 %v739_v33  ;;  %v3360_v9 = vmul.f32 %v7053_v13, %v3359_v22  ;;  %v3976_v0 = vand.u32 2147483648, %v9031_v15  ;;  %v3979_v19 = vmul.f32 %v7055_v10, %v9055_v55  ;;  %v3958_v23 = vsub.f32 1.5, %v3957_v48  ;;  %v746_v48 = vld [vmem:[%s7949_s28 + $0x5f0] sm:$0xff] }
 0x246   : > { %3592 = vperm.xlu1 %6963, %v3357_v62   ;;  %v2969_v40 = vmul.f32 0.98, %v9068_v4  ;;  %v3971_v56 = vmul.f32 %v7051_v30, %v3970_v25  ;;  %v3340_v12 = vmul.f32 %v3339_v39, %v8997_v14  ;;  %v747_v30 = vld [vmem:[%s7949_s28 + $0x5f8] sm:$0xff] }
 0x247   : > { %v3361_v28 = vmul.f32 0.5, %v3360_v9  ;;  %v3980_v22 = vmul.f32 %v7055_v10, %v3979_v19  ;;  %v3959_v63 = vmul.f32 %v9052_v5, %v3958_v23  ;;  %v881_v5 = vld [vmem:[#allocation7 + $0x228] sm:$0xff]  ;;  %v2906_v23 = vld [vmem:[%s8117_s19 + $0xc0] sm:$0xff] }
 0x248   : > { %v1787_v42 = vpop.f32.mrf.mxu2  ;;  %v1900_v33 = vpop.f32.mrf.mxu3  ;;  %v3972_v62 = vmul.f32 %v3971_v56, %v9031_v15  ;;  %2217 = vmatpush.msra.mxu2 %v881_v5  ;;  %v752_v5 = vld [vmem:[%s7949_s28 + $0x620] sm:$0xff] }
 0x249   : > { %v1788_v49 = vadd.f32 %v1787_v42, %v1675_v41  ;;  %v1564_v1 = vpop.f32.mrf.mxu0  ;;  %v1677_v6 = vpop.f32.mrf.mxu1  ;;  %v3362_v25 = vsub.f32 1.5, %v3361_v28  ;;  %v3342_v41 = vsel %vm3341_vm0, %v8997_v14, %v3340_v12  ;;  %v3981_v42 = vmul.f32 0.5, %v3980_v22  ;;  %v817_v12 = vld [vmem:[#allocation7 + $0x28] sm:$0xff] }
 0x24a   : > { %v1565_v34 = vadd.f32 %v1564_v1, %v8105_v36  ;;  %v3345_v39 = vsel %vm3343_vm1, %v3344_v46, %v3342_v41  ;;  %v3960_v19 = vmul.f32 %v3959_v63, %v8983_v59  ;;  %v3974_v56 = vsel %vm3973_vm2, %v9031_v15, %v3972_v62  ;;  %1991 = vmatpush.msra.mxu0 %v817_v12  ;;  %v2907_v22 = vld [vmem:[%s8117_s19 + $0xc8] sm:$0xff] }
 0x24b   : > { %v9103_v9 = vadd.f32 %v1900_v33, %v1788_v49  ;;  %v3363_v28 = vmul.f32 %v7053_v13, %v3362_v25  ;;  %v3001_v1 = vadd.f32 0.02, %v2969_v40  ;;  %v3977_v14 = vsel %vm3975_vm3, %v3976_v0, %v3974_v56  ;;  %v913_v49 = vld [vmem:[#allocation7 + $0x328] sm:$0xff]  ;;  %3587 = vperm.xlu2 %6964, %v3345_v39   ;;  %v754_v56 = vld [vmem:[%s7949_s28 + $0x630] sm:$0xff] }
 0x24c   : > { %v1678_v36 = vadd.f32 %v1677_v6, %v1565_v34  ;;  %1611 = vmatmul.f32.gmra.mxu0 %v744_v16  ;;  %1724 = vmatmul.f32.gmra.mxu1 %v745_v32  ;;  %v3368_v46 = vand.u32 2147483648, %v9049_v38  ;;  %v3982_v33 = vsub.f32 1.5, %v3981_v42  ;;  %v849_v6 = vld [vmem:[#allocation7 + $0x128] sm:$0xff]  ;;  %v9118_v40 = vmul.f32 0.01, %v2906_v23 }
 0x24d   : > { %11994 = vst [vmem:[#allocation54_spill] sm:$0xff] %v9103_v9  ;;  %1837 = vmatmul.f32.gmra.mxu2 %v746_v48  ;;  %1950 = vmatmul.f32.gmra.mxu3 %v747_v30  ;;  %v3364_v16 = vmul.f32 %v3363_v28, %v9049_v38  ;;  %v3033_v13 = vmax.f32 %v3001_v1, 0.0  ;;  %v3964_v0 = vand.u32 2147483648, %v8983_v59  ;;  %v9123_v32 = vsub.f32 1.0, %v9055_v55  ;;  %v753_v23 = vld [vmem:[%s7949_s28 + $0x628] sm:$0xff]  ;;  %v771_v9 = vld [vmem:[%s7949_s28 + $0x6b8] sm:$0xff] }
 0x24e   : > { %4269 = vperm.xlu1 %6963, %v3977_v14   ;;  %v3983_v15 = vmul.f32 %v7055_v10, %v3982_v33  ;;  %v3962_v10 = vsel %vm3961_vm6, %v8983_v59, %v3960_v19  ;;  %2330 = vmatpush.msra.mxu3 %v913_v49  ;;  %v2970_v62 = vmul.f32 0.98, %v9118_v40  ;;  %v755_v19 = vld [vmem:[%s7949_s28 + $0x638] sm:$0xff]  ;;  %v9146_v14 = vmul.f32 0.01, %v2907_v22 }
 0x24f   : > { %v3366_v48 = vsel %vm3365_vm4, %v9049_v38, %v3364_v16  ;;  %v9132_v30 = vmin.f32 %v3033_v13, 1.0  ;;  %2104 = vmatpush.msra.mxu1 %v849_v6  ;;  %7056 = vrsqrt.f32 %v9123_v32  ;;  %v3965_v33 = vsel %vm3963_vm8, %v3964_v0, %v3962_v10 }
 0x250   : > { %v1790_v63 = vpop.f32.mrf.mxu2  ;;  %v1903_v34 = vpop.f32.mrf.mxu3  ;;  %v3369_v41 = vsel %vm3367_vm5, %v3368_v46, %v3366_v48  ;;  %v3984_v28 = vmul.f32 %v3983_v15, %v9055_v55  ;;  %v3002_v12 = vadd.f32 0.02, %v2970_v62  ;;  %v3988_v46 = vand.u32 2147483648, %v9055_v55 }
 0x251   : > { %v1791_v25 = vadd.f32 %v1790_v63, %v1678_v36  ;;  %v1567_v39 = vpop.f32.mrf.mxu0  ;;  %v1680_v42 = vpop.f32.mrf.mxu1  ;;  %3597 = vperm.xlu0 %6962, %v3369_v41   ;;  %v9144_v1 = vsub.f32 1.0, %v9132_v30  ;;  %7058 = vrsqrt.f32 %v9132_v30  ;;  %v761_v41 = vld [vmem:[%s7949_s28 + $0x668] sm:$0xff]  ;;  %vm3377_vm12 = vcmp.eq.f32.partialorder %v9123_v32, inf }
 0x252   : > { %v1568_v36 = vadd.f32 %v1567_v39, %v8112_v53  ;;  %v3986_v49 = vsel %vm3985_vm7, %v9055_v55, %v3984_v28  ;;  %v3034_v6 = vmax.f32 %v3002_v12, 0.0  ;;  %v2971_v53 = vmul.f32 0.98, %v9146_v14  ;;  %v2908_v39 = vld [vmem:[%s8117_s19 + $0xd0] sm:$0xff] }
 0x253   : > { %v9149_v38 = vadd.f32 %v1903_v34, %v1791_v25  ;;  %7060 = vrsqrt.f32 %v9144_v1  ;;  %4264 = vperm.xlu2 %6964, %v3965_v33   ;;  %v3989_v13 = vsel %vm3987_vm9, %v3988_v46, %v3986_v49  ;;  %v760_v25 = vld [vmem:[%s7949_s28 + $0x660] sm:$0xff]  ;;  %v879_v33 = vld [vmem:[#allocation7 + $0x218] sm:$0xff]  ;;  %vm3389_vm10 = vcmp.eq.f32.partialorder %v9144_v1, inf }
 0x254   : > { %1614 = vmatmul.f32.gmra.mxu0 %v752_v5  ;;  %1727 = vmatmul.f32.gmra.mxu1 %v753_v23  ;;  %v1681_v16 = vadd.f32 %v1680_v42, %v1568_v36  ;;  %v9163_v15 = vmin.f32 %v3034_v6, 1.0  ;;  %v3003_v34 = vadd.f32 0.02, %v2971_v53  ;;  %v762_v23 = vld [vmem:[%s7949_s28 + $0x670] sm:$0xff]  ;;  %v815_v49 = vld [vmem:[#allocation7 + $0x18] sm:$0xff]  ;;  %vm3391_vm11 = vcmp.eq.f32.partialorder %v9144_v1, 0.0 }
 0x255   : > { %11995 = vst [vmem:[#allocation55_spill] sm:$0xff] %v9149_v38  ;;  %1840 = vmatmul.f32.gmra.mxu2 %v754_v56  ;;  %1953 = vmatmul.f32.gmra.mxu3 %v755_v19  ;;  %v9161_v59 = vpop.eup %7056  ;;  %v763_v56 = vld [vmem:[%s7949_s28 + $0x678] sm:$0xff]  ;;  %vm3379_vm13 = vcmp.eq.f32.partialorder %v9123_v32, 0.0  ;;  %v770_v38 = vld [vmem:[%s7949_s28 + $0x6b0] sm:$0xff]  ;;  %vm3997_vm1 = vcmp.eq.f32.partialorder %v9132_v30, inf  ;;  %vm3999_vm2 = vcmp.eq.f32.partialorder %v9132_v30, 0.0 }
 0x256   : > { %v3371_v63 = vmul.f32 %v9161_v59, %v9123_v32  ;;  %7062 = vrsqrt.f32 %v9163_v15  ;;  %v9177_v28 = vsub.f32 1.0, %v9163_v15  ;;  %v3035_v46 = vmax.f32 %v3003_v34, 0.0  ;;  %v847_v53 = vld [vmem:[#allocation7 + $0x118] sm:$0xff]  ;;  %2218 = vmatpush.msra.mxu2 %v879_v33  ;;  %1992 = vmatpush.msra.mxu0 %v815_v49 }
 0x257   : > { %v9165_v0 = vpop.eup %7058  ;;  %v2909_v34 = vld [vmem:[%s8117_s19 + $0xd8] sm:$0xff]  ;;  %2105 = vmatpush.msra.mxu1 %v847_v53  ;;  %vm4009_vm14 = vcmp.eq.f32.partialorder %v9163_v15, inf  ;;  %vm4011_vm15 = vcmp.eq.f32.partialorder %v9163_v15, 0.0 }
 0x258   : > { %v1793_v55 = vpop.f32.mrf.mxu2  ;;  %v1906_v22 = vpop.f32.mrf.mxu3  ;;  %v3372_v19 = vmul.f32 %v9161_v59, %v3371_v63  ;;  %v3991_v6 = vmul.f32 %v9165_v0, %v9132_v30  ;;  %7064 = vrsqrt.f32 %v9177_v28  ;;  %v9193_v63 = vmin.f32 %v3035_v46, 1.0 }
 0x259   : > { %v1794_v48 = vadd.f32 %v1793_v55, %v1681_v16  ;;  %v1570_v10 = vpop.f32.mrf.mxu0  ;;  %v1683_v62 = vpop.f32.mrf.mxu1  ;;  %4274 = vperm.xlu0 %6962, %v3989_v13   ;;  %v9186_v16 = vmul.f32 0.01, %v2908_v39  ;;  %v3392_v55 = vand.u32 2147483648, %v9144_v1  ;;  %vm3401_vm0 = vcmp.eq.f32.partialorder %v9177_v28, inf }
 0x25a   : > { %v7061_v42 = vpop.eup %7060  ;;  %v1571_v5 = vadd.f32 %v1570_v10, %v8127_v7  ;;  %v911_v7 = vld [vmem:[#allocation7 + $0x318] sm:$0xff]  ;;  %v3992_v39 = vmul.f32 %v9165_v0, %v3991_v6  ;;  %7066 = vrsqrt.f32 %v9193_v63  ;;  %v9204_v6 = vmul.f32 0.01, %v2909_v34 }
 0x25b   : > { %v9180_v12 = vadd.f32 %v1906_v22, %v1794_v48  ;;  %v3383_v36 = vmul.f32 %v7061_v42, %v9144_v1  ;;  %v3373_v22 = vmul.f32 0.5, %v3372_v19  ;;  %2331 = vmatpush.msra.mxu3 %v911_v7  ;;  %v769_v7 = vld [vmem:[%s7949_s28 + $0x6a8] sm:$0xff]  ;;  %vm3403_vm3 = vcmp.eq.f32.partialorder %v9177_v28, 0.0 }
 0x25c   : > { %1617 = vmatmul.f32.gmra.mxu0 %v760_v25  ;;  %1730 = vmatmul.f32.gmra.mxu1 %v761_v41  ;;  %v7063_v48 = vpop.eup %7062  ;;  %v1684_v10 = vadd.f32 %v1683_v62, %v1571_v5  ;;  %v3380_v41 = vand.u32 2147483648, %v9123_v32  ;;  %v2972_v62 = vmul.f32 0.98, %v9186_v16  ;;  %v3993_v27 = vmul.f32 0.5, %v3992_v39 }
 0x25d   : > { %11996 = vst [vmem:[#allocation56_spill] sm:$0xff] %v9180_v12  ;;  %1843 = vmatmul.f32.gmra.mxu2 %v762_v23  ;;  %1956 = vmatmul.f32.gmra.mxu3 %v763_v56  ;;  %v3384_v13 = vmul.f32 %v7061_v42, %v3383_v36  ;;  %v4003_v19 = vmul.f32 %v7063_v48, %v9163_v15  ;;  %v3374_v36 = vsub.f32 1.5, %v3373_v22  ;;  %vm4021_vm4 = vcmp.eq.f32.partialorder %v9193_v63, inf }
 0x25e   : > { %v7065_v53 = vpop.eup %7064  ;;  %vm4023_vm5 = vcmp.eq.f32.partialorder %v9193_v63, 0.0 }
 0x25f   : > { %v3385_v25 = vmul.f32 0.5, %v3384_v13  ;;  %v768_v13 = vld [vmem:[%s7949_s28 + $0x6a0] sm:$0xff]  ;;  %v4004_v22 = vmul.f32 %v7063_v48, %v4003_v19  ;;  %v3375_v50 = vmul.f32 %v9161_v59, %v3374_v36 }
 0x260   : > { %v1796_v23 = vpop.f32.mrf.mxu2  ;;  %v1909_v56 = vpop.f32.mrf.mxu3 }
 0x261   : > { %v1797_v5 = vadd.f32 %v1796_v23, %v1684_v10  ;;  %v3386_v46 = vsub.f32 1.5, %v3385_v25  ;;  %v1573_v33 = vpop.f32.mrf.mxu0  ;;  %v1686_v49 = vpop.f32.mrf.mxu1  ;;  %v3395_v25 = vmul.f32 %v7065_v53, %v9177_v28  ;;  %v4005_v34 = vmul.f32 0.5, %v4004_v22 }
 0x262   : > { %v1574_v12 = vadd.f32 %v1573_v33, %v8140_v31  ;;  %v4012_v23 = vand.u32 2147483648, %v9163_v15  ;;  %v3376_v31 = vmul.f32 %v3375_v50, %v9123_v32  ;;  %v3994_v33 = vsub.f32 1.5, %v3993_v27 }
 0x263   : > { %v9210_v35 = vadd.f32 %v1909_v56, %v1797_v5  ;;  %v3387_v10 = vmul.f32 %v7061_v42, %v3386_v46  ;;  %v3396_v59 = vmul.f32 %v7065_v53, %v3395_v25  ;;  %v7067_v42 = vpop.eup %7066  ;;  %v4006_v56 = vsub.f32 1.5, %v4005_v34  ;;  %v777_v34 = vld [vmem:[%s7949_s28 + $0x6e8] sm:$0xff] }
 0x264   : > { %1620 = vmatmul.f32.gmra.mxu0 %v768_v13  ;;  %1733 = vmatmul.f32.gmra.mxu1 %v769_v7  ;;  %v1687_v39 = vadd.f32 %v1686_v49, %v1574_v12  ;;  %v3378_v36 = vsel %vm3377_vm12, %v9123_v32, %v3376_v31  ;;  %v3995_v50 = vmul.f32 %v9165_v0, %v3994_v33  ;;  %v4000_v5 = vand.u32 2147483648, %v9132_v30  ;;  %v776_v0 = vld [vmem:[%s7949_s28 + $0x6e0] sm:$0xff]  ;;  %v778_v33 = vld [vmem:[%s7949_s28 + $0x6f0] sm:$0xff] }
 0x265   : > { %v3388_v19 = vmul.f32 %v3387_v10, %v9144_v1  ;;  %1846 = vmatmul.f32.gmra.mxu2 %v770_v38  ;;  %1959 = vmatmul.f32.gmra.mxu3 %v771_v9  ;;  %v3397_v9 = vmul.f32 0.5, %v3396_v59  ;;  %v3381_v38 = vsel %vm3379_vm13, %v3380_v41, %v3378_v36  ;;  %v4007_v13 = vmul.f32 %v7063_v48, %v4006_v56  ;;  %v779_v48 = vld [vmem:[%s7949_s28 + $0x6f8] sm:$0xff] }
 0x266   : > { %3602 = vperm.xlu2 %6964, %v3381_v38   ;;  %v4015_v7 = vmul.f32 %v7067_v42, %v9193_v63  ;;  %v3996_v22 = vmul.f32 %v3995_v50, %v9132_v30  ;;  %v3004_v31 = vadd.f32 0.02, %v2972_v62 }
 0x267   : > { %v3390_v27 = vsel %vm3389_vm10, %v9144_v1, %v3388_v19  ;;  %v3398_v10 = vsub.f32 1.5, %v3397_v9  ;;  %v2973_v1 = vmul.f32 0.98, %v9204_v6 }
 0x268   : > { %v3393_v12 = vsel %vm3391_vm11, %v3392_v55, %v3390_v27  ;;  %v1799_v46 = vpop.f32.mrf.mxu2  ;;  %v1912_v49 = vpop.f32.mrf.mxu3  ;;  %v4008_v55 = vmul.f32 %v4007_v13, %v9163_v15  ;;  %v4016_v19 = vmul.f32 %v7067_v42, %v4015_v7  ;;  %v3998_v59 = vsel %vm3997_vm1, %v9132_v30, %v3996_v22 }
 0x269   : > { %3607 = vperm.xlu1 %6963, %v3393_v12   ;;  %v1800_v32 = vadd.f32 %v1799_v46, %v1687_v39  ;;  %v1576_v41 = vpop.f32.mrf.mxu0  ;;  %v1689_v25 = vpop.f32.mrf.mxu1  ;;  %v3399_v56 = vmul.f32 %v7065_v53, %v3398_v10  ;;  %v3036_v62 = vmax.f32 %v3004_v31, 0.0  ;;  %v3404_v27 = vand.u32 2147483648, %v9177_v28  ;;  %v2910_v12 = vld [vmem:[%s8117_s19 + $0xe0] sm:$0xff]  ;;  %v813_v31 = vld [vmem:[#allocation7 + $0x8] sm:$0xff] }
 0x26a   : > { %v1577_v36 = vadd.f32 %v1576_v41, %v8154_v54  ;;  %v4010_v50 = vsel %vm4009_vm14, %v9163_v15, %v4008_v55  ;;  %v4017_v9 = vmul.f32 0.5, %v4016_v19  ;;  %v3005_v38 = vadd.f32 0.02, %v2973_v1  ;;  %v845_v19 = vld [vmem:[#allocation7 + $0x108] sm:$0xff]  ;;  %1993 = vmatpush.msra.mxu0 %v813_v31 }
 0x26b   : > { %v9243_v39 = vadd.f32 %v1912_v49, %v1800_v32  ;;  %v3400_v46 = vmul.f32 %v3399_v56, %v9177_v28  ;;  %v4001_v54 = vsel %vm3999_vm2, %v4000_v5, %v3998_v59  ;;  %v9255_v53 = vmin.f32 %v3036_v62, 1.0  ;;  %v787_v62 = vld [vmem:[%s7949_s28 + $0x738] sm:$0xff]  ;;  %2106 = vmatpush.msra.mxu1 %v845_v19  ;;  %v2911_v31 = vld [vmem:[%s8117_s19 + $0xe8] sm:$0xff] }
 0x26c   : > { %1623 = vmatmul.f32.gmra.mxu0 %v776_v0  ;;  %1736 = vmatmul.f32.gmra.mxu1 %v777_v34  ;;  %v4013_v49 = vsel %vm4011_vm15, %v4012_v23, %v4010_v50  ;;  %v4018_v13 = vsub.f32 1.5, %v4017_v9  ;;  %v3037_v0 = vmax.f32 %v3005_v38, 0.0  ;;  %v1690_v22 = vadd.f32 %v1689_v25, %v1577_v36  ;;  %v877_v23 = vld [vmem:[#allocation7 + $0x208] sm:$0xff]  ;;  %v786_v36 = vld [vmem:[%s7949_s28 + $0x730] sm:$0xff] }
 0x26d   : > { %11997 = vst [vmem:[#allocation57_spill] sm:$0xff] %v9243_v39  ;;  %1849 = vmatmul.f32.gmra.mxu2 %v778_v33  ;;  %1962 = vmatmul.f32.gmra.mxu3 %v779_v48  ;;  %v3402_v7 = vsel %vm3401_vm0, %v9177_v28, %v3400_v46  ;;  %v9263_v32 = vsub.f32 1.0, %v9255_v53  ;;  %v9265_v10 = vmul.f32 0.01, %v2910_v12  ;;  %v909_v28 = vld [vmem:[#allocation7 + $0x308] sm:$0xff]  ;;  %v9270_v25 = vsub.f32 1.0, %v9193_v63 }
 0x26e   : > { %v3405_v41 = vsel %vm3403_vm3, %v3404_v27, %v3402_v7  ;;  %v4019_v34 = vmul.f32 %v7067_v42, %v4018_v13  ;;  %4279 = vperm.xlu2 %6964, %v4001_v54   ;;  %v9267_v15 = vmin.f32 %v3037_v0, 1.0  ;;  %v784_v48 = vld [vmem:[%s7949_s28 + $0x720] sm:$0xff]  ;;  %v785_v42 = vld [vmem:[%s7949_s28 + $0x728] sm:$0xff]  ;;  %v4024_v56 = vand.u32 2147483648, %v9193_v63  ;;  %2219 = vmatpush.msra.mxu2 %v877_v23 }
 0x26f   : > { %3612 = vperm.xlu0 %6962, %v3405_v41   ;;  %7068 = vrsqrt.f32 %v9263_v32  ;;  %2332 = vmatpush.msra.mxu3 %v909_v28  ;;  %v2974_v12 = vmul.f32 0.98, %v9265_v10  ;;  %vm3425_vm6 = vcmp.eq.f32.partialorder %v9263_v32, inf  ;;  %vm3427_vm7 = vcmp.eq.f32.partialorder %v9263_v32, 0.0 }
 0x270   : > { %v1802_v30 = vpop.f32.mrf.mxu2  ;;  %v1915_v5 = vpop.f32.mrf.mxu3  ;;  %v4020_v59 = vmul.f32 %v4019_v34, %v9193_v63  ;;  %7070 = vrsqrt.f32 %v9267_v15  ;;  %v9289_v38 = vsub.f32 1.0, %v9267_v15  ;;  %v793_v34 = vld [vmem:[%s7949_s28 + $0x768] sm:$0xff]  ;;  %vm4045_vm8 = vcmp.eq.f32.partialorder %v9267_v15, inf }
 0x271   : > { %4284 = vperm.xlu1 %6963, %v4013_v49   ;;  %v1803_v1 = vadd.f32 %v1802_v30, %v1690_v22  ;;  %v1579_v55 = vpop.f32.mrf.mxu0  ;;  %v1692_v33 = vpop.f32.mrf.mxu1  ;;  %7072 = vrsqrt.f32 %v9270_v25  ;;  %v3006_v7 = vadd.f32 0.02, %v2974_v12  ;;  %v9316_v12 = vmul.f32 0.01, %v2911_v31 }
 0x272   : > { %v1580_v27 = vadd.f32 %v1579_v55, %v8167_v17  ;;  %v4022_v9 = vsel %vm4021_vm4, %v9193_v63, %v4020_v59  ;;  %7074 = vrsqrt.f32 %v9289_v38  ;;  %v794_v55 = vld [vmem:[%s7949_s28 + $0x770] sm:$0xff]  ;;  %vm3413_vm9 = vcmp.eq.f32.partialorder %v9270_v25, inf }
 0x273   : > { %v9281_v50 = vadd.f32 %v1915_v5, %v1803_v1  ;;  %v4025_v17 = vsel %vm4023_vm5, %v4024_v56, %v4022_v9  ;;  %v792_v5 = vld [vmem:[%s7949_s28 + $0x760] sm:$0xff]  ;;  %7076 = vrsqrt.f32 %v9255_v53  ;;  %vm4047_vm10 = vcmp.eq.f32.partialorder %v9267_v15, 0.0 }
 0x274   : > { %1626 = vmatmul.f32.gmra.mxu0 %v784_v48  ;;  %1739 = vmatmul.f32.gmra.mxu1 %v785_v42  ;;  %v1693_v54 = vadd.f32 %v1692_v33, %v1580_v27  ;;  %v795_v33 = vld [vmem:[%s7949_s28 + $0x778] sm:$0xff]  ;;  %v3038_v48 = vmax.f32 %v3006_v7, 0.0  ;;  %v3428_v27 = vand.u32 2147483648, %v9263_v32  ;;  %vm3437_vm11 = vcmp.eq.f32.partialorder %v9289_v38, inf }
 0x275   : > { %11998 = vst [vmem:[#allocation58_spill] sm:$0xff] %v9281_v50  ;;  %1852 = vmatmul.f32.gmra.mxu2 %v786_v36  ;;  %1965 = vmatmul.f32.gmra.mxu3 %v787_v62  ;;  %v7069_v46 = vpop.eup %7068  ;;  %vm3439_vm12 = vcmp.eq.f32.partialorder %v9289_v38, 0.0  ;;  %vm3415_vm13 = vcmp.eq.f32.partialorder %v9270_v25, 0.0  ;;  %vm4033_vm14 = vcmp.eq.f32.partialorder %v9255_v53, inf  ;;  %vm4035_vm15 = vcmp.eq.f32.partialorder %v9255_v53, 0.0 }
 0x276   : > { %v7071_v63 = vpop.eup %7070  ;;  %v3419_v0 = vmul.f32 %v7069_v46, %v9263_v32  ;;  %v9314_v9 = vmin.f32 %v3038_v48, 1.0  ;;  %v2975_v48 = vmul.f32 0.98, %v9316_v12 }
 0x277   : > { %4289 = vperm.xlu0 %6962, %v4025_v17   ;;  %v4039_v23 = vmul.f32 %v7071_v63, %v9267_v15  ;;  %v9300_v28 = vpop.eup %7072 }
 0x278   : > { %v1805_v49 = vpop.f32.mrf.mxu2  ;;  %v1918_v13 = vpop.f32.mrf.mxu3  ;;  %v3420_v1 = vmul.f32 %v7069_v46, %v3419_v0  ;;  %v3407_v56 = vmul.f32 %v9300_v28, %v9270_v25  ;;  %7078 = vrsqrt.f32 %v9314_v9  ;;  %v3007_v39 = vadd.f32 0.02, %v2975_v48 }
 0x279   : > { %v1806_v22 = vadd.f32 %v1805_v49, %v1693_v54  ;;  %v1582_v41 = vpop.f32.mrf.mxu0  ;;  %v1695_v30 = vpop.f32.mrf.mxu1  ;;  %v4040_v59 = vmul.f32 %v7071_v63, %v4039_v23  ;;  %vm4057_vm0 = vcmp.eq.f32.partialorder %v9314_v9, inf  ;;  %vm4059_vm1 = vcmp.eq.f32.partialorder %v9314_v9, 0.0 }
 0x27a   : > { %v1583_v19 = vadd.f32 %v1582_v41, %v8185_v60  ;;  %v9311_v36 = vpop.eup %7074  ;;  %v3421_v62 = vmul.f32 0.5, %v3420_v1  ;;  %v3408_v54 = vmul.f32 %v9300_v28, %v3407_v56  ;;  %v800_v1 = vld [vmem:[%s7949_s28 + $0x7a0] sm:$0xff]  ;;  %v3039_v48 = vmax.f32 %v3007_v39, 0.0 }
 0x27b   : > { %v9306_v42 = vadd.f32 %v1918_v13, %v1806_v22  ;;  %v4041_v17 = vmul.f32 0.5, %v4040_v59  ;;  %v3431_v60 = vmul.f32 %v9311_v36, %v9289_v38  ;;  %v9325_v0 = vpop.eup %7076 }
 0x27c   : > { %1629 = vmatmul.f32.gmra.mxu0 %v792_v5  ;;  %1742 = vmatmul.f32.gmra.mxu1 %v793_v34  ;;  %v3422_v49 = vsub.f32 1.5, %v3421_v62  ;;  %v1696_v7 = vadd.f32 %v1695_v30, %v1583_v19  ;;  %v3409_v5 = vmul.f32 0.5, %v3408_v54  ;;  %v1035_v30 = vld [vmem:[#allocation7 + $0x6f8] sm:$0xff] }
 0x27d   : > { %11999 = vst [vmem:[#allocation59_spill] sm:$0xff] %v9306_v42  ;;  %1855 = vmatmul.f32.gmra.mxu2 %v794_v55  ;;  %1968 = vmatmul.f32.gmra.mxu3 %v795_v33  ;;  %v4042_v22 = vsub.f32 1.5, %v4041_v17  ;;  %v3432_v41 = vmul.f32 %v9311_v36, %v3431_v60  ;;  %v801_v55 = vld [vmem:[%s7949_s28 + $0x7a8] sm:$0xff]  ;;  %v4027_v33 = vmul.f32 %v9325_v0, %v9255_v53  ;;  %v971_v60 = vld [vmem:[#allocation7 + $0x4f8] sm:$0xff]  ;;  %v802_v42 = vld [vmem:[%s7949_s28 + $0x7b0] sm:$0xff] }
 0x27e   : > { %v3423_v34 = vmul.f32 %v7069_v46, %v3422_v49  ;;  %v3410_v17 = vsub.f32 1.5, %v3409_v5  ;;  %2656 = vmatpush.msrb.mxu2 %v1035_v30  ;;  %v1067_v54 = vld [vmem:[#allocation7 + $0x7f8] sm:$0xff]  ;;  %2430 = vmatpush.msrb.mxu0 %v971_v60 }
 0x27f   : > { %v4043_v59 = vmul.f32 %v7071_v63, %v4042_v22  ;;  %v3433_v56 = vmul.f32 0.5, %v3432_v41  ;;  %v1003_v49 = vld [vmem:[#allocation7 + $0x5f8] sm:$0xff]  ;;  %v4028_v50 = vmul.f32 %v9325_v0, %v4027_v33  ;;  %2769 = vmatpush.msrb.mxu3 %v1067_v54 }
 0x280   : > { %v1808_v23 = vpop.f32.mrf.mxu2  ;;  %v1921_v31 = vpop.f32.mrf.mxu3  ;;  %v3424_v13 = vmul.f32 %v3423_v34, %v9263_v32  ;;  %v803_v41 = vld [vmem:[%s7949_s28 + $0x7b8] sm:$0xff]  ;;  %v3411_v5 = vmul.f32 %v9300_v28, %v3410_v17  ;;  %2543 = vmatpush.msrb.mxu1 %v1003_v49  ;;  %v3416_v28 = vand.u32 2147483648, %v9270_v25 }
 0x281   : > { %v1809_v19 = vadd.f32 %v1808_v23, %v1696_v7  ;;  %v1585_v62 = vpop.f32.mrf.mxu0  ;;  %v1698_v46 = vpop.f32.mrf.mxu1  ;;  %v3434_v7 = vsub.f32 1.5, %v3433_v56  ;;  %v4044_v30 = vmul.f32 %v4043_v59, %v9267_v15  ;;  %v4029_v33 = vmul.f32 0.5, %v4028_v50 }
 0x282   : > { %v1586_v22 = vadd.f32 %v1585_v62, %v8208_v45  ;;  %v7079_v23 = vpop.eup %7078  ;;  %v3426_v34 = vsel %vm3425_vm6, %v9263_v32, %v3424_v13  ;;  %v3412_v13 = vmul.f32 %v3411_v5, %v9270_v25  ;;  %v810_v5 = vld [vmem:[%s7949_s28 + $0x7f0] sm:$0xff] }
 0x283   : > { %v9339_v63 = vadd.f32 %v1921_v31, %v1809_v19  ;;  %v3429_v31 = vsel %vm3427_vm7, %v3428_v27, %v3426_v34  ;;  %v3435_v45 = vmul.f32 %v9311_v36, %v3434_v7  ;;  %v3440_v19 = vand.u32 2147483648, %v9289_v38  ;;  %v808_v7 = vld [vmem:[%s7949_s28 + $0x7e0] sm:$0xff] }
 0x284   : > { %1632 = vmatmul.f32.gmra.mxu0 %v800_v1  ;;  %1745 = vmatmul.f32.gmra.mxu1 %v801_v55  ;;  %v4051_v1 = vmul.f32 %v7079_v23, %v9314_v9  ;;  %v4030_v50 = vsub.f32 1.5, %v4029_v33  ;;  %v1699_v32 = vadd.f32 %v1698_v46, %v1586_v22  ;;  %v9358_v36 = vmin.f32 %v3039_v48, 1.0  ;;  %v809_v22 = vld [vmem:[%s7949_s28 + $0x7e8] sm:$0xff]  ;;  %v2912_v33 = vld [vmem:[%s8117_s19 + $0xf0] sm:$0xff] }
 0x285   : > { %1858 = vmatmul.f32.gmra.mxu2 %v802_v42  ;;  %3622 = vperm.xlu1 %6963, %v3429_v31   ;;  %v3436_v39 = vmul.f32 %v3435_v45, %v9289_v38  ;;  %v4046_v42 = vsel %vm4045_vm8, %v9267_v15, %v4044_v30  ;;  %v3414_v59 = vsel %vm3413_vm9, %v9270_v25, %v3412_v13  ;;  %v4036_v30 = vand.u32 2147483648, %v9255_v53 }
 0x286   : > { %1971 = vmatmul.f32.gmra.mxu3 %v803_v41  ;;  %v4052_v56 = vmul.f32 %v7079_v23, %v4051_v1  ;;  %v4031_v62 = vmul.f32 %v9325_v0, %v4030_v50  ;;  %v3417_v60 = vsel %vm3415_vm13, %v3416_v28, %v3414_v59  ;;  %v9373_v41 = vsub.f32 1.0, %v9358_v36 }
 0x287   : > { %v3438_v46 = vsel %vm3437_vm11, %v9289_v38, %v3436_v39  ;;  %3617 = vperm.xlu2 %6964, %v3417_v60   ;;  %v12000_v48 = vand.u32 2147483648, %v9267_v15  ;;  %v811_v38 = vld [vmem:[%s7949_s28 + $0x7f8] sm:$0xff]  ;;  %v9395_v15 = vmul.f32 0.01, %v2912_v33  ;;  %v9398_v50 = vsub.f32 1.0, %v9314_v9  ;;  %v7094_v33 = vld [vmem:[%s7949_s28] sm:$0xff] }
 0x288   : > { %v1811_v27 = vpop.f32.mrf.mxu2  ;;  %v1924_v55 = vpop.f32.mrf.mxu3  ;;  %v3441_v25 = vsel %vm3439_vm12, %v3440_v19, %v3438_v46  ;;  %v4053_v0 = vmul.f32 0.5, %v4052_v56  ;;  %v4032_v34 = vmul.f32 %v4031_v62, %v9255_v53  ;;  %7080 = vrsqrt.f32 %v9373_v41  ;;  %v2913_v19 = vld [vmem:[%s8117_s19 + $0xf8] sm:$0xff] }
 0x289   : > { %v1812_v17 = vadd.f32 %v1811_v27, %v1699_v32  ;;  %v1588_v54 = vpop.f32.mrf.mxu0  ;;  %v1701_v49 = vpop.f32.mrf.mxu1  ;;  %v4049_v31 = vsel %vm4047_vm10, %v12000_v48, %v4046_v42  ;;  %3627 = vperm.xlu0 %6962, %v3441_v25   ;;  %v4060_v39 = vand.u32 2147483648, %v9314_v9  ;;  %v9402_v32 = vmul.f32 0.01, %v2913_v19  ;;  %v7097_v19 = vld [vmem:[%s7949_s28 + $0x18] sm:$0xff] }
 0x28a   : > { %v1589_v28 = vadd.f32 %v1588_v54, %v8236_v24  ;;  %v4054_v13 = vsub.f32 1.5, %v4053_v0  ;;  %v4034_v1 = vsel %vm4033_vm14, %v9255_v53, %v4032_v34  ;;  %7082 = vrsqrt.f32 %v9398_v50 }
 0x28b   : > { %v9385_v45 = vadd.f32 %v1924_v55, %v1812_v17  ;;  %v4037_v27 = vsel %vm4035_vm15, %v4036_v30, %v4034_v1  ;;  %v2976_v55 = vmul.f32 0.98, %v9395_v15  ;;  %v2977_v54 = vmul.f32 0.98, %v9402_v32 }
 0x28c   : > { %1635 = vmatmul.f32.gmra.mxu0 %v808_v7  ;;  %1748 = vmatmul.f32.gmra.mxu1 %v809_v22  ;;  %v4055_v24 = vmul.f32 %v7079_v23, %v4054_v13  ;;  %v1702_v42 = vadd.f32 %v1701_v49, %v1589_v28  ;;  %7084 = vrsqrt.f32 %v9358_v36  ;;  %vm3461_vm2 = vcmp.eq.f32.partialorder %v9373_v41, inf }
 0x28d   : > { %12001 = vst [vmem:[#allocation60_spill] sm:$0xff] %v9385_v45  ;;  %1861 = vmatmul.f32.gmra.mxu2 %v810_v5  ;;  %4299 = vperm.xlu1 %6963, %v4049_v31   ;;  %v3008_v60 = vadd.f32 0.02, %v2976_v55  ;;  %v3009_v34 = vadd.f32 0.02, %v2977_v54  ;;  %v7095_v31 = vld [vmem:[%s7949_s28 + $0x8] sm:$0xff] }
 0x28e   : > { %1974 = vmatmul.f32.gmra.mxu3 %v811_v38  ;;  %v4056_v53 = vmul.f32 %v4055_v24, %v9314_v9  ;;  %v7081_v23 = vpop.eup %7080  ;;  %vm3463_vm3 = vcmp.eq.f32.partialorder %v9373_v41, 0.0  ;;  %vm3449_vm4 = vcmp.eq.f32.partialorder %v9398_v50, inf  ;;  %vm3451_vm5 = vcmp.eq.f32.partialorder %v9398_v50, 0.0  ;;  %v4101_v45 = vld [vmem:[%s7957_s29 + $0x18] sm:$0xff] }
 0x28f   : > { %4294 = vperm.xlu2 %6964, %v4037_v27   ;;  %v3455_v7 = vmul.f32 %v7081_v23, %v9373_v41  ;;  %v3040_v5 = vmax.f32 %v3008_v60, 0.0  ;;  %v3041_v38 = vmax.f32 %v3009_v34, 0.0  ;;  %v3464_v34 = vand.u32 2147483648, %v9373_v41 }
 0x290   : > { %v1814_v59 = vpop.f32.mrf.mxu2  ;;  %v1927_v56 = vpop.f32.mrf.mxu3  ;;  %v4058_v49 = vsel %vm4057_vm0, %v9314_v9, %v4056_v53  ;;  %v7096_v9 = vld [vmem:[%s7949_s28 + $0x10] sm:$0xff]  ;;  %vm4069_vm8 = vcmp.eq.f32.partialorder %v9358_v36, inf  ;;  %vm4071_vm9 = vcmp.eq.f32.partialorder %v9358_v36, 0.0 }
 0x291   : > { %v1815_v62 = vadd.f32 %v1814_v59, %v1702_v42  ;;  %v1591_v46 = vpop.f32.mrf.mxu0  ;;  %v1704_v17 = vpop.f32.mrf.mxu1  ;;  %v4061_v25 = vsel %vm4059_vm1, %v4060_v39, %v4058_v49  ;;  %v3456_v30 = vmul.f32 %v7081_v23, %v3455_v7  ;;  %v9422_v28 = vmin.f32 %v3040_v5, 1.0  ;;  %v1033_v39 = vld [vmem:[#allocation7 + $0x6e8] sm:$0xff]  ;;  %v967_v5 = vld [vmem:[#allocation7 + $0x4d8] sm:$0xff] }
 0x292   : > { %v1592_v22 = vadd.f32 %v1591_v46, %v8260_v11  ;;  %4304 = vperm.xlu0 %6962, %v4061_v25   ;;  %v9418_v48 = vpop.eup %7082  ;;  %2657 = vmatpush.msrb.mxu2 %v1033_v39  ;;  %v1001_v46 = vld [vmem:[#allocation7 + $0x5e8] sm:$0xff]  ;;  %v9434_v7 = vmin.f32 %v3041_v38, 1.0  ;;  %v1031_v25 = vld [vmem:[#allocation7 + $0x6d8] sm:$0xff] }
 0x293   : > { %v9415_v0 = vadd.f32 %v1927_v56, %v1815_v62  ;;  %v3457_v11 = vmul.f32 0.5, %v3456_v30  ;;  %v3443_v13 = vmul.f32 %v9418_v48, %v9398_v50  ;;  %v9427_v1 = vpop.eup %7084  ;;  %7086 = vrsqrt.f32 %v9422_v28  ;;  %v969_v56 = vld [vmem:[#allocation7 + $0x4e8] sm:$0xff]  ;;  %2544 = vmatpush.msrb.mxu1 %v1001_v46 }
 0x294   : > { %1994 = vmatmul.f32.vlgmr.msra.gmra.mxu0 %v7094_v33  ;;  %2107 = vmatmul.f32.vlgmr.msra.gmra.mxu1 %v7095_v31  ;;  %v1705_v24 = vadd.f32 %v1704_v17, %v1592_v22  ;;  %v9431_v53 = vsub.f32 1.0, %v9422_v28  ;;  %v1065_v62 = vld [vmem:[#allocation7 + $0x7e8] sm:$0xff]  ;;  %v4063_v22 = vmul.f32 %v9427_v1, %v9358_v36  ;;  %v1063_v31 = vld [vmem:[#allocation7 + $0x7d8] sm:$0xff]  ;;  %vm4081_vm6 = vcmp.eq.f32.partialorder %v9422_v28, inf }
 0x295   : > { %12002 = vst [vmem:[#allocation61_spill] sm:$0xff] %v9415_v0  ;;  %2220 = vmatmul.f32.vlgmr.msra.gmra.mxu2 %v7096_v9  ;;  %v3458_v42 = vsub.f32 1.5, %v3457_v11  ;;  %v3444_v59 = vmul.f32 %v9418_v48, %v3443_v13  ;;  %2431 = vmatpush.msrb.mxu0 %v969_v56  ;;  %v999_v9 = vld [vmem:[#allocation7 + $0x5d8] sm:$0xff]  ;;  %v7098_v11 = vld [vmem:[%s7949_s28 + $0x40] sm:$0xff]  ;;  %vm4083_vm7 = vcmp.eq.f32.partialorder %v9422_v28, 0.0  ;;  %vm4093_vm12 = vcmp.eq.f32.partialorder %v9434_v7, inf }
 0x296   : > { %2333 = vmatmul.f32.vlgmr.msra.gmra.mxu3 %v7097_v19  ;;  %7088 = vrsqrt.f32 %v9431_v53  ;;  %2658 = vmatpush.msrb.mxu2 %v1031_v25  ;;  %vm3473_vm10 = vcmp.eq.f32.partialorder %v9431_v53, inf  ;;  %vm3475_vm11 = vcmp.eq.f32.partialorder %v9431_v53, 0.0  ;;  %vm4095_vm13 = vcmp.eq.f32.partialorder %v9434_v7, 0.0 }
 0x297   : > { %2770 = vmatpush.msrb.mxu3 %v1065_v62  ;;  %v3459_v17 = vmul.f32 %v7081_v23, %v3458_v42  ;;  %v3445_v23 = vmul.f32 0.5, %v3444_v59  ;;  %2432 = vmatpush.msrb.mxu0 %v967_v5  ;;  %7090 = vrsqrt.f32 %v9434_v7  ;;  %v4064_v59 = vmul.f32 %v9427_v1, %v4063_v22 }
 0x298   : > { %v1817_v27 = vpop.f32.mrf.mxu2  ;;  %v1930_v55 = vpop.f32.mrf.mxu3  ;;  %2545 = vmatpush.msrb.mxu1 %v999_v9  ;;  %v9462_v5 = vsub.f32 1.0, %v9434_v7 }
 0x299   : > { %v1818_v60 = vadd.f32 %v1817_v27, %v1705_v24  ;;  %v1594_v54 = vpop.f32.mrf.mxu0  ;;  %v1707_v49 = vpop.f32.mrf.mxu1  ;;  %v3460_v38 = vmul.f32 %v3459_v17, %v9373_v41  ;;  %2771 = vmatpush.msrb.mxu3 %v1063_v31  ;;  %v7099_v24 = vld [vmem:[%s7949_s28 + $0x48] sm:$0xff]  ;;  %v3446_v39 = vsub.f32 1.5, %v3445_v23  ;;  %v3452_v17 = vand.u32 2147483648, %v9398_v50 }
 0x29a   : > { %v1595_v33 = vadd.f32 %v1594_v54, %v8293_v20  ;;  %v7087_v19 = vpop.eup %7086  ;;  %v7100_v20 = vld [vmem:[%s7949_s28 + $0x50] sm:$0xff]  ;;  %v4065_v25 = vmul.f32 0.5, %v4064_v59  ;;  %7092 = vrsqrt.f32 %v9462_v5  ;;  %vm3485_vm14 = vcmp.eq.f32.partialorder %v9462_v5, inf }
 0x29b   : > { %v9441_v30 = vadd.f32 %v1930_v55, %v1818_v60  ;;  %v3462_v42 = vsel %vm3461_vm2, %v9373_v41, %v3460_v38  ;;  %v4075_v27 = vmul.f32 %v7087_v19, %v9422_v28  ;;  %v7101_v55 = vld [vmem:[%s7949_s28 + $0x58] sm:$0xff]  ;;  %v3447_v62 = vmul.f32 %v9418_v48, %v3446_v39 }
 0x29c   : > { %1997 = vmatmul.f32.gmra.mxu0 %v7098_v11  ;;  %v1708_v13 = vadd.f32 %v1707_v49, %v1595_v33  ;;  %2110 = vmatmul.f32.gmra.mxu1 %v7099_v24  ;;  %v3465_v56 = vsel %vm3463_vm3, %v3464_v34, %v3462_v42  ;;  %v7089_v46 = vpop.eup %7088  ;;  %v4066_v38 = vsub.f32 1.5, %v4065_v25  ;;  %vm3487_vm15 = vcmp.eq.f32.partialorder %v9462_v5, 0.0 }
 0x29d   : > { %12003 = vst [vmem:[#allocation62_spill] sm:$0xff] %v9441_v30  ;;  %2223 = vmatmul.f32.gmra.mxu2 %v7100_v20  ;;  %3637 = vperm.xlu1 %6963, %v3465_v56   ;;  %v4076_v60 = vmul.f32 %v7087_v19, %v4075_v27  ;;  %v3467_v22 = vmul.f32 %v7089_v46, %v9431_v53  ;;  %v7091_v23 = vpop.eup %7090  ;;  %v7103_v56 = vld [vmem:[%s7949_s28 + $0x88] sm:$0xff] }
 0x29e   : > { %2336 = vmatmul.f32.gmra.mxu3 %v7101_v55  ;;  %v3448_v41 = vmul.f32 %v3447_v62, %v9398_v50  ;;  %v4087_v20 = vmul.f32 %v7091_v23, %v9434_v7  ;;  %v4067_v27 = vmul.f32 %v9427_v1, %v4066_v38  ;;  %v4084_v62 = vand.u32 2147483648, %v9422_v28 }
 0x29f   : > { %v4077_v31 = vmul.f32 0.5, %v4076_v60  ;;  %v3468_v11 = vmul.f32 %v7089_v46, %v3467_v22  ;;  %v7104_v60 = vld [vmem:[%s7949_s28 + $0x90] sm:$0xff]  ;;  %v4072_v1 = vand.u32 2147483648, %v9358_v36 }
 0x2a0   : > { %v1820_v54 = vpop.f32.mrf.mxu2  ;;  %v1933_v49 = vpop.f32.mrf.mxu3  ;;  %v4088_v59 = vmul.f32 %v7091_v23, %v4087_v20 }
 0x2a1   : > { %v1821_v33 = vadd.f32 %v1820_v54, %v1708_v13  ;;  %v1597_v48 = vpop.f32.mrf.mxu0  ;;  %v1710_v34 = vpop.f32.mrf.mxu1  ;;  %v3450_v13 = vsel %vm3449_vm4, %v9398_v50, %v3448_v41  ;;  %v4078_v39 = vsub.f32 1.5, %v4077_v31  ;;  %v3469_v55 = vmul.f32 0.5, %v3468_v11  ;;  %v7105_v54 = vld [vmem:[%s7949_s28 + $0x98] sm:$0xff]  ;;  %v965_v41 = vld [vmem:[#allocation7 + $0x4c8] sm:$0xff] }
 0x2a2   : > { %v1598_v9 = vadd.f32 %v1597_v48, %v8335_v37  ;;  %v3453_v42 = vsel %vm3451_vm5, %v3452_v17, %v3450_v13  ;;  %v7102_v37 = vld [vmem:[%s7949_s28 + $0x80] sm:$0xff]  ;;  %v4089_v25 = vmul.f32 0.5, %v4088_v59  ;;  %v1061_v48 = vld [vmem:[#allocation7 + $0x7c8] sm:$0xff]  ;;  %v7093_v31 = vpop.eup %7092  ;;  %2433 = vmatpush.msrb.mxu0 %v965_v41 }
 0x2a3   : > { %v9469_v24 = vadd.f32 %v1933_v49, %v1821_v33  ;;  %3632 = vperm.xlu2 %6964, %v3453_v42   ;;  %v4079_v50 = vmul.f32 %v7087_v19, %v4078_v39  ;;  %v4068_v49 = vmul.f32 %v4067_v27, %v9358_v36  ;;  %v3470_v17 = vsub.f32 1.5, %v3469_v55  ;;  %v1029_v33 = vld [vmem:[#allocation7 + $0x6c8] sm:$0xff]  ;;  %2772 = vmatpush.msrb.mxu3 %v1061_v48 }
 0x2a4   : > { %2000 = vmatmul.f32.gmra.mxu0 %v7102_v37  ;;  %2113 = vmatmul.f32.gmra.mxu1 %v7103_v56  ;;  %v1711_v22 = vadd.f32 %v1710_v34, %v1598_v9  ;;  %v3476_v9 = vand.u32 2147483648, %v9431_v53  ;;  %v4090_v20 = vsub.f32 1.5, %v4089_v25 }
 0x2a5   : > { %12004 = vst [vmem:[#allocation63_spill] sm:$0xff] %v9469_v24  ;;  %2226 = vmatmul.f32.gmra.mxu2 %v7104_v60  ;;  %v4080_v19 = vmul.f32 %v4079_v50, %v9422_v28  ;;  %v4070_v13 = vsel %vm4069_vm8, %v9358_v36, %v4068_v49  ;;  %v3471_v34 = vmul.f32 %v7089_v46, %v3470_v17  ;;  %v7106_v49 = vld [vmem:[%s7949_s28 + $0xc0] sm:$0xff]  ;;  %v997_v17 = vld [vmem:[#allocation7 + $0x5c8] sm:$0xff] }
 0x2a6   : > { %2339 = vmatmul.f32.gmra.mxu3 %v7105_v54  ;;  %2659 = vmatpush.msrb.mxu2 %v1029_v33  ;;  %v4073_v55 = vsel %vm4071_vm9, %v4072_v1, %v4070_v13  ;;  %v3479_v46 = vmul.f32 %v7093_v31, %v9462_v5  ;;  %v4091_v60 = vmul.f32 %v7091_v23, %v4090_v20  ;;  %v7108_v23 = vld [vmem:[%s7949_s28 + $0xd0] sm:$0xff]  ;;  %v7109_v1 = vld [vmem:[%s7949_s28 + $0xd8] sm:$0xff]  ;;  %v4096_v33 = vand.u32 2147483648, %v9434_v7  ;;  %v4099_v24 = vld [vmem:[%s7957_s29 + $0x8] sm:$0xff] }
 0x2a7   : > { %v4082_v27 = vsel %vm4081_vm6, %v9422_v28, %v4080_v19  ;;  %v3472_v50 = vmul.f32 %v3471_v34, %v9431_v53  ;;  %v7107_v28 = vld [vmem:[%s7949_s28 + $0xc8] sm:$0xff]  ;;  %2546 = vmatpush.msrb.mxu1 %v997_v17 }
 0x2a8   : > { %v1823_v38 = vpop.f32.mrf.mxu2  ;;  %v1936_v11 = vpop.f32.mrf.mxu3  ;;  %v4085_v56 = vsel %vm4083_vm7, %v4084_v62, %v4082_v27  ;;  %v4092_v36 = vmul.f32 %v4091_v60, %v9434_v7 }
 0x2a9   : > { %v1824_v39 = vadd.f32 %v1823_v38, %v1711_v22  ;;  %v1600_v42 = vpop.f32.mrf.mxu0  ;;  %v1713_v37 = vpop.f32.mrf.mxu1  ;;  %4314 = vperm.xlu1 %6963, %v4085_v56   ;;  %v3480_v22 = vmul.f32 %v7093_v31, %v3479_v46 }
 0x2aa   : > { %v1601_v59 = vadd.f32 %v1600_v42, %v8375_v44  ;;  %v3474_v44 = vsel %vm3473_vm10, %v9431_v53, %v3472_v50  ;;  %v4094_v19 = vsel %vm4093_vm12, %v9434_v7, %v4092_v36  ;;  %v7110_v42 = vld [vmem:[%s7949_s28 + $0x100] sm:$0xff]  ;;  %v7113_v7 = vld [vmem:[%s7949_s28 + $0x118] sm:$0xff] }
 0x2ab   : > { %v9504_v54 = vadd.f32 %v1936_v11, %v1824_v39  ;;  %4309 = vperm.xlu2 %6964, %v4073_v55   ;;  %v3477_v62 = vsel %vm3475_vm11, %v3476_v9, %v3474_v44  ;;  %v3481_v13 = vmul.f32 0.5, %v3480_v22  ;;  %v4097_v39 = vsel %vm4095_vm13, %v4096_v33, %v4094_v19  ;;  %v7112_v55 = vld [vmem:[%s7949_s28 + $0x110] sm:$0xff]  ;;  %v1059_v22 = vld [vmem:[#allocation7 + $0x7b8] sm:$0xff] }
 0x2ac   : > { %2003 = vmatmul.f32.gmra.mxu0 %v7106_v49  ;;  %2116 = vmatmul.f32.gmra.mxu1 %v7107_v28  ;;  %v1714_v25 = vadd.f32 %v1713_v37, %v1601_v59  ;;  %v7111_v37 = vld [vmem:[%s7949_s28 + $0x108] sm:$0xff]  ;;  %v3488_v59 = vand.u32 2147483648, %v9462_v5  ;;  %v7114_v28 = vld [vmem:[%s7949_s28 + $0x140] sm:$0xff] }
 0x2ad   : > { %12005 = vst [vmem:[#allocation64_spill] sm:$0xff] %v9504_v54  ;;  %2229 = vmatmul.f32.gmra.mxu2 %v7108_v23  ;;  %3642 = vperm.xlu0 %6962, %v3477_v62   ;;  %v3482_v20 = vsub.f32 1.5, %v3481_v13  ;;  %v7115_v62 = vld [vmem:[%s7949_s28 + $0x148] sm:$0xff]  ;;  %v7116_v23 = vld [vmem:[%s7949_s28 + $0x150] sm:$0xff] }
 0x2ae   : > { %2342 = vmatmul.f32.gmra.mxu3 %v7109_v1  ;;  %v7117_v1 = vld [vmem:[%s7949_s28 + $0x158] sm:$0xff]  ;;  %v12009_v13 = vld [vmem:[#allocation27_spill] sm:$0xff] }
 0x2af   : > { %v3483_v27 = vmul.f32 %v7093_v31, %v3482_v20  ;;  %2773 = vmatpush.msrb.mxu3 %v1059_v22  ;;  %v12010_v20 = vld [vmem:[#allocation30_spill] sm:$0xff] }
 0x2b0   : > { %v1826_v41 = vpop.f32.mrf.mxu2  ;;  %v1939_v48 = vpop.f32.mrf.mxu3  ;;  %v7344_v54 = vld [vmem:[%s7949_s28 + $0x7a8] sm:$0xff] }
 0x2b1   : > { %v1827_v53 = vadd.f32 %v1826_v41, %v1714_v25  ;;  %v1603_v38 = vpop.f32.mrf.mxu0  ;;  %v1716_v11 = vpop.f32.mrf.mxu1  ;;  %4581 = vperm.xlu1 %6963, %v8122_v2   ;;  %v3484_v46 = vmul.f32 %v3483_v27, %v9462_v5  ;;  %v1027_v25 = vld [vmem:[#allocation7 + $0x6b8] sm:$0xff] }
 0x2b2   : > { %v1604_v9 = vadd.f32 %v1603_v38, %v8410_v57  ;;  %2660 = vmatpush.msrb.mxu2 %v1027_v25  ;;  %v995_v41 = vld [vmem:[#allocation7 + $0x5b8] sm:$0xff]  ;;  %v993_v25 = vld [vmem:[#allocation7 + $0x5a8] sm:$0xff] }
 0x2b3   : > { %v9520_v34 = vadd.f32 %v1939_v48, %v1827_v53  ;;  %v3486_v50 = vsel %vm3485_vm14, %v9462_v5, %v3484_v46  ;;  %v963_v5 = vld [vmem:[#allocation7 + $0x4b8] sm:$0xff]  ;;  %2547 = vmatpush.msrb.mxu1 %v995_v41 }
 0x2b4   : > { %2006 = vmatmul.f32.gmra.mxu0 %v7110_v42  ;;  %2119 = vmatmul.f32.gmra.mxu1 %v7111_v37  ;;  %v1717_v57 = vadd.f32 %v1716_v11, %v1604_v9  ;;  %v3489_v17 = vsel %vm3487_vm15, %v3488_v59, %v3486_v50  ;;  %v7118_v9 = vld [vmem:[%s7949_s28 + $0x180] sm:$0xff]  ;;  %v7120_v42 = vld [vmem:[%s7949_s28 + $0x190] sm:$0xff]  ;;  %v7121_v37 = vld [vmem:[%s7949_s28 + $0x198] sm:$0xff] }
 0x2b5   : > { %12006 = vst [vmem:[#allocation65_spill] sm:$0xff] %v9520_v34  ;;  %2232 = vmatmul.f32.gmra.mxu2 %v7112_v55  ;;  %4319 = vperm.xlu0 %6962, %v4097_v39   ;;  %v7119_v39 = vld [vmem:[%s7949_s28 + $0x188] sm:$0xff]  ;;  %v7122_v50 = vld [vmem:[%s7949_s28 + $0x1c0] sm:$0xff] }
 0x2b6   : > { %2345 = vmatmul.f32.gmra.mxu3 %v7113_v7  ;;  %3647 = vperm.xlu2 %6964, %v3489_v17   ;;  %v7124_v17 = vld [vmem:[%s7949_s28 + $0x1d0] sm:$0xff] }
 0x2b7   : > { %2434 = vmatpush.msrb.mxu0 %v963_v5  ;;  %2548 = vmatpush.msrb.mxu1 %v993_v25 }
 0x2b8   : > { %v1829_v2 = vpop.f32.mrf.mxu2  ;;  %v1942_v56 = vpop.f32.mrf.mxu3 }
 0x2b9   : > { %v1830_v31 = vadd.f32 %v1829_v2, %v1717_v57  ;;  %v1606_v60 = vpop.f32.mrf.mxu0  ;;  %v1719_v49 = vpop.f32.mrf.mxu1  ;;  %4596 = vperm.xlu1 %6963, %v8180_v51   ;;  %v12011_v57 = vld [vmem:[#allocation29_spill] sm:$0xff] }
 0x2ba   : > { %v1607_v36 = vadd.f32 %v1606_v60, %v8447_v21  ;;  %v12013_v2 = vld [vmem:[#allocation37_spill] sm:$0xff] }
 0x2bb   : > { %v9533_v44 = vadd.f32 %v1942_v56, %v1830_v31  ;;  %v12014_v31 = vld [vmem:[#allocation28_spill] sm:$0xff]  ;;  %v12015_v60 = vld [vmem:[#allocation33_spill] sm:$0xff] }
 0x2bc   : > { %2009 = vmatmul.f32.gmra.mxu0 %v7114_v28  ;;  %2122 = vmatmul.f32.gmra.mxu1 %v7115_v62  ;;  %v1720_v33 = vadd.f32 %v1719_v49, %v1607_v36  ;;  %v7123_v49 = vld [vmem:[%s7949_s28 + $0x1c8] sm:$0xff]  ;;  %v7125_v36 = vld [vmem:[%s7949_s28 + $0x1d8] sm:$0xff] }
 0x2bd   : > { %12007 = vst [vmem:[#allocation66_spill] sm:$0xff] %v9533_v44  ;;  %2235 = vmatmul.f32.gmra.mxu2 %v7116_v23  ;;  %4591 = vperm.xlu0 %6962, %v8205_v43   ;;  %v1025_v28 = vld [vmem:[#allocation7 + $0x6a8] sm:$0xff] }
 0x2be   : > { %2348 = vmatmul.f32.gmra.mxu3 %v7117_v1  ;;  %4586 = vperm.xlu2 %6964, %v12009_v13   ;;  %v961_v62 = vld [vmem:[#allocation7 + $0x4a8] sm:$0xff]  ;;  %v7126_v13 = vld [vmem:[%s7949_s28 + $0x200] sm:$0xff] }
 0x2bf   : > { %v1057_v23 = vld [vmem:[#allocation7 + $0x7a8] sm:$0xff]  ;;  %2661 = vmatpush.msrb.mxu2 %v1025_v28  ;;  %2435 = vmatpush.msrb.mxu0 %v961_v62 }
 0x2c0   : > { %v1832_v21 = vpop.f32.mrf.mxu2  ;;  %v1945_v48 = vpop.f32.mrf.mxu3  ;;  %2774 = vmatpush.msrb.mxu3 %v1057_v23 }
 0x2c1   : > { %v1833_v51 = vadd.f32 %v1832_v21, %v1720_v33  ;;  %v1609_v19 = vpop.f32.mrf.mxu0  ;;  %v1722_v53 = vpop.f32.mrf.mxu1  ;;  %4611 = vperm.xlu1 %6963, %v12010_v20   ;;  %v7127_v20 = vld [vmem:[%s7949_s28 + $0x208] sm:$0xff] }
 0x2c2   : > { %v1610_v11 = vadd.f32 %v1609_v19, %v8500_v52  ;;  %v12018_v19 = vld [vmem:[#allocation38_spill] sm:$0xff] }
 0x2c3   : > { %v9542_v38 = vadd.f32 %v1945_v48, %v1833_v51  ;;  %v12016_v48 = vld [vmem:[#allocation32_spill] sm:$0xff] }
 0x2c4   : > { %2012 = vmatmul.f32.gmra.mxu0 %v7118_v9  ;;  %2125 = vmatmul.f32.gmra.mxu1 %v7119_v39  ;;  %v1723_v43 = vadd.f32 %v1722_v53, %v1610_v11  ;;  %v12019_v11 = vld [vmem:[#allocation31_spill] sm:$0xff]  ;;  %v12020_v9 = vld [vmem:[#allocation36_spill] sm:$0xff] }
 0x2c5   : > { %12008 = vst [vmem:[#allocation67_spill] sm:$0xff] %v9542_v38  ;;  %2238 = vmatmul.f32.gmra.mxu2 %v7120_v42  ;;  %4606 = vperm.xlu0 %6962, %v12011_v57   ;;  %v7128_v39 = vld [vmem:[%s7949_s28 + $0x210] sm:$0xff]  ;;  %v7129_v42 = vld [vmem:[%s7949_s28 + $0x218] sm:$0xff] }
 0x2c6   : > { %2351 = vmatmul.f32.gmra.mxu3 %v7121_v37  ;;  %4601 = vperm.xlu2 %6964, %v12014_v31   ;;  %v12024_v31 = vld [vmem:[#allocation34_spill] sm:$0xff]  ;;  %v4577_v38 = vld [vmem:[#allocation10 + $0x3f8] sm:$0xff] }
 0x2c8   : > { %v1835_v27 = vpop.f32.mrf.mxu2  ;;  %v1948_v55 = vpop.f32.mrf.mxu3 }
 0x2c9   : > { %v1836_v52 = vadd.f32 %v1835_v27, %v1723_v43  ;;  %v1612_v7 = vpop.f32.mrf.mxu0  ;;  %v1725_v59 = vpop.f32.mrf.mxu1  ;;  %4626 = vperm.xlu1 %6963, %v12015_v60   ;;  %v12025_v60 = vld [vmem:[#allocation42_spill] sm:$0xff] }
 0x2ca   : > { %v1613_v56 = vadd.f32 %v1612_v7, %v12013_v2  ;;  %v12023_v2 = vld [vmem:[#allocation41_spill] sm:$0xff] }
 0x2cb   : > { %v9552_v46 = vadd.f32 %v1948_v55, %v1836_v52 }
 0x2cc   : > { %2015 = vmatmul.f32.gmra.mxu0 %v7122_v50  ;;  %2128 = vmatmul.f32.gmra.mxu1 %v7123_v49  ;;  %v1726_v1 = vadd.f32 %v1725_v59, %v1613_v56  ;;  %v12021_v59 = vld [vmem:[#allocation35_spill] sm:$0xff]  ;;  %v7130_v50 = vld [vmem:[%s7949_s28 + $0x240] sm:$0xff] }
 0x2cd   : > { %12012 = vst [vmem:[#allocation27_spill] sm:$0xff] %v9552_v46  ;;  %2241 = vmatmul.f32.gmra.mxu2 %v7124_v17  ;;  %4621 = vperm.xlu0 %6962, %v12016_v48   ;;  %v7131_v49 = vld [vmem:[%s7949_s28 + $0x248] sm:$0xff]  ;;  %v7132_v17 = vld [vmem:[%s7949_s28 + $0x250] sm:$0xff]  ;;  %v1023_v48 = vld [vmem:[#allocation7 + $0x698] sm:$0xff] }
 0x2ce   : > { %2354 = vmatmul.f32.gmra.mxu3 %v7125_v36  ;;  %4616 = vperm.xlu2 %6964, %v12019_v11   ;;  %v7133_v36 = vld [vmem:[%s7949_s28 + $0x258] sm:$0xff]  ;;  %v7337_v46 = vld [vmem:[%s7949_s28 + $0x730] sm:$0xff] }
 0x2cf   : > { %v959_v11 = vld [vmem:[#allocation7 + $0x498] sm:$0xff]  ;;  %2662 = vmatpush.msrb.mxu2 %v1023_v48  ;;  %v957_v48 = vld [vmem:[#allocation7 + $0x488] sm:$0xff] }
 0x2d0   : > { %v1838_v5 = vpop.f32.mrf.mxu2  ;;  %v1951_v22 = vpop.f32.mrf.mxu3  ;;  %2436 = vmatpush.msrb.mxu0 %v959_v11  ;;  %v989_v11 = vld [vmem:[#allocation7 + $0x588] sm:$0xff] }
 0x2d1   : > { %v1839_v33 = vadd.f32 %v1838_v5, %v1726_v1  ;;  %v1615_v41 = vpop.f32.mrf.mxu0  ;;  %v1728_v21 = vpop.f32.mrf.mxu1  ;;  %4641 = vperm.xlu1 %6963, %v12020_v9   ;;  %v7135_v9 = vld [vmem:[%s7949_s28 + $0x288] sm:$0xff] }
 0x2d2   : > { %v1616_v53 = vadd.f32 %v1615_v41, %v12018_v19  ;;  %v12028_v41 = vld [vmem:[#allocation43_spill] sm:$0xff]  ;;  %2437 = vmatpush.msrb.mxu0 %v957_v48 }
 0x2d3   : > { %v9562_v51 = vadd.f32 %v1951_v22, %v1839_v33  ;;  %v12026_v22 = vld [vmem:[#allocation40_spill] sm:$0xff]  ;;  %v12029_v19 = vld [vmem:[#allocation39_spill] sm:$0xff] }
 0x2d4   : > { %2018 = vmatmul.f32.gmra.mxu0 %v7126_v13  ;;  %2131 = vmatmul.f32.gmra.mxu1 %v7127_v20  ;;  %v1729_v37 = vadd.f32 %v1728_v21, %v1616_v53  ;;  %v7134_v53 = vld [vmem:[%s7949_s28 + $0x280] sm:$0xff]  ;;  %v1055_v13 = vld [vmem:[#allocation7 + $0x798] sm:$0xff]  ;;  %v1017_v48 = vld [vmem:[#allocation7 + $0x668] sm:$0xff] }
 0x2d5   : > { %12017 = vst [vmem:[#allocation30_spill] sm:$0xff] %v9562_v51  ;;  %2244 = vmatmul.f32.gmra.mxu2 %v7128_v39  ;;  %4636 = vperm.xlu0 %6962, %v12021_v59   ;;  %v991_v20 = vld [vmem:[#allocation7 + $0x598] sm:$0xff]  ;;  %v7136_v39 = vld [vmem:[%s7949_s28 + $0x290] sm:$0xff]  ;;  %v7336_v51 = vld [vmem:[%s7949_s28 + $0x728] sm:$0xff] }
 0x2d6   : > { %2357 = vmatmul.f32.gmra.mxu3 %v7129_v42  ;;  %4631 = vperm.xlu2 %6964, %v12024_v31   ;;  %v7137_v42 = vld [vmem:[%s7949_s28 + $0x298] sm:$0xff] }
 0x2d7   : > { %2775 = vmatpush.msrb.mxu3 %v1055_v13  ;;  %2549 = vmatpush.msrb.mxu1 %v991_v20  ;;  %v12032_v31 = vld [vmem:[#allocation45_spill] sm:$0xff] }
 0x2d8   : > { %v1841_v43 = vpop.f32.mrf.mxu2  ;;  %v1954_v27 = vpop.f32.mrf.mxu3 }
 0x2d9   : > { %v1842_v55 = vadd.f32 %v1841_v43, %v1729_v37  ;;  %v1618_v52 = vpop.f32.mrf.mxu0  ;;  %v1731_v7 = vpop.f32.mrf.mxu1  ;;  %4656 = vperm.xlu1 %6963, %v12025_v60   ;;  %v7139_v60 = vld [vmem:[%s7949_s28 + $0x2c8] sm:$0xff]  ;;  %2550 = vmatpush.msrb.mxu1 %v989_v11 }
 0x2da   : > { %v1619_v56 = vadd.f32 %v1618_v52, %v12023_v2  ;;  %v12031_v2 = vld [vmem:[#allocation44_spill] sm:$0xff]  ;;  %v1049_v11 = vld [vmem:[#allocation7 + $0x768] sm:$0xff] }
 0x2db   : > { %v9572_v57 = vadd.f32 %v1954_v27, %v1842_v55 }
 0x2dc   : > { %2021 = vmatmul.f32.gmra.mxu0 %v7130_v50  ;;  %2134 = vmatmul.f32.gmra.mxu1 %v7131_v49  ;;  %v1732_v28 = vadd.f32 %v1731_v7, %v1619_v56  ;;  %v7138_v50 = vld [vmem:[%s7949_s28 + $0x2c0] sm:$0xff]  ;;  %v7140_v49 = vld [vmem:[%s7949_s28 + $0x2d0] sm:$0xff] }
 0x2dd   : > { %12022 = vst [vmem:[#allocation29_spill] sm:$0xff] %v9572_v57  ;;  %2247 = vmatmul.f32.gmra.mxu2 %v7132_v17  ;;  %4651 = vperm.xlu0 %6962, %v12026_v22   ;;  %v7142_v22 = vld [vmem:[%s7949_s28 + $0x300] sm:$0xff] }
 0x2de   : > { %2360 = vmatmul.f32.gmra.mxu3 %v7133_v36  ;;  %4646 = vperm.xlu2 %6964, %v12029_v19   ;;  %v1053_v19 = vld [vmem:[#allocation7 + $0x788] sm:$0xff] }
 0x2df   : > { %2776 = vmatpush.msrb.mxu3 %v1053_v19  ;;  %v7156_v19 = vld [vmem:[%s7949_s28 + $0x3d0] sm:$0xff] }
 0x2e0   : > { %v1844_v62 = vpop.f32.mrf.mxu2  ;;  %v1957_v23 = vpop.f32.mrf.mxu3 }
 0x2e1   : > { %v1845_v1 = vadd.f32 %v1844_v62, %v1732_v28  ;;  %v1621_v25 = vpop.f32.mrf.mxu0  ;;  %v1734_v5 = vpop.f32.mrf.mxu1  ;;  %4671 = vperm.xlu1 %6963, %v8837_v3   ;;  %v7141_v3 = vld [vmem:[%s7949_s28 + $0x2d8] sm:$0xff] }
 0x2e2   : > { %v1622_v21 = vadd.f32 %v1621_v25, %v12028_v41  ;;  %v12034_v25 = vld [vmem:[#allocation46_spill] sm:$0xff] }
 0x2e3   : > { %v9582_v33 = vadd.f32 %v1957_v23, %v1845_v1  ;;  %v7143_v41 = vld [vmem:[%s7949_s28 + $0x308] sm:$0xff] }
 0x2e4   : > { %2024 = vmatmul.f32.gmra.mxu0 %v7134_v53  ;;  %2137 = vmatmul.f32.gmra.mxu1 %v7135_v9  ;;  %v1735_v37 = vadd.f32 %v1734_v5, %v1622_v21  ;;  %v1021_v21 = vld [vmem:[#allocation7 + $0x688] sm:$0xff]  ;;  %v7145_v53 = vld [vmem:[%s7949_s28 + $0x318] sm:$0xff] }
 0x2e5   : > { %12027 = vst [vmem:[#allocation37_spill] sm:$0xff] %v9582_v33  ;;  %2250 = vmatmul.f32.gmra.mxu2 %v7136_v39  ;;  %4666 = vperm.xlu0 %6962, %v8790_v26  }
 0x2e6   : > { %2363 = vmatmul.f32.gmra.mxu3 %v7137_v42  ;;  %4661 = vperm.xlu2 %6964, %v12032_v31  }
 0x2e7   : > { %2663 = vmatpush.msrb.mxu2 %v1021_v21  ;;  %v7155_v21 = vld [vmem:[%s7949_s28 + $0x3c8] sm:$0xff] }
 0x2e8   : > { %v1847_v43 = vpop.f32.mrf.mxu2  ;;  %v1960_v27 = vpop.f32.mrf.mxu3 }
 0x2e9   : > { %v1848_v55 = vadd.f32 %v1847_v43, %v1735_v37  ;;  %v1624_v52 = vpop.f32.mrf.mxu0  ;;  %v1737_v7 = vpop.f32.mrf.mxu1  ;;  %4686 = vperm.xlu1 %6963, %v8943_v18   ;;  %v7144_v18 = vld [vmem:[%s7949_s28 + $0x310] sm:$0xff] }
 0x2ea   : > { %v1625_v56 = vadd.f32 %v1624_v52, %v12031_v2  ;;  %v12036_v37 = vld [vmem:[#allocation47_spill] sm:$0xff] }
 0x2eb   : > { %v9592_v59 = vadd.f32 %v1960_v27, %v1848_v55  ;;  %v7146_v27 = vld [vmem:[%s7949_s28 + $0x340] sm:$0xff]  ;;  %v7147_v55 = vld [vmem:[%s7949_s28 + $0x348] sm:$0xff]  ;;  %v7148_v52 = vld [vmem:[%s7949_s28 + $0x350] sm:$0xff] }
 0x2ec   : > { %2027 = vmatmul.f32.gmra.mxu0 %v7138_v50  ;;  %2140 = vmatmul.f32.gmra.mxu1 %v7139_v60  ;;  %v1738_v17 = vadd.f32 %v1737_v7, %v1625_v56  ;;  %v7149_v7 = vld [vmem:[%s7949_s28 + $0x358] sm:$0xff] }
 0x2ed   : > { %12030 = vst [vmem:[#allocation28_spill] sm:$0xff] %v9592_v59  ;;  %2253 = vmatmul.f32.gmra.mxu2 %v7140_v49  ;;  %4681 = vperm.xlu0 %6962, %v8916_v58   ;;  %v7150_v49 = vld [vmem:[%s7949_s28 + $0x380] sm:$0xff] }
 0x2ee   : > { %2366 = vmatmul.f32.gmra.mxu3 %v7141_v3  ;;  %4676 = vperm.xlu2 %6964, %v8887_v61   ;;  %v7151_v3 = vld [vmem:[%s7949_s28 + $0x388] sm:$0xff] }
 0x2f0   : > { %v1850_v36 = vpop.f32.mrf.mxu2  ;;  %v1963_v28 = vpop.f32.mrf.mxu3 }
 0x2f1   : > { %v1851_v26 = vadd.f32 %v1850_v36, %v1738_v17  ;;  %v1627_v62 = vpop.f32.mrf.mxu0  ;;  %v1740_v23 = vpop.f32.mrf.mxu1  ;;  %4701 = vperm.xlu1 %6963, %v9118_v40   ;;  %v7152_v17 = vld [vmem:[%s7949_s28 + $0x390] sm:$0xff]  ;;  %v7153_v36 = vld [vmem:[%s7949_s28 + $0x398] sm:$0xff] }
 0x2f2   : > { %v1628_v5 = vadd.f32 %v1627_v62, %v12034_v25  ;;  %v7154_v25 = vld [vmem:[%s7949_s28 + $0x3c0] sm:$0xff] }
 0x2f3   : > { %v9602_v1 = vadd.f32 %v1963_v28, %v1851_v26 }
 0x2f4   : > { %2030 = vmatmul.f32.gmra.mxu0 %v7142_v22  ;;  %2143 = vmatmul.f32.gmra.mxu1 %v7143_v41  ;;  %v1741_v58 = vadd.f32 %v1740_v23, %v1628_v5  ;;  %v1019_v5 = vld [vmem:[#allocation7 + $0x678] sm:$0xff] }
 0x2f5   : > { %12033 = vst [vmem:[#allocation33_spill] sm:$0xff] %v9602_v1  ;;  %2256 = vmatmul.f32.gmra.mxu2 %v7144_v18  ;;  %4696 = vperm.xlu0 %6962, %v9068_v4   ;;  %v955_v22 = vld [vmem:[#allocation7 + $0x478] sm:$0xff]  ;;  %v7158_v18 = vld [vmem:[#allocation8] sm:$0x3] }
 0x2f6   : > { %2369 = vmatmul.f32.gmra.mxu3 %v7145_v53  ;;  %4691 = vperm.xlu2 %6964, %v9004_v29   ;;  %v1051_v41 = vld [vmem:[#allocation7 + $0x778] sm:$0xff]  ;;  %v9640_v53 = vperm.slane %v7158_v18, 1 }
 0x2f7   : > { %2664 = vmatpush.msrb.mxu2 %v1019_v5  ;;  %2438 = vmatpush.msrb.mxu0 %v955_v22  ;;  %v7170_v18 = vld [vmem:[%s7949_s28 + $0x498] sm:$0xff] }
 0x2f8   : > { %v1853_v13 = vpop.f32.mrf.mxu2  ;;  %v1966_v9 = vpop.f32.mrf.mxu3  ;;  %2777 = vmatpush.msrb.mxu3 %v1051_v41  ;;  %v7330_v1 = vld [vmem:[%s7949_s28 + $0x6b8] sm:$0xff] }
 0x2f9   : > { %v1854_v61 = vadd.f32 %v1853_v13, %v1741_v58  ;;  %v1630_v20 = vpop.f32.mrf.mxu0  ;;  %v1743_v39 = vpop.f32.mrf.mxu1  ;;  %4716 = vperm.xlu1 %6963, %v9204_v6   ;;  %v985_v58 = vld [vmem:[#allocation7 + $0x568] sm:$0xff]  ;;  %2665 = vmatpush.msrb.mxu2 %v1017_v48 }
 0x2fa   : > { %v1631_v43 = vadd.f32 %v1630_v20, %v12036_v37  ;;  %2778 = vmatpush.msrb.mxu3 %v1049_v11  ;;  %v7168_v48 = vld [vmem:[%s7949_s28 + $0x488] sm:$0xff] }
 0x2fb   : > { %v9612_v42 = vadd.f32 %v1966_v9, %v1854_v61  ;;  %v949_v11 = vld [vmem:[#allocation7 + $0x448] sm:$0xff] }
 0x2fc   : > { %2033 = vmatmul.f32.gmra.mxu0 %v7146_v27  ;;  %2146 = vmatmul.f32.gmra.mxu1 %v7147_v55  ;;  %v1744_v4 = vadd.f32 %v1743_v39, %v1631_v43  ;;  %v7159_v27 = vld [vmem:[%s7949_s28 + $0x400] sm:$0xff] }
 0x2fd   : > { %12035 = vst [vmem:[#allocation32_spill] sm:$0xff] %v9612_v42  ;;  %2259 = vmatmul.f32.gmra.mxu2 %v7148_v52  ;;  %4711 = vperm.xlu0 %6962, %v9186_v16   ;;  %v7160_v52 = vld [vmem:[%s7949_s28 + $0x408] sm:$0xff]  ;;  %v7329_v42 = vld [vmem:[%s7949_s28 + $0x6b0] sm:$0xff] }
 0x2fe   : > { %2372 = vmatmul.f32.gmra.mxu3 %v7149_v7  ;;  %4706 = vperm.xlu2 %6964, %v9146_v14   ;;  %v7161_v7 = vld [vmem:[%s7949_s28 + $0x410] sm:$0xff] }
 0x300   : > { %v1856_v40 = vpop.f32.mrf.mxu2  ;;  %v1969_v56 = vpop.f32.mrf.mxu3 }
 0x301   : > { %v1857_v2 = vadd.f32 %v1856_v40, %v1744_v4  ;;  %v1633_v31 = vpop.f32.mrf.mxu0  ;;  %v1746_v29 = vpop.f32.mrf.mxu1  ;;  %4731 = vperm.xlu1 %6963, %v9395_v15   ;;  %v7157_v15 = vld [vmem:[%s7949_s28 + $0x3d8] sm:$0xff] }
 0x302   : > { %v1634_v60 = vadd.f32 %v1633_v31, %v8825_v47  ;;  %v7162_v4 = vld [vmem:[%s7949_s28 + $0x418] sm:$0xff] }
 0x303   : > { %v9622_v50 = vadd.f32 %v1969_v56, %v1857_v2  ;;  %v1015_v40 = vld [vmem:[#allocation7 + $0x658] sm:$0xff] }
 0x304   : > { %2036 = vmatmul.f32.gmra.mxu0 %v7150_v49  ;;  %2149 = vmatmul.f32.gmra.mxu1 %v7151_v3  ;;  %v1747_v28 = vadd.f32 %v1746_v29, %v1634_v60  ;;  %v951_v2 = vld [vmem:[#allocation7 + $0x458] sm:$0xff] }
 0x305   : > { %12037 = vst [vmem:[#allocation38_spill] sm:$0xff] %v9622_v50  ;;  %2262 = vmatmul.f32.gmra.mxu2 %v7152_v17  ;;  %4726 = vperm.xlu0 %6962, %v9316_v12   ;;  %v987_v12 = vld [vmem:[#allocation7 + $0x578] sm:$0xff]  ;;  %v7328_v50 = vld [vmem:[%s7949_s28 + $0x6a8] sm:$0xff] }
 0x306   : > { %2375 = vmatmul.f32.gmra.mxu3 %v7153_v36  ;;  %4721 = vperm.xlu2 %6964, %v9265_v10   ;;  %v1047_v56 = vld [vmem:[#allocation7 + $0x758] sm:$0xff]  ;;  %v7163_v36 = vld [vmem:[%s7949_s28 + $0x440] sm:$0xff] }
 0x307   : > { %2551 = vmatpush.msrb.mxu1 %v987_v12  ;;  %2666 = vmatpush.msrb.mxu2 %v1015_v40  ;;  %v7167_v12 = vld [vmem:[%s7949_s28 + $0x480] sm:$0xff]  ;;  %v7174_v40 = vld [vmem:[%s7949_s28 + $0x4d8] sm:$0xff] }
 0x308   : > { %v1859_v16 = vpop.f32.mrf.mxu2  ;;  %2779 = vmatpush.msrb.mxu3 %v1047_v56 }
 0x309   : > { %v1860_v6 = vadd.f32 %v1859_v16, %v1747_v28  ;;  %v1972_v26 = vpop.f32.mrf.mxu3  ;;  %v1636_v62 = vpop.f32.mrf.mxu0  ;;  %2552 = vmatpush.msrb.mxu1 %v985_v58  ;;  %v983_v28 = vld [vmem:[#allocation7 + $0x558] sm:$0xff] }
 0x30a   : > { %v1749_v47 = vpop.f32.mrf.mxu1  ;;  %v1637_v23 = vadd.f32 %v1636_v62, %v8869_v8  ;;  %v953_v8 = vld [vmem:[#allocation7 + $0x468] sm:$0xff]  ;;  %v7166_v62 = vld [vmem:[%s7949_s28 + $0x458] sm:$0xff] }
 0x30b   : > { %v9632_v14 = vadd.f32 %v1972_v26, %v1860_v6  ;;  %2439 = vmatpush.msrb.mxu0 %v953_v8  ;;  %v7164_v6 = vld [vmem:[%s7949_s28 + $0x448] sm:$0xff]  ;;  %v7165_v26 = vld [vmem:[%s7949_s28 + $0x450] sm:$0xff]  ;;  %2553 = vmatpush.msrb.mxu1 %v983_v28 }
 0x30c   : > { %2039 = vmatmul.f32.gmra.mxu0 %v7154_v25  ;;  %2152 = vmatmul.f32.gmra.mxu1 %v7155_v21  ;;  %v1750_v10 = vadd.f32 %v1749_v47, %v1637_v23  ;;  %v1013_v8 = vld [vmem:[#allocation7 + $0x648] sm:$0xff] }
 0x30d   : > { %12038 = vst [vmem:[#allocation31_spill] sm:$0xff] %v9632_v14  ;;  %2265 = vmatmul.f32.gmra.mxu2 %v7156_v19  ;;  %2440 = vmatpush.msrb.mxu0 %v951_v2  ;;  %v7285_v14 = vld [vmem:[%s7949_s28 + $0x3f0] sm:$0xff] }
 0x30e   : > { %2378 = vmatmul.f32.gmra.mxu3 %v7157_v15  ;;  %4736 = vperm.xlu2 %6964, %v9402_v32   ;;  %v7169_v15 = vld [vmem:[%s7949_s28 + $0x490] sm:$0xff] }
 0x30f   : > { %2667 = vmatpush.msrb.mxu2 %v1013_v8  ;;  %2441 = vmatpush.msrb.mxu0 %v949_v11  ;;  %v7181_v11 = vld [vmem:[%s7949_s28 + $0x550] sm:$0xff] }
 0x310   : > { %v1862_v13 = vpop.f32.mrf.mxu2 }
 0x311   : > { %v1863_v61 = vadd.f32 %v1862_v13, %v1750_v10  ;;  %v1975_v9 = vpop.f32.mrf.mxu3  ;;  %v1995_v20 = vpop.f32.mrf.mxu0  ;;  %v1045_v10 = vld [vmem:[#allocation7 + $0x748] sm:$0xff] }
 0x312   : > { %v1996_v39 = vadd.f32 %v1995_v20, %v9640_v53  ;;  %v2108_v37 = vpop.f32.mrf.mxu1  ;;  %2780 = vmatpush.msrb.mxu3 %v1045_v10  ;;  %v7182_v10 = vld [vmem:[%s7949_s28 + $0x558] sm:$0xff] }
 0x313   : > { %v9643_v43 = vadd.f32 %v1975_v9, %v1863_v61 }
 0x314   : > { %2042 = vmatmul.f32.gmra.mxu0 %v7159_v27  ;;  %v2109_v55 = vadd.f32 %v2108_v37, %v1996_v39  ;;  %2155 = vmatmul.f32.gmra.mxu1 %v7160_v52  ;;  %v7171_v27 = vld [vmem:[%s7949_s28 + $0x4c0] sm:$0xff]  ;;  %v7172_v52 = vld [vmem:[%s7949_s28 + $0x4c8] sm:$0xff] }
 0x315   : > { %12039 = vst [vmem:[#allocation36_spill] sm:$0xff] %v9643_v43  ;;  %2268 = vmatmul.f32.gmra.mxu2 %v7161_v7 }
 0x316   : > { %2381 = vmatmul.f32.gmra.mxu3 %v7162_v4  ;;  %v7173_v4 = vld [vmem:[%s7949_s28 + $0x4d0] sm:$0xff] }
 0x318   : > { %v2221_v31 = vpop.f32.mrf.mxu2 }
 0x319   : > { %v2222_v32 = vadd.f32 %v2221_v31, %v2109_v55  ;;  %v2334_v29 = vpop.f32.mrf.mxu3  ;;  %v1998_v60 = vpop.f32.mrf.mxu0  ;;  %v981_v55 = vld [vmem:[#allocation7 + $0x548] sm:$0xff] }
 0x31a   : > { %v1999_v49 = vadd.f32 %v1998_v60, %v9640_v53  ;;  %v2111_v3 = vpop.f32.mrf.mxu1  ;;  %2554 = vmatpush.msrb.mxu1 %v981_v55  ;;  %v7183_v55 = vld [vmem:[%s7949_s28 + $0x580] sm:$0xff] }
 0x31b   : > { %v9651_v17 = vadd.f32 %v2334_v29, %v2222_v32 }
 0x31c   : > { %2045 = vmatmul.f32.gmra.mxu0 %v7163_v36  ;;  %v2112_v16 = vadd.f32 %v2111_v3, %v1999_v49  ;;  %2158 = vmatmul.f32.gmra.mxu1 %v7164_v6  ;;  %v7175_v3 = vld [vmem:[%s7949_s28 + $0x500] sm:$0xff]  ;;  %v7176_v36 = vld [vmem:[%s7949_s28 + $0x508] sm:$0xff]  ;;  %v7178_v6 = vld [vmem:[%s7949_s28 + $0x518] sm:$0xff] }
 0x31d   : > { %2271 = vmatmul.f32.gmra.mxu2 %v7165_v26  ;;  %v1011_v26 = vld [vmem:[#allocation7 + $0x638] sm:$0xff] }
 0x31e   : > { %2384 = vmatmul.f32.gmra.mxu3 %v7166_v62  ;;  %v947_v62 = vld [vmem:[#allocation7 + $0x438] sm:$0xff]  ;;  %2668 = vmatpush.msrb.mxu2 %v1011_v26  ;;  %v977_v26 = vld [vmem:[#allocation7 + $0x528] sm:$0xff] }
 0x31f   : > { %2442 = vmatpush.msrb.mxu0 %v947_v62  ;;  %v7188_v62 = vld [vmem:[%s7949_s28 + $0x5c8] sm:$0xff] }
 0x320   : > { %v2224_v47 = vpop.f32.mrf.mxu2 }
 0x321   : > { %v2225_v23 = vadd.f32 %v2224_v47, %v2112_v16  ;;  %v2337_v25 = vpop.f32.mrf.mxu3  ;;  %v2001_v5 = vpop.f32.mrf.mxu0  ;;  %v7177_v16 = vld [vmem:[%s7949_s28 + $0x510] sm:$0xff]  ;;  %v1043_v47 = vld [vmem:[#allocation7 + $0x738] sm:$0xff] }
 0x322   : > { %v2114_v22 = vpop.f32.mrf.mxu1  ;;  %v2002_v21 = vadd.f32 %v2001_v5, %v9640_v53  ;;  %2781 = vmatpush.msrb.mxu3 %v1043_v47 }
 0x323   : > { %v9657_v41 = vadd.f32 %v2337_v25, %v2225_v23 }
 0x324   : > { %2048 = vmatmul.f32.gmra.mxu0 %v7167_v12  ;;  %2161 = vmatmul.f32.gmra.mxu1 %v7168_v48  ;;  %v2115_v19 = vadd.f32 %v2114_v22, %v2002_v21 }
 0x325   : > { %2274 = vmatmul.f32.gmra.mxu2 %v7169_v15  ;;  %v979_v15 = vld [vmem:[#allocation7 + $0x538] sm:$0xff] }
 0x326   : > { %2387 = vmatmul.f32.gmra.mxu3 %v7170_v18  ;;  %v7180_v18 = vld [vmem:[%s7949_s28 + $0x548] sm:$0xff]  ;;  %2555 = vmatpush.msrb.mxu1 %v979_v15 }
 0x328   : > { %v2227_v58 = vpop.f32.mrf.mxu2  ;;  %2556 = vmatpush.msrb.mxu1 %v977_v26 }
 0x329   : > { %v2228_v13 = vadd.f32 %v2227_v58, %v2115_v19  ;;  %v2340_v61 = vpop.f32.mrf.mxu3  ;;  %v2004_v9 = vpop.f32.mrf.mxu0  ;;  %v7179_v19 = vld [vmem:[%s7949_s28 + $0x540] sm:$0xff] }
 0x32a   : > { %v2005_v20 = vadd.f32 %v2004_v9, %v9640_v53  ;;  %v2117_v39 = vpop.f32.mrf.mxu1 }
 0x32b   : > { %v9665_v37 = vadd.f32 %v2340_v61, %v2228_v13 }
 0x32c   : > { %2051 = vmatmul.f32.gmra.mxu0 %v7171_v27  ;;  %2164 = vmatmul.f32.gmra.mxu1 %v7172_v52  ;;  %v2118_v7 = vadd.f32 %v2117_v39, %v2005_v20  ;;  %v7184_v52 = vld [vmem:[%s7949_s28 + $0x588] sm:$0xff] }
 0x32d   : > { %2277 = vmatmul.f32.gmra.mxu2 %v7173_v4  ;;  %v7185_v4 = vld [vmem:[%s7949_s28 + $0x590] sm:$0xff] }
 0x32e   : > { %2390 = vmatmul.f32.gmra.mxu3 %v7174_v40  ;;  %v7186_v40 = vld [vmem:[%s7949_s28 + $0x598] sm:$0xff] }
 0x330   : > { %v2230_v2 = vpop.f32.mrf.mxu2 }
 0x331   : > { %v2231_v56 = vadd.f32 %v2230_v2, %v2118_v7  ;;  %v2343_v31 = vpop.f32.mrf.mxu3  ;;  %v2007_v32 = vpop.f32.mrf.mxu0  ;;  %v1009_v2 = vld [vmem:[#allocation7 + $0x628] sm:$0xff] }
 0x332   : > { %v2008_v29 = vadd.f32 %v2007_v32, %v9640_v53  ;;  %v2120_v60 = vpop.f32.mrf.mxu1  ;;  %2669 = vmatpush.msrb.mxu2 %v1009_v2 }
 0x333   : > { %v9672_v49 = vadd.f32 %v2343_v31, %v2231_v56  ;;  %v945_v56 = vld [vmem:[#allocation7 + $0x428] sm:$0xff] }
 0x334   : > { %2054 = vmatmul.f32.gmra.mxu0 %v7175_v3  ;;  %2167 = vmatmul.f32.gmra.mxu1 %v7176_v36  ;;  %v2121_v28 = vadd.f32 %v2120_v60, %v2008_v29  ;;  %v1041_v31 = vld [vmem:[#allocation7 + $0x728] sm:$0xff] }
 0x335   : > { %2280 = vmatmul.f32.gmra.mxu2 %v7177_v16  ;;  %2443 = vmatpush.msrb.mxu0 %v945_v56  ;;  %v7195_v56 = vld [vmem:[%s7949_s28 + $0x640] sm:$0xff] }
 0x336   : > { %2393 = vmatmul.f32.gmra.mxu3 %v7178_v6  ;;  %v7187_v6 = vld [vmem:[%s7949_s28 + $0x5c0] sm:$0xff] }
 0x337   : > { %2782 = vmatpush.msrb.mxu3 %v1041_v31  ;;  %v975_v31 = vld [vmem:[#allocation7 + $0x518] sm:$0xff] }
 0x338   : > { %v2233_v23 = vpop.f32.mrf.mxu2  ;;  %2557 = vmatpush.msrb.mxu1 %v975_v31 }
 0x339   : > { %v2234_v25 = vadd.f32 %v2233_v23, %v2121_v28  ;;  %v2346_v5 = vpop.f32.mrf.mxu3  ;;  %v2010_v22 = vpop.f32.mrf.mxu0  ;;  %v7189_v23 = vld [vmem:[%s7949_s28 + $0x5d0] sm:$0xff] }
 0x33a   : > { %v2011_v21 = vadd.f32 %v2010_v22, %v9640_v53  ;;  %v2123_v12 = vpop.f32.mrf.mxu1 }
 0x33b   : > { %v9679_v48 = vadd.f32 %v2346_v5, %v2234_v25  ;;  %v7190_v25 = vld [vmem:[%s7949_s28 + $0x5d8] sm:$0xff] }
 0x33c   : > { %2057 = vmatmul.f32.gmra.mxu0 %v7179_v19  ;;  %2170 = vmatmul.f32.gmra.mxu1 %v7180_v18  ;;  %v2124_v8 = vadd.f32 %v2123_v12, %v2011_v21 }
 0x33d   : > { %2283 = vmatmul.f32.gmra.mxu2 %v7181_v11  ;;  %v7192_v11 = vld [vmem:[%s7949_s28 + $0x608] sm:$0xff] }
 0x33e   : > { %2396 = vmatmul.f32.gmra.mxu3 %v7182_v10 }
 0x340   : > { %v2236_v58 = vpop.f32.mrf.mxu2 }
 0x341   : > { %v2237_v13 = vadd.f32 %v2236_v58, %v2124_v8  ;;  %v2349_v61 = vpop.f32.mrf.mxu3  ;;  %v2013_v9 = vpop.f32.mrf.mxu0  ;;  %v7191_v8 = vld [vmem:[%s7949_s28 + $0x600] sm:$0xff]  ;;  %v7193_v58 = vld [vmem:[%s7949_s28 + $0x610] sm:$0xff] }
 0x342   : > { %v2014_v20 = vadd.f32 %v2013_v9, %v9640_v53  ;;  %v2126_v39 = vpop.f32.mrf.mxu1  ;;  %v943_v9 = vld [vmem:[#allocation7 + $0x418] sm:$0xff] }
 0x343   : > { %v9686_v27 = vadd.f32 %v2349_v61, %v2237_v13  ;;  %v7194_v13 = vld [vmem:[%s7949_s28 + $0x618] sm:$0xff]  ;;  %2444 = vmatpush.msrb.mxu0 %v943_v9 }
 0x344   : > { %2060 = vmatmul.f32.gmra.mxu0 %v7183_v55  ;;  %2173 = vmatmul.f32.gmra.mxu1 %v7184_v52  ;;  %v2127_v7 = vadd.f32 %v2126_v39, %v2014_v20  ;;  %v1007_v61 = vld [vmem:[#allocation7 + $0x618] sm:$0xff] }
 0x345   : > { %2286 = vmatmul.f32.gmra.mxu2 %v7185_v4  ;;  %v1039_v20 = vld [vmem:[#allocation7 + $0x718] sm:$0xff] }
 0x346   : > { %2399 = vmatmul.f32.gmra.mxu3 %v7186_v40  ;;  %2670 = vmatpush.msrb.mxu2 %v1007_v61 }
 0x347   : > { %2783 = vmatpush.msrb.mxu3 %v1039_v20 }
 0x348   : > { %v2239_v32 = vpop.f32.mrf.mxu2 }
 0x349   : > { %v2240_v29 = vadd.f32 %v2239_v32, %v2127_v7  ;;  %v2352_v60 = vpop.f32.mrf.mxu3  ;;  %v2016_v3 = vpop.f32.mrf.mxu0  ;;  %v7196_v32 = vld [vmem:[%s7949_s28 + $0x648] sm:$0xff] }
 0x34a   : > { %v2017_v36 = vadd.f32 %v2016_v3, %v9640_v53  ;;  %v2129_v28 = vpop.f32.mrf.mxu1  ;;  %v7198_v3 = vld [vmem:[%s7949_s28 + $0x658] sm:$0xff] }
 0x34b   : > { %v9693_v16 = vadd.f32 %v2352_v60, %v2240_v29  ;;  %v7197_v60 = vld [vmem:[%s7949_s28 + $0x650] sm:$0xff] }
 0x34c   : > { %2063 = vmatmul.f32.gmra.mxu0 %v7187_v6  ;;  %2176 = vmatmul.f32.gmra.mxu1 %v7188_v62  ;;  %v2130_v47 = vadd.f32 %v2129_v28, %v2017_v36 }
 0x34d   : > { %2289 = vmatmul.f32.gmra.mxu2 %v7189_v23 }
 0x34e   : > { %2402 = vmatmul.f32.gmra.mxu3 %v7190_v25  ;;  %v7199_v25 = vld [vmem:[%s7949_s28 + $0x680] sm:$0xff] }
 0x350   : > { %v2242_v5 = vpop.f32.mrf.mxu2 }
 0x351   : > { %v2243_v22 = vadd.f32 %v2242_v5, %v2130_v47  ;;  %v2355_v21 = vpop.f32.mrf.mxu3  ;;  %v2019_v12 = vpop.f32.mrf.mxu0  ;;  %v7200_v5 = vld [vmem:[%s7949_s28 + $0x688] sm:$0xff] }
 0x352   : > { %v2020_v19 = vadd.f32 %v2019_v12, %v9640_v53  ;;  %v2132_v15 = vpop.f32.mrf.mxu1  ;;  %v7202_v12 = vld [vmem:[%s7949_s28 + $0x698] sm:$0xff] }
 0x353   : > { %v9700_v18 = vadd.f32 %v2355_v21, %v2243_v22  ;;  %v7201_v21 = vld [vmem:[%s7949_s28 + $0x690] sm:$0xff] }
 0x354   : > { %2066 = vmatmul.f32.gmra.mxu0 %v7191_v8  ;;  %2179 = vmatmul.f32.gmra.mxu1 %v7192_v11  ;;  %v2133_v10 = vadd.f32 %v2132_v15, %v2020_v19  ;;  %v1005_v19 = vld [vmem:[#allocation7 + $0x608] sm:$0xff] }
 0x355   : > { %2292 = vmatmul.f32.gmra.mxu2 %v7193_v58  ;;  %v941_v15 = vld [vmem:[#allocation7 + $0x408] sm:$0xff] }
 0x356   : > { %2405 = vmatmul.f32.gmra.mxu3 %v7194_v13  ;;  %v1037_v8 = vld [vmem:[#allocation7 + $0x708] sm:$0xff]  ;;  %2671 = vmatpush.msrb.mxu2 %v1005_v19 }
 0x357   : > { %2445 = vmatpush.msrb.mxu0 %v941_v15  ;;  %2784 = vmatpush.msrb.mxu3 %v1037_v8 }
 0x358   : > { %v2245_v39 = vpop.f32.mrf.mxu2 }
 0x359   : > { %v2246_v55 = vadd.f32 %v2245_v39, %v2133_v10  ;;  %v2358_v52 = vpop.f32.mrf.mxu3  ;;  %v2022_v7 = vpop.f32.mrf.mxu0  ;;  %v7203_v39 = vld [vmem:[%s7949_s28 + $0x6c0] sm:$0xff] }
 0x35a   : > { %v2023_v4 = vadd.f32 %v2022_v7, %v9640_v53  ;;  %v2135_v40 = vpop.f32.mrf.mxu1 }
 0x35b   : > { %v9707_v2 = vadd.f32 %v2358_v52, %v2246_v55  ;;  %v973_v55 = vld [vmem:[#allocation7 + $0x508] sm:$0xff] }
 0x35c   : > { %2069 = vmatmul.f32.gmra.mxu0 %v7195_v56  ;;  %2182 = vmatmul.f32.gmra.mxu1 %v7196_v32  ;;  %v2136_v29 = vadd.f32 %v2135_v40, %v2023_v4  ;;  %v7204_v52 = vld [vmem:[%s7949_s28 + $0x6c8] sm:$0xff]  ;;  %v7205_v4 = vld [vmem:[%s7949_s28 + $0x6d0] sm:$0xff]  ;;  %v7206_v40 = vld [vmem:[%s7949_s28 + $0x6d8] sm:$0xff] }
 0x35d   : > { %2295 = vmatmul.f32.gmra.mxu2 %v7197_v60  ;;  %2558 = vmatpush.msrb.mxu1 %v973_v55  ;;  %v7214_v55 = vld [vmem:[%s7949_s28 + $0x758] sm:$0xff] }
 0x35e   : > { %2408 = vmatmul.f32.gmra.mxu3 %v7198_v3 }
 0x360   : > { %v2248_v36 = vpop.f32.mrf.mxu2 }
 0x361   : > { %v2249_v28 = vadd.f32 %v2248_v36, %v2136_v29  ;;  %v2361_v6 = vpop.f32.mrf.mxu3  ;;  %v2025_v26 = vpop.f32.mrf.mxu0 }
 0x362   : > { %v2026_v62 = vadd.f32 %v2025_v26, %v9640_v53  ;;  %v2138_v47 = vpop.f32.mrf.mxu1 }
 0x363   : > { %v9714_v23 = vadd.f32 %v2361_v6, %v2249_v28  ;;  %v7207_v28 = vld [vmem:[%s7949_s28 + $0x700] sm:$0xff]  ;;  %v7208_v6 = vld [vmem:[%s7949_s28 + $0x708] sm:$0xff] }
 0x364   : > { %2072 = vmatmul.f32.gmra.mxu0 %v7199_v25  ;;  %2185 = vmatmul.f32.gmra.mxu1 %v7200_v5  ;;  %v2139_v22 = vadd.f32 %v2138_v47, %v2026_v62  ;;  %v7209_v62 = vld [vmem:[%s7949_s28 + $0x710] sm:$0xff]  ;;  %v7210_v47 = vld [vmem:[%s7949_s28 + $0x718] sm:$0xff]  ;;  %v4510_v5 = vld [vmem:[#allocation10 + $0x1e0] sm:$0xff] }
 0x365   : > { %2298 = vmatmul.f32.gmra.mxu2 %v7201_v21  ;;  %v4511_v25 = vld [vmem:[#allocation10 + $0x1e8] sm:$0xff]  ;;  %4876 = vmatpush.msra.mxu0 %v4510_v5 }
 0x366   : > { %2411 = vmatmul.f32.gmra.mxu3 %v7202_v12  ;;  %5102 = vmatpush.msra.mxu2 %v4511_v25 }
 0x368   : > { %v2251_v11 = vpop.f32.mrf.mxu2 }
 0x369   : > { %v2252_v10 = vadd.f32 %v2251_v11, %v2139_v22  ;;  %v2364_v58 = vpop.f32.mrf.mxu3  ;;  %v2028_v13 = vpop.f32.mrf.mxu0  ;;  %v4575_v22 = vld [vmem:[#allocation10 + $0x3e8] sm:$0xff] }
 0x36a   : > { %v2029_v61 = vadd.f32 %v2028_v13, %v9640_v53  ;;  %v2141_v9 = vpop.f32.mrf.mxu1  ;;  %5215 = vmatpush.msra.mxu3 %v4575_v22  ;;  %v4574_v13 = vld [vmem:[#allocation10 + $0x3e0] sm:$0xff] }
 0x36b   : > { %v9721_v20 = vadd.f32 %v2364_v58, %v2252_v10  ;;  %v7211_v58 = vld [vmem:[%s7949_s28 + $0x740] sm:$0xff]  ;;  %4989 = vmatpush.msra.mxu1 %v4574_v13 }
 0x36c   : > { %2075 = vmatmul.f32.gmra.mxu0 %v7203_v39  ;;  %2188 = vmatmul.f32.gmra.mxu1 %v7204_v52  ;;  %v2142_v7 = vadd.f32 %v2141_v9, %v2029_v61  ;;  %v7212_v61 = vld [vmem:[%s7949_s28 + $0x748] sm:$0xff]  ;;  %v7213_v39 = vld [vmem:[%s7949_s28 + $0x750] sm:$0xff] }
 0x36d   : > { %2301 = vmatmul.f32.gmra.mxu2 %v7205_v4 }
 0x36e   : > { %2414 = vmatmul.f32.gmra.mxu3 %v7206_v40 }
 0x370   : > { %v2254_v56 = vpop.f32.mrf.mxu2 }
 0x371   : > { %v2255_v31 = vadd.f32 %v2254_v56, %v2142_v7  ;;  %v2367_v32 = vpop.f32.mrf.mxu3  ;;  %v2031_v29 = vpop.f32.mrf.mxu0 }
 0x372   : > { %v2032_v60 = vadd.f32 %v2031_v29, %v9640_v53  ;;  %v2144_v3 = vpop.f32.mrf.mxu1  ;;  %v7215_v29 = vld [vmem:[%s7949_s28 + $0x780] sm:$0xff] }
 0x373   : > { %v9728_v36 = vadd.f32 %v2367_v32, %v2255_v31 }
 0x374   : > { %2078 = vmatmul.f32.gmra.mxu0 %v7207_v28  ;;  %2191 = vmatmul.f32.gmra.mxu1 %v7208_v6  ;;  %v2145_v26 = vadd.f32 %v2144_v3, %v2032_v60  ;;  %v7216_v60 = vld [vmem:[%s7949_s28 + $0x788] sm:$0xff]  ;;  %v7217_v28 = vld [vmem:[%s7949_s28 + $0x790] sm:$0xff]  ;;  %v7218_v6 = vld [vmem:[%s7949_s28 + $0x798] sm:$0xff] }
 0x375   : > { %2304 = vmatmul.f32.gmra.mxu2 %v7209_v62  ;;  %v4506_v62 = vld [vmem:[#allocation10 + $0x1c0] sm:$0xff] }
 0x376   : > { %2417 = vmatmul.f32.gmra.mxu3 %v7210_v47  ;;  %v4571_v47 = vld [vmem:[#allocation10 + $0x3c8] sm:$0xff]  ;;  %4877 = vmatpush.msra.mxu0 %v4506_v62 }
 0x377   : > { %5216 = vmatpush.msra.mxu3 %v4571_v47  ;;  %v4567_v62 = vld [vmem:[#allocation10 + $0x3a8] sm:$0xff] }
 0x378   : > { %v2257_v21 = vpop.f32.mrf.mxu2 }
 0x379   : > { %v2258_v12 = vadd.f32 %v2257_v21, %v2145_v26  ;;  %v2370_v19 = vpop.f32.mrf.mxu3  ;;  %v2034_v15 = vpop.f32.mrf.mxu0  ;;  %v4507_v26 = vld [vmem:[#allocation10 + $0x1c8] sm:$0xff]  ;;  %5217 = vmatpush.msra.mxu3 %v4567_v62  ;;  %v4498_v62 = vld [vmem:[#allocation10 + $0x180] sm:$0xff] }
 0x37a   : > { %v2035_v8 = vadd.f32 %v2034_v15, %v9640_v53  ;;  %v2147_v11 = vpop.f32.mrf.mxu1  ;;  %5103 = vmatpush.msra.mxu2 %v4507_v26  ;;  %v4502_v26 = vld [vmem:[#allocation10 + $0x1a0] sm:$0xff] }
 0x37b   : > { %v9735_v10 = vadd.f32 %v2370_v19, %v2258_v12  ;;  %4878 = vmatpush.msra.mxu0 %v4502_v26  ;;  %v4499_v26 = vld [vmem:[#allocation10 + $0x188] sm:$0xff] }
 0x37c   : > { %2081 = vmatmul.f32.gmra.mxu0 %v7211_v58  ;;  %2194 = vmatmul.f32.gmra.mxu1 %v7212_v61  ;;  %v2148_v9 = vadd.f32 %v2147_v11, %v2035_v8  ;;  %v7219_v8 = vld [vmem:[%s7949_s28 + $0x7c0] sm:$0xff]  ;;  %v7220_v58 = vld [vmem:[%s7949_s28 + $0x7c8] sm:$0xff]  ;;  %v7221_v61 = vld [vmem:[%s7949_s28 + $0x7d0] sm:$0xff] }
 0x37d   : > { %2307 = vmatmul.f32.gmra.mxu2 %v7213_v39  ;;  %v4570_v11 = vld [vmem:[#allocation10 + $0x3c0] sm:$0xff]  ;;  %4879 = vmatpush.msra.mxu0 %v4498_v62  ;;  %v7241_v62 = vld [vmem:[%s7949_s28 + $0x130] sm:$0xff] }
 0x37e   : > { %2420 = vmatmul.f32.gmra.mxu3 %v7214_v55  ;;  %4990 = vmatpush.msra.mxu1 %v4570_v11  ;;  %v4566_v11 = vld [vmem:[#allocation10 + $0x3a0] sm:$0xff] }
 0x380   : > { %v2260_v52 = vpop.f32.mrf.mxu2  ;;  %4991 = vmatpush.msra.mxu1 %v4566_v11 }
 0x381   : > { %v2261_v7 = vadd.f32 %v2260_v52, %v2148_v9  ;;  %v2373_v4 = vpop.f32.mrf.mxu3  ;;  %v2037_v40 = vpop.f32.mrf.mxu0  ;;  %v7222_v9 = vld [vmem:[%s7949_s28 + $0x7d8] sm:$0xff] }
 0x382   : > { %v2038_v56 = vadd.f32 %v2037_v40, %v9640_v53  ;;  %v2150_v31 = vpop.f32.mrf.mxu1 }
 0x383   : > { %v9742_v32 = vadd.f32 %v2373_v4, %v2261_v7 }
 0x384   : > { %2084 = vmatmul.f32.gmra.mxu0 %v7215_v29  ;;  %2197 = vmatmul.f32.gmra.mxu1 %v7216_v60  ;;  %v2151_v3 = vadd.f32 %v2150_v31, %v2038_v56  ;;  %v7223_v31 = vld [vmem:[%s7949_s28 + $0x20] sm:$0xff]  ;;  %v7224_v29 = vld [vmem:[%s7949_s28 + $0x28] sm:$0xff] }
 0x385   : > { %2310 = vmatmul.f32.gmra.mxu2 %v7217_v28  ;;  %v7226_v28 = vld [vmem:[%s7949_s28 + $0x38] sm:$0xff] }
 0x386   : > { %2423 = vmatmul.f32.gmra.mxu3 %v7218_v6  ;;  %v4503_v6 = vld [vmem:[#allocation10 + $0x1a8] sm:$0xff] }
 0x387   : > { %5104 = vmatpush.msra.mxu2 %v4503_v6  ;;  %v7234_v6 = vld [vmem:[%s7949_s28 + $0xb8] sm:$0xff] }
 0x388   : > { %v2263_v25 = vpop.f32.mrf.mxu2 }
 0x389   : > { %v2264_v5 = vadd.f32 %v2263_v25, %v2151_v3  ;;  %v2376_v22 = vpop.f32.mrf.mxu3  ;;  %v2040_v21 = vpop.f32.mrf.mxu0  ;;  %v7225_v3 = vld [vmem:[%s7949_s28 + $0x30] sm:$0xff]  ;;  %5105 = vmatpush.msra.mxu2 %v4499_v26 }
 0x38a   : > { %v2041_v12 = vadd.f32 %v2040_v21, %v9640_v53  ;;  %v2153_v19 = vpop.f32.mrf.mxu1 }
 0x38b   : > { %v9749_v15 = vadd.f32 %v2376_v22, %v2264_v5 }
 0x38c   : > { %2087 = vmatmul.f32.gmra.mxu0 %v7219_v8  ;;  %2200 = vmatmul.f32.gmra.mxu1 %v7220_v58  ;;  %v2154_v13 = vadd.f32 %v2153_v19, %v2041_v12  ;;  %v7227_v8 = vld [vmem:[%s7949_s28 + $0x60] sm:$0xff]  ;;  %v7228_v58 = vld [vmem:[%s7949_s28 + $0x68] sm:$0xff] }
 0x38d   : > { %2313 = vmatmul.f32.gmra.mxu2 %v7221_v61  ;;  %v7229_v61 = vld [vmem:[%s7949_s28 + $0x70] sm:$0xff] }
 0x38e   : > { %2426 = vmatmul.f32.gmra.mxu3 %v7222_v9  ;;  %v7230_v9 = vld [vmem:[%s7949_s28 + $0x78] sm:$0xff] }
 0x390   : > { %v2266_v39 = vpop.f32.mrf.mxu2 }
 0x391   : > { %v2267_v55 = vadd.f32 %v2266_v39, %v2154_v13  ;;  %v2379_v52 = vpop.f32.mrf.mxu3  ;;  %v2043_v7 = vpop.f32.mrf.mxu0 }
 0x392   : > { %v2044_v4 = vadd.f32 %v2043_v7, %v9640_v53  ;;  %v2156_v40 = vpop.f32.mrf.mxu1 }
 0x393   : > { %v9756_v56 = vadd.f32 %v2379_v52, %v2267_v55 }
 0x394   : > { %2446 = vmatmul.f32.vlgmr.msrb.gmra.mxu0 %v7223_v31  ;;  %2559 = vmatmul.f32.vlgmr.msrb.gmra.mxu1 %v7224_v29  ;;  %v2157_v60 = vadd.f32 %v2156_v40, %v2044_v4  ;;  %v7231_v29 = vld [vmem:[%s7949_s28 + $0xa0] sm:$0xff] }
 0x395   : > { %2672 = vmatmul.f32.vlgmr.msrb.gmra.mxu2 %v7225_v3 }
 0x396   : > { %2785 = vmatmul.f32.vlgmr.msrb.gmra.mxu3 %v7226_v28  ;;  %v7233_v28 = vld [vmem:[%s7949_s28 + $0xb0] sm:$0xff] }
 0x398   : > { %v2269_v47 = vpop.f32.mrf.mxu2 }
 0x399   : > { %v2270_v25 = vadd.f32 %v2269_v47, %v2157_v60  ;;  %v2382_v5 = vpop.f32.mrf.mxu3  ;;  %v2046_v22 = vpop.f32.mrf.mxu0  ;;  %v7232_v60 = vld [vmem:[%s7949_s28 + $0xa8] sm:$0xff] }
 0x39a   : > { %v2047_v21 = vadd.f32 %v2046_v22, %v9640_v53  ;;  %v2159_v12 = vpop.f32.mrf.mxu1  ;;  %v4563_v47 = vld [vmem:[#allocation10 + $0x388] sm:$0xff] }
 0x39b   : > { %v9763_v19 = vadd.f32 %v2382_v5, %v2270_v25  ;;  %5218 = vmatpush.msra.mxu3 %v4563_v47  ;;  %v7242_v47 = vld [vmem:[%s7949_s28 + $0x138] sm:$0xff] }
 0x39c   : > { %2449 = vmatmul.f32.gmra.mxu0 %v7227_v8  ;;  %2562 = vmatmul.f32.gmra.mxu1 %v7228_v58  ;;  %v2160_v13 = vadd.f32 %v2159_v12, %v2047_v21  ;;  %v7235_v58 = vld [vmem:[%s7949_s28 + $0xe0] sm:$0xff] }
 0x39d   : > { %2675 = vmatmul.f32.gmra.mxu2 %v7229_v61  ;;  %v7236_v61 = vld [vmem:[%s7949_s28 + $0xe8] sm:$0xff] }
 0x39e   : > { %2788 = vmatmul.f32.gmra.mxu3 %v7230_v9 }
 0x3a0   : > { %v2272_v39 = vpop.f32.mrf.mxu2 }
 0x3a1   : > { %v2273_v55 = vadd.f32 %v2272_v39, %v2160_v13  ;;  %v2385_v52 = vpop.f32.mrf.mxu3  ;;  %v2049_v7 = vpop.f32.mrf.mxu0  ;;  %v4562_v13 = vld [vmem:[#allocation10 + $0x380] sm:$0xff]  ;;  %v7237_v39 = vld [vmem:[%s7949_s28 + $0xf0] sm:$0xff] }
 0x3a2   : > { %v2050_v4 = vadd.f32 %v2049_v7, %v9640_v53  ;;  %v2162_v40 = vpop.f32.mrf.mxu1  ;;  %4992 = vmatpush.msra.mxu1 %v4562_v13 }
 0x3a3   : > { %v9770_v31 = vadd.f32 %v2385_v52, %v2273_v55  ;;  %v7238_v55 = vld [vmem:[%s7949_s28 + $0xf8] sm:$0xff] }
 0x3a4   : > { %2452 = vmatmul.f32.gmra.mxu0 %v7231_v29  ;;  %2565 = vmatmul.f32.gmra.mxu1 %v7232_v60  ;;  %v2163_v3 = vadd.f32 %v2162_v40, %v2050_v4 }
 0x3a5   : > { %2678 = vmatmul.f32.gmra.mxu2 %v7233_v28  ;;  %v7239_v28 = vld [vmem:[%s7949_s28 + $0x120] sm:$0xff] }
 0x3a6   : > { %2791 = vmatmul.f32.gmra.mxu3 %v7234_v6  ;;  %v7240_v6 = vld [vmem:[%s7949_s28 + $0x128] sm:$0xff] }
 0x3a8   : > { %v2275_v25 = vpop.f32.mrf.mxu2 }
 0x3a9   : > { %v2276_v5 = vadd.f32 %v2275_v25, %v2163_v3  ;;  %v2388_v22 = vpop.f32.mrf.mxu3  ;;  %v2052_v21 = vpop.f32.mrf.mxu0  ;;  %v4495_v25 = vld [vmem:[#allocation10 + $0x168] sm:$0xff] }
 0x3aa   : > { %v2053_v12 = vadd.f32 %v2052_v21, %v9640_v53  ;;  %v2165_v8 = vpop.f32.mrf.mxu1  ;;  %5106 = vmatpush.msra.mxu2 %v4495_v25  ;;  %v7247_v25 = vld [vmem:[%s7949_s28 + $0x1a0] sm:$0xff] }
 0x3ab   : > { %v9777_v11 = vadd.f32 %v2388_v22, %v2276_v5  ;;  %v4494_v5 = vld [vmem:[#allocation10 + $0x160] sm:$0xff]  ;;  %v4559_v22 = vld [vmem:[#allocation10 + $0x368] sm:$0xff] }
 0x3ac   : > { %2455 = vmatmul.f32.gmra.mxu0 %v7235_v58  ;;  %2568 = vmatmul.f32.gmra.mxu1 %v7236_v61  ;;  %v2166_v9 = vadd.f32 %v2165_v8, %v2053_v12 }
 0x3ad   : > { %2681 = vmatmul.f32.gmra.mxu2 %v7237_v39  ;;  %4880 = vmatpush.msra.mxu0 %v4494_v5  ;;  %v7243_v39 = vld [vmem:[%s7949_s28 + $0x160] sm:$0xff]  ;;  %v7248_v5 = vld [vmem:[%s7949_s28 + $0x1a8] sm:$0xff] }
 0x3ae   : > { %2794 = vmatmul.f32.gmra.mxu3 %v7238_v55  ;;  %v4558_v55 = vld [vmem:[#allocation10 + $0x360] sm:$0xff] }
 0x3af   : > { %5219 = vmatpush.msra.mxu3 %v4559_v22  ;;  %4993 = vmatpush.msra.mxu1 %v4558_v55 }
 0x3b0   : > { %v2278_v52 = vpop.f32.mrf.mxu2 }
 0x3b1   : > { %v2279_v7 = vadd.f32 %v2278_v52, %v2166_v9  ;;  %v2391_v4 = vpop.f32.mrf.mxu3  ;;  %v2055_v40 = vpop.f32.mrf.mxu0  ;;  %v7244_v52 = vld [vmem:[%s7949_s28 + $0x168] sm:$0xff] }
 0x3b2   : > { %v2056_v29 = vadd.f32 %v2055_v40, %v9640_v53  ;;  %v2168_v60 = vpop.f32.mrf.mxu1  ;;  %v7246_v40 = vld [vmem:[%s7949_s28 + $0x178] sm:$0xff] }
 0x3b3   : > { %v9784_v3 = vadd.f32 %v2391_v4, %v2279_v7  ;;  %v7245_v4 = vld [vmem:[%s7949_s28 + $0x170] sm:$0xff] }
 0x3b4   : > { %2458 = vmatmul.f32.gmra.mxu0 %v7239_v28  ;;  %2571 = vmatmul.f32.gmra.mxu1 %v7240_v6  ;;  %v2169_v26 = vadd.f32 %v2168_v60, %v2056_v29 }
 0x3b5   : > { %2684 = vmatmul.f32.gmra.mxu2 %v7241_v62 }
 0x3b6   : > { %2797 = vmatmul.f32.gmra.mxu3 %v7242_v47 }
 0x3b8   : > { %v2281_v21 = vpop.f32.mrf.mxu2 }
 0x3b9   : > { %v2282_v12 = vadd.f32 %v2281_v21, %v2169_v26  ;;  %v2394_v8 = vpop.f32.mrf.mxu3  ;;  %v2058_v58 = vpop.f32.mrf.mxu0  ;;  %v7249_v21 = vld [vmem:[%s7949_s28 + $0x1b0] sm:$0xff] }
 0x3ba   : > { %v2059_v13 = vadd.f32 %v2058_v58, %v9640_v53  ;;  %v2171_v61 = vpop.f32.mrf.mxu1  ;;  %v4490_v58 = vld [vmem:[#allocation10 + $0x140] sm:$0xff] }
 0x3bb   : > { %v9791_v9 = vadd.f32 %v2394_v8, %v2282_v12  ;;  %v7250_v12 = vld [vmem:[%s7949_s28 + $0x1b8] sm:$0xff]  ;;  %v4491_v8 = vld [vmem:[#allocation10 + $0x148] sm:$0xff]  ;;  %4881 = vmatpush.msra.mxu0 %v4490_v58 }
 0x3bc   : > { %2461 = vmatmul.f32.gmra.mxu0 %v7243_v39  ;;  %2574 = vmatmul.f32.gmra.mxu1 %v7244_v52  ;;  %v2172_v7 = vadd.f32 %v2171_v61, %v2059_v13  ;;  %v4555_v13 = vld [vmem:[#allocation10 + $0x348] sm:$0xff] }
 0x3bd   : > { %2687 = vmatmul.f32.gmra.mxu2 %v7245_v4  ;;  %5220 = vmatpush.msra.mxu3 %v4555_v13  ;;  %v7255_v13 = vld [vmem:[%s7949_s28 + $0x220] sm:$0xff] }
 0x3be   : > { %2800 = vmatmul.f32.gmra.mxu3 %v7246_v40  ;;  %5107 = vmatpush.msra.mxu2 %v4491_v8 }
 0x3c0   : > { %v2284_v29 = vpop.f32.mrf.mxu2 }
 0x3c1   : > { %v2285_v60 = vadd.f32 %v2284_v29, %v2172_v7  ;;  %v2397_v28 = vpop.f32.mrf.mxu3  ;;  %v2061_v6 = vpop.f32.mrf.mxu0  ;;  %v7251_v29 = vld [vmem:[%s7949_s28 + $0x1e0] sm:$0xff] }
 0x3c2   : > { %v2062_v26 = vadd.f32 %v2061_v6, %v9640_v53  ;;  %v2174_v62 = vpop.f32.mrf.mxu1 }
 0x3c3   : > { %v9798_v47 = vadd.f32 %v2397_v28, %v2285_v60  ;;  %v4554_v60 = vld [vmem:[#allocation10 + $0x340] sm:$0xff] }
 0x3c4   : > { %2464 = vmatmul.f32.gmra.mxu0 %v7247_v25  ;;  %2577 = vmatmul.f32.gmra.mxu1 %v7248_v5  ;;  %v2175_v22 = vadd.f32 %v2174_v62, %v2062_v26  ;;  %v7252_v28 = vld [vmem:[%s7949_s28 + $0x1e8] sm:$0xff]  ;;  %v7253_v26 = vld [vmem:[%s7949_s28 + $0x1f0] sm:$0xff]  ;;  %v7254_v62 = vld [vmem:[%s7949_s28 + $0x1f8] sm:$0xff] }
 0x3c5   : > { %2690 = vmatmul.f32.gmra.mxu2 %v7249_v21  ;;  %4994 = vmatpush.msra.mxu1 %v4554_v60 }
 0x3c6   : > { %2803 = vmatmul.f32.gmra.mxu3 %v7250_v12 }
 0x3c8   : > { %v2287_v61 = vpop.f32.mrf.mxu2 }
 0x3c9   : > { %v2288_v39 = vadd.f32 %v2287_v61, %v2175_v22  ;;  %v2400_v55 = vpop.f32.mrf.mxu3  ;;  %v2064_v52 = vpop.f32.mrf.mxu0  ;;  %v7256_v61 = vld [vmem:[%s7949_s28 + $0x228] sm:$0xff] }
 0x3ca   : > { %v2065_v7 = vadd.f32 %v2064_v52, %v9640_v53  ;;  %v2177_v4 = vpop.f32.mrf.mxu1  ;;  %v7258_v52 = vld [vmem:[%s7949_s28 + $0x238] sm:$0xff] }
 0x3cb   : > { %v9805_v40 = vadd.f32 %v2400_v55, %v2288_v39  ;;  %v7257_v55 = vld [vmem:[%s7949_s28 + $0x230] sm:$0xff] }
 0x3cc   : > { %2467 = vmatmul.f32.gmra.mxu0 %v7251_v29  ;;  %2580 = vmatmul.f32.gmra.mxu1 %v7252_v28  ;;  %v2178_v6 = vadd.f32 %v2177_v4, %v2065_v7  ;;  %v4487_v7 = vld [vmem:[#allocation10 + $0x128] sm:$0xff]  ;;  %v4486_v4 = vld [vmem:[#allocation10 + $0x120] sm:$0xff] }
 0x3cd   : > { %2693 = vmatmul.f32.gmra.mxu2 %v7253_v26  ;;  %v4551_v29 = vld [vmem:[#allocation10 + $0x328] sm:$0xff]  ;;  %4882 = vmatpush.msra.mxu0 %v4486_v4 }
 0x3ce   : > { %2806 = vmatmul.f32.gmra.mxu3 %v7254_v62  ;;  %5108 = vmatpush.msra.mxu2 %v4487_v7 }
 0x3cf   : > { %5221 = vmatpush.msra.mxu3 %v4551_v29 }
 0x3d0   : > { %v2290_v25 = vpop.f32.mrf.mxu2 }
 0x3d1   : > { %v2291_v5 = vadd.f32 %v2290_v25, %v2178_v6  ;;  %v2403_v22 = vpop.f32.mrf.mxu3  ;;  %v2067_v21 = vpop.f32.mrf.mxu0 }
 0x3d2   : > { %v2068_v12 = vadd.f32 %v2067_v21, %v9640_v53  ;;  %v2180_v8 = vpop.f32.mrf.mxu1  ;;  %v4550_v21 = vld [vmem:[#allocation10 + $0x320] sm:$0xff] }
 0x3d3   : > { %v9812_v58 = vadd.f32 %v2403_v22, %v2291_v5  ;;  %v7259_v22 = vld [vmem:[%s7949_s28 + $0x260] sm:$0xff]  ;;  %4995 = vmatpush.msra.mxu1 %v4550_v21 }
 0x3d4   : > { %2470 = vmatmul.f32.gmra.mxu0 %v7255_v13  ;;  %2583 = vmatmul.f32.gmra.mxu1 %v7256_v61  ;;  %v2181_v39 = vadd.f32 %v2180_v8, %v2068_v12  ;;  %v7260_v12 = vld [vmem:[%s7949_s28 + $0x268] sm:$0xff]  ;;  %v7261_v13 = vld [vmem:[%s7949_s28 + $0x270] sm:$0xff]  ;;  %v7262_v61 = vld [vmem:[%s7949_s28 + $0x278] sm:$0xff] }
 0x3d5   : > { %2696 = vmatmul.f32.gmra.mxu2 %v7257_v55  ;;  %v4482_v21 = vld [vmem:[#allocation10 + $0x100] sm:$0xff] }
 0x3d6   : > { %2809 = vmatmul.f32.gmra.mxu3 %v7258_v52  ;;  %4883 = vmatpush.msra.mxu0 %v4482_v21 }
 0x3d8   : > { %v2293_v60 = vpop.f32.mrf.mxu2 }
 0x3d9   : > { %v2294_v28 = vadd.f32 %v2293_v60, %v2181_v39  ;;  %v2406_v6 = vpop.f32.mrf.mxu3  ;;  %v2070_v26 = vpop.f32.mrf.mxu0 }
 0x3da   : > { %v2071_v62 = vadd.f32 %v2070_v26, %v9640_v53  ;;  %v2183_v25 = vpop.f32.mrf.mxu1 }
 0x3db   : > { %v9819_v5 = vadd.f32 %v2406_v6, %v2294_v28  ;;  %v7263_v28 = vld [vmem:[%s7949_s28 + $0x2a0] sm:$0xff]  ;;  %v7264_v6 = vld [vmem:[%s7949_s28 + $0x2a8] sm:$0xff] }
 0x3dc   : > { %2473 = vmatmul.f32.gmra.mxu0 %v7259_v22  ;;  %2586 = vmatmul.f32.gmra.mxu1 %v7260_v12  ;;  %v2184_v8 = vadd.f32 %v2183_v25, %v2071_v62  ;;  %v7265_v62 = vld [vmem:[%s7949_s28 + $0x2b0] sm:$0xff]  ;;  %v7266_v25 = vld [vmem:[%s7949_s28 + $0x2b8] sm:$0xff] }
 0x3dd   : > { %2699 = vmatmul.f32.gmra.mxu2 %v7261_v13  ;;  %v4483_v22 = vld [vmem:[#allocation10 + $0x108] sm:$0xff] }
 0x3de   : > { %2812 = vmatmul.f32.gmra.mxu3 %v7262_v61  ;;  %v4547_v12 = vld [vmem:[#allocation10 + $0x308] sm:$0xff]  ;;  %5109 = vmatpush.msra.mxu2 %v4483_v22 }
 0x3df   : > { %5222 = vmatpush.msra.mxu3 %v4547_v12 }
 0x3e0   : > { %v2296_v39 = vpop.f32.mrf.mxu2 }
 0x3e1   : > { %v2297_v55 = vadd.f32 %v2296_v39, %v2184_v8  ;;  %v2409_v52 = vpop.f32.mrf.mxu3  ;;  %v2073_v7 = vpop.f32.mrf.mxu0 }
 0x3e2   : > { %v2074_v4 = vadd.f32 %v2073_v7, %v9640_v53  ;;  %v2186_v29 = vpop.f32.mrf.mxu1 }
 0x3e3   : > { %v9826_v60 = vadd.f32 %v2409_v52, %v2297_v55 }
 0x3e4   : > { %2476 = vmatmul.f32.gmra.mxu0 %v7263_v28  ;;  %2589 = vmatmul.f32.gmra.mxu1 %v7264_v6  ;;  %v2187_v26 = vadd.f32 %v2186_v29, %v2074_v4  ;;  %v7267_v4 = vld [vmem:[%s7949_s28 + $0x2e0] sm:$0xff]  ;;  %v7268_v28 = vld [vmem:[%s7949_s28 + $0x2e8] sm:$0xff] }
 0x3e5   : > { %2702 = vmatmul.f32.gmra.mxu2 %v7265_v62  ;;  %v4546_v29 = vld [vmem:[#allocation10 + $0x300] sm:$0xff]  ;;  %v7269_v62 = vld [vmem:[%s7949_s28 + $0x2f0] sm:$0xff] }
 0x3e6   : > { %2815 = vmatmul.f32.gmra.mxu3 %v7266_v25  ;;  %v7270_v25 = vld [vmem:[%s7949_s28 + $0x2f8] sm:$0xff]  ;;  %4996 = vmatpush.msra.mxu1 %v4546_v29  ;;  %v4479_v29 = vld [vmem:[#allocation10 + $0xe8] sm:$0xff] }
 0x3e7   : > { %5110 = vmatpush.msra.mxu2 %v4479_v29  ;;  %v7278_v29 = vld [vmem:[%s7949_s28 + $0x378] sm:$0xff] }
 0x3e8   : > { %v2299_v8 = vpop.f32.mrf.mxu2 }
 0x3e9   : > { %v2300_v13 = vadd.f32 %v2299_v8, %v2187_v26  ;;  %v2412_v61 = vpop.f32.mrf.mxu3  ;;  %v2076_v39 = vpop.f32.mrf.mxu0 }
 0x3ea   : > { %v2077_v55 = vadd.f32 %v2076_v39, %v9640_v53  ;;  %v2189_v52 = vpop.f32.mrf.mxu1  ;;  %v7271_v39 = vld [vmem:[%s7949_s28 + $0x320] sm:$0xff] }
 0x3eb   : > { %v9833_v7 = vadd.f32 %v2412_v61, %v2300_v13 }
 0x3ec   : > { %2479 = vmatmul.f32.gmra.mxu0 %v7267_v4  ;;  %2592 = vmatmul.f32.gmra.mxu1 %v7268_v28  ;;  %v2190_v6 = vadd.f32 %v2189_v52, %v2077_v55  ;;  %v7272_v4 = vld [vmem:[%s7949_s28 + $0x328] sm:$0xff]  ;;  %v7273_v52 = vld [vmem:[%s7949_s28 + $0x330] sm:$0xff]  ;;  %v7274_v28 = vld [vmem:[%s7949_s28 + $0x338] sm:$0xff] }
 0x3ed   : > { %2705 = vmatmul.f32.gmra.mxu2 %v7269_v62  ;;  %v4543_v62 = vld [vmem:[#allocation10 + $0x2e8] sm:$0xff] }
 0x3ee   : > { %2818 = vmatmul.f32.gmra.mxu3 %v7270_v25 }
 0x3ef   : > { %5223 = vmatpush.msra.mxu3 %v4543_v62 }
 0x3f0   : > { %v2302_v26 = vpop.f32.mrf.mxu2 }
 0x3f1   : > { %v2303_v22 = vadd.f32 %v2302_v26, %v2190_v6  ;;  %v2415_v21 = vpop.f32.mrf.mxu3  ;;  %v2079_v12 = vpop.f32.mrf.mxu0  ;;  %v4478_v6 = vld [vmem:[#allocation10 + $0xe0] sm:$0xff] }
 0x3f2   : > { %v2080_v8 = vadd.f32 %v2079_v12, %v9640_v53  ;;  %v2192_v13 = vpop.f32.mrf.mxu1  ;;  %4884 = vmatpush.msra.mxu0 %v4478_v6 }
 0x3f3   : > { %v9840_v61 = vadd.f32 %v2415_v21, %v2303_v22 }
 0x3f4   : > { %2482 = vmatmul.f32.gmra.mxu0 %v7271_v39  ;;  %2595 = vmatmul.f32.gmra.mxu1 %v7272_v4  ;;  %v2193_v55 = vadd.f32 %v2192_v13, %v2080_v8  ;;  %v7275_v39 = vld [vmem:[%s7949_s28 + $0x360] sm:$0xff]  ;;  %v7276_v4 = vld [vmem:[%s7949_s28 + $0x368] sm:$0xff] }
 0x3f5   : > { %2708 = vmatmul.f32.gmra.mxu2 %v7273_v52 }
 0x3f6   : > { %2821 = vmatmul.f32.gmra.mxu3 %v7274_v28  ;;  %v7277_v28 = vld [vmem:[%s7949_s28 + $0x370] sm:$0xff] }
 0x3f8   : > { %v2305_v25 = vpop.f32.mrf.mxu2 }
 0x3f9   : > { %v2306_v26 = vadd.f32 %v2305_v25, %v2193_v55  ;;  %v2418_v22 = vpop.f32.mrf.mxu3  ;;  %v2082_v21 = vpop.f32.mrf.mxu0  ;;  %v4542_v55 = vld [vmem:[#allocation10 + $0x2e0] sm:$0xff] }
 0x3fa   : > { %v2083_v12 = vadd.f32 %v2082_v21, %v9640_v53  ;;  %v2195_v8 = vpop.f32.mrf.mxu1  ;;  %4997 = vmatpush.msra.mxu1 %v4542_v55  ;;  %v4475_v55 = vld [vmem:[#allocation10 + $0xc8] sm:$0xff] }
 0x3fb   : > { %v9847_v13 = vadd.f32 %v2418_v22, %v2306_v26  ;;  %5111 = vmatpush.msra.mxu2 %v4475_v55  ;;  %v7286_v55 = vld [vmem:[%s7949_s28 + $0x3f8] sm:$0xff] }
 0x3fc   : > { %2485 = vmatmul.f32.gmra.mxu0 %v7275_v39  ;;  %2598 = vmatmul.f32.gmra.mxu1 %v7276_v4  ;;  %v2196_v52 = vadd.f32 %v2195_v8, %v2083_v12  ;;  %v7279_v4 = vld [vmem:[%s7949_s28 + $0x3a0] sm:$0xff]  ;;  %v7280_v12 = vld [vmem:[%s7949_s28 + $0x3a8] sm:$0xff] }
 0x3fd   : > { %2711 = vmatmul.f32.gmra.mxu2 %v7277_v28  ;;  %v7281_v28 = vld [vmem:[%s7949_s28 + $0x3b0] sm:$0xff] }
 0x3fe   : > { %2824 = vmatmul.f32.gmra.mxu3 %v7278_v29  ;;  %v7282_v29 = vld [vmem:[%s7949_s28 + $0x3b8] sm:$0xff] }
 0x400   : > { %v2308_v6 = vpop.f32.mrf.mxu2 }
 0x401   : > { %v2309_v62 = vadd.f32 %v2308_v6, %v2196_v52  ;;  %v2421_v25 = vpop.f32.mrf.mxu3  ;;  %v2085_v26 = vpop.f32.mrf.mxu0  ;;  %v4474_v52 = vld [vmem:[#allocation10 + $0xc0] sm:$0xff]  ;;  %v4539_v6 = vld [vmem:[#allocation10 + $0x2c8] sm:$0xff] }
 0x402   : > { %v2086_v22 = vadd.f32 %v2085_v26, %v9640_v53  ;;  %v2198_v21 = vpop.f32.mrf.mxu1  ;;  %4885 = vmatpush.msra.mxu0 %v4474_v52  ;;  %5224 = vmatpush.msra.mxu3 %v4539_v6 }
 0x403   : > { %v9854_v39 = vadd.f32 %v2421_v25, %v2309_v62 }
 0x404   : > { %2488 = vmatmul.f32.gmra.mxu0 %v7279_v4  ;;  %2601 = vmatmul.f32.gmra.mxu1 %v7280_v12  ;;  %v2199_v8 = vadd.f32 %v2198_v21, %v2086_v22  ;;  %v7283_v12 = vld [vmem:[%s7949_s28 + $0x3e0] sm:$0xff] }
 0x405   : > { %12040 = vst [vmem:[#allocation35_spill] sm:$0xff] %v9854_v39  ;;  %2714 = vmatmul.f32.gmra.mxu2 %v7281_v28  ;;  %v7284_v28 = vld [vmem:[%s7949_s28 + $0x3e8] sm:$0xff] }
 0x406   : > { %2827 = vmatmul.f32.gmra.mxu3 %v7282_v29 }
 0x408   : > { %v2311_v43 = vpop.f32.mrf.mxu2 }
 0x409   : > { %v2312_v62 = vadd.f32 %v2311_v43, %v2199_v8  ;;  %v2424_v25 = vpop.f32.mrf.mxu3  ;;  %v2088_v26 = vpop.f32.mrf.mxu0  ;;  %v4538_v43 = vld [vmem:[#allocation10 + $0x2c0] sm:$0xff] }
 0x40a   : > { %v2089_v22 = vadd.f32 %v2088_v26, %v9640_v53  ;;  %v2201_v21 = vpop.f32.mrf.mxu1  ;;  %4998 = vmatpush.msra.mxu1 %v4538_v43  ;;  %v4535_v43 = vld [vmem:[#allocation10 + $0x2a8] sm:$0xff] }
 0x40b   : > { %v9861_v4 = vadd.f32 %v2424_v25, %v2312_v62  ;;  %5225 = vmatpush.msra.mxu3 %v4535_v43 }
 0x40c   : > { %2491 = vmatmul.f32.gmra.mxu0 %v7283_v12  ;;  %2604 = vmatmul.f32.gmra.mxu1 %v7284_v28  ;;  %v2202_v29 = vadd.f32 %v2201_v21, %v2089_v22  ;;  %v7287_v12 = vld [vmem:[%s7949_s28 + $0x420] sm:$0xff]  ;;  %v7288_v21 = vld [vmem:[%s7949_s28 + $0x428] sm:$0xff]  ;;  %v7290_v28 = vld [vmem:[%s7949_s28 + $0x438] sm:$0xff] }
 0x40d   : > { %12041 = vst [vmem:[#allocation41_spill] sm:$0xff] %v9861_v4  ;;  %2717 = vmatmul.f32.gmra.mxu2 %v7285_v14  ;;  %v7289_v14 = vld [vmem:[%s7949_s28 + $0x430] sm:$0xff] }
 0x40e   : > { %2830 = vmatmul.f32.gmra.mxu3 %v7286_v55  ;;  %v4471_v55 = vld [vmem:[#allocation10 + $0xa8] sm:$0xff] }
 0x40f   : > { %5112 = vmatpush.msra.mxu2 %v4471_v55  ;;  %v7294_v55 = vld [vmem:[%s7949_s28 + $0x478] sm:$0xff] }
 0x410   : > { %v2314_v8 = vpop.f32.mrf.mxu2 }
 0x411   : > { %v2315_v53 = vadd.f32 %v2314_v8, %v2202_v29  ;;  %v2427_v52 = vpop.f32.mrf.mxu3  ;;  %v2447_v6 = vpop.f32.mrf.mxu0  ;;  %v4470_v29 = vld [vmem:[#allocation10 + $0xa0] sm:$0xff] }
 0x412   : > { %v2448_v62 = vadd.f32 %v2447_v6, %v9651_v17  ;;  %v2560_v25 = vpop.f32.mrf.mxu1  ;;  %4886 = vmatpush.msra.mxu0 %v4470_v29 }
 0x413   : > { %v9868_v26 = vadd.f32 %v2427_v52, %v2315_v53 }
 0x414   : > { %2494 = vmatmul.f32.gmra.mxu0 %v7287_v12  ;;  %v2561_v22 = vadd.f32 %v2560_v25, %v2448_v62  ;;  %2607 = vmatmul.f32.gmra.mxu1 %v7288_v21  ;;  %v7291_v12 = vld [vmem:[%s7949_s28 + $0x460] sm:$0xff] }
 0x415   : > { %12042 = vst [vmem:[#allocation34_spill] sm:$0xff] %v9868_v26  ;;  %2720 = vmatmul.f32.gmra.mxu2 %v7289_v14  ;;  %v7292_v14 = vld [vmem:[%s7949_s28 + $0x468] sm:$0xff]  ;;  %v7347_v26 = vld [vmem:[%s7949_s28 + $0x7e0] sm:$0xff] }
 0x416   : > { %2833 = vmatmul.f32.gmra.mxu3 %v7290_v28  ;;  %v7293_v28 = vld [vmem:[%s7949_s28 + $0x470] sm:$0xff] }
 0x418   : > { %v2673_v8 = vpop.f32.mrf.mxu2 }
 0x419   : > { %v2674_v17 = vadd.f32 %v2673_v8, %v2561_v22  ;;  %v2786_v53 = vpop.f32.mrf.mxu3  ;;  %v2450_v52 = vpop.f32.mrf.mxu0  ;;  %v4534_v22 = vld [vmem:[#allocation10 + $0x2a0] sm:$0xff] }
 0x41a   : > { %v2451_v6 = vadd.f32 %v2450_v52, %v9657_v41  ;;  %v2563_v62 = vpop.f32.mrf.mxu1  ;;  %4999 = vmatpush.msra.mxu1 %v4534_v22  ;;  %v4531_v22 = vld [vmem:[#allocation10 + $0x288] sm:$0xff] }
 0x41b   : > { %v9875_v25 = vadd.f32 %v2786_v53, %v2674_v17  ;;  %5226 = vmatpush.msra.mxu3 %v4531_v22 }
 0x41c   : > { %2497 = vmatmul.f32.gmra.mxu0 %v7291_v12  ;;  %v2564_v21 = vadd.f32 %v2563_v62, %v2451_v6  ;;  %2610 = vmatmul.f32.gmra.mxu1 %v7292_v14  ;;  %v7295_v6 = vld [vmem:[%s7949_s28 + $0x4a0] sm:$0xff]  ;;  %v7296_v12 = vld [vmem:[%s7949_s28 + $0x4a8] sm:$0xff]  ;;  %v7297_v14 = vld [vmem:[%s7949_s28 + $0x4b0] sm:$0xff] }
 0x41d   : > { %2723 = vmatmul.f32.gmra.mxu2 %v7293_v28  ;;  %v7298_v28 = vld [vmem:[%s7949_s28 + $0x4b8] sm:$0xff] }
 0x41e   : > { %2836 = vmatmul.f32.gmra.mxu3 %v7294_v55  ;;  %v4467_v55 = vld [vmem:[#allocation10 + $0x88] sm:$0xff] }
 0x41f   : > { %5113 = vmatpush.msra.mxu2 %v4467_v55  ;;  %v7302_v55 = vld [vmem:[%s7949_s28 + $0x4f8] sm:$0xff] }
 0x420   : > { %v2676_v29 = vpop.f32.mrf.mxu2 }
 0x421   : > { %v2677_v41 = vadd.f32 %v2676_v29, %v2564_v21  ;;  %v2789_v43 = vpop.f32.mrf.mxu3  ;;  %v2453_v8 = vpop.f32.mrf.mxu0  ;;  %v4466_v21 = vld [vmem:[#allocation10 + $0x80] sm:$0xff] }
 0x422   : > { %v2454_v17 = vadd.f32 %v2453_v8, %v9665_v37  ;;  %v2566_v53 = vpop.f32.mrf.mxu1  ;;  %4887 = vmatpush.msra.mxu0 %v4466_v21 }
 0x423   : > { %v9882_v52 = vadd.f32 %v2789_v43, %v2677_v41 }
 0x424   : > { %2500 = vmatmul.f32.gmra.mxu0 %v7295_v6  ;;  %v2567_v62 = vadd.f32 %v2566_v53, %v2454_v17  ;;  %2613 = vmatmul.f32.gmra.mxu1 %v7296_v12  ;;  %v7299_v6 = vld [vmem:[%s7949_s28 + $0x4e0] sm:$0xff] }
 0x425   : > { %2726 = vmatmul.f32.gmra.mxu2 %v7297_v14  ;;  %v7300_v14 = vld [vmem:[%s7949_s28 + $0x4e8] sm:$0xff] }
 0x426   : > { %2839 = vmatmul.f32.gmra.mxu3 %v7298_v28  ;;  %v7301_v28 = vld [vmem:[%s7949_s28 + $0x4f0] sm:$0xff] }
 0x428   : > { %v2679_v29 = vpop.f32.mrf.mxu2 }
 0x429   : > { %v2680_v37 = vadd.f32 %v2679_v29, %v2567_v62  ;;  %v2792_v41 = vpop.f32.mrf.mxu3  ;;  %v2456_v43 = vpop.f32.mrf.mxu0  ;;  %v4530_v62 = vld [vmem:[#allocation10 + $0x280] sm:$0xff] }
 0x42a   : > { %v2457_v8 = vadd.f32 %v2456_v43, %v9672_v49  ;;  %v2569_v17 = vpop.f32.mrf.mxu1  ;;  %5000 = vmatpush.msra.mxu1 %v4530_v62  ;;  %v4527_v62 = vld [vmem:[#allocation10 + $0x268] sm:$0xff] }
 0x42b   : > { %v9889_v53 = vadd.f32 %v2792_v41, %v2680_v37  ;;  %5227 = vmatpush.msra.mxu3 %v4527_v62 }
 0x42c   : > { %2503 = vmatmul.f32.gmra.mxu0 %v7299_v6  ;;  %v2570_v12 = vadd.f32 %v2569_v17, %v2457_v8  ;;  %2616 = vmatmul.f32.gmra.mxu1 %v7300_v14  ;;  %v7303_v8 = vld [vmem:[%s7949_s28 + $0x520] sm:$0xff]  ;;  %v7304_v6 = vld [vmem:[%s7949_s28 + $0x528] sm:$0xff]  ;;  %v7305_v14 = vld [vmem:[%s7949_s28 + $0x530] sm:$0xff] }
 0x42d   : > { %2729 = vmatmul.f32.gmra.mxu2 %v7301_v28  ;;  %v7306_v28 = vld [vmem:[%s7949_s28 + $0x538] sm:$0xff] }
 0x42e   : > { %2842 = vmatmul.f32.gmra.mxu3 %v7302_v55  ;;  %v4463_v55 = vld [vmem:[#allocation10 + $0x68] sm:$0xff] }
 0x42f   : > { %5114 = vmatpush.msra.mxu2 %v4463_v55  ;;  %v7310_v55 = vld [vmem:[%s7949_s28 + $0x578] sm:$0xff] }
 0x430   : > { %v2682_v21 = vpop.f32.mrf.mxu2 }
 0x431   : > { %v2683_v49 = vadd.f32 %v2682_v21, %v2570_v12  ;;  %v2795_v22 = vpop.f32.mrf.mxu3  ;;  %v2459_v29 = vpop.f32.mrf.mxu0  ;;  %v4462_v12 = vld [vmem:[#allocation10 + $0x60] sm:$0xff] }
 0x432   : > { %v2460_v37 = vadd.f32 %v2459_v29, %v9679_v48  ;;  %v2572_v41 = vpop.f32.mrf.mxu1  ;;  %4888 = vmatpush.msra.mxu0 %v4462_v12 }
 0x433   : > { %v9896_v43 = vadd.f32 %v2795_v22, %v2683_v49 }
 0x434   : > { %2506 = vmatmul.f32.gmra.mxu0 %v7303_v8  ;;  %v2573_v17 = vadd.f32 %v2572_v41, %v2460_v37  ;;  %2619 = vmatmul.f32.gmra.mxu1 %v7304_v6  ;;  %v7307_v8 = vld [vmem:[%s7949_s28 + $0x560] sm:$0xff] }
 0x435   : > { %2732 = vmatmul.f32.gmra.mxu2 %v7305_v14  ;;  %v7308_v14 = vld [vmem:[%s7949_s28 + $0x568] sm:$0xff] }
 0x436   : > { %2845 = vmatmul.f32.gmra.mxu3 %v7306_v28  ;;  %v7309_v28 = vld [vmem:[%s7949_s28 + $0x570] sm:$0xff] }
 0x438   : > { %v2685_v21 = vpop.f32.mrf.mxu2 }
 0x439   : > { %v2686_v48 = vadd.f32 %v2685_v21, %v2573_v17  ;;  %v2798_v49 = vpop.f32.mrf.mxu3  ;;  %v2462_v22 = vpop.f32.mrf.mxu0  ;;  %v4526_v17 = vld [vmem:[#allocation10 + $0x260] sm:$0xff] }
 0x43a   : > { %v2463_v29 = vadd.f32 %v2462_v22, %v9686_v27  ;;  %v2575_v37 = vpop.f32.mrf.mxu1  ;;  %5001 = vmatpush.msra.mxu1 %v4526_v17  ;;  %v4523_v17 = vld [vmem:[#allocation10 + $0x248] sm:$0xff] }
 0x43b   : > { %v9903_v41 = vadd.f32 %v2798_v49, %v2686_v48  ;;  %5228 = vmatpush.msra.mxu3 %v4523_v17 }
 0x43c   : > { %2509 = vmatmul.f32.gmra.mxu0 %v7307_v8  ;;  %v2576_v6 = vadd.f32 %v2575_v37, %v2463_v29  ;;  %2622 = vmatmul.f32.gmra.mxu1 %v7308_v14  ;;  %v7311_v29 = vld [vmem:[%s7949_s28 + $0x5a0] sm:$0xff]  ;;  %v7312_v8 = vld [vmem:[%s7949_s28 + $0x5a8] sm:$0xff]  ;;  %v7313_v14 = vld [vmem:[%s7949_s28 + $0x5b0] sm:$0xff] }
 0x43d   : > { %2735 = vmatmul.f32.gmra.mxu2 %v7309_v28  ;;  %v7314_v28 = vld [vmem:[%s7949_s28 + $0x5b8] sm:$0xff] }
 0x43e   : > { %2848 = vmatmul.f32.gmra.mxu3 %v7310_v55  ;;  %v4459_v55 = vld [vmem:[#allocation10 + $0x48] sm:$0xff] }
 0x43f   : > { %5115 = vmatpush.msra.mxu2 %v4459_v55  ;;  %v7318_v55 = vld [vmem:[%s7949_s28 + $0x5f8] sm:$0xff] }
 0x440   : > { %v2688_v12 = vpop.f32.mrf.mxu2 }
 0x441   : > { %v2689_v27 = vadd.f32 %v2688_v12, %v2576_v6  ;;  %v2801_v62 = vpop.f32.mrf.mxu3  ;;  %v2465_v21 = vpop.f32.mrf.mxu0  ;;  %v4458_v6 = vld [vmem:[#allocation10 + $0x40] sm:$0xff] }
 0x442   : > { %v2466_v48 = vadd.f32 %v2465_v21, %v9693_v16  ;;  %v2578_v49 = vpop.f32.mrf.mxu1  ;;  %4889 = vmatpush.msra.mxu0 %v4458_v6 }
 0x443   : > { %v9910_v22 = vadd.f32 %v2801_v62, %v2689_v27 }
 0x444   : > { %2512 = vmatmul.f32.gmra.mxu0 %v7311_v29  ;;  %v2579_v37 = vadd.f32 %v2578_v49, %v2466_v48  ;;  %2625 = vmatmul.f32.gmra.mxu1 %v7312_v8  ;;  %v7315_v29 = vld [vmem:[%s7949_s28 + $0x5e0] sm:$0xff] }
 0x445   : > { %2738 = vmatmul.f32.gmra.mxu2 %v7313_v14  ;;  %v7316_v14 = vld [vmem:[%s7949_s28 + $0x5e8] sm:$0xff] }
 0x446   : > { %2851 = vmatmul.f32.gmra.mxu3 %v7314_v28  ;;  %v7317_v28 = vld [vmem:[%s7949_s28 + $0x5f0] sm:$0xff] }
 0x448   : > { %v2691_v12 = vpop.f32.mrf.mxu2 }
 0x449   : > { %v2692_v16 = vadd.f32 %v2691_v12, %v2579_v37  ;;  %v2804_v27 = vpop.f32.mrf.mxu3  ;;  %v2468_v62 = vpop.f32.mrf.mxu0  ;;  %v4522_v37 = vld [vmem:[#allocation10 + $0x240] sm:$0xff] }
 0x44a   : > { %v2469_v21 = vadd.f32 %v2468_v62, %v9700_v18  ;;  %v2581_v48 = vpop.f32.mrf.mxu1  ;;  %5002 = vmatpush.msra.mxu1 %v4522_v37  ;;  %v4454_v37 = vld [vmem:[#allocation10 + $0x20] sm:$0xff] }
 0x44b   : > { %v9917_v49 = vadd.f32 %v2804_v27, %v2692_v16  ;;  %4890 = vmatpush.msra.mxu0 %v4454_v37  ;;  %v7326_v37 = vld [vmem:[%s7949_s28 + $0x678] sm:$0xff] }
 0x44c   : > { %2515 = vmatmul.f32.gmra.mxu0 %v7315_v29  ;;  %v2582_v8 = vadd.f32 %v2581_v48, %v2469_v21  ;;  %2628 = vmatmul.f32.gmra.mxu1 %v7316_v14  ;;  %v7319_v21 = vld [vmem:[%s7949_s28 + $0x620] sm:$0xff]  ;;  %v7320_v29 = vld [vmem:[%s7949_s28 + $0x628] sm:$0xff]  ;;  %v7321_v14 = vld [vmem:[%s7949_s28 + $0x630] sm:$0xff] }
 0x44d   : > { %2741 = vmatmul.f32.gmra.mxu2 %v7317_v28  ;;  %v7322_v28 = vld [vmem:[%s7949_s28 + $0x638] sm:$0xff] }
 0x44e   : > { %2854 = vmatmul.f32.gmra.mxu3 %v7318_v55  ;;  %v4455_v55 = vld [vmem:[#allocation10 + $0x28] sm:$0xff] }
 0x44f   : > { %5116 = vmatpush.msra.mxu2 %v4455_v55  ;;  %v7325_v55 = vld [vmem:[%s7949_s28 + $0x670] sm:$0xff] }
 0x450   : > { %v2694_v6 = vpop.f32.mrf.mxu2 }
 0x451   : > { %v2695_v18 = vadd.f32 %v2694_v6, %v2582_v8  ;;  %v2807_v17 = vpop.f32.mrf.mxu3  ;;  %v2471_v12 = vpop.f32.mrf.mxu0  ;;  %v4519_v8 = vld [vmem:[#allocation10 + $0x228] sm:$0xff] }
 0x452   : > { %v2472_v16 = vadd.f32 %v2471_v12, %v9707_v2  ;;  %v2584_v27 = vpop.f32.mrf.mxu1  ;;  %5229 = vmatpush.msra.mxu3 %v4519_v8  ;;  %v9930_v12 = vpop.permute.xlu1 %3497  ;;  %v4518_v8 = vld [vmem:[#allocation10 + $0x220] sm:$0xff] }
 0x453   : > { %v9924_v62 = vadd.f32 %v2807_v17, %v2695_v18  ;;  %5003 = vmatpush.msra.mxu1 %v4518_v8  ;;  %v4450_v8 = vld [vmem:[#allocation10] sm:$0xff] }
 0x454   : > { %2518 = vmatmul.f32.gmra.mxu0 %v7319_v21  ;;  %v2585_v48 = vadd.f32 %v2584_v27, %v2472_v16  ;;  %2631 = vmatmul.f32.gmra.mxu1 %v7320_v29  ;;  %v7323_v29 = vld [vmem:[%s7949_s28 + $0x660] sm:$0xff] }
 0x455   : > { %2744 = vmatmul.f32.gmra.mxu2 %v7321_v14  ;;  %4891 = vmatpush.msra.mxu0 %v4450_v8  ;;  %v7334_v8 = vld [vmem:[%s7949_s28 + $0x6f8] sm:$0xff] }
 0x456   : > { %2857 = vmatmul.f32.gmra.mxu3 %v7322_v28  ;;  %v7324_v28 = vld [vmem:[%s7949_s28 + $0x668] sm:$0xff] }
 0x458   : > { %v2697_v6 = vpop.f32.mrf.mxu2 }
 0x459   : > { %v2698_v2 = vadd.f32 %v2697_v6, %v2585_v48  ;;  %v2810_v18 = vpop.f32.mrf.mxu3  ;;  %v2474_v17 = vpop.f32.mrf.mxu0 }
 0x45a   : > { %v2475_v16 = vadd.f32 %v2474_v17, %v9714_v23  ;;  %v2587_v27 = vpop.f32.mrf.mxu1  ;;  %v9939_v48 = vpop.permute.xlu0 %3492 }
 0x45b   : > { %v9933_v21 = vadd.f32 %v2810_v18, %v2698_v2  ;;  %v9941_v6 = vpop.permute.xlu2 %3502 }
 0x45c   : > { %2521 = vmatmul.f32.gmra.mxu0 %v7323_v29  ;;  %v2588_v14 = vadd.f32 %v2587_v27, %v2475_v16  ;;  %2634 = vmatmul.f32.gmra.mxu1 %v7324_v28  ;;  %v7327_v28 = vld [vmem:[%s7949_s28 + $0x6a0] sm:$0xff] }
 0x45d   : > { %2747 = vmatmul.f32.gmra.mxu2 %v7325_v55  ;;  %v9947_v55 = vpop.permute.xlu1 %4169 }
 0x45e   : > { %2860 = vmatmul.f32.gmra.mxu3 %v7326_v37 }
 0x460   : > { %v2700_v23 = vpop.f32.mrf.mxu2 }
 0x461   : > { %v2701_v2 = vadd.f32 %v2700_v23, %v2588_v14  ;;  %v2813_v18 = vpop.f32.mrf.mxu3  ;;  %v2477_v17 = vpop.f32.mrf.mxu0  ;;  %v4451_v14 = vld [vmem:[#allocation10 + $0x8] sm:$0xff] }
 0x462   : > { %v2478_v16 = vadd.f32 %v2477_v17, %v9721_v20  ;;  %v2590_v27 = vpop.f32.mrf.mxu1  ;;  %v4515_v23 = vld [vmem:[#allocation10 + $0x208] sm:$0xff]  ;;  %v9952_v59 = vpop.permute.xlu0 %4164  ;;  %5117 = vmatpush.msra.mxu2 %v4451_v14 }
 0x463   : > { %v9944_v29 = vadd.f32 %v2813_v18, %v2701_v2  ;;  %5230 = vmatpush.msra.mxu3 %v4515_v23  ;;  %v7332_v14 = vld [vmem:[%s7949_s28 + $0x6e8] sm:$0xff] }
 0x464   : > { %2524 = vmatmul.f32.gmra.mxu0 %v7327_v28  ;;  %v2591_v37 = vadd.f32 %v2590_v27, %v2478_v16  ;;  %2637 = vmatmul.f32.gmra.mxu1 %v7328_v50  ;;  %v9954_v50 = vpop.permute.xlu2 %4174  ;;  %v7331_v27 = vld [vmem:[%s7949_s28 + $0x6e0] sm:$0xff] }
 0x465   : > { %2750 = vmatmul.f32.gmra.mxu2 %v7329_v42  ;;  %v9960_v28 = vpop.permute.xlu1 %4179  ;;  %v4514_v23 = vld [vmem:[#allocation10 + $0x200] sm:$0xff]  ;;  %5667 = vmatpush.msrb.mxu3 %v4577_v38 }
 0x466   : > { %2863 = vmatmul.f32.gmra.mxu3 %v7330_v1  ;;  %5004 = vmatpush.msra.mxu1 %v4514_v23  ;;  %v7338_v23 = vld [vmem:[%s7949_s28 + $0x738] sm:$0xff] }
 0x468   : > { %v2703_v20 = vpop.f32.mrf.mxu2 }
 0x469   : > { %v2704_v2 = vadd.f32 %v2703_v20, %v2591_v37  ;;  %v2816_v18 = vpop.f32.mrf.mxu3  ;;  %v2480_v17 = vpop.f32.mrf.mxu0  ;;  %v7333_v37 = vld [vmem:[%s7949_s28 + $0x6f0] sm:$0xff] }
 0x46a   : > { %v2481_v1 = vadd.f32 %v2480_v17, %v9728_v36  ;;  %v2593_v42 = vpop.f32.mrf.mxu1  ;;  %v9965_v20 = vpop.permute.xlu0 %3507 }
 0x46b   : > { %v9957_v16 = vadd.f32 %v2816_v18, %v2704_v2 }
 0x46c   : > { %2527 = vmatmul.f32.gmra.mxu0 %v7331_v27  ;;  %v2594_v33 = vadd.f32 %v2593_v42, %v2481_v1  ;;  %2640 = vmatmul.f32.gmra.mxu1 %v7332_v14  ;;  %v9967_v27 = vpop.permute.xlu2 %3512 }
 0x46d   : > { %2753 = vmatmul.f32.gmra.mxu2 %v7333_v37  ;;  %v7335_v37 = vld [vmem:[%s7949_s28 + $0x720] sm:$0xff] }
 0x46e   : > { %2866 = vmatmul.f32.gmra.mxu3 %v7334_v8  ;;  %v9973_v8 = vpop.permute.xlu1 %3517 }
 0x470   : > { %v2706_v36 = vpop.f32.mrf.mxu2 }
 0x471   : > { %v2707_v2 = vadd.f32 %v2706_v36, %v2594_v33  ;;  %v2819_v18 = vpop.f32.mrf.mxu3  ;;  %v2483_v17 = vpop.f32.mrf.mxu0  ;;  %v4513_v33 = vld [vmem:[#allocation10 + $0x1f8] sm:$0xff]  ;;  %v4512_v36 = vld [vmem:[#allocation10 + $0x1f0] sm:$0xff] }
 0x472   : > { %v2484_v1 = vadd.f32 %v2483_v17, %v9735_v10  ;;  %v2596_v42 = vpop.f32.mrf.mxu1  ;;  %5554 = vmatpush.msrb.mxu2 %v4513_v33  ;;  %5328 = vmatpush.msrb.mxu0 %v4512_v36  ;;  %v7340_v33 = vld [vmem:[%s7949_s28 + $0x768] sm:$0xff]  ;;  %v7342_v36 = vld [vmem:[%s7949_s28 + $0x778] sm:$0xff] }
 0x473   : > { %v9970_v14 = vadd.f32 %v2819_v18, %v2707_v2 }
 0x474   : > { %2530 = vmatmul.f32.gmra.mxu0 %v7335_v37  ;;  %v2597_v57 = vadd.f32 %v2596_v42, %v2484_v1  ;;  %2643 = vmatmul.f32.gmra.mxu1 %v7336_v51  ;;  %v9978_v1 = vpop.permute.xlu0 %4184  ;;  %v7339_v37 = vld [vmem:[%s7949_s28 + $0x760] sm:$0xff] }
 0x475   : > { %2756 = vmatmul.f32.gmra.mxu2 %v7337_v46 }
 0x476   : > { %2869 = vmatmul.f32.gmra.mxu3 %v7338_v23  ;;  %v9984_v23 = vpop.permute.xlu2 %4189  ;;  %v9989_v38 = vpop.permute.xlu1 %4194 }
 0x478   : > { %v2709_v10 = vpop.f32.mrf.mxu2 }
 0x479   : > { %v2710_v2 = vadd.f32 %v2709_v10, %v2597_v57  ;;  %v2822_v18 = vpop.f32.mrf.mxu3  ;;  %v2486_v17 = vpop.f32.mrf.mxu0  ;;  %v7341_v57 = vld [vmem:[%s7949_s28 + $0x770] sm:$0xff] }
 0x47a   : > { %v2487_v46 = vadd.f32 %v2486_v17, %v9742_v32  ;;  %v2599_v51 = vpop.f32.mrf.mxu1  ;;  %v4576_v10 = vld [vmem:[#allocation10 + $0x3f0] sm:$0xff] }
 0x47b   : > { %v9981_v42 = vadd.f32 %v2822_v18, %v2710_v2  ;;  %5441 = vmatpush.msrb.mxu1 %v4576_v10  ;;  %v7345_v10 = vld [vmem:[%s7949_s28 + $0x7b0] sm:$0xff] }
 0x47c   : > { %2533 = vmatmul.f32.gmra.mxu0 %v7339_v37  ;;  %v2600_v44 = vadd.f32 %v2599_v51, %v2487_v46  ;;  %2646 = vmatmul.f32.gmra.mxu1 %v7340_v33  ;;  %v9991_v37 = vpop.permute.xlu0 %3522 }
 0x47d   : > { %2759 = vmatmul.f32.gmra.mxu2 %v7341_v57  ;;  %v7343_v57 = vld [vmem:[%s7949_s28 + $0x7a0] sm:$0xff] }
 0x47e   : > { %2872 = vmatmul.f32.gmra.mxu3 %v7342_v36  ;;  %v9997_v36 = vpop.permute.xlu2 %3527 }
 0x480   : > { %v2712_v32 = vpop.f32.mrf.mxu2 }
 0x481   : > { %v2713_v2 = vadd.f32 %v2712_v32, %v2600_v44  ;;  %v2825_v18 = vpop.f32.mrf.mxu3  ;;  %v2489_v17 = vpop.f32.mrf.mxu0  ;;  %v7346_v44 = vld [vmem:[%s7949_s28 + $0x7b8] sm:$0xff] }
 0x482   : > { %v2490_v46 = vadd.f32 %v2489_v17, %v9749_v15  ;;  %v2602_v51 = vpop.f32.mrf.mxu1  ;;  %v10002_v32 = vpop.permute.xlu1 %3532  ;;  %v4509_v15 = vld [vmem:[#allocation10 + $0x1d8] sm:$0xff]  ;;  %v4508_v17 = vld [vmem:[#allocation10 + $0x1d0] sm:$0xff] }
 0x483   : > { %v9994_v33 = vadd.f32 %v2825_v18, %v2713_v2  ;;  %v4573_v2 = vld [vmem:[#allocation10 + $0x3d8] sm:$0xff]  ;;  %5555 = vmatpush.msrb.mxu2 %v4509_v15  ;;  %5329 = vmatpush.msrb.mxu0 %v4508_v17  ;;  %v7348_v15 = vld [vmem:[%s7949_s28 + $0x7e8] sm:$0xff] }
 0x484   : > { %2536 = vmatmul.f32.gmra.mxu0 %v7343_v57  ;;  %v2603_v34 = vadd.f32 %v2602_v51, %v2490_v46  ;;  %2649 = vmatmul.f32.gmra.mxu1 %v7344_v54  ;;  %v4098_v51 = vld [vmem:[%s7957_s29] sm:$0xff]  ;;  %v10010_v0 = vpop.permute.xlu0 %4199 }
 0x485   : > { %2762 = vmatmul.f32.gmra.mxu2 %v7345_v10  ;;  %5668 = vmatpush.msrb.mxu3 %v4573_v2  ;;  %v4322_v2 = vmul.f32 %v9952_v59, %v4098_v51 }
 0x486   : > { %2875 = vmatmul.f32.gmra.mxu3 %v7346_v44 }
 0x488   : > { %v2715_v18 = vpop.f32.mrf.mxu2 }
 0x489   : > { %v2716_v57 = vadd.f32 %v2715_v18, %v2603_v34  ;;  %v2828_v46 = vpop.f32.mrf.mxu3  ;;  %v2492_v54 = vpop.f32.mrf.mxu0  ;;  %v12044_v34 = vld [vmem:[#allocation48_spill] sm:$0xff] }
 0x48a   : > { %v2493_v10 = vadd.f32 %v2492_v54, %v9756_v56  ;;  %v2605_v44 = vpop.f32.mrf.mxu1  ;;  %v3650_v17 = vmul.f32 %v9939_v48, %v12044_v34  ;;  %v7349_v18 = vld [vmem:[%s7949_s28 + $0x7f0] sm:$0xff]  ;;  %v7350_v56 = vld [vmem:[%s7949_s28 + $0x7f8] sm:$0xff] }
 0x48b   : > { %v10007_v30 = vadd.f32 %v2828_v46, %v2716_v57  ;;  %v4323_v57 = vmul.f32 %v9952_v59, %v4099_v24  ;;  %v10019_v46 = vpop.permute.xlu2 %4204  ;;  %v4572_v54 = vld [vmem:[#allocation10 + $0x3d0] sm:$0xff] }
 0x48c   : > { %2539 = vmatmul.f32.gmra.mxu0 %v7347_v26  ;;  %v2606_v4 = vadd.f32 %v2605_v44, %v2493_v10  ;;  %2652 = vmatmul.f32.gmra.mxu1 %v7348_v15  ;;  %v3651_v26 = vmul.f32 %v9939_v48, %v9875_v25  ;;  %v10023_v10 = vpop.permute.xlu1 %4209  ;;  %v10025_v15 = vadd.f32 %v4322_v2, %v3650_v17  ;;  %v10035_v25 = vpop.permute.xlu0 %3537  ;;  %v12048_v17 = vld [vmem:[#allocation49_spill] sm:$0xff] }
 0x48d   : > { %12043 = vst [vmem:[#allocation42_spill] sm:$0xff] %v10007_v30  ;;  %2765 = vmatmul.f32.gmra.mxu2 %v7349_v18  ;;  %5442 = vmatpush.msrb.mxu1 %v4572_v54  ;;  %v4100_v30 = vld [vmem:[%s7957_s29 + $0x10] sm:$0xff]  ;;  %v4505_v54 = vld [vmem:[#allocation10 + $0x1b8] sm:$0xff] }
 0x48e   : > { %2878 = vmatmul.f32.gmra.mxu3 %v7350_v56  ;;  %12045 = vst [vmem:[#allocation40_spill] sm:$0xff] %v10025_v15  ;;  %v10028_v56 = vadd.f32 %v4323_v57, %v3651_v26  ;;  %v4324_v2 = vmul.f32 %v9947_v55, %v4100_v30  ;;  %v3653_v26 = vmul.f32 %v9930_v12, %v9882_v52 }
 0x48f   : > { %5556 = vmatpush.msrb.mxu2 %v4505_v54  ;;  %v4568_v54 = vld [vmem:[#allocation10 + $0x3b0] sm:$0xff] }
 0x490   : > { %v2718_v44 = vpop.f32.mrf.mxu2  ;;  %12046 = vst [vmem:[#allocation43_spill] sm:$0xff] %v10028_v56  ;;  %5443 = vmatpush.msrb.mxu1 %v4568_v54  ;;  %v4501_v54 = vld [vmem:[#allocation10 + $0x198] sm:$0xff] }
 0x491   : > { %v2719_v51 = vadd.f32 %v2718_v44, %v2606_v4  ;;  %v2831_v34 = vpop.f32.mrf.mxu3  ;;  %v2495_v18 = vpop.f32.mrf.mxu0  ;;  %v3652_v4 = vmul.f32 %v9930_v12, %v12048_v17  ;;  %v4504_v44 = vld [vmem:[#allocation10 + $0x1b0] sm:$0xff]  ;;  %5557 = vmatpush.msrb.mxu2 %v4501_v54 }
 0x492   : > { %v2496_v24 = vadd.f32 %v2495_v18, %v9763_v19  ;;  %v2608_v59 = vpop.f32.mrf.mxu1  ;;  %v4325_v19 = vmul.f32 %v9947_v55, %v4101_v45  ;;  %5330 = vmatpush.msrb.mxu0 %v4504_v44  ;;  %v4102_v45 = vld [vmem:[%s7957_s29 + $0x20] sm:$0xff] }
 0x493   : > { %v10032_v39 = vadd.f32 %v2831_v34, %v2719_v51  ;;  %v10044_v57 = vpop.permute.xlu2 %3542  ;;  %v4569_v51 = vld [vmem:[#allocation10 + $0x3b8] sm:$0xff]  ;;  %v10050_v30 = vadd.f32 %v4324_v2, %v3652_v4  ;;  %v12050_v4 = vld [vmem:[#allocation50_spill] sm:$0xff]  ;;  %v4326_v2 = vmul.f32 %v9954_v50, %v4102_v45  ;;  %v4104_v45 = vld [vmem:[%s7957_s29 + $0x30] sm:$0xff] }
 0x494   : > { %4892 = vmatmul.f32.vlgmr.msra.gmra.mxu0 %v10025_v15  ;;  %v2609_v48 = vadd.f32 %v2608_v59, %v2496_v24  ;;  %5005 = vmatmul.f32.vlgmr.msra.gmra.mxu1 %v10028_v56  ;;  %v10048_v34 = vpop.permute.xlu1 %3547  ;;  %v10053_v55 = vadd.f32 %v4325_v19, %v3653_v26  ;;  %v10067_v19 = vpop.permute.xlu0 %4214  ;;  %v3655_v26 = vmul.f32 %v9941_v6, %v9889_v53 }
 0x495   : > { %12047 = vst [vmem:[#allocation39_spill] sm:$0xff] %v10032_v39  ;;  %5118 = vmatmul.f32.vlgmr.msra.gmra.mxu2 %v10025_v15  ;;  %5669 = vmatpush.msrb.mxu3 %v4569_v51 }
 0x496   : > { %5231 = vmatmul.f32.vlgmr.msra.gmra.mxu3 %v10028_v56  ;;  %12049 = vst [vmem:[#allocation44_spill] sm:$0xff] %v10053_v55  ;;  %v4103_v56 = vld [vmem:[%s7957_s29 + $0x28] sm:$0xff] }
 0x498   : > { %v2721_v18 = vpop.f32.mrf.mxu2 }
 0x499   : > { %v2722_v24 = vadd.f32 %v2721_v18, %v2609_v48  ;;  %v2834_v59 = vpop.f32.mrf.mxu3  ;;  %v2498_v17 = vpop.f32.mrf.mxu0  ;;  %v3654_v48 = vmul.f32 %v9941_v6, %v12050_v4  ;;  %v4105_v4 = vld [vmem:[%s7957_s29 + $0x38] sm:$0xff] }
 0x49a   : > { %v2499_v52 = vadd.f32 %v2498_v17, %v9770_v31  ;;  %v2611_v12 = vpop.f32.mrf.mxu1  ;;  %v4327_v31 = vmul.f32 %v9954_v50, %v4103_v56 }
 0x49b   : > { %v10057_v15 = vadd.f32 %v2834_v59, %v2722_v24  ;;  %v10071_v44 = vpop.permute.xlu2 %4219  ;;  %v10073_v18 = vadd.f32 %v4326_v2, %v3654_v48  ;;  %v12053_v48 = vld [vmem:[#allocation51_spill] sm:$0xff] }
 0x49c   : > { %4895 = vmatmul.f32.gmra.mxu0 %v10050_v30  ;;  %v2612_v39 = vadd.f32 %v2611_v12, %v2499_v52  ;;  %5008 = vmatmul.f32.gmra.mxu1 %v10053_v55  ;;  %v10076_v52 = vpop.permute.xlu1 %4224  ;;  %v10078_v50 = vadd.f32 %v4327_v31, %v3655_v26  ;;  %v3656_v2 = vmul.f32 %v9965_v20, %v12053_v48  ;;  %v10092_v31 = vpop.permute.xlu0 %3552 }
 0x49d   : > { %5121 = vmatmul.f32.gmra.mxu2 %v10050_v30  ;;  %12051 = vst [vmem:[#allocation45_spill] sm:$0xff] %v10073_v18  ;;  %v3657_v26 = vmul.f32 %v9965_v20, %v9896_v43 }
 0x49e   : > { %5234 = vmatmul.f32.gmra.mxu3 %v10053_v55  ;;  %12052 = vst [vmem:[#allocation46_spill] sm:$0xff] %v10078_v50 }
 0x4a0   : > { %v2724_v51 = vpop.f32.mrf.mxu2 }
 0x4a1   : > { %v2725_v24 = vadd.f32 %v2724_v51, %v2612_v39  ;;  %v2837_v59 = vpop.f32.mrf.mxu3  ;;  %v2501_v17 = vpop.f32.mrf.mxu0  ;;  %v4328_v39 = vmul.f32 %v9960_v28, %v4104_v45  ;;  %v4500_v51 = vld [vmem:[#allocation10 + $0x190] sm:$0xff] }
 0x4a2   : > { %v2502_v56 = vadd.f32 %v2501_v17, %v9777_v11  ;;  %v2614_v12 = vpop.f32.mrf.mxu1  ;;  %v4329_v11 = vmul.f32 %v9960_v28, %v4105_v4  ;;  %5331 = vmatpush.msrb.mxu0 %v4500_v51  ;;  %v4106_v28 = vld [vmem:[%s7957_s29 + $0x40] sm:$0xff] }
 0x4a3   : > { %v10082_v53 = vadd.f32 %v2837_v59, %v2725_v24  ;;  %v4565_v24 = vld [vmem:[#allocation10 + $0x398] sm:$0xff]  ;;  %v10096_v59 = vpop.permute.xlu2 %3557  ;;  %v10098_v45 = vadd.f32 %v4328_v39, %v3656_v2  ;;  %v4330_v2 = vmul.f32 %v9978_v1, %v4106_v28  ;;  %v4108_v28 = vld [vmem:[%s7957_s29 + $0x50] sm:$0xff] }
 0x4a4   : > { %4898 = vmatmul.f32.gmra.mxu0 %v10073_v18  ;;  %v2615_v6 = vadd.f32 %v2614_v12, %v2502_v56  ;;  %5011 = vmatmul.f32.gmra.mxu1 %v10078_v50  ;;  %v10101_v4 = vpop.permute.xlu1 %3562  ;;  %v10119_v51 = vpop.permute.xlu0 %4229 }
 0x4a5   : > { %5124 = vmatmul.f32.gmra.mxu2 %v10073_v18  ;;  %12054 = vst [vmem:[#allocation47_spill] sm:$0xff] %v10098_v45  ;;  %5670 = vmatpush.msrb.mxu3 %v4565_v24  ;;  %v4107_v18 = vld [vmem:[%s7957_s29 + $0x48] sm:$0xff] }
 0x4a6   : > { %5237 = vmatmul.f32.gmra.mxu3 %v10078_v50  ;;  %v10103_v50 = vadd.f32 %v4329_v11, %v3657_v26  ;;  %v3659_v11 = vmul.f32 %v9967_v27, %v9903_v41  ;;  %v4564_v26 = vld [vmem:[#allocation10 + $0x390] sm:$0xff] }
 0x4a7   : > { %5444 = vmatpush.msrb.mxu1 %v4564_v26 }
 0x4a8   : > { %v2727_v17 = vpop.f32.mrf.mxu2  ;;  %12055 = vst [vmem:[#allocation48_spill] sm:$0xff] %v10103_v50 }
 0x4a9   : > { %v2728_v56 = vadd.f32 %v2727_v17, %v2615_v6  ;;  %v2840_v12 = vpop.f32.mrf.mxu3  ;;  %v2504_v48 = vpop.f32.mrf.mxu0  ;;  %v12056_v6 = vld [vmem:[#allocation52_spill] sm:$0xff] }
 0x4aa   : > { %v2505_v43 = vadd.f32 %v2504_v48, %v9784_v3  ;;  %v2617_v20 = vpop.f32.mrf.mxu1  ;;  %v3658_v39 = vmul.f32 %v9967_v27, %v12056_v6  ;;  %v4331_v3 = vmul.f32 %v9978_v1, %v4107_v18  ;;  %v4109_v6 = vld [vmem:[%s7957_s29 + $0x58] sm:$0xff] }
 0x4ab   : > { %v10107_v55 = vadd.f32 %v2840_v12, %v2728_v56 }
 0x4ac   : > { %4901 = vmatmul.f32.gmra.mxu0 %v10098_v45  ;;  %v2618_v54 = vadd.f32 %v2617_v20, %v2505_v43  ;;  %5014 = vmatmul.f32.gmra.mxu1 %v10103_v50  ;;  %v10121_v17 = vadd.f32 %v4330_v2, %v3658_v39  ;;  %v10124_v43 = vpop.permute.xlu2 %4234  ;;  %v10126_v20 = vadd.f32 %v4331_v3, %v3659_v11  ;;  %v10133_v27 = vpop.permute.xlu1 %4239  ;;  %v12059_v2 = vld [vmem:[#allocation53_spill] sm:$0xff] }
 0x4ad   : > { %5127 = vmatmul.f32.gmra.mxu2 %v10098_v45  ;;  %v3660_v26 = vmul.f32 %v9973_v8, %v12059_v2  ;;  %v3661_v3 = vmul.f32 %v9973_v8, %v9910_v22  ;;  %v4497_v11 = vld [vmem:[#allocation10 + $0x178] sm:$0xff] }
 0x4ae   : > { %5240 = vmatmul.f32.gmra.mxu3 %v10103_v50  ;;  %12057 = vst [vmem:[#allocation49_spill] sm:$0xff] %v10121_v17  ;;  %5558 = vmatpush.msrb.mxu2 %v4497_v11 }
 0x4af   : > { %12058 = vst [vmem:[#allocation50_spill] sm:$0xff] %v10126_v20 }
 0x4b0   : > { %v2730_v24 = vpop.f32.mrf.mxu2 }
 0x4b1   : > { %v2731_v56 = vadd.f32 %v2730_v24, %v2618_v54  ;;  %v2843_v12 = vpop.f32.mrf.mxu3  ;;  %v2507_v48 = vpop.f32.mrf.mxu0  ;;  %v4332_v54 = vmul.f32 %v9984_v23, %v4108_v28  ;;  %v4496_v24 = vld [vmem:[#allocation10 + $0x170] sm:$0xff] }
 0x4b2   : > { %v2508_v1 = vadd.f32 %v2507_v48, %v9791_v9  ;;  %v2620_v18 = vpop.f32.mrf.mxu1  ;;  %v4333_v9 = vmul.f32 %v9984_v23, %v4109_v6  ;;  %5332 = vmatpush.msrb.mxu0 %v4496_v24  ;;  %v4560_v24 = vld [vmem:[#allocation10 + $0x370] sm:$0xff] }
 0x4b3   : > { %v10130_v41 = vadd.f32 %v2843_v12, %v2731_v56  ;;  %v4561_v56 = vld [vmem:[#allocation10 + $0x378] sm:$0xff]  ;;  %v10144_v12 = vpop.permute.xlu0 %3567  ;;  %v10146_v28 = vadd.f32 %v4332_v54, %v3660_v26  ;;  %v12062_v26 = vld [vmem:[#allocation54_spill] sm:$0xff]  ;;  %5445 = vmatpush.msrb.mxu1 %v4560_v24  ;;  %v4492_v24 = vld [vmem:[#allocation10 + $0x150] sm:$0xff] }
 0x4b4   : > { %4904 = vmatmul.f32.gmra.mxu0 %v10121_v17  ;;  %v2621_v39 = vadd.f32 %v2620_v18, %v2508_v1  ;;  %5017 = vmatmul.f32.gmra.mxu1 %v10126_v20  ;;  %v10149_v23 = vpop.permute.xlu2 %3572  ;;  %v10151_v6 = vadd.f32 %v4333_v9, %v3661_v3  ;;  %v10158_v11 = vpop.permute.xlu1 %3577  ;;  %v3662_v9 = vmul.f32 %v9991_v37, %v12062_v26 }
 0x4b5   : > { %5130 = vmatmul.f32.gmra.mxu2 %v10121_v17  ;;  %12060 = vst [vmem:[#allocation51_spill] sm:$0xff] %v10146_v28  ;;  %5671 = vmatpush.msrb.mxu3 %v4561_v56  ;;  %v4111_v17 = vld [vmem:[%s7957_s29 + $0x68] sm:$0xff]  ;;  %v3663_v3 = vmul.f32 %v9991_v37, %v9917_v49 }
 0x4b6   : > { %5243 = vmatmul.f32.gmra.mxu3 %v10126_v20  ;;  %v4110_v20 = vld [vmem:[%s7957_s29 + $0x60] sm:$0xff]  ;;  %12061 = vst [vmem:[#allocation52_spill] sm:$0xff] %v10151_v6  ;;  %5333 = vmatpush.msrb.mxu0 %v4492_v24  ;;  %v3667_v24 = vmul.f32 %v10002_v32, %v9933_v21 }
 0x4b7   : > { %v4334_v54 = vmul.f32 %v9989_v38, %v4110_v20 }
 0x4b8   : > { %v2733_v48 = vpop.f32.mrf.mxu2 }
 0x4b9   : > { %v2734_v1 = vadd.f32 %v2733_v48, %v2621_v39  ;;  %v2846_v18 = vpop.f32.mrf.mxu3  ;;  %v2510_v2 = vpop.f32.mrf.mxu0  ;;  %v10169_v48 = vadd.f32 %v4334_v54, %v3662_v9 }
 0x4ba   : > { %v2511_v22 = vadd.f32 %v2510_v2, %v9798_v47  ;;  %v2623_v8 = vpop.f32.mrf.mxu1  ;;  %v4335_v47 = vmul.f32 %v9989_v38, %v4111_v17  ;;  %v4112_v2 = vld [vmem:[%s7957_s29 + $0x70] sm:$0xff] }
 0x4bb   : > { %v10155_v50 = vadd.f32 %v2846_v18, %v2734_v1  ;;  %12063 = vst [vmem:[#allocation53_spill] sm:$0xff] %v10169_v48  ;;  %v12065_v17 = vld [vmem:[#allocation55_spill] sm:$0xff]  ;;  %v4336_v54 = vmul.f32 %v10010_v0, %v4112_v2 }
 0x4bc   : > { %4907 = vmatmul.f32.gmra.mxu0 %v10146_v28  ;;  %v2624_v39 = vadd.f32 %v2623_v8, %v2511_v22  ;;  %5020 = vmatmul.f32.gmra.mxu1 %v10151_v6  ;;  %v10172_v22 = vadd.f32 %v4335_v47, %v3663_v3  ;;  %v10181_v49 = vpop.permute.xlu2 %4249  ;;  %v10190_v9 = vpop.permute.xlu1 %4254  ;;  %v3665_v47 = vmul.f32 %v9997_v36, %v9924_v62  ;;  %v4493_v3 = vld [vmem:[#allocation10 + $0x158] sm:$0xff]  ;;  %v4115_v62 = vld [vmem:[%s7957_s29 + $0x88] sm:$0xff] }
 0x4bd   : > { %5133 = vmatmul.f32.gmra.mxu2 %v10146_v28  ;;  %v10176_v28 = vpop.permute.xlu0 %4244 }
 0x4be   : > { %5246 = vmatmul.f32.gmra.mxu3 %v10151_v6  ;;  %12064 = vst [vmem:[#allocation54_spill] sm:$0xff] %v10172_v22  ;;  %v4113_v6 = vld [vmem:[%s7957_s29 + $0x78] sm:$0xff]  ;;  %5559 = vmatpush.msrb.mxu2 %v4493_v3 }
 0x4c0   : > { %v2736_v56 = vpop.f32.mrf.mxu2 }
 0x4c1   : > { %v2737_v1 = vadd.f32 %v2736_v56, %v2624_v39  ;;  %v2849_v20 = vpop.f32.mrf.mxu3  ;;  %v2513_v18 = vpop.f32.mrf.mxu0  ;;  %v3664_v39 = vmul.f32 %v9997_v36, %v12065_v17  ;;  %v4557_v56 = vld [vmem:[#allocation10 + $0x358] sm:$0xff] }
 0x4c2   : > { %v2514_v8 = vadd.f32 %v2513_v18, %v9805_v40  ;;  %v2626_v26 = vpop.f32.mrf.mxu1  ;;  %v4337_v40 = vmul.f32 %v10010_v0, %v4113_v6  ;;  %5672 = vmatpush.msrb.mxu3 %v4557_v56  ;;  %v4556_v56 = vld [vmem:[#allocation10 + $0x350] sm:$0xff] }
 0x4c3   : > { %v10178_v38 = vadd.f32 %v2849_v20, %v2737_v1  ;;  %v10194_v20 = vadd.f32 %v4336_v54, %v3664_v39  ;;  %v12068_v54 = vld [vmem:[#allocation56_spill] sm:$0xff]  ;;  %5446 = vmatpush.msrb.mxu1 %v4556_v56 }
 0x4c4   : > { %4910 = vmatmul.f32.gmra.mxu0 %v10169_v48  ;;  %v2627_v37 = vadd.f32 %v2626_v26, %v2514_v8  ;;  %5023 = vmatmul.f32.gmra.mxu1 %v10172_v22  ;;  %v4114_v26 = vld [vmem:[%s7957_s29 + $0x80] sm:$0xff]  ;;  %v10197_v0 = vadd.f32 %v4337_v40, %v3665_v47  ;;  %v10206_v3 = vpop.permute.xlu2 %3587  ;;  %v3666_v40 = vmul.f32 %v10002_v32, %v12068_v54  ;;  %v10215_v47 = vpop.permute.xlu1 %3592 }
 0x4c5   : > { %5136 = vmatmul.f32.gmra.mxu2 %v10169_v48  ;;  %12066 = vst [vmem:[#allocation55_spill] sm:$0xff] %v10194_v20  ;;  %v10201_v36 = vpop.permute.xlu0 %3582  ;;  %v4553_v56 = vld [vmem:[#allocation10 + $0x338] sm:$0xff] }
 0x4c6   : > { %5249 = vmatmul.f32.gmra.mxu3 %v10172_v22  ;;  %12067 = vst [vmem:[#allocation68_spill] sm:$0xff] %v10197_v0 }
 0x4c7   : > { %5673 = vmatpush.msrb.mxu3 %v4553_v56 }
 0x4c8   : > { %v2739_v1 = vpop.f32.mrf.mxu2 }
 0x4c9   : > { %v2740_v18 = vadd.f32 %v2739_v1, %v2627_v37  ;;  %v2852_v2 = vpop.f32.mrf.mxu3  ;;  %v2516_v8 = vpop.f32.mrf.mxu0  ;;  %v4338_v37 = vmul.f32 %v10019_v46, %v4114_v26 }
 0x4ca   : > { %v2517_v6 = vadd.f32 %v2516_v8, %v9812_v58  ;;  %v2629_v17 = vpop.f32.mrf.mxu1  ;;  %v4339_v58 = vmul.f32 %v10019_v46, %v4115_v62  ;;  %v4117_v46 = vld [vmem:[%s7957_s29 + $0x98] sm:$0xff] }
 0x4cb   : > { %v10203_v22 = vadd.f32 %v2852_v2, %v2740_v18  ;;  %v10219_v18 = vadd.f32 %v4338_v37, %v3666_v40 }
 0x4cc   : > { %4913 = vmatmul.f32.gmra.mxu0 %v10194_v20  ;;  %v2630_v39 = vadd.f32 %v2629_v17, %v2517_v6  ;;  %5026 = vmatmul.f32.gmra.mxu1 %v10197_v0  ;;  %v4116_v6 = vld [vmem:[%s7957_s29 + $0x90] sm:$0xff]  ;;  %v10222_v17 = vadd.f32 %v4339_v58, %v3667_v24  ;;  %v10238_v40 = vpop.permute.xlu2 %4264  ;;  %v4489_v58 = vld [vmem:[#allocation10 + $0x138] sm:$0xff] }
 0x4cd   : > { %5139 = vmatmul.f32.gmra.mxu2 %v10194_v20  ;;  %12069 = vst [vmem:[#allocation56_spill] sm:$0xff] %v10219_v18  ;;  %v4340_v32 = vmul.f32 %v10023_v10, %v4116_v6  ;;  %v10233_v37 = vpop.permute.xlu0 %4259  ;;  %v4488_v24 = vld [vmem:[#allocation10 + $0x130] sm:$0xff] }
 0x4ce   : > { %5252 = vmatmul.f32.gmra.mxu3 %v10197_v0  ;;  %12070 = vst [vmem:[#allocation69_spill] sm:$0xff] %v10222_v17  ;;  %5560 = vmatpush.msrb.mxu2 %v4489_v58 }
 0x4cf   : > { %5334 = vmatpush.msrb.mxu0 %v4488_v24  ;;  %v4552_v24 = vld [vmem:[#allocation10 + $0x330] sm:$0xff] }
 0x4d0   : > { %v2742_v1 = vpop.f32.mrf.mxu2  ;;  %5447 = vmatpush.msrb.mxu1 %v4552_v24  ;;  %v4484_v24 = vld [vmem:[#allocation10 + $0x110] sm:$0xff] }
 0x4d1   : > { %v2743_v2 = vadd.f32 %v2742_v1, %v2630_v39  ;;  %v2855_v8 = vpop.f32.mrf.mxu3  ;;  %v2519_v26 = vpop.f32.mrf.mxu0  ;;  %v3668_v39 = vmul.f32 %v10035_v25, %v9210_v35  ;;  %5335 = vmatpush.msrb.mxu0 %v4484_v24  ;;  %v4548_v24 = vld [vmem:[#allocation10 + $0x310] sm:$0xff] }
 0x4d2   : > { %v2520_v54 = vadd.f32 %v2519_v26, %v9819_v5  ;;  %v2632_v0 = vpop.f32.mrf.mxu1  ;;  %v4341_v5 = vmul.f32 %v10023_v10, %v4117_v46  ;;  %v10242_v1 = vpop.permute.xlu1 %4269  ;;  %v4118_v10 = vld [vmem:[%s7957_s29 + $0xa0] sm:$0xff]  ;;  %v4119_v46 = vld [vmem:[%s7957_s29 + $0xa8] sm:$0xff]  ;;  %5448 = vmatpush.msrb.mxu1 %v4548_v24  ;;  %v4480_v24 = vld [vmem:[#allocation10 + $0xf0] sm:$0xff] }
 0x4d3   : > { %v10226_v62 = vadd.f32 %v2855_v8, %v2743_v2  ;;  %v10244_v2 = vadd.f32 %v4340_v32, %v3668_v39  ;;  %v12073_v32 = vld [vmem:[#allocation57_spill] sm:$0xff]  ;;  %v4342_v39 = vmul.f32 %v10067_v19, %v4118_v10  ;;  %5336 = vmatpush.msrb.mxu0 %v4480_v24  ;;  %v12086_v24 = vld [vmem:[#allocation42_spill] sm:$0xff] }
 0x4d4   : > { %4916 = vmatmul.f32.gmra.mxu0 %v10219_v18  ;;  %v2633_v21 = vadd.f32 %v2632_v0, %v2520_v54  ;;  %5029 = vmatmul.f32.gmra.mxu1 %v10222_v17  ;;  %v3669_v0 = vmul.f32 %v10035_v25, %v9944_v29 }
 0x4d5   : > { %5142 = vmatmul.f32.gmra.mxu2 %v10219_v18  ;;  %12071 = vst [vmem:[#allocation70_spill] sm:$0xff] %v10244_v2  ;;  %v10258_v58 = vpop.permute.xlu0 %3597 }
 0x4d6   : > { %5255 = vmatmul.f32.gmra.mxu3 %v10222_v17  ;;  %v10247_v54 = vadd.f32 %v4341_v5, %v3669_v0  ;;  %v10263_v5 = vpop.permute.xlu2 %3602  ;;  %v3671_v0 = vmul.f32 %v10044_v57, %v9957_v16 }
 0x4d8   : > { %v2745_v35 = vpop.f32.mrf.mxu2  ;;  %12072 = vst [vmem:[#allocation71_spill] sm:$0xff] %v10247_v54 }
 0x4d9   : > { %v2746_v8 = vadd.f32 %v2745_v35, %v2633_v21  ;;  %v2858_v26 = vpop.f32.mrf.mxu3  ;;  %v2522_v6 = vpop.f32.mrf.mxu0  ;;  %v3670_v21 = vmul.f32 %v10044_v57, %v12073_v32  ;;  %v4121_v32 = vld [vmem:[%s7957_s29 + $0xb8] sm:$0xff] }
 0x4da   : > { %v2523_v29 = vadd.f32 %v2522_v6, %v9826_v60  ;;  %v2635_v25 = vpop.f32.mrf.mxu1  ;;  %v4343_v60 = vmul.f32 %v10067_v19, %v4119_v46  ;;  %v10267_v56 = vpop.permute.xlu1 %3607 }
 0x4db   : > { %v10251_v17 = vadd.f32 %v2858_v26, %v2746_v8  ;;  %v10269_v8 = vadd.f32 %v4342_v39, %v3670_v21  ;;  %v12076_v21 = vld [vmem:[#allocation58_spill] sm:$0xff]  ;;  %v3673_v39 = vmul.f32 %v10048_v34, %v9970_v14 }
 0x4dc   : > { %4919 = vmatmul.f32.gmra.mxu0 %v10244_v2  ;;  %v2636_v18 = vadd.f32 %v2635_v25, %v2523_v29  ;;  %5032 = vmatmul.f32.gmra.mxu1 %v10247_v54  ;;  %v4120_v29 = vld [vmem:[%s7957_s29 + $0xb0] sm:$0xff]  ;;  %v10272_v25 = vadd.f32 %v4343_v60, %v3671_v0  ;;  %v4485_v0 = vld [vmem:[#allocation10 + $0x118] sm:$0xff] }
 0x4dd   : > { %5145 = vmatmul.f32.gmra.mxu2 %v10244_v2  ;;  %12074 = vst [vmem:[#allocation57_spill] sm:$0xff] %v10269_v8  ;;  %v4344_v57 = vmul.f32 %v10071_v44, %v4120_v29  ;;  %v10288_v60 = vpop.permute.xlu0 %4274  ;;  %v12094_v2 = vld [vmem:[#allocation34_spill] sm:$0xff] }
 0x4de   : > { %5258 = vmatmul.f32.gmra.mxu3 %v10247_v54  ;;  %12075 = vst [vmem:[#allocation72_spill] sm:$0xff] %v10272_v25  ;;  %5561 = vmatpush.msrb.mxu2 %v4485_v0 }
 0x4e0   : > { %v2748_v35 = vpop.f32.mrf.mxu2 }
 0x4e1   : > { %v2749_v26 = vadd.f32 %v2748_v35, %v2636_v18  ;;  %v2861_v6 = vpop.f32.mrf.mxu3  ;;  %v2525_v10 = vpop.f32.mrf.mxu0  ;;  %v3672_v18 = vmul.f32 %v10048_v34, %v12076_v21  ;;  %v4549_v35 = vld [vmem:[#allocation10 + $0x318] sm:$0xff] }
 0x4e2   : > { %v2526_v19 = vadd.f32 %v2525_v10, %v9833_v7  ;;  %v2638_v46 = vpop.f32.mrf.mxu1  ;;  %v4345_v7 = vmul.f32 %v10071_v44, %v4121_v32  ;;  %5674 = vmatpush.msrb.mxu3 %v4549_v35  ;;  %v4122_v44 = vld [vmem:[%s7957_s29 + $0xc0] sm:$0xff]  ;;  %v10295_v32 = vpop.permute.xlu1 %4284 }
 0x4e3   : > { %v10276_v54 = vadd.f32 %v2861_v6, %v2749_v26  ;;  %v10290_v26 = vpop.permute.xlu2 %4279  ;;  %v10292_v10 = vadd.f32 %v4344_v57, %v3672_v18  ;;  %v12079_v57 = vld [vmem:[#allocation59_spill] sm:$0xff] }
 0x4e4   : > { %4922 = vmatmul.f32.gmra.mxu0 %v10269_v8  ;;  %v2639_v16 = vadd.f32 %v2638_v46, %v2526_v19  ;;  %5035 = vmatmul.f32.gmra.mxu1 %v10272_v25  ;;  %v10297_v14 = vadd.f32 %v4345_v7, %v3673_v39  ;;  %v3674_v18 = vmul.f32 %v10092_v31, %v12079_v57 }
 0x4e5   : > { %5148 = vmatmul.f32.gmra.mxu2 %v10269_v8  ;;  %12077 = vst [vmem:[#allocation58_spill] sm:$0xff] %v10292_v10  ;;  %v3675_v7 = vmul.f32 %v10092_v31, %v9981_v42  ;;  %v10313_v39 = vpop.permute.xlu0 %3612  ;;  %v4125_v31 = vld [vmem:[%s7957_s29 + $0xd8] sm:$0xff] }
 0x4e6   : > { %5261 = vmatmul.f32.gmra.mxu3 %v10272_v25  ;;  %12078 = vst [vmem:[#allocation73_spill] sm:$0xff] %v10297_v14  ;;  %v4123_v25 = vld [vmem:[%s7957_s29 + $0xc8] sm:$0xff] }
 0x4e8   : > { %v2751_v6 = vpop.f32.mrf.mxu2 }
 0x4e9   : > { %v2752_v29 = vadd.f32 %v2751_v6, %v2639_v16  ;;  %v2864_v19 = vpop.f32.mrf.mxu3  ;;  %v2528_v46 = vpop.f32.mrf.mxu0  ;;  %v4346_v16 = vmul.f32 %v10076_v52, %v4122_v44 }
 0x4ea   : > { %v2529_v34 = vadd.f32 %v2528_v46, %v9840_v61  ;;  %v2641_v21 = vpop.f32.mrf.mxu1  ;;  %v4347_v61 = vmul.f32 %v10076_v52, %v4123_v25 }
 0x4eb   : > { %v10301_v8 = vadd.f32 %v2864_v19, %v2752_v29  ;;  %v10315_v35 = vpop.permute.xlu2 %3617  ;;  %v10317_v29 = vadd.f32 %v4346_v16, %v3674_v18  ;;  %v3677_v18 = vmul.f32 %v10096_v59, %v9994_v33 }
 0x4ec   : > { %4925 = vmatmul.f32.gmra.mxu0 %v10292_v10  ;;  %v2642_v0 = vadd.f32 %v2641_v21, %v2529_v34  ;;  %5038 = vmatmul.f32.gmra.mxu1 %v10297_v14  ;;  %v4124_v34 = vld [vmem:[%s7957_s29 + $0xd0] sm:$0xff]  ;;  %v10320_v21 = vpop.permute.xlu1 %3622  ;;  %v10322_v52 = vadd.f32 %v4347_v61, %v3675_v7  ;;  %v4481_v7 = vld [vmem:[#allocation10 + $0xf8] sm:$0xff] }
 0x4ed   : > { %5151 = vmatmul.f32.gmra.mxu2 %v10292_v10  ;;  %12080 = vst [vmem:[#allocation59_spill] sm:$0xff] %v10317_v29  ;;  %v4348_v16 = vmul.f32 %v10119_v51, %v4124_v34  ;;  %v4126_v34 = vld [vmem:[%s7957_s29 + $0xe0] sm:$0xff] }
 0x4ee   : > { %5264 = vmatmul.f32.gmra.mxu3 %v10297_v14  ;;  %12081 = vst [vmem:[#allocation74_spill] sm:$0xff] %v10322_v52  ;;  %5562 = vmatpush.msrb.mxu2 %v4481_v7  ;;  %v4130_v10 = vld [vmem:[%s7957_s29 + $0x100] sm:$0xff] }
 0x4f0   : > { %v2754_v6 = vpop.f32.mrf.mxu2 }
 0x4f1   : > { %v2755_v19 = vadd.f32 %v2754_v6, %v2642_v0  ;;  %v2867_v46 = vpop.f32.mrf.mxu3  ;;  %v2531_v44 = vpop.f32.mrf.mxu0  ;;  %v3676_v0 = vmul.f32 %v10096_v59, %v9339_v63  ;;  %v4545_v6 = vld [vmem:[#allocation10 + $0x2f8] sm:$0xff]  ;;  %v4127_v59 = vld [vmem:[%s7957_s29 + $0xe8] sm:$0xff] }
 0x4f2   : > { %v2532_v25 = vadd.f32 %v2531_v44, %v9847_v13  ;;  %v2644_v42 = vpop.f32.mrf.mxu1  ;;  %v4349_v13 = vmul.f32 %v10119_v51, %v4125_v31  ;;  %v12084_v51 = vld [vmem:[#allocation35_spill] sm:$0xff]  ;;  %5675 = vmatpush.msrb.mxu3 %v4545_v6  ;;  %v4351_v7 = vmul.f32 %v10124_v43, %v4127_v59  ;;  %v3679_v6 = vmul.f32 %v10101_v4, %v12086_v24 }
 0x4f3   : > { %v10326_v57 = vadd.f32 %v2867_v46, %v2755_v19  ;;  %v10338_v19 = vadd.f32 %v4348_v16, %v3676_v0  ;;  %v10350_v0 = vpop.permute.xlu2 %4294 }
 0x4f4   : > { %4928 = vmatmul.f32.gmra.mxu0 %v10317_v29  ;;  %v2645_v14 = vadd.f32 %v2644_v42, %v2532_v25  ;;  %5041 = vmatmul.f32.gmra.mxu1 %v10322_v52  ;;  %v10341_v25 = vpop.permute.xlu0 %4289  ;;  %v10343_v42 = vadd.f32 %v4349_v13, %v3677_v18  ;;  %v4350_v13 = vmul.f32 %v10124_v43, %v4126_v34  ;;  %v12085_v18 = vld [vmem:[#allocation60_spill] sm:$0xff] }
 0x4f5   : > { %5154 = vmatmul.f32.gmra.mxu2 %v10317_v29  ;;  %12082 = vst [vmem:[#allocation75_spill] sm:$0xff] %v10338_v19 }
 0x4f6   : > { %5267 = vmatmul.f32.gmra.mxu3 %v10322_v52  ;;  %12083 = vst [vmem:[#allocation76_spill] sm:$0xff] %v10343_v42 }
 0x4f8   : > { %v2757_v61 = vpop.f32.mrf.mxu2 }
 0x4f9   : > { %v2758_v63 = vadd.f32 %v2757_v61, %v2645_v14  ;;  %v2870_v46 = vpop.f32.mrf.mxu3  ;;  %v2534_v44 = vpop.f32.mrf.mxu0  ;;  %v3678_v61 = vmul.f32 %v10101_v4, %v12085_v18 }
 0x4fa   : > { %v2535_v31 = vadd.f32 %v2534_v44, %v12084_v51  ;;  %v2647_v33 = vpop.f32.mrf.mxu1  ;;  %v10352_v14 = vpop.permute.xlu1 %4299 }
 0x4fb   : > { %v10347_v52 = vadd.f32 %v2870_v46, %v2758_v63  ;;  %v4544_v63 = vld [vmem:[#allocation10 + $0x2f0] sm:$0xff]  ;;  %v10363_v44 = vadd.f32 %v4350_v13, %v3678_v61  ;;  %v10374_v4 = vpop.permute.xlu2 %3632 }
 0x4fc   : > { %4931 = vmatmul.f32.gmra.mxu0 %v10338_v19  ;;  %v2648_v16 = vadd.f32 %v2647_v33, %v2535_v31  ;;  %5044 = vmatmul.f32.gmra.mxu1 %v10343_v42  ;;  %v4128_v33 = vld [vmem:[%s7957_s29 + $0xf0] sm:$0xff]  ;;  %v10366_v18 = vpop.permute.xlu0 %3627 }
 0x4fd   : > { %5157 = vmatmul.f32.gmra.mxu2 %v10338_v19  ;;  %5449 = vmatpush.msrb.mxu1 %v4544_v63  ;;  %12087 = vst [vmem:[#allocation35_spill] sm:$0xff] %v10363_v44  ;;  %v10368_v19 = vadd.f32 %v4351_v7, %v3679_v6  ;;  %v4352_v61 = vmul.f32 %v10133_v27, %v4128_v33  ;;  %v12090_v63 = vld [vmem:[#allocation61_spill] sm:$0xff] }
 0x4fe   : > { %5270 = vmatmul.f32.gmra.mxu3 %v10343_v42  ;;  %v12089_v42 = vld [vmem:[#allocation41_spill] sm:$0xff]  ;;  %v3680_v7 = vmul.f32 %v10144_v12, %v12090_v63 }
 0x4ff   : > { %12088 = vst [vmem:[#allocation60_spill] sm:$0xff] %v10368_v19 }
 0x500   : > { %v2760_v46 = vpop.f32.mrf.mxu2  ;;  %v10388_v33 = vadd.f32 %v4352_v61, %v3680_v7  ;;  %v4131_v61 = vld [vmem:[%s7957_s29 + $0x108] sm:$0xff]  ;;  %v4354_v7 = vmul.f32 %v10176_v28, %v4130_v10 }
 0x501   : > { %v2761_v51 = vadd.f32 %v2760_v46, %v2648_v16  ;;  %v2873_v34 = vpop.f32.mrf.mxu3  ;;  %v2537_v31 = vpop.f32.mrf.mxu0  ;;  %v4129_v16 = vld [vmem:[%s7957_s29 + $0xf8] sm:$0xff] }
 0x502   : > { %v2538_v29 = vadd.f32 %v2537_v31, %v12089_v42  ;;  %v2650_v43 = vpop.f32.mrf.mxu1  ;;  %v10376_v24 = vpop.permute.xlu1 %3637  ;;  %v12091_v42 = vld [vmem:[#allocation39_spill] sm:$0xff]  ;;  %v4477_v46 = vld [vmem:[#allocation10 + $0xd8] sm:$0xff]  ;;  %12092 = vst [vmem:[#allocation42_spill] sm:$0xff] %v10388_v33 }
 0x503   : > { %v10371_v59 = vadd.f32 %v2873_v34, %v2761_v51  ;;  %v3681_v6 = vmul.f32 %v10144_v12, %v12091_v42  ;;  %v4476_v51 = vld [vmem:[#allocation10 + $0xd0] sm:$0xff]  ;;  %v4541_v34 = vld [vmem:[#allocation10 + $0x2d8] sm:$0xff]  ;;  %5563 = vmatpush.msrb.mxu2 %v4477_v46 }
 0x504   : > { %4934 = vmatmul.f32.gmra.mxu0 %v10363_v44  ;;  %v2651_v13 = vadd.f32 %v2650_v43, %v2538_v29  ;;  %5047 = vmatmul.f32.gmra.mxu1 %v10368_v19  ;;  %v4353_v29 = vmul.f32 %v10133_v27, %v4129_v16  ;;  %v10397_v46 = vpop.permute.xlu0 %4304  ;;  %v12095_v16 = vld [vmem:[#allocation62_spill] sm:$0xff] }
 0x505   : > { %5160 = vmatmul.f32.gmra.mxu2 %v10363_v44  ;;  %5337 = vmatpush.msrb.mxu0 %v4476_v51  ;;  %v3683_v51 = vmul.f32 %v10149_v23, %v10057_v15 }
 0x506   : > { %5273 = vmatmul.f32.gmra.mxu3 %v10368_v19  ;;  %v10391_v19 = vadd.f32 %v4353_v29, %v3681_v6 }
 0x507   : > { %5676 = vmatpush.msrb.mxu3 %v4541_v34  ;;  %v4355_v34 = vmul.f32 %v10176_v28, %v4131_v61  ;;  %v4133_v28 = vld [vmem:[%s7957_s29 + $0x118] sm:$0xff] }
 0x508   : > { %v2763_v31 = vpop.f32.mrf.mxu2  ;;  %12093 = vst [vmem:[#allocation41_spill] sm:$0xff] %v10391_v19 }
 0x509   : > { %v2764_v43 = vadd.f32 %v2763_v31, %v2651_v13  ;;  %v2876_v63 = vpop.f32.mrf.mxu3  ;;  %v2540_v44 = vpop.f32.mrf.mxu0  ;;  %v3682_v13 = vmul.f32 %v10149_v23, %v12095_v16  ;;  %v10420_v16 = vadd.f32 %v4355_v34, %v3683_v51  ;;  %v3685_v51 = vmul.f32 %v10158_v11, %v10082_v53  ;;  %v4473_v34 = vld [vmem:[#allocation10 + $0xb8] sm:$0xff] }
 0x50a   : > { %v2541_v12 = vadd.f32 %v2540_v44, %v12094_v2  ;;  %v2653_v42 = vpop.f32.mrf.mxu1  ;;  %v4540_v2 = vld [vmem:[#allocation10 + $0x2d0] sm:$0xff]  ;;  %v10406_v44 = vpop.permute.xlu2 %4309  ;;  %5564 = vmatpush.msrb.mxu2 %v4473_v34  ;;  %v4134_v53 = vld [vmem:[%s7957_s29 + $0x120] sm:$0xff] }
 0x50b   : > { %v10394_v20 = vadd.f32 %v2876_v63, %v2764_v43  ;;  %v10408_v6 = vpop.permute.xlu1 %4314  ;;  %5450 = vmatpush.msrb.mxu1 %v4540_v2  ;;  %v10413_v31 = vadd.f32 %v4354_v7, %v3682_v13  ;;  %12098 = vst [vmem:[#allocation34_spill] sm:$0xff] %v10420_v16 }
 0x50c   : > { %4937 = vmatmul.f32.gmra.mxu0 %v10388_v33  ;;  %v2654_v27 = vadd.f32 %v2653_v42, %v2541_v12  ;;  %5050 = vmatmul.f32.gmra.mxu1 %v10391_v19  ;;  %v4132_v12 = vld [vmem:[%s7957_s29 + $0x110] sm:$0xff]  ;;  %v10418_v42 = vld [vmem:[#allocation11] sm:$0xf]  ;;  %v10427_v15 = vpop.permute.xlu0 %3642 }
 0x50d   : > { %5163 = vmatmul.f32.gmra.mxu2 %v10388_v33  ;;  %12096 = vst [vmem:[#allocation61_spill] sm:$0xff] %v10413_v31  ;;  %v4356_v23 = vmul.f32 %v10181_v49, %v4132_v12  ;;  %v10435_v61 = vperm.slane %v10418_v42, 1  ;;  %v4357_v12 = vmul.f32 %v10181_v49, %v4133_v28  ;;  %v4135_v49 = vld [vmem:[%s7957_s29 + $0x128] sm:$0xff]  ;;  %v4358_v28 = vmul.f32 %v10190_v9, %v4134_v53 }
 0x50e   : > { %5276 = vmatmul.f32.gmra.mxu3 %v10391_v19 }
 0x510   : > { %v2766_v29 = vpop.f32.mrf.mxu2 }
 0x511   : > { %v2767_v10 = vadd.f32 %v2766_v29, %v2654_v27  ;;  %v2879_v43 = vpop.f32.mrf.mxu3  ;;  %v10415_v63 = vpop.f32.mrf.mxu0  ;;  %v12100_v27 = vld [vmem:[#allocation63_spill] sm:$0xff] }
 0x512   : > { %12097 = vst [vmem:[#allocation39_spill] sm:$0xff] %v10415_v63  ;;  %v10422_v19 = vpop.f32.mrf.mxu1  ;;  %v3684_v13 = vmul.f32 %v10158_v11, %v12100_v27  ;;  %v10439_v7 = vpop.permute.xlu2 %3647  ;;  %v4472_v29 = vld [vmem:[#allocation10 + $0xb0] sm:$0xff]  ;;  %v10453_v11 = vadd.f32 %v4357_v12, %v3685_v51 }
 0x513   : > { %12099 = vst [vmem:[#allocation62_spill] sm:$0xff] %v10422_v19  ;;  %v10424_v33 = vadd.f32 %v2879_v43, %v2767_v10  ;;  %v10441_v2 = vpop.permute.xlu1 %4581  ;;  %v4537_v10 = vld [vmem:[#allocation10 + $0x2b8] sm:$0xff]  ;;  %5338 = vmatpush.msrb.mxu0 %v4472_v29  ;;  %v4536_v51 = vld [vmem:[#allocation10 + $0x2b0] sm:$0xff] }
 0x514   : > { %4940 = vmatmul.f32.gmra.mxu0 %v10413_v31  ;;  %5053 = vmatmul.f32.gmra.mxu1 %v10420_v16  ;;  %v4749_v43 = vmul.f32 %v10435_v61, %v10441_v2  ;;  %v10448_v19 = vadd.f32 %v4356_v23, %v3684_v13  ;;  %v12104_v23 = vld [vmem:[#allocation64_spill] sm:$0xff]  ;;  %v10467_v34 = vpop.permute.xlu0 %4319 }
 0x515   : > { %5166 = vmatmul.f32.gmra.mxu2 %v10413_v31  ;;  %5677 = vmatpush.msrb.mxu3 %v4537_v10  ;;  %v3686_v13 = vmul.f32 %v10201_v36, %v12104_v23  ;;  %v4359_v10 = vmul.f32 %v10190_v9, %v4135_v49  ;;  %v4137_v49 = vld [vmem:[%s7957_s29 + $0x138] sm:$0xff] }
 0x516   : > { %5279 = vmatmul.f32.gmra.mxu3 %v10420_v16  ;;  %5451 = vmatpush.msrb.mxu1 %v4536_v51  ;;  %v3689_v51 = vmul.f32 %v10206_v3, %v10130_v41  ;;  %v4138_v41 = vld [vmem:[%s7957_s29 + $0x140] sm:$0xff] }
 0x517   : > { %v10476_v12 = vadd.f32 %v4358_v28, %v3686_v13 }
 0x518   : > { %v5119_v27 = vpop.f32.mrf.mxu2 }
 0x519   : > { %v5120_v63 = vadd.f32 %v5119_v27, %v4749_v43  ;;  %v5232_v16 = vpop.f32.mrf.mxu3  ;;  %v10450_v31 = vpop.f32.mrf.mxu0 }
 0x51a   : > { %12101 = vst [vmem:[#allocation63_spill] sm:$0xff] %v10450_v31  ;;  %v10455_v48 = vpop.f32.mrf.mxu1 }
 0x51b   : > { %12102 = vst [vmem:[#allocation77_spill] sm:$0xff] %v10455_v48  ;;  %v10457_v45 = vadd.f32 %v5232_v16, %v5120_v63  ;;  %v10469_v63 = vpop.permute.xlu2 %4586  ;;  %v3687_v16 = vmul.f32 %v10201_v36, %v10107_v55  ;;  %v4136_v48 = vld [vmem:[%s7957_s29 + $0x130] sm:$0xff]  ;;  %v12109_v36 = vld [vmem:[#allocation65_spill] sm:$0xff] }
 0x51c   : > { %4943 = vmatmul.f32.gmra.mxu0 %v10448_v19  ;;  %5056 = vmatmul.f32.gmra.mxu1 %v10453_v11  ;;  %v4753_v29 = vmul.f32 %v10435_v61, %v10469_v63  ;;  %v3688_v9 = vmul.f32 %v10206_v3, %v12109_v36  ;;  %v4360_v28 = vmul.f32 %v10233_v37, %v4136_v48  ;;  %v10495_v13 = vpop.permute.xlu0 %4591 }
 0x51d   : > { %12103 = vst [vmem:[#allocation78_spill] sm:$0xff] %v10457_v45  ;;  %5169 = vmatmul.f32.gmra.mxu2 %v10448_v19  ;;  %v10481_v45 = vadd.f32 %v4359_v10, %v3687_v16  ;;  %v4469_v16 = vld [vmem:[#allocation10 + $0x98] sm:$0xff]  ;;  %v4361_v48 = vmul.f32 %v10233_v37, %v4137_v49  ;;  %v4139_v37 = vld [vmem:[%s7957_s29 + $0x148] sm:$0xff] }
 0x51e   : > { %5282 = vmatmul.f32.gmra.mxu3 %v10453_v11  ;;  %v4533_v10 = vld [vmem:[#allocation10 + $0x298] sm:$0xff]  ;;  %5565 = vmatpush.msrb.mxu2 %v4469_v16  ;;  %v12113_v49 = vld [vmem:[#allocation66_spill] sm:$0xff]  ;;  %v10521_v16 = vpop.permute.xlu1 %4596 }
 0x51f   : > { %12106 = vst [vmem:[#allocation79_spill] sm:$0xff] %v10481_v45  ;;  %5678 = vmatpush.msrb.mxu3 %v4533_v10  ;;  %v10507_v3 = vadd.f32 %v4361_v48, %v3689_v51  ;;  %v4532_v51 = vld [vmem:[#allocation10 + $0x290] sm:$0xff]  ;;  %v4363_v10 = vmul.f32 %v10238_v40, %v4139_v37 }
 0x520   : > { %v5122_v43 = vpop.f32.mrf.mxu2  ;;  %5452 = vmatpush.msrb.mxu1 %v4532_v51  ;;  %v4465_v51 = vld [vmem:[#allocation10 + $0x78] sm:$0xff] }
 0x521   : > { %v5123_v27 = vadd.f32 %v5122_v43, %v4753_v29  ;;  %v5235_v53 = vpop.f32.mrf.mxu3  ;;  %v10478_v23 = vpop.f32.mrf.mxu0  ;;  %v4468_v29 = vld [vmem:[#allocation10 + $0x90] sm:$0xff]  ;;  %v4757_v43 = vmul.f32 %v10435_v61, %v10495_v13  ;;  %5566 = vmatpush.msrb.mxu2 %v4465_v51 }
 0x522   : > { %12105 = vst [vmem:[#allocation64_spill] sm:$0xff] %v10478_v23  ;;  %v10483_v31 = vpop.f32.mrf.mxu1  ;;  %5339 = vmatpush.msrb.mxu0 %v4468_v29  ;;  %v4761_v29 = vmul.f32 %v10435_v61, %v10521_v16 }
 0x523   : > { %12107 = vst [vmem:[#allocation80_spill] sm:$0xff] %v10483_v31  ;;  %v10485_v55 = vadd.f32 %v5235_v53, %v5123_v27  ;;  %v10502_v53 = vadd.f32 %v4360_v28, %v3688_v9  ;;  %v4362_v9 = vmul.f32 %v10238_v40, %v4138_v41  ;;  %v3690_v28 = vmul.f32 %v10215_v47, %v12113_v49  ;;  %v4140_v49 = vld [vmem:[%s7957_s29 + $0x150] sm:$0xff] }
 0x524   : > { %4946 = vmatmul.f32.gmra.mxu0 %v10476_v12  ;;  %5059 = vmatmul.f32.gmra.mxu1 %v10481_v45  ;;  %v12117_v40 = vld [vmem:[#allocation67_spill] sm:$0xff]  ;;  %v10573_v51 = vpop.permute.xlu0 %4606 }
 0x525   : > { %12108 = vst [vmem:[#allocation81_spill] sm:$0xff] %v10485_v55  ;;  %5172 = vmatmul.f32.gmra.mxu2 %v10476_v12  ;;  %v10528_v48 = vadd.f32 %v4362_v9, %v3690_v28  ;;  %v3692_v37 = vmul.f32 %v10258_v58, %v12117_v40  ;;  %v10547_v9 = vpop.permute.xlu2 %4601  ;;  %v3693_v28 = vmul.f32 %v10258_v58, %v10178_v38  ;;  %v4142_v38 = vld [vmem:[%s7957_s29 + $0x160] sm:$0xff] }
 0x526   : > { %5285 = vmatmul.f32.gmra.mxu3 %v10481_v45 }
 0x528   : > { %v5125_v27 = vpop.f32.mrf.mxu2 }
 0x529   : > { %v5126_v36 = vadd.f32 %v5125_v27, %v4757_v43  ;;  %v5238_v31 = vpop.f32.mrf.mxu3  ;;  %v10504_v55 = vpop.f32.mrf.mxu0 }
 0x52a   : > { %12110 = vst [vmem:[#allocation65_spill] sm:$0xff] %v10504_v55  ;;  %v10509_v23 = vpop.f32.mrf.mxu1 }
 0x52b   : > { %12111 = vst [vmem:[#allocation82_spill] sm:$0xff] %v10509_v23  ;;  %v10511_v45 = vadd.f32 %v5238_v31, %v5126_v36  ;;  %v3691_v31 = vmul.f32 %v10215_v47, %v10155_v50  ;;  %v4141_v50 = vld [vmem:[%s7957_s29 + $0x158] sm:$0xff]  ;;  %v4364_v47 = vmul.f32 %v10242_v1, %v4140_v49 }
 0x52c   : > { %4949 = vmatmul.f32.gmra.mxu0 %v10502_v53  ;;  %5062 = vmatmul.f32.gmra.mxu1 %v10507_v3 }
 0x52d   : > { %12112 = vst [vmem:[#allocation83_spill] sm:$0xff] %v10511_v45  ;;  %5175 = vmatmul.f32.gmra.mxu2 %v10502_v53  ;;  %v10533_v23 = vadd.f32 %v4363_v10, %v3691_v31  ;;  %v4464_v31 = vld [vmem:[#allocation10 + $0x70] sm:$0xff]  ;;  %v4765_v10 = vmul.f32 %v10435_v61, %v10547_v9 }
 0x52e   : > { %5288 = vmatmul.f32.gmra.mxu3 %v10507_v3  ;;  %5340 = vmatpush.msrb.mxu0 %v4464_v31  ;;  %v3695_v31 = vmul.f32 %v10263_v5, %v10203_v22  ;;  %v4145_v22 = vld [vmem:[%s7957_s29 + $0x178] sm:$0xff] }
 0x530   : > { %v5128_v43 = vpop.f32.mrf.mxu2 }
 0x531   : > { %v5129_v27 = vadd.f32 %v5128_v43, %v4761_v29  ;;  %v5241_v36 = vpop.f32.mrf.mxu3  ;;  %v10530_v41 = vpop.f32.mrf.mxu0  ;;  %v4529_v29 = vld [vmem:[#allocation10 + $0x278] sm:$0xff]  ;;  %v4365_v43 = vmul.f32 %v10242_v1, %v4141_v50  ;;  %v12121_v1 = vld [vmem:[#allocation27_spill] sm:$0xff] }
 0x532   : > { %12114 = vst [vmem:[#allocation66_spill] sm:$0xff] %v10530_v41  ;;  %v10535_v45 = vpop.f32.mrf.mxu1  ;;  %5679 = vmatpush.msrb.mxu3 %v4529_v29  ;;  %v3694_v50 = vmul.f32 %v10263_v5, %v12121_v1  ;;  %v4769_v29 = vmul.f32 %v10435_v61, %v10573_v51  ;;  %v4144_v1 = vld [vmem:[%s7957_s29 + $0x170] sm:$0xff] }
 0x533   : > { %12115 = vst [vmem:[#allocation84_spill] sm:$0xff] %v10535_v45  ;;  %v10537_v55 = vadd.f32 %v5241_v36, %v5129_v27  ;;  %v10554_v36 = vadd.f32 %v4364_v47, %v3692_v37  ;;  %v10559_v58 = vadd.f32 %v4365_v43, %v3693_v28  ;;  %v4143_v47 = vld [vmem:[%s7957_s29 + $0x168] sm:$0xff]  ;;  %v4366_v37 = vmul.f32 %v10288_v60, %v4142_v38  ;;  %v4528_v28 = vld [vmem:[#allocation10 + $0x270] sm:$0xff] }
 0x534   : > { %4952 = vmatmul.f32.gmra.mxu0 %v10528_v48  ;;  %5065 = vmatmul.f32.gmra.mxu1 %v10533_v23  ;;  %v4368_v5 = vmul.f32 %v10290_v26, %v4144_v1 }
 0x535   : > { %12116 = vst [vmem:[#allocation85_spill] sm:$0xff] %v10537_v55  ;;  %5178 = vmatmul.f32.gmra.mxu2 %v10528_v48  ;;  %5453 = vmatpush.msrb.mxu1 %v4528_v28  ;;  %v4461_v28 = vld [vmem:[#allocation10 + $0x58] sm:$0xff] }
 0x536   : > { %5291 = vmatmul.f32.gmra.mxu3 %v10533_v23  ;;  %5567 = vmatpush.msrb.mxu2 %v4461_v28  ;;  %v10619_v28 = vperm.slane %v10418_v42, 0  ;;  %v3699_v42 = vmul.f32 %v10313_v39, %v10251_v17 }
 0x538   : > { %v5131_v27 = vpop.f32.mrf.mxu2 }
 0x539   : > { %v5132_v49 = vadd.f32 %v5131_v27, %v4765_v10  ;;  %v5244_v40 = vpop.f32.mrf.mxu3  ;;  %v10556_v45 = vpop.f32.mrf.mxu0  ;;  %v4367_v10 = vmul.f32 %v10288_v60, %v4143_v47  ;;  %v10580_v27 = vadd.f32 %v4366_v37, %v3694_v50  ;;  %v12125_v60 = vld [vmem:[#allocation30_spill] sm:$0xff]  ;;  %v3697_v37 = vmul.f32 %v10267_v56, %v10226_v62 }
 0x53a   : > { %12118 = vst [vmem:[#allocation67_spill] sm:$0xff] %v10556_v45  ;;  %v10561_v55 = vpop.f32.mrf.mxu1  ;;  %v3696_v50 = vmul.f32 %v10267_v56, %v12125_v60  ;;  %v10599_v47 = vpop.permute.xlu1 %4611  ;;  %v4146_v62 = vld [vmem:[%s7957_s29 + $0x180] sm:$0xff] }
 0x53b   : > { %12119 = vst [vmem:[#allocation86_spill] sm:$0xff] %v10561_v55  ;;  %v10563_v41 = vadd.f32 %v5244_v40, %v5132_v49  ;;  %v10585_v55 = vadd.f32 %v4367_v10, %v3695_v31  ;;  %v4460_v31 = vld [vmem:[#allocation10 + $0x50] sm:$0xff]  ;;  %v4773_v10 = vmul.f32 %v10435_v61, %v10599_v47 }
 0x53c   : > { %4955 = vmatmul.f32.gmra.mxu0 %v10554_v36  ;;  %5068 = vmatmul.f32.gmra.mxu1 %v10559_v58 }
 0x53d   : > { %12120 = vst [vmem:[#allocation87_spill] sm:$0xff] %v10563_v41  ;;  %5181 = vmatmul.f32.gmra.mxu2 %v10554_v36  ;;  %5341 = vmatpush.msrb.mxu0 %v4460_v31  ;;  %v10628_v31 = vpop.permute.xlu2 %4616 }
 0x53e   : > { %5294 = vmatmul.f32.gmra.mxu3 %v10559_v58 }
 0x540   : > { %v5134_v43 = vpop.f32.mrf.mxu2 }
 0x541   : > { %v5135_v49 = vadd.f32 %v5134_v43, %v4769_v29  ;;  %v5247_v40 = vpop.f32.mrf.mxu3  ;;  %v10582_v38 = vpop.f32.mrf.mxu0  ;;  %v4525_v29 = vld [vmem:[#allocation10 + $0x258] sm:$0xff]  ;;  %v4369_v43 = vmul.f32 %v10290_v26, %v4145_v22  ;;  %v4147_v26 = vld [vmem:[%s7957_s29 + $0x188] sm:$0xff]  ;;  %v4370_v22 = vmul.f32 %v10295_v32, %v4146_v62 }
 0x542   : > { %12122 = vst [vmem:[#allocation27_spill] sm:$0xff] %v10582_v38  ;;  %v10587_v41 = vpop.f32.mrf.mxu1  ;;  %5680 = vmatpush.msrb.mxu3 %v4525_v29  ;;  %v10632_v29 = vpop.permute.xlu0 %4621 }
 0x543   : > { %12123 = vst [vmem:[#allocation88_spill] sm:$0xff] %v10587_v41  ;;  %v10589_v45 = vadd.f32 %v5247_v40, %v5135_v49  ;;  %v10606_v40 = vadd.f32 %v4368_v5, %v3696_v50  ;;  %v10611_v56 = vadd.f32 %v4369_v43, %v3697_v37  ;;  %v12129_v5 = vld [vmem:[#allocation29_spill] sm:$0xff]  ;;  %v4524_v37 = vld [vmem:[#allocation10 + $0x250] sm:$0xff]  ;;  %v4371_v43 = vmul.f32 %v10295_v32, %v4147_v26 }
 0x544   : > { %4958 = vmatmul.f32.gmra.mxu0 %v10580_v27  ;;  %5071 = vmatmul.f32.gmra.mxu1 %v10585_v55  ;;  %v3698_v50 = vmul.f32 %v10313_v39, %v12129_v5  ;;  %12130 = vst [vmem:[#allocation29_spill] sm:$0xff] %v10628_v31  ;;  %v12135_v26 = vld [vmem:[#allocation37_spill] sm:$0xff] }
 0x545   : > { %12124 = vst [vmem:[#allocation89_spill] sm:$0xff] %v10589_v45  ;;  %5184 = vmatmul.f32.gmra.mxu2 %v10580_v27  ;;  %5454 = vmatpush.msrb.mxu1 %v4524_v37  ;;  %v10642_v17 = vadd.f32 %v4371_v43, %v3699_v42  ;;  %v4457_v42 = vld [vmem:[#allocation10 + $0x38] sm:$0xff]  ;;  %v4456_v43 = vld [vmem:[#allocation10 + $0x30] sm:$0xff] }
 0x546   : > { %5297 = vmatmul.f32.gmra.mxu3 %v10585_v55  ;;  %5568 = vmatpush.msrb.mxu2 %v4457_v42 }
 0x547   : > { %12132 = vst [vmem:[#allocation93_spill] sm:$0xff] %v10642_v17  ;;  %5342 = vmatpush.msrb.mxu0 %v4456_v43 }
 0x548   : > { %v5137_v49 = vpop.f32.mrf.mxu2 }
 0x549   : > { %v5138_v1 = vadd.f32 %v5137_v49, %v4773_v10  ;;  %v5250_v60 = vpop.f32.mrf.mxu3  ;;  %v10608_v41 = vpop.f32.mrf.mxu0  ;;  %v4777_v10 = vmul.f32 %v10435_v61, %v10628_v31 }
 0x54a   : > { %12126 = vst [vmem:[#allocation30_spill] sm:$0xff] %v10608_v41  ;;  %v10613_v45 = vpop.f32.mrf.mxu1 }
 0x54b   : > { %12127 = vst [vmem:[#allocation90_spill] sm:$0xff] %v10613_v45  ;;  %v10615_v38 = vadd.f32 %v5250_v60, %v5138_v1  ;;  %v4780_v1 = vmul.f32 %v10619_v28, %v10632_v29  ;;  %v10639_v60 = vadd.f32 %v4370_v22, %v3698_v50  ;;  %v3700_v22 = vmul.f32 %v10315_v35, %v12135_v26  ;;  %v4149_v50 = vld [vmem:[%s7957_s29 + $0x198] sm:$0xff] }
 0x54c   : > { %4961 = vmatmul.f32.gmra.mxu0 %v10606_v40  ;;  %5074 = vmatmul.f32.gmra.mxu1 %v10611_v56 }
 0x54d   : > { %12128 = vst [vmem:[#allocation91_spill] sm:$0xff] %v10615_v38  ;;  %5187 = vmatmul.f32.gmra.mxu2 %v10606_v40  ;;  %v4148_v38 = vld [vmem:[%s7957_s29 + $0x190] sm:$0xff] }
 0x54e   : > { %5300 = vmatmul.f32.gmra.mxu3 %v10611_v56  ;;  %12131 = vst [vmem:[#allocation92_spill] sm:$0xff] %v10639_v60 }
 0x550   : > { %v5140_v49 = vpop.f32.mrf.mxu2 }
 0x551   : > { %v5141_v62 = vadd.f32 %v5140_v49, %v4777_v10  ;;  %v5253_v5 = vpop.f32.mrf.mxu3  ;;  %v4917_v45 = vpop.f32.mrf.mxu0  ;;  %v4372_v10 = vmul.f32 %v10341_v25, %v4148_v38  ;;  %v4521_v49 = vld [vmem:[#allocation10 + $0x238] sm:$0xff]  ;;  %v4373_v38 = vmul.f32 %v10341_v25, %v4149_v50  ;;  %v4151_v50 = vld [vmem:[%s7957_s29 + $0x1a8] sm:$0xff] }
 0x552   : > { %v4918_v39 = vadd.f32 %v4917_v45, %v4780_v1  ;;  %v5030_v37 = vpop.f32.mrf.mxu1  ;;  %v3701_v45 = vmul.f32 %v10315_v35, %v10276_v54  ;;  %v10658_v1 = vpop.permute.xlu1 %4626  ;;  %5681 = vmatpush.msrb.mxu3 %v4521_v49  ;;  %v3703_v49 = vmul.f32 %v10320_v21, %v10301_v8 }
 0x553   : > { %v10644_v41 = vadd.f32 %v5253_v5, %v5141_v62  ;;  %v4781_v62 = vmul.f32 %v10435_v61, %v10632_v29  ;;  %v10665_v54 = vadd.f32 %v4372_v10, %v3700_v22  ;;  %v12138_v10 = vld [vmem:[#allocation28_spill] sm:$0xff] }
 0x554   : > { %4964 = vmatmul.f32.gmra.mxu0 %v10639_v60  ;;  %v10647_v32 = vadd.f32 %v5030_v37, %v4918_v39  ;;  %5077 = vmatmul.f32.gmra.mxu1 %v10642_v17  ;;  %v4784_v39 = vmul.f32 %v10619_v28, %v10658_v1  ;;  %v3702_v43 = vmul.f32 %v10320_v21, %v12138_v10 }
 0x555   : > { %12133 = vst [vmem:[#allocation94_spill] sm:$0xff] %v10644_v41  ;;  %5190 = vmatmul.f32.gmra.mxu2 %v10639_v60  ;;  %v10668_v41 = vadd.f32 %v4373_v38, %v3701_v45  ;;  %v4520_v45 = vld [vmem:[#allocation10 + $0x230] sm:$0xff] }
 0x556   : > { %12134 = vst [vmem:[#allocation95_spill] sm:$0xff] %v10647_v32  ;;  %5303 = vmatmul.f32.gmra.mxu3 %v10642_v17  ;;  %v4150_v32 = vld [vmem:[%s7957_s29 + $0x1a0] sm:$0xff]  ;;  %5455 = vmatpush.msrb.mxu1 %v4520_v45 }
 0x557   : > { %v4374_v22 = vmul.f32 %v10350_v0, %v4150_v32  ;;  %v4375_v32 = vmul.f32 %v10350_v0, %v4151_v50  ;;  %v4153_v0 = vld [vmem:[%s7957_s29 + $0x1b8] sm:$0xff] }
 0x558   : > { %v5143_v5 = vpop.f32.mrf.mxu2 }
 0x559   : > { %v5144_v35 = vadd.f32 %v5143_v5, %v4781_v62  ;;  %v5256_v37 = vpop.f32.mrf.mxu3  ;;  %v4920_v26 = vpop.f32.mrf.mxu0  ;;  %v10691_v5 = vadd.f32 %v4374_v22, %v3702_v43  ;;  %v10694_v8 = vadd.f32 %v4375_v32, %v3703_v49  ;;  %v12141_v22 = vld [vmem:[#allocation33_spill] sm:$0xff]  ;;  %v3705_v49 = vmul.f32 %v10366_v18, %v10326_v57  ;;  %v4452_v32 = vld [vmem:[#allocation10 + $0x10] sm:$0xff] }
 0x55a   : > { %v4921_v17 = vadd.f32 %v4920_v26, %v4784_v39  ;;  %v5033_v60 = vpop.f32.mrf.mxu1  ;;  %v4152_v26 = vld [vmem:[%s7957_s29 + $0x1b0] sm:$0xff]  ;;  %v3704_v43 = vmul.f32 %v10366_v18, %v12141_v22  ;;  %5343 = vmatpush.msrb.mxu0 %v4452_v32  ;;  %v4154_v22 = vld [vmem:[%s7957_s29 + $0x1c0] sm:$0xff] }
 0x55b   : > { %v10670_v42 = vadd.f32 %v5256_v37, %v5144_v35  ;;  %v4376_v50 = vmul.f32 %v10352_v14, %v4152_v26  ;;  %v4378_v32 = vmul.f32 %v10397_v46, %v4154_v22  ;;  %v4156_v22 = vld [vmem:[%s7957_s29 + $0x1d0] sm:$0xff] }
 0x55c   : > { %4967 = vmatmul.f32.gmra.mxu0 %v10665_v54  ;;  %v10673_v25 = vadd.f32 %v5033_v60, %v4921_v17  ;;  %5080 = vmatmul.f32.gmra.mxu1 %v10668_v41  ;;  %v10684_v60 = vpop.permute.xlu2 %4631  ;;  %v4785_v17 = vmul.f32 %v10435_v61, %v10658_v1 }
 0x55d   : > { %12136 = vst [vmem:[#allocation37_spill] sm:$0xff] %v10670_v42  ;;  %5193 = vmatmul.f32.gmra.mxu2 %v10665_v54  ;;  %v4788_v38 = vmul.f32 %v10619_v28, %v10684_v60  ;;  %v10717_v57 = vadd.f32 %v4376_v50, %v3704_v43  ;;  %v4155_v43 = vld [vmem:[%s7957_s29 + $0x1c8] sm:$0xff] }
 0x55e   : > { %12137 = vst [vmem:[#allocation96_spill] sm:$0xff] %v10673_v25  ;;  %5306 = vmatmul.f32.gmra.mxu3 %v10668_v41 }
 0x560   : > { %v5146_v62 = vpop.f32.mrf.mxu2 }
 0x561   : > { %v5147_v39 = vadd.f32 %v5146_v62, %v4785_v17  ;;  %v5259_v35 = vpop.f32.mrf.mxu3  ;;  %v4923_v37 = vpop.f32.mrf.mxu0  ;;  %v4453_v17 = vld [vmem:[#allocation10 + $0x18] sm:$0xff] }
 0x562   : > { %v4924_v21 = vadd.f32 %v4923_v37, %v4788_v38  ;;  %v5036_v10 = vpop.f32.mrf.mxu1  ;;  %v4517_v62 = vld [vmem:[#allocation10 + $0x218] sm:$0xff]  ;;  %v10710_v38 = vpop.permute.xlu0 %4636  ;;  %5569 = vmatpush.msrb.mxu2 %v4453_v17 }
 0x563   : > { %v10696_v45 = vadd.f32 %v5259_v35, %v5147_v39  ;;  %v4789_v39 = vmul.f32 %v10435_v61, %v10684_v60  ;;  %v4377_v35 = vmul.f32 %v10352_v14, %v4153_v0  ;;  %v4792_v26 = vmul.f32 %v10619_v28, %v10710_v38  ;;  %5682 = vmatpush.msrb.mxu3 %v4517_v62  ;;  %v12144_v0 = vld [vmem:[#allocation32_spill] sm:$0xff] }
 0x564   : > { %4970 = vmatmul.f32.gmra.mxu0 %v10691_v5  ;;  %v10699_v25 = vadd.f32 %v5036_v10, %v4924_v21  ;;  %5083 = vmatmul.f32.gmra.mxu1 %v10694_v8  ;;  %v3706_v50 = vmul.f32 %v10374_v4, %v12144_v0  ;;  %v3707_v62 = vmul.f32 %v10374_v4, %v10347_v52 }
 0x565   : > { %12139 = vst [vmem:[#allocation28_spill] sm:$0xff] %v10696_v45  ;;  %5196 = vmatmul.f32.gmra.mxu2 %v10691_v5 }
 0x566   : > { %12140 = vst [vmem:[#allocation97_spill] sm:$0xff] %v10699_v25  ;;  %5309 = vmatmul.f32.gmra.mxu3 %v10694_v8  ;;  %v10720_v25 = vadd.f32 %v4377_v35, %v3705_v49  ;;  %v4516_v49 = vld [vmem:[#allocation10 + $0x210] sm:$0xff] }
 0x567   : > { %5456 = vmatpush.msrb.mxu1 %v4516_v49 }
 0x568   : > { %v5149_v37 = vpop.f32.mrf.mxu2 }
 0x569   : > { %v5150_v18 = vadd.f32 %v5149_v37, %v4789_v39  ;;  %v5262_v21 = vpop.f32.mrf.mxu3  ;;  %v4926_v10 = vpop.f32.mrf.mxu0  ;;  %v4379_v39 = vmul.f32 %v10397_v46, %v4155_v43  ;;  %v4157_v46 = vld [vmem:[%s7957_s29 + $0x1d8] sm:$0xff]  ;;  %v12147_v43 = vld [vmem:[#allocation38_spill] sm:$0xff] }
 0x56a   : > { %v4927_v45 = vadd.f32 %v4926_v10, %v4792_v26  ;;  %v5039_v42 = vpop.f32.mrf.mxu1  ;;  %v10743_v26 = vadd.f32 %v4378_v32, %v3706_v50  ;;  %v4380_v50 = vmul.f32 %v10406_v44, %v4156_v22  ;;  %v3708_v32 = vmul.f32 %v10376_v24, %v12147_v43  ;;  %v4158_v43 = vld [vmem:[%s7957_s29 + $0x1e0] sm:$0xff] }
 0x56b   : > { %v10722_v17 = vadd.f32 %v5262_v21, %v5150_v18  ;;  %v10746_v52 = vadd.f32 %v4379_v39, %v3707_v62  ;;  %v3709_v62 = vmul.f32 %v10376_v24, %v10371_v59  ;;  %v6061_v39 = vld [vmem:[#allocation14 + $0x78] sm:$0xff] }
 0x56c   : > { %4973 = vmatmul.f32.gmra.mxu0 %v10717_v57  ;;  %v10725_v14 = vadd.f32 %v5039_v42, %v4927_v45  ;;  %5086 = vmatmul.f32.gmra.mxu1 %v10720_v25  ;;  %v10736_v42 = vpop.permute.xlu1 %4641  ;;  %v4793_v45 = vmul.f32 %v10435_v61, %v10710_v38  ;;  %v10769_v59 = vadd.f32 %v4380_v50, %v3708_v32  ;;  %v12150_v32 = vld [vmem:[#allocation31_spill] sm:$0xff] }
 0x56d   : > { %12142 = vst [vmem:[#allocation33_spill] sm:$0xff] %v10722_v17  ;;  %5199 = vmatmul.f32.gmra.mxu2 %v10717_v57  ;;  %v4796_v37 = vmul.f32 %v10619_v28, %v10736_v42  ;;  %6114 = vmatpush.msra.mxu0 %v6061_v39  ;;  %v4382_v50 = vmul.f32 %v10408_v6, %v4158_v43  ;;  %v4160_v43 = vld [vmem:[%s7957_s29 + $0x1f0] sm:$0xff] }
 0x56e   : > { %12143 = vst [vmem:[#allocation98_spill] sm:$0xff] %v10725_v14  ;;  %5312 = vmatmul.f32.gmra.mxu3 %v10720_v25  ;;  %v3710_v39 = vmul.f32 %v10427_v15, %v12150_v32 }
 0x570   : > { %v5152_v35 = vpop.f32.mrf.mxu2 }
 0x571   : > { %v5153_v18 = vadd.f32 %v5152_v35, %v4793_v45  ;;  %v5265_v21 = vpop.f32.mrf.mxu3  ;;  %v4929_v10 = vpop.f32.mrf.mxu0  ;;  %v6093_v45 = vld [vmem:[#allocation14 + $0x178] sm:$0xff] }
 0x572   : > { %v4930_v4 = vadd.f32 %v4929_v10, %v4796_v37  ;;  %v5042_v0 = vpop.f32.mrf.mxu1  ;;  %v6109_v35 = vld [vmem:[#allocation14 + $0x1f8] sm:$0xff]  ;;  %v10762_v37 = vpop.permute.xlu2 %4646  ;;  %6340 = vmatpush.msra.mxu2 %v6093_v45 }
 0x573   : > { %v10748_v49 = vadd.f32 %v5265_v21, %v5153_v18  ;;  %v4797_v18 = vmul.f32 %v10435_v61, %v10736_v42  ;;  %v4381_v21 = vmul.f32 %v10406_v44, %v4157_v46  ;;  %v4800_v22 = vmul.f32 %v10619_v28, %v10762_v37  ;;  %6453 = vmatpush.msra.mxu3 %v6109_v35  ;;  %v4159_v46 = vld [vmem:[%s7957_s29 + $0x1e8] sm:$0xff] }
 0x574   : > { %4976 = vmatmul.f32.gmra.mxu0 %v10743_v26  ;;  %v10751_v14 = vadd.f32 %v5042_v0, %v4930_v4  ;;  %5089 = vmatmul.f32.gmra.mxu1 %v10746_v52  ;;  %v3711_v35 = vmul.f32 %v10427_v15, %v10394_v20 }
 0x575   : > { %12145 = vst [vmem:[#allocation32_spill] sm:$0xff] %v10748_v49  ;;  %5202 = vmatmul.f32.gmra.mxu2 %v10743_v26 }
 0x576   : > { %12146 = vst [vmem:[#allocation99_spill] sm:$0xff] %v10751_v14  ;;  %5315 = vmatmul.f32.gmra.mxu3 %v10746_v52  ;;  %v10772_v14 = vadd.f32 %v4381_v21, %v3709_v62  ;;  %v6077_v62 = vld [vmem:[#allocation14 + $0xf8] sm:$0xff] }
 0x577   : > { %6227 = vmatpush.msra.mxu1 %v6077_v62 }
 0x578   : > { %v5155_v10 = vpop.f32.mrf.mxu2 }
 0x579   : > { %v5156_v24 = vadd.f32 %v5155_v10, %v4797_v18  ;;  %v5268_v4 = vpop.f32.mrf.mxu3  ;;  %v4932_v0 = vpop.f32.mrf.mxu0  ;;  %v4383_v18 = vmul.f32 %v10408_v6, %v4159_v46  ;;  %v12153_v46 = vld [vmem:[#allocation36_spill] sm:$0xff] }
 0x57a   : > { %v4933_v49 = vadd.f32 %v4932_v0, %v4800_v22  ;;  %v5045_v17 = vpop.f32.mrf.mxu1  ;;  %v10795_v22 = vadd.f32 %v4382_v50, %v3710_v39  ;;  %v3712_v50 = vmul.f32 %v10439_v7, %v12153_v46  ;;  %v4161_v39 = vld [vmem:[%s7957_s29 + $0x1f8] sm:$0xff] }
 0x57b   : > { %v10774_v45 = vadd.f32 %v5268_v4, %v5156_v24  ;;  %v10798_v20 = vadd.f32 %v4383_v18, %v3711_v35  ;;  %v3713_v35 = vmul.f32 %v10439_v7, %v10424_v33  ;;  %v6092_v18 = vld [vmem:[#allocation14 + $0x170] sm:$0xff] }
 0x57c   : > { %4979 = vmatmul.f32.gmra.mxu0 %v10769_v59  ;;  %v10777_v44 = vadd.f32 %v5045_v17, %v4933_v49  ;;  %5092 = vmatmul.f32.gmra.mxu1 %v10772_v14  ;;  %v10788_v17 = vpop.permute.xlu0 %4651  ;;  %v4801_v49 = vmul.f32 %v10435_v61, %v10762_v37 }
 0x57d   : > { %12148 = vst [vmem:[#allocation38_spill] sm:$0xff] %v10774_v45  ;;  %5205 = vmatmul.f32.gmra.mxu2 %v10769_v59  ;;  %v4804_v10 = vmul.f32 %v10619_v28, %v10788_v17 }
 0x57e   : > { %12149 = vst [vmem:[#allocation100_spill] sm:$0xff] %v10777_v44  ;;  %5318 = vmatmul.f32.gmra.mxu3 %v10772_v14  ;;  %6341 = vmatpush.msra.mxu2 %v6092_v18 }
 0x580   : > { %v5158_v21 = vpop.f32.mrf.mxu2 }
 0x581   : > { %v5159_v24 = vadd.f32 %v5158_v21, %v4801_v49  ;;  %v5271_v4 = vpop.f32.mrf.mxu3  ;;  %v4935_v0 = vpop.f32.mrf.mxu0  ;;  %v4384_v49 = vmul.f32 %v10467_v34, %v4160_v43  ;;  %v6060_v21 = vld [vmem:[#allocation14 + $0x70] sm:$0xff] }
 0x582   : > { %v4936_v15 = vadd.f32 %v4935_v0, %v4804_v10  ;;  %v5048_v32 = vpop.f32.mrf.mxu1  ;;  %v6108_v10 = vld [vmem:[#allocation14 + $0x1f0] sm:$0xff]  ;;  %6115 = vmatpush.msra.mxu0 %v6060_v21  ;;  %v4385_v0 = vmul.f32 %v10467_v34, %v4161_v39 }
 0x583   : > { %v10800_v62 = vadd.f32 %v5271_v4, %v5159_v24  ;;  %v10814_v24 = vpop.permute.xlu1 %4656  ;;  %v4805_v4 = vmul.f32 %v10435_v61, %v10788_v17  ;;  %6454 = vmatpush.msra.mxu3 %v6108_v10  ;;  %v6076_v34 = vld [vmem:[#allocation14 + $0xf0] sm:$0xff] }
 0x584   : > { %4982 = vmatmul.f32.gmra.mxu0 %v10795_v22  ;;  %v10803_v6 = vadd.f32 %v5048_v32, %v4936_v15  ;;  %5095 = vmatmul.f32.gmra.mxu1 %v10798_v20  ;;  %v4808_v15 = vmul.f32 %v10619_v28, %v10814_v24  ;;  %v10821_v32 = vadd.f32 %v4384_v49, %v3712_v50  ;;  %v10833_v50 = vpop.permute.xlu2 %4661 }
 0x585   : > { %12151 = vst [vmem:[#allocation31_spill] sm:$0xff] %v10800_v62  ;;  %5208 = vmatmul.f32.gmra.mxu2 %v10795_v22  ;;  %6228 = vmatpush.msra.mxu1 %v6076_v34  ;;  %v4809_v39 = vmul.f32 %v10435_v61, %v10814_v24  ;;  %v6107_v34 = vld [vmem:[#allocation14 + $0x1e8] sm:$0xff] }
 0x586   : > { %12152 = vst [vmem:[#allocation101_spill] sm:$0xff] %v10803_v6  ;;  %5321 = vmatmul.f32.gmra.mxu3 %v10798_v20  ;;  %v10823_v6 = vadd.f32 %v4385_v0, %v3713_v35  ;;  %v4812_v35 = vmul.f32 %v10619_v28, %v10833_v50 }
 0x587   : > { %6455 = vmatpush.msra.mxu3 %v6107_v34 }
 0x588   : > { %v5161_v43 = vpop.f32.mrf.mxu2 }
 0x589   : > { %v5162_v33 = vadd.f32 %v5161_v43, %v4805_v4  ;;  %v5274_v7 = vpop.f32.mrf.mxu3  ;;  %v4938_v46 = vpop.f32.mrf.mxu0  ;;  %v12157_v43 = vld [vmem:[#allocation40_spill] sm:$0xff] }
 0x58a   : > { %v4939_v62 = vadd.f32 %v4938_v46, %v4808_v15  ;;  %v5051_v44 = vpop.f32.mrf.mxu1  ;;  %v6059_v46 = vld [vmem:[#allocation14 + $0x68] sm:$0xff] }
 0x58b   : > { %v10825_v45 = vadd.f32 %v5274_v7, %v5162_v33  ;;  %v12159_v33 = vld [vmem:[#allocation43_spill] sm:$0xff]  ;;  %6116 = vmatpush.msra.mxu0 %v6059_v46  ;;  %v10861_v46 = vpop.permute.xlu1 %4671 }
 0x58c   : > { %4985 = vmatmul.f32.gmra.mxu0 %v10821_v32  ;;  %v10828_v18 = vadd.f32 %v5051_v44, %v4939_v62  ;;  %5098 = vmatmul.f32.gmra.mxu1 %v10823_v6  ;;  %v6091_v7 = vld [vmem:[#allocation14 + $0x168] sm:$0xff] }
 0x58d   : > { %12154 = vst [vmem:[#allocation36_spill] sm:$0xff] %v10825_v45  ;;  %5211 = vmatmul.f32.gmra.mxu2 %v10821_v32  ;;  %v12172_v45 = vld [vmem:[#allocation48_spill] sm:$0xff] }
 0x58e   : > { %12155 = vst [vmem:[#allocation102_spill] sm:$0xff] %v10828_v18  ;;  %5324 = vmatmul.f32.gmra.mxu3 %v10823_v6  ;;  %6342 = vmatpush.msra.mxu2 %v6091_v7  ;;  %v6075_v7 = vld [vmem:[#allocation14 + $0xe8] sm:$0xff]  ;;  %v6106_v18 = vld [vmem:[#allocation14 + $0x1e0] sm:$0xff] }
 0x58f   : > { %6229 = vmatpush.msra.mxu1 %v6075_v7  ;;  %v12167_v7 = vld [vmem:[#allocation46_spill] sm:$0xff]  ;;  %6456 = vmatpush.msra.mxu3 %v6106_v18 }
 0x590   : > { %v5164_v49 = vpop.f32.mrf.mxu2 }
 0x591   : > { %v5165_v21 = vadd.f32 %v5164_v49, %v4809_v39  ;;  %v5277_v44 = vpop.f32.mrf.mxu3  ;;  %v4941_v62 = vpop.f32.mrf.mxu0  ;;  %v4813_v49 = vmul.f32 %v10435_v61, %v10833_v50 }
 0x592   : > { %v4942_v10 = vadd.f32 %v4941_v62, %v4812_v35  ;;  %v5054_v4 = vpop.f32.mrf.mxu1  ;;  %v10847_v39 = vpop.permute.xlu0 %4666 }
 0x593   : > { %v10839_v0 = vadd.f32 %v5277_v44, %v5165_v21  ;;  %v4816_v21 = vmul.f32 %v10619_v28, %v10847_v39  ;;  %v4817_v34 = vmul.f32 %v10435_v61, %v10847_v39 }
 0x594   : > { %5344 = vmatmul.f32.vlgmr.msrb.gmra.mxu0 %v12157_v43  ;;  %v10842_v15 = vadd.f32 %v5054_v4, %v4942_v10  ;;  %5457 = vmatmul.f32.vlgmr.msrb.gmra.mxu1 %v12159_v33 }
 0x595   : > { %12156 = vst [vmem:[#allocation103_spill] sm:$0xff] %v10839_v0  ;;  %5570 = vmatmul.f32.vlgmr.msrb.gmra.mxu2 %v12157_v43  ;;  %v12162_v0 = vld [vmem:[#allocation44_spill] sm:$0xff] }
 0x596   : > { %12158 = vst [vmem:[#allocation40_spill] sm:$0xff] %v10842_v15  ;;  %5683 = vmatmul.f32.vlgmr.msrb.gmra.mxu3 %v12159_v33 }
 0x597   : > { %12163 = vst [vmem:[#allocation44_spill] sm:$0xff] %v10861_v46 }
 0x598   : > { %v5167_v35 = vpop.f32.mrf.mxu2 }
 0x599   : > { %v5168_v44 = vadd.f32 %v5167_v35, %v4813_v49  ;;  %v5280_v62 = vpop.f32.mrf.mxu3  ;;  %v4944_v10 = vpop.f32.mrf.mxu0  ;;  %v4820_v35 = vmul.f32 %v10619_v28, %v10861_v46 }
 0x59a   : > { %v4945_v4 = vadd.f32 %v4944_v10, %v4816_v21  ;;  %v5057_v43 = vpop.f32.mrf.mxu1  ;;  %v10889_v18 = vpop.permute.xlu0 %4681 }
 0x59b   : > { %v10853_v33 = vadd.f32 %v5280_v62, %v5168_v44  ;;  %12173 = vst [vmem:[#allocation48_spill] sm:$0xff] %v10889_v18 }
 0x59c   : > { %5347 = vmatmul.f32.gmra.mxu0 %v10050_v30  ;;  %v10856_v15 = vadd.f32 %v5057_v43, %v4945_v4  ;;  %5460 = vmatmul.f32.gmra.mxu1 %v12162_v0 }
 0x59d   : > { %12160 = vst [vmem:[#allocation43_spill] sm:$0xff] %v10853_v33  ;;  %5573 = vmatmul.f32.gmra.mxu2 %v10050_v30  ;;  %v12165_v30 = vld [vmem:[#allocation45_spill] sm:$0xff]  ;;  %v6058_v33 = vld [vmem:[#allocation14 + $0x60] sm:$0xff] }
 0x59e   : > { %12161 = vst [vmem:[#allocation104_spill] sm:$0xff] %v10856_v15  ;;  %5686 = vmatmul.f32.gmra.mxu3 %v12162_v0  ;;  %v6090_v15 = vld [vmem:[#allocation14 + $0x160] sm:$0xff]  ;;  %6117 = vmatpush.msra.mxu0 %v6058_v33 }
 0x59f   : > { %6343 = vmatpush.msra.mxu2 %v6090_v15  ;;  %v6074_v15 = vld [vmem:[#allocation14 + $0xe0] sm:$0xff] }
 0x5a0   : > { %v5170_v49 = vpop.f32.mrf.mxu2  ;;  %6230 = vmatpush.msra.mxu1 %v6074_v15  ;;  %v12177_v15 = vld [vmem:[#allocation50_spill] sm:$0xff] }
 0x5a1   : > { %v5171_v21 = vadd.f32 %v5170_v49, %v4817_v34  ;;  %v5283_v44 = vpop.f32.mrf.mxu3  ;;  %v4947_v62 = vpop.f32.mrf.mxu0  ;;  %v4821_v49 = vmul.f32 %v10435_v61, %v10861_v46  ;;  %v12182_v46 = vld [vmem:[#allocation52_spill] sm:$0xff] }
 0x5a2   : > { %v4948_v10 = vadd.f32 %v4947_v62, %v4820_v35  ;;  %v5060_v4 = vpop.f32.mrf.mxu1  ;;  %v10875_v34 = vpop.permute.xlu2 %4676 }
 0x5a3   : > { %v10867_v43 = vadd.f32 %v5283_v44, %v5171_v21  ;;  %12168 = vst [vmem:[#allocation46_spill] sm:$0xff] %v10875_v34  ;;  %v4824_v21 = vmul.f32 %v10619_v28, %v10875_v34  ;;  %v4825_v33 = vmul.f32 %v10435_v61, %v10875_v34  ;;  %v6105_v34 = vld [vmem:[#allocation14 + $0x1d8] sm:$0xff] }
 0x5a4   : > { %5350 = vmatmul.f32.gmra.mxu0 %v12165_v30  ;;  %v10870_v0 = vadd.f32 %v5060_v4, %v4948_v10  ;;  %5463 = vmatmul.f32.gmra.mxu1 %v12167_v7 }
 0x5a5   : > { %12164 = vst [vmem:[#allocation105_spill] sm:$0xff] %v10867_v43  ;;  %5576 = vmatmul.f32.gmra.mxu2 %v12165_v30  ;;  %6457 = vmatpush.msra.mxu3 %v6105_v34 }
 0x5a6   : > { %12166 = vst [vmem:[#allocation45_spill] sm:$0xff] %v10870_v0  ;;  %5689 = vmatmul.f32.gmra.mxu3 %v12167_v7  ;;  %v12170_v0 = vld [vmem:[#allocation47_spill] sm:$0xff] }
 0x5a8   : > { %v5173_v35 = vpop.f32.mrf.mxu2 }
 0x5a9   : > { %v5174_v44 = vadd.f32 %v5173_v35, %v4821_v49  ;;  %v5286_v62 = vpop.f32.mrf.mxu3  ;;  %v4950_v10 = vpop.f32.mrf.mxu0  ;;  %v4828_v35 = vmul.f32 %v10619_v28, %v10889_v18 }
 0x5aa   : > { %v4951_v4 = vadd.f32 %v4950_v10, %v4824_v21  ;;  %v5063_v30 = vpop.f32.mrf.mxu1  ;;  %v10917_v34 = vpop.permute.xlu2 %4691 }
 0x5ab   : > { %v10881_v7 = vadd.f32 %v5286_v62, %v5174_v44  ;;  %12183 = vst [vmem:[#allocation52_spill] sm:$0xff] %v10917_v34 }
 0x5ac   : > { %5353 = vmatmul.f32.gmra.mxu0 %v12170_v0  ;;  %v10884_v43 = vadd.f32 %v5063_v30, %v4951_v4  ;;  %5466 = vmatmul.f32.gmra.mxu1 %v12172_v45 }
 0x5ad   : > { %12169 = vst [vmem:[#allocation106_spill] sm:$0xff] %v10881_v7  ;;  %5579 = vmatmul.f32.gmra.mxu2 %v12170_v0  ;;  %v12175_v0 = vld [vmem:[#allocation49_spill] sm:$0xff] }
 0x5ae   : > { %12171 = vst [vmem:[#allocation47_spill] sm:$0xff] %v10884_v43  ;;  %5692 = vmatmul.f32.gmra.mxu3 %v12172_v45  ;;  %v6089_v43 = vld [vmem:[#allocation14 + $0x158] sm:$0xff] }
 0x5af   : > { %v6057_v7 = vld [vmem:[#allocation14 + $0x58] sm:$0xff]  ;;  %6344 = vmatpush.msra.mxu2 %v6089_v43 }
 0x5b0   : > { %v5176_v49 = vpop.f32.mrf.mxu2  ;;  %6118 = vmatpush.msra.mxu0 %v6057_v7  ;;  %v6073_v43 = vld [vmem:[#allocation14 + $0xd8] sm:$0xff] }
 0x5b1   : > { %v5177_v21 = vadd.f32 %v5176_v49, %v4825_v33  ;;  %v5289_v44 = vpop.f32.mrf.mxu3  ;;  %v4953_v62 = vpop.f32.mrf.mxu0  ;;  %v4829_v49 = vmul.f32 %v10435_v61, %v10889_v18  ;;  %6231 = vmatpush.msra.mxu1 %v6073_v43  ;;  %v12187_v43 = vld [vmem:[#allocation54_spill] sm:$0xff]  ;;  %v12192_v18 = vld [vmem:[#allocation68_spill] sm:$0xff] }
 0x5b2   : > { %v4954_v10 = vadd.f32 %v4953_v62, %v4828_v35  ;;  %v5066_v4 = vpop.f32.mrf.mxu1  ;;  %v10903_v33 = vpop.permute.xlu1 %4686 }
 0x5b3   : > { %v10895_v30 = vadd.f32 %v5289_v44, %v5177_v21  ;;  %12178 = vst [vmem:[#allocation50_spill] sm:$0xff] %v10903_v33  ;;  %v4832_v21 = vmul.f32 %v10619_v28, %v10903_v33  ;;  %v4833_v7 = vmul.f32 %v10435_v61, %v10903_v33  ;;  %v6104_v33 = vld [vmem:[#allocation14 + $0x1d0] sm:$0xff] }
 0x5b4   : > { %5356 = vmatmul.f32.gmra.mxu0 %v12175_v0  ;;  %v10898_v45 = vadd.f32 %v5066_v4, %v4954_v10  ;;  %5469 = vmatmul.f32.gmra.mxu1 %v12177_v15 }
 0x5b5   : > { %12174 = vst [vmem:[#allocation107_spill] sm:$0xff] %v10895_v30  ;;  %5582 = vmatmul.f32.gmra.mxu2 %v12175_v0  ;;  %6458 = vmatpush.msra.mxu3 %v6104_v33 }
 0x5b6   : > { %12176 = vst [vmem:[#allocation49_spill] sm:$0xff] %v10898_v45  ;;  %5695 = vmatmul.f32.gmra.mxu3 %v12177_v15  ;;  %v12180_v45 = vld [vmem:[#allocation51_spill] sm:$0xff] }
 0x5b8   : > { %v5179_v35 = vpop.f32.mrf.mxu2 }
 0x5b9   : > { %v5180_v44 = vadd.f32 %v5179_v35, %v4829_v49  ;;  %v5292_v62 = vpop.f32.mrf.mxu3  ;;  %v4956_v10 = vpop.f32.mrf.mxu0  ;;  %v4836_v35 = vmul.f32 %v10619_v28, %v10917_v34 }
 0x5ba   : > { %v4957_v4 = vadd.f32 %v4956_v10, %v4832_v21  ;;  %v5069_v0 = vpop.f32.mrf.mxu1  ;;  %v10945_v33 = vpop.permute.xlu1 %4701 }
 0x5bb   : > { %v10909_v15 = vadd.f32 %v5292_v62, %v5180_v44  ;;  %12193 = vst [vmem:[#allocation68_spill] sm:$0xff] %v10945_v33 }
 0x5bc   : > { %5359 = vmatmul.f32.gmra.mxu0 %v12180_v45  ;;  %v10912_v30 = vadd.f32 %v5069_v0, %v4957_v4  ;;  %5472 = vmatmul.f32.gmra.mxu1 %v12182_v46 }
 0x5bd   : > { %12179 = vst [vmem:[#allocation108_spill] sm:$0xff] %v10909_v15  ;;  %5585 = vmatmul.f32.gmra.mxu2 %v12180_v45  ;;  %v12185_v45 = vld [vmem:[#allocation53_spill] sm:$0xff] }
 0x5be   : > { %12181 = vst [vmem:[#allocation51_spill] sm:$0xff] %v10912_v30  ;;  %5698 = vmatmul.f32.gmra.mxu3 %v12182_v46  ;;  %v6088_v30 = vld [vmem:[#allocation14 + $0x150] sm:$0xff] }
 0x5bf   : > { %v6056_v15 = vld [vmem:[#allocation14 + $0x50] sm:$0xff]  ;;  %6345 = vmatpush.msra.mxu2 %v6088_v30 }
 0x5c0   : > { %v5182_v49 = vpop.f32.mrf.mxu2  ;;  %6119 = vmatpush.msra.mxu0 %v6056_v15  ;;  %v6072_v30 = vld [vmem:[#allocation14 + $0xd0] sm:$0xff] }
 0x5c1   : > { %v5183_v21 = vadd.f32 %v5182_v49, %v4833_v7  ;;  %v5295_v44 = vpop.f32.mrf.mxu3  ;;  %v4959_v62 = vpop.f32.mrf.mxu0  ;;  %v4837_v49 = vmul.f32 %v10435_v61, %v10917_v34  ;;  %6232 = vmatpush.msra.mxu1 %v6072_v30  ;;  %v12197_v30 = vld [vmem:[#allocation69_spill] sm:$0xff]  ;;  %v12202_v34 = vld [vmem:[#allocation71_spill] sm:$0xff] }
 0x5c2   : > { %v4960_v10 = vadd.f32 %v4959_v62, %v4836_v35  ;;  %v5072_v4 = vpop.f32.mrf.mxu1  ;;  %v10931_v7 = vpop.permute.xlu0 %4696 }
 0x5c3   : > { %v10923_v0 = vadd.f32 %v5295_v44, %v5183_v21  ;;  %12188 = vst [vmem:[#allocation54_spill] sm:$0xff] %v10931_v7  ;;  %v4840_v21 = vmul.f32 %v10619_v28, %v10931_v7  ;;  %v4841_v15 = vmul.f32 %v10435_v61, %v10931_v7  ;;  %v6103_v7 = vld [vmem:[#allocation14 + $0x1c8] sm:$0xff] }
 0x5c4   : > { %5362 = vmatmul.f32.gmra.mxu0 %v12185_v45  ;;  %v10926_v46 = vadd.f32 %v5072_v4, %v4960_v10  ;;  %5475 = vmatmul.f32.gmra.mxu1 %v12187_v43 }
 0x5c5   : > { %12184 = vst [vmem:[#allocation109_spill] sm:$0xff] %v10923_v0  ;;  %5588 = vmatmul.f32.gmra.mxu2 %v12185_v45  ;;  %6459 = vmatpush.msra.mxu3 %v6103_v7 }
 0x5c6   : > { %12186 = vst [vmem:[#allocation53_spill] sm:$0xff] %v10926_v46  ;;  %5701 = vmatmul.f32.gmra.mxu3 %v12187_v43  ;;  %v12190_v46 = vld [vmem:[#allocation55_spill] sm:$0xff] }
 0x5c8   : > { %v5185_v35 = vpop.f32.mrf.mxu2 }
 0x5c9   : > { %v5186_v44 = vadd.f32 %v5185_v35, %v4837_v49  ;;  %v5298_v62 = vpop.f32.mrf.mxu3  ;;  %v4962_v10 = vpop.f32.mrf.mxu0  ;;  %v4844_v35 = vmul.f32 %v10619_v28, %v10945_v33 }
 0x5ca   : > { %v4963_v4 = vadd.f32 %v4962_v10, %v4840_v21  ;;  %v5075_v45 = vpop.f32.mrf.mxu1  ;;  %v10973_v7 = vpop.permute.xlu0 %4711 }
 0x5cb   : > { %v10937_v43 = vadd.f32 %v5298_v62, %v5186_v44  ;;  %12203 = vst [vmem:[#allocation71_spill] sm:$0xff] %v10973_v7 }
 0x5cc   : > { %5365 = vmatmul.f32.gmra.mxu0 %v12190_v46  ;;  %v10940_v0 = vadd.f32 %v5075_v45, %v4963_v4  ;;  %5478 = vmatmul.f32.gmra.mxu1 %v12192_v18 }
 0x5cd   : > { %12189 = vst [vmem:[#allocation110_spill] sm:$0xff] %v10937_v43  ;;  %5591 = vmatmul.f32.gmra.mxu2 %v12190_v46  ;;  %v12195_v46 = vld [vmem:[#allocation56_spill] sm:$0xff] }
 0x5ce   : > { %12191 = vst [vmem:[#allocation55_spill] sm:$0xff] %v10940_v0  ;;  %5704 = vmatmul.f32.gmra.mxu3 %v12192_v18  ;;  %v6087_v0 = vld [vmem:[#allocation14 + $0x148] sm:$0xff] }
 0x5cf   : > { %v6055_v43 = vld [vmem:[#allocation14 + $0x48] sm:$0xff]  ;;  %6346 = vmatpush.msra.mxu2 %v6087_v0 }
 0x5d0   : > { %v5188_v49 = vpop.f32.mrf.mxu2  ;;  %6120 = vmatpush.msra.mxu0 %v6055_v43  ;;  %v6071_v0 = vld [vmem:[#allocation14 + $0xc8] sm:$0xff] }
 0x5d1   : > { %v5189_v21 = vadd.f32 %v5188_v49, %v4841_v15  ;;  %v5301_v44 = vpop.f32.mrf.mxu3  ;;  %v4965_v62 = vpop.f32.mrf.mxu0  ;;  %v4845_v49 = vmul.f32 %v10435_v61, %v10945_v33  ;;  %6233 = vmatpush.msra.mxu1 %v6071_v0  ;;  %v12207_v0 = vld [vmem:[#allocation72_spill] sm:$0xff]  ;;  %v12212_v33 = vld [vmem:[#allocation73_spill] sm:$0xff] }
 0x5d2   : > { %v4966_v10 = vadd.f32 %v4965_v62, %v4844_v35  ;;  %v5078_v4 = vpop.f32.mrf.mxu1  ;;  %v10959_v15 = vpop.permute.xlu2 %4706 }
 0x5d3   : > { %v10951_v45 = vadd.f32 %v5301_v44, %v5189_v21  ;;  %12198 = vst [vmem:[#allocation69_spill] sm:$0xff] %v10959_v15  ;;  %v4848_v21 = vmul.f32 %v10619_v28, %v10959_v15  ;;  %v4849_v43 = vmul.f32 %v10435_v61, %v10959_v15  ;;  %v6102_v15 = vld [vmem:[#allocation14 + $0x1c0] sm:$0xff] }
 0x5d4   : > { %5368 = vmatmul.f32.gmra.mxu0 %v12195_v46  ;;  %v10954_v18 = vadd.f32 %v5078_v4, %v4966_v10  ;;  %5481 = vmatmul.f32.gmra.mxu1 %v12197_v30 }
 0x5d5   : > { %12194 = vst [vmem:[#allocation111_spill] sm:$0xff] %v10951_v45  ;;  %5594 = vmatmul.f32.gmra.mxu2 %v12195_v46  ;;  %6460 = vmatpush.msra.mxu3 %v6102_v15 }
 0x5d6   : > { %12196 = vst [vmem:[#allocation56_spill] sm:$0xff] %v10954_v18  ;;  %5707 = vmatmul.f32.gmra.mxu3 %v12197_v30  ;;  %v12200_v18 = vld [vmem:[#allocation70_spill] sm:$0xff] }
 0x5d8   : > { %v5191_v35 = vpop.f32.mrf.mxu2 }
 0x5d9   : > { %v5192_v44 = vadd.f32 %v5191_v35, %v4845_v49  ;;  %v5304_v62 = vpop.f32.mrf.mxu3  ;;  %v4968_v10 = vpop.f32.mrf.mxu0  ;;  %v4852_v35 = vmul.f32 %v10619_v28, %v10973_v7 }
 0x5da   : > { %v4969_v4 = vadd.f32 %v4968_v10, %v4848_v21  ;;  %v5081_v46 = vpop.f32.mrf.mxu1  ;;  %v11001_v15 = vpop.permute.xlu2 %4721 }
 0x5db   : > { %v10965_v30 = vadd.f32 %v5304_v62, %v5192_v44  ;;  %12213 = vst [vmem:[#allocation73_spill] sm:$0xff] %v11001_v15 }
 0x5dc   : > { %5371 = vmatmul.f32.gmra.mxu0 %v12200_v18  ;;  %v10968_v45 = vadd.f32 %v5081_v46, %v4969_v4  ;;  %5484 = vmatmul.f32.gmra.mxu1 %v12202_v34 }
 0x5dd   : > { %12199 = vst [vmem:[#allocation112_spill] sm:$0xff] %v10965_v30  ;;  %5597 = vmatmul.f32.gmra.mxu2 %v12200_v18  ;;  %v12205_v18 = vld [vmem:[#allocation57_spill] sm:$0xff]  ;;  %v6054_v30 = vld [vmem:[#allocation14 + $0x40] sm:$0xff] }
 0x5de   : > { %12201 = vst [vmem:[#allocation70_spill] sm:$0xff] %v10968_v45  ;;  %5710 = vmatmul.f32.gmra.mxu3 %v12202_v34  ;;  %v6086_v45 = vld [vmem:[#allocation14 + $0x140] sm:$0xff]  ;;  %6121 = vmatpush.msra.mxu0 %v6054_v30 }
 0x5df   : > { %6347 = vmatpush.msra.mxu2 %v6086_v45  ;;  %v6070_v45 = vld [vmem:[#allocation14 + $0xc0] sm:$0xff] }
 0x5e0   : > { %v5194_v49 = vpop.f32.mrf.mxu2  ;;  %6234 = vmatpush.msra.mxu1 %v6070_v45  ;;  %v12217_v45 = vld [vmem:[#allocation74_spill] sm:$0xff] }
 0x5e1   : > { %v5195_v21 = vadd.f32 %v5194_v49, %v4849_v43  ;;  %v5307_v44 = vpop.f32.mrf.mxu3  ;;  %v4971_v62 = vpop.f32.mrf.mxu0  ;;  %v4853_v49 = vmul.f32 %v10435_v61, %v10973_v7 }
 0x5e2   : > { %v4972_v10 = vadd.f32 %v4971_v62, %v4852_v35  ;;  %v5084_v4 = vpop.f32.mrf.mxu1  ;;  %v10987_v43 = vpop.permute.xlu1 %4716 }
 0x5e3   : > { %v10979_v46 = vadd.f32 %v5307_v44, %v5195_v21  ;;  %12208 = vst [vmem:[#allocation72_spill] sm:$0xff] %v10987_v43  ;;  %v4856_v21 = vmul.f32 %v10619_v28, %v10987_v43  ;;  %v4857_v30 = vmul.f32 %v10435_v61, %v10987_v43  ;;  %v12222_v43 = vld [vmem:[#allocation76_spill] sm:$0xff] }
 0x5e4   : > { %5374 = vmatmul.f32.gmra.mxu0 %v12205_v18  ;;  %v10982_v34 = vadd.f32 %v5084_v4, %v4972_v10  ;;  %5487 = vmatmul.f32.gmra.mxu1 %v12207_v0 }
 0x5e5   : > { %12204 = vst [vmem:[#allocation113_spill] sm:$0xff] %v10979_v46  ;;  %5600 = vmatmul.f32.gmra.mxu2 %v12205_v18 }
 0x5e6   : > { %12206 = vst [vmem:[#allocation57_spill] sm:$0xff] %v10982_v34  ;;  %5713 = vmatmul.f32.gmra.mxu3 %v12207_v0  ;;  %v12210_v34 = vld [vmem:[#allocation58_spill] sm:$0xff] }
 0x5e8   : > { %v5197_v35 = vpop.f32.mrf.mxu2 }
 0x5e9   : > { %v5198_v44 = vadd.f32 %v5197_v35, %v4853_v49  ;;  %v5310_v62 = vpop.f32.mrf.mxu3  ;;  %v4974_v10 = vpop.f32.mrf.mxu0  ;;  %v4860_v35 = vmul.f32 %v10619_v28, %v11001_v15 }
 0x5ea   : > { %v4975_v4 = vadd.f32 %v4974_v10, %v4856_v21  ;;  %v5087_v18 = vpop.f32.mrf.mxu1  ;;  %v11027_v7 = vpop.permute.xlu1 %4731 }
 0x5eb   : > { %v10993_v0 = vadd.f32 %v5310_v62, %v5198_v44  ;;  %12223 = vst [vmem:[#allocation76_spill] sm:$0xff] %v11027_v7 }
 0x5ec   : > { %5377 = vmatmul.f32.gmra.mxu0 %v12210_v34  ;;  %v10996_v46 = vadd.f32 %v5087_v18, %v4975_v4  ;;  %5490 = vmatmul.f32.gmra.mxu1 %v12212_v33 }
 0x5ed   : > { %12209 = vst [vmem:[#allocation114_spill] sm:$0xff] %v10993_v0  ;;  %5603 = vmatmul.f32.gmra.mxu2 %v12210_v34  ;;  %v12215_v34 = vld [vmem:[#allocation59_spill] sm:$0xff] }
 0x5ee   : > { %12211 = vst [vmem:[#allocation58_spill] sm:$0xff] %v10996_v46  ;;  %5716 = vmatmul.f32.gmra.mxu3 %v12212_v33  ;;  %v11013_v46 = vpop.permute.xlu0 %4726 }
 0x5ef   : > { %12218 = vst [vmem:[#allocation74_spill] sm:$0xff] %v11013_v46 }
 0x5f0   : > { %v5200_v49 = vpop.f32.mrf.mxu2 }
 0x5f1   : > { %v5201_v21 = vadd.f32 %v5200_v49, %v4857_v30  ;;  %v5313_v44 = vpop.f32.mrf.mxu3  ;;  %v4977_v62 = vpop.f32.mrf.mxu0  ;;  %v4861_v30 = vmul.f32 %v10435_v61, %v11001_v15  ;;  %v4864_v49 = vmul.f32 %v10619_v28, %v11013_v46 }
 0x5f2   : > { %v4978_v10 = vadd.f32 %v4977_v62, %v4860_v35  ;;  %v5090_v4 = vpop.f32.mrf.mxu1  ;;  %v6101_v62 = vld [vmem:[#allocation14 + $0x1b8] sm:$0xff] }
 0x5f3   : > { %v11007_v18 = vadd.f32 %v5313_v44, %v5201_v21  ;;  %v6085_v21 = vld [vmem:[#allocation14 + $0x138] sm:$0xff]  ;;  %6461 = vmatpush.msra.mxu3 %v6101_v62 }
 0x5f4   : > { %5380 = vmatmul.f32.gmra.mxu0 %v12215_v34  ;;  %v11010_v33 = vadd.f32 %v5090_v4, %v4978_v10  ;;  %5493 = vmatmul.f32.gmra.mxu1 %v12217_v45  ;;  %v6053_v44 = vld [vmem:[#allocation14 + $0x38] sm:$0xff] }
 0x5f5   : > { %12214 = vst [vmem:[#allocation115_spill] sm:$0xff] %v11007_v18  ;;  %5606 = vmatmul.f32.gmra.mxu2 %v12215_v34  ;;  %6122 = vmatpush.msra.mxu0 %v6053_v44 }
 0x5f6   : > { %12216 = vst [vmem:[#allocation59_spill] sm:$0xff] %v11010_v33  ;;  %5719 = vmatmul.f32.gmra.mxu3 %v12217_v45  ;;  %6348 = vmatpush.msra.mxu2 %v6085_v21  ;;  %v12220_v45 = vld [vmem:[#allocation75_spill] sm:$0xff] }
 0x5f8   : > { %v5203_v35 = vpop.f32.mrf.mxu2 }
 0x5f9   : > { %v5204_v10 = vadd.f32 %v5203_v35, %v4861_v30  ;;  %v5316_v4 = vpop.f32.mrf.mxu3  ;;  %v4980_v33 = vpop.f32.mrf.mxu0  ;;  %v4865_v30 = vmul.f32 %v10435_v61, %v11013_v46  ;;  %v12232_v46 = vld [vmem:[#allocation41_spill] sm:$0xff] }
 0x5fa   : > { %v4981_v18 = vadd.f32 %v4980_v33, %v4864_v49  ;;  %v5093_v0 = vpop.f32.mrf.mxu1  ;;  %v6069_v33 = vld [vmem:[#allocation14 + $0xb8] sm:$0xff]  ;;  %v4868_v49 = vmul.f32 %v10619_v28, %v11027_v7 }
 0x5fb   : > { %v11021_v34 = vadd.f32 %v5316_v4, %v5204_v10  ;;  %6235 = vmatpush.msra.mxu1 %v6069_v33  ;;  %v12225_v4 = vld [vmem:[#allocation35_spill] sm:$0xff]  ;;  %v6084_v33 = vld [vmem:[#allocation14 + $0x130] sm:$0xff] }
 0x5fc   : > { %5383 = vmatmul.f32.gmra.mxu0 %v12220_v45  ;;  %v11024_v15 = vadd.f32 %v5093_v0, %v4981_v18  ;;  %5496 = vmatmul.f32.gmra.mxu1 %v12222_v43 }
 0x5fd   : > { %12219 = vst [vmem:[#allocation116_spill] sm:$0xff] %v11021_v34  ;;  %5609 = vmatmul.f32.gmra.mxu2 %v12220_v45 }
 0x5fe   : > { %12221 = vst [vmem:[#allocation75_spill] sm:$0xff] %v11024_v15  ;;  %5722 = vmatmul.f32.gmra.mxu3 %v12222_v43  ;;  %v12227_v43 = vld [vmem:[#allocation60_spill] sm:$0xff]  ;;  %v11041_v15 = vpop.permute.xlu2 %4736  ;;  %6349 = vmatpush.msra.mxu2 %v6084_v33 }
 0x5ff   : > { %12228 = vst [vmem:[#allocation60_spill] sm:$0xff] %v11041_v15  ;;  %v6068_v33 = vld [vmem:[#allocation14 + $0xb0] sm:$0xff] }
 0x600   : > { %v5206_v35 = vpop.f32.mrf.mxu2  ;;  %6236 = vmatpush.msra.mxu1 %v6068_v33  ;;  %v6099_v33 = vld [vmem:[#allocation14 + $0x1a8] sm:$0xff] }
 0x601   : > { %v5207_v21 = vadd.f32 %v5206_v35, %v4865_v30  ;;  %v5319_v0 = vpop.f32.mrf.mxu3  ;;  %v4983_v18 = vpop.f32.mrf.mxu0  ;;  %v6052_v30 = vld [vmem:[#allocation14 + $0x30] sm:$0xff] }
 0x602   : > { %v4984_v44 = vadd.f32 %v4983_v18, %v4868_v49  ;;  %v5096_v62 = vpop.f32.mrf.mxu1  ;;  %v6100_v35 = vld [vmem:[#allocation14 + $0x1b0] sm:$0xff]  ;;  %v4869_v49 = vmul.f32 %v10435_v61, %v11027_v7  ;;  %6123 = vmatpush.msra.mxu0 %v6052_v30  ;;  %v4873_v30 = vmul.f32 %v10435_v61, %v11041_v15  ;;  %v6083_v61 = vld [vmem:[#allocation14 + $0x128] sm:$0xff] }
 0x603   : > { %v11035_v10 = vadd.f32 %v5319_v0, %v5207_v21  ;;  %v4872_v21 = vmul.f32 %v10619_v28, %v11041_v15  ;;  %6462 = vmatpush.msra.mxu3 %v6100_v35  ;;  %6350 = vmatpush.msra.mxu2 %v6083_v61 }
 0x604   : > { %5386 = vmatmul.f32.gmra.mxu0 %v12225_v4  ;;  %v11038_v45 = vadd.f32 %v5096_v62, %v4984_v44  ;;  %5499 = vmatmul.f32.gmra.mxu1 %v12227_v43 }
 0x605   : > { %12224 = vst [vmem:[#allocation117_spill] sm:$0xff] %v11035_v10  ;;  %5612 = vmatmul.f32.gmra.mxu2 %v12225_v4  ;;  %6463 = vmatpush.msra.mxu3 %v6099_v33 }
 0x606   : > { %12226 = vst [vmem:[#allocation35_spill] sm:$0xff] %v11038_v45  ;;  %5725 = vmatmul.f32.gmra.mxu3 %v12227_v43  ;;  %v12230_v43 = vld [vmem:[#allocation42_spill] sm:$0xff] }
 0x608   : > { %v5209_v0 = vpop.f32.mrf.mxu2 }
 0x609   : > { %v5210_v18 = vadd.f32 %v5209_v0, %v4869_v49  ;;  %v5322_v44 = vpop.f32.mrf.mxu3  ;;  %v4986_v62 = vpop.f32.mrf.mxu0 }
 0x60a   : > { %v4987_v45 = vadd.f32 %v4986_v62, %v4872_v21  ;;  %v5099_v4 = vpop.f32.mrf.mxu1  ;;  %v12235_v62 = vld [vmem:[#allocation34_spill] sm:$0xff] }
 0x60b   : > { %v11049_v10 = vadd.f32 %v5322_v44, %v5210_v18  ;;  %v12234_v44 = vld [vmem:[#allocation61_spill] sm:$0xff] }
 0x60c   : > { %5389 = vmatmul.f32.gmra.mxu0 %v12230_v43  ;;  %v11052_v34 = vadd.f32 %v5099_v4, %v4987_v45  ;;  %5502 = vmatmul.f32.gmra.mxu1 %v12232_v46  ;;  %v11067_v4 = vld [vmem:[#allocation11] sm:$0xf] }
 0x60d   : > { %12229 = vst [vmem:[#allocation118_spill] sm:$0xff] %v11049_v10  ;;  %5615 = vmatmul.f32.gmra.mxu2 %v12230_v43  ;;  %v6051_v43 = vld [vmem:[#allocation14 + $0x28] sm:$0xff] }
 0x60e   : > { %12231 = vst [vmem:[#allocation42_spill] sm:$0xff] %v11052_v34  ;;  %5728 = vmatmul.f32.gmra.mxu3 %v12232_v46  ;;  %v11070_v46 = vperm.slane %v11067_v4, 3  ;;  %6124 = vmatpush.msra.mxu0 %v6051_v43 }
 0x610   : > { %v5212_v35 = vpop.f32.mrf.mxu2 }
 0x611   : > { %v5213_v49 = vadd.f32 %v5212_v35, %v4873_v30  ;;  %v5325_v21 = vpop.f32.mrf.mxu3  ;;  %v11059_v0 = vpop.f32.mrf.mxu0  ;;  %v4751_v30 = vmul.f32 %v11070_v46, %v10441_v2 }
 0x612   : > { %v11061_v18 = vpop.f32.mrf.mxu1 }
 0x613   : > { %v11063_v45 = vadd.f32 %v5325_v21, %v5213_v49 }
 0x614   : > { %5392 = vmatmul.f32.gmra.mxu0 %v12234_v44  ;;  %5505 = vmatmul.f32.gmra.mxu1 %v12235_v62 }
 0x615   : > { %12233 = vst [vmem:[#allocation41_spill] sm:$0xff] %v11063_v45  ;;  %5618 = vmatmul.f32.gmra.mxu2 %v12234_v44  ;;  %v6067_v44 = vld [vmem:[#allocation14 + $0xa8] sm:$0xff] }
 0x616   : > { %5731 = vmatmul.f32.gmra.mxu3 %v12235_v62  ;;  %6237 = vmatpush.msra.mxu1 %v6067_v44  ;;  %v4755_v62 = vmul.f32 %v11070_v46, %v10469_v63  ;;  %v6098_v44 = vld [vmem:[#allocation14 + $0x1a0] sm:$0xff] }
 0x617   : > { %6464 = vmatpush.msra.mxu3 %v6098_v44 }
 0x618   : > { %v5571_v35 = vpop.f32.mrf.mxu2 }
 0x619   : > { %v5572_v49 = vadd.f32 %v5571_v35, %v4751_v30  ;;  %v5684_v21 = vpop.f32.mrf.mxu3  ;;  %v11076_v45 = vpop.f32.mrf.mxu0 }
 0x61a   : > { %v11078_v34 = vpop.f32.mrf.mxu1 }
 0x61b   : > { %v11080_v10 = vadd.f32 %v5684_v21, %v5572_v49  ;;  %v12237_v21 = vld [vmem:[#allocation79_spill] sm:$0xff] }
 0x61c   : > { %5395 = vmatmul.f32.gmra.mxu0 %v10448_v19  ;;  %5508 = vmatmul.f32.gmra.mxu1 %v10453_v11 }
 0x61d   : > { %5621 = vmatmul.f32.gmra.mxu2 %v10448_v19  ;;  %v6082_v19 = vld [vmem:[#allocation14 + $0x120] sm:$0xff] }
 0x61e   : > { %5734 = vmatmul.f32.gmra.mxu3 %v10453_v11  ;;  %v6050_v11 = vld [vmem:[#allocation14 + $0x20] sm:$0xff]  ;;  %6351 = vmatpush.msra.mxu2 %v6082_v19 }
 0x61f   : > { %6125 = vmatpush.msra.mxu0 %v6050_v11 }
 0x620   : > { %v5574_v61 = vpop.f32.mrf.mxu2 }
 0x621   : > { %v5575_v43 = vadd.f32 %v5574_v61, %v4755_v62  ;;  %v5687_v33 = vpop.f32.mrf.mxu3  ;;  %v11088_v30 = vpop.f32.mrf.mxu0  ;;  %v4759_v62 = vmul.f32 %v11070_v46, %v10495_v13 }
 0x622   : > { %v11090_v35 = vpop.f32.mrf.mxu1 }
 0x623   : > { %12236 = vst [vmem:[#allocation61_spill] sm:$0xff] %v11090_v35  ;;  %v11092_v49 = vadd.f32 %v5687_v33, %v5575_v43 }
 0x624   : > { %5398 = vmatmul.f32.gmra.mxu0 %v10476_v12  ;;  %5511 = vmatmul.f32.gmra.mxu1 %v12237_v21 }
 0x625   : > { %5624 = vmatmul.f32.gmra.mxu2 %v10476_v12  ;;  %v6066_v12 = vld [vmem:[#allocation14 + $0xa0] sm:$0xff] }
 0x626   : > { %5737 = vmatmul.f32.gmra.mxu3 %v12237_v21  ;;  %6238 = vmatpush.msra.mxu1 %v6066_v12  ;;  %v4763_v21 = vmul.f32 %v11070_v46, %v10521_v16  ;;  %v4767_v12 = vmul.f32 %v11070_v46, %v10547_v9 }
 0x628   : > { %v5577_v61 = vpop.f32.mrf.mxu2 }
 0x629   : > { %v5578_v43 = vadd.f32 %v5577_v61, %v4759_v62  ;;  %v5690_v33 = vpop.f32.mrf.mxu3  ;;  %v11100_v15 = vpop.f32.mrf.mxu0 }
 0x62a   : > { %v11102_v7 = vpop.f32.mrf.mxu1 }
 0x62b   : > { %v11104_v35 = vadd.f32 %v5690_v33, %v5578_v43  ;;  %v6097_v33 = vld [vmem:[#allocation14 + $0x198] sm:$0xff] }
 0x62c   : > { %5401 = vmatmul.f32.gmra.mxu0 %v10502_v53  ;;  %5514 = vmatmul.f32.gmra.mxu1 %v10507_v3 }
 0x62d   : > { %5627 = vmatmul.f32.gmra.mxu2 %v10502_v53  ;;  %v6081_v53 = vld [vmem:[#allocation14 + $0x118] sm:$0xff]  ;;  %6465 = vmatpush.msra.mxu3 %v6097_v33 }
 0x62e   : > { %5740 = vmatmul.f32.gmra.mxu3 %v10507_v3  ;;  %v6049_v3 = vld [vmem:[#allocation14 + $0x18] sm:$0xff]  ;;  %6352 = vmatpush.msra.mxu2 %v6081_v53 }
 0x62f   : > { %6126 = vmatpush.msra.mxu0 %v6049_v3 }
 0x630   : > { %v5580_v19 = vpop.f32.mrf.mxu2 }
 0x631   : > { %v5581_v11 = vadd.f32 %v5580_v19, %v4763_v21  ;;  %v5693_v44 = vpop.f32.mrf.mxu3  ;;  %v11112_v62 = vpop.f32.mrf.mxu0 }
 0x632   : > { %12238 = vst [vmem:[#allocation34_spill] sm:$0xff] %v11112_v62  ;;  %v11114_v61 = vpop.f32.mrf.mxu1 }
 0x633   : > { %12239 = vst [vmem:[#allocation79_spill] sm:$0xff] %v11114_v61  ;;  %v11116_v43 = vadd.f32 %v5693_v44, %v5581_v11 }
 0x634   : > { %5404 = vmatmul.f32.gmra.mxu0 %v10528_v48  ;;  %5517 = vmatmul.f32.gmra.mxu1 %v10533_v23 }
 0x635   : > { %5630 = vmatmul.f32.gmra.mxu2 %v10528_v48  ;;  %v4771_v48 = vmul.f32 %v11070_v46, %v10573_v51 }
 0x636   : > { %5743 = vmatmul.f32.gmra.mxu3 %v10533_v23  ;;  %v6065_v23 = vld [vmem:[#allocation14 + $0x98] sm:$0xff] }
 0x637   : > { %6239 = vmatpush.msra.mxu1 %v6065_v23  ;;  %v4775_v23 = vmul.f32 %v11070_v46, %v10599_v47 }
 0x638   : > { %v5583_v21 = vpop.f32.mrf.mxu2 }
 0x639   : > { %v5584_v19 = vadd.f32 %v5583_v21, %v4767_v12  ;;  %v5696_v11 = vpop.f32.mrf.mxu3  ;;  %v11124_v44 = vpop.f32.mrf.mxu0 }
 0x63a   : > { %v11126_v61 = vpop.f32.mrf.mxu1 }
 0x63b   : > { %v11128_v62 = vadd.f32 %v5696_v11, %v5584_v19  ;;  %v6096_v11 = vld [vmem:[#allocation14 + $0x190] sm:$0xff] }
 0x63c   : > { %5407 = vmatmul.f32.gmra.mxu0 %v10554_v36  ;;  %5520 = vmatmul.f32.gmra.mxu1 %v10559_v58 }
 0x63d   : > { %5633 = vmatmul.f32.gmra.mxu2 %v10554_v36  ;;  %v6080_v36 = vld [vmem:[#allocation14 + $0x110] sm:$0xff]  ;;  %6466 = vmatpush.msra.mxu3 %v6096_v11 }
 0x63e   : > { %5746 = vmatmul.f32.gmra.mxu3 %v10559_v58  ;;  %v6048_v58 = vld [vmem:[#allocation14 + $0x10] sm:$0xff]  ;;  %6353 = vmatpush.msra.mxu2 %v6080_v36  ;;  %v4779_v36 = vmul.f32 %v11070_v46, %v10628_v31  ;;  %v6095_v31 = vld [vmem:[#allocation14 + $0x188] sm:$0xff] }
 0x63f   : > { %6127 = vmatpush.msra.mxu0 %v6048_v58  ;;  %6467 = vmatpush.msra.mxu3 %v6095_v31  ;;  %v4787_v31 = vmul.f32 %v11070_v46, %v10658_v1 }
 0x640   : > { %v5586_v53 = vpop.f32.mrf.mxu2 }
 0x641   : > { %v5587_v3 = vadd.f32 %v5586_v53, %v4771_v48  ;;  %v5699_v33 = vpop.f32.mrf.mxu3  ;;  %v11136_v12 = vpop.f32.mrf.mxu0 }
 0x642   : > { %12240 = vst [vmem:[#allocation119_spill] sm:$0xff] %v11136_v12  ;;  %v11138_v21 = vpop.f32.mrf.mxu1 }
 0x643   : > { %12241 = vst [vmem:[#allocation120_spill] sm:$0xff] %v11138_v21  ;;  %v11140_v19 = vadd.f32 %v5699_v33, %v5587_v3 }
 0x644   : > { %5410 = vmatmul.f32.gmra.mxu0 %v10580_v27  ;;  %5523 = vmatmul.f32.gmra.mxu1 %v10585_v55 }
 0x645   : > { %5636 = vmatmul.f32.gmra.mxu2 %v10580_v27  ;;  %v6064_v27 = vld [vmem:[#allocation14 + $0x90] sm:$0xff] }
 0x646   : > { %5749 = vmatmul.f32.gmra.mxu3 %v10585_v55  ;;  %v11156_v55 = vperm.slane %v11067_v4, 2  ;;  %6240 = vmatpush.msra.mxu1 %v6064_v27  ;;  %v6079_v27 = vld [vmem:[#allocation14 + $0x108] sm:$0xff] }
 0x647   : > { %6354 = vmatpush.msra.mxu2 %v6079_v27 }
 0x648   : > { %v5589_v48 = vpop.f32.mrf.mxu2  ;;  %v4782_v11 = vmul.f32 %v11156_v55, %v10632_v29  ;;  %v4790_v27 = vmul.f32 %v11156_v55, %v10684_v60 }
 0x649   : > { %v5590_v53 = vadd.f32 %v5589_v48, %v4775_v23  ;;  %v5702_v3 = vpop.f32.mrf.mxu3  ;;  %v11148_v33 = vpop.f32.mrf.mxu0 }
 0x64a   : > { %12242 = vst [vmem:[#allocation121_spill] sm:$0xff] %v11148_v33  ;;  %v11150_v21 = vpop.f32.mrf.mxu1  ;;  %v12245_v33 = vld [vmem:[#allocation92_spill] sm:$0xff] }
 0x64b   : > { %12243 = vst [vmem:[#allocation122_spill] sm:$0xff] %v11150_v21  ;;  %v11152_v12 = vadd.f32 %v5702_v3, %v5590_v53 }
 0x64c   : > { %5413 = vmatmul.f32.gmra.mxu0 %v10606_v40  ;;  %5526 = vmatmul.f32.gmra.mxu1 %v10611_v56 }
 0x64d   : > { %12244 = vst [vmem:[#allocation123_spill] sm:$0xff] %v11152_v12  ;;  %5639 = vmatmul.f32.gmra.mxu2 %v10606_v40  ;;  %v6047_v12 = vld [vmem:[#allocation14 + $0x8] sm:$0xff] }
 0x64e   : > { %5752 = vmatmul.f32.gmra.mxu3 %v10611_v56  ;;  %v12246_v56 = vld [vmem:[#allocation93_spill] sm:$0xff]  ;;  %6128 = vmatpush.msra.mxu0 %v6047_v12 }
 0x650   : > { %v5592_v58 = vpop.f32.mrf.mxu2 }
 0x651   : > { %v5593_v23 = vadd.f32 %v5592_v58, %v4779_v36  ;;  %v5705_v48 = vpop.f32.mrf.mxu3  ;;  %v5369_v53 = vpop.f32.mrf.mxu0  ;;  %v4783_v36 = vmul.f32 %v11070_v46, %v10632_v29  ;;  %v6063_v29 = vld [vmem:[#allocation14 + $0x88] sm:$0xff] }
 0x652   : > { %v5370_v4 = vadd.f32 %v5369_v53, %v4782_v11  ;;  %v5482_v3 = vpop.f32.mrf.mxu1  ;;  %v4786_v11 = vmul.f32 %v11156_v55, %v10658_v1  ;;  %6241 = vmatpush.msra.mxu1 %v6063_v29  ;;  %v6046_v1 = vld [vmem:[#allocation14] sm:$0xff] }
 0x653   : > { %v11165_v21 = vadd.f32 %v5705_v48, %v5593_v23  ;;  %6129 = vmatpush.msra.mxu0 %v6046_v1 }
 0x654   : > { %5416 = vmatmul.f32.gmra.mxu0 %v12245_v33  ;;  %v11168_v40 = vadd.f32 %v5482_v3, %v5370_v4  ;;  %5529 = vmatmul.f32.gmra.mxu1 %v12246_v56 }
 0x655   : > { %5642 = vmatmul.f32.gmra.mxu2 %v12245_v33 }
 0x656   : > { %5755 = vmatmul.f32.gmra.mxu3 %v12246_v56 }
 0x658   : > { %v5595_v58 = vpop.f32.mrf.mxu2 }
 0x659   : > { %v5596_v23 = vadd.f32 %v5595_v58, %v4783_v36  ;;  %v5708_v48 = vpop.f32.mrf.mxu3  ;;  %v5372_v53 = vpop.f32.mrf.mxu0 }
 0x65a   : > { %v5373_v4 = vadd.f32 %v5372_v53, %v4786_v11  ;;  %v5485_v33 = vpop.f32.mrf.mxu1 }
 0x65b   : > { %v11177_v3 = vadd.f32 %v5708_v48, %v5596_v23 }
 0x65c   : > { %5419 = vmatmul.f32.gmra.mxu0 %v10665_v54  ;;  %v11180_v56 = vadd.f32 %v5485_v33, %v5373_v4  ;;  %5532 = vmatmul.f32.gmra.mxu1 %v10668_v41  ;;  %v6094_v4 = vld [vmem:[#allocation14 + $0x180] sm:$0xff]  ;;  %v4791_v33 = vmul.f32 %v11070_v46, %v10684_v60 }
 0x65d   : > { %5645 = vmatmul.f32.gmra.mxu2 %v10665_v54  ;;  %6468 = vmatpush.msra.mxu3 %v6094_v4  ;;  %v6062_v60 = vld [vmem:[#allocation14 + $0x80] sm:$0xff] }
 0x65e   : > { %5758 = vmatmul.f32.gmra.mxu3 %v10668_v41  ;;  %v6078_v41 = vld [vmem:[#allocation14 + $0x100] sm:$0xff]  ;;  %6242 = vmatpush.msra.mxu1 %v6062_v60 }
 0x65f   : > { %6355 = vmatpush.msra.mxu2 %v6078_v41  ;;  %v4798_v41 = vmul.f32 %v11156_v55, %v10736_v42 }
 0x660   : > { %v5598_v12 = vpop.f32.mrf.mxu2 }
 0x661   : > { %v5599_v36 = vadd.f32 %v5598_v12, %v4787_v31  ;;  %v5711_v58 = vpop.f32.mrf.mxu3  ;;  %v5375_v11 = vpop.f32.mrf.mxu0  ;;  %v4794_v31 = vmul.f32 %v11156_v55, %v10710_v38 }
 0x662   : > { %v5376_v23 = vadd.f32 %v5375_v11, %v4790_v27  ;;  %v5488_v48 = vpop.f32.mrf.mxu1 }
 0x663   : > { %v11189_v53 = vadd.f32 %v5711_v58, %v5599_v36 }
 0x664   : > { %5422 = vmatmul.f32.gmra.mxu0 %v10691_v5  ;;  %v11192_v54 = vadd.f32 %v5488_v48, %v5376_v23  ;;  %5535 = vmatmul.f32.gmra.mxu1 %v10694_v8  ;;  %v4795_v23 = vmul.f32 %v11070_v46, %v10710_v38 }
 0x665   : > { %5648 = vmatmul.f32.gmra.mxu2 %v10691_v5 }
 0x666   : > { %5761 = vmatmul.f32.gmra.mxu3 %v10694_v8 }
 0x668   : > { %v5601_v29 = vpop.f32.mrf.mxu2 }
 0x669   : > { %v5602_v12 = vadd.f32 %v5601_v29, %v4791_v33  ;;  %v5714_v27 = vpop.f32.mrf.mxu3  ;;  %v5378_v36 = vpop.f32.mrf.mxu0 }
 0x66a   : > { %v5379_v58 = vadd.f32 %v5378_v36, %v4794_v31  ;;  %v5491_v5 = vpop.f32.mrf.mxu1 }
 0x66b   : > { %v11201_v11 = vadd.f32 %v5714_v27, %v5602_v12  ;;  %v4802_v27 = vmul.f32 %v11156_v55, %v10762_v37 }
 0x66c   : > { %5425 = vmatmul.f32.gmra.mxu0 %v10717_v57  ;;  %v11204_v8 = vadd.f32 %v5491_v5, %v5379_v58  ;;  %5538 = vmatmul.f32.gmra.mxu1 %v10720_v25 }
 0x66d   : > { %5651 = vmatmul.f32.gmra.mxu2 %v10717_v57 }
 0x66e   : > { %5764 = vmatmul.f32.gmra.mxu3 %v10720_v25  ;;  %v4799_v25 = vmul.f32 %v11070_v46, %v10736_v42  ;;  %v4803_v42 = vmul.f32 %v11070_v46, %v10762_v37  ;;  %v12247_v37 = vld [vmem:[#allocation39_spill] sm:$0xff] }
 0x670   : > { %v5604_v48 = vpop.f32.mrf.mxu2 }
 0x671   : > { %v5605_v1 = vadd.f32 %v5604_v48, %v4795_v23  ;;  %v5717_v4 = vpop.f32.mrf.mxu3  ;;  %v5381_v33 = vpop.f32.mrf.mxu0 }
 0x672   : > { %v5382_v29 = vadd.f32 %v5381_v33, %v4798_v41  ;;  %v5494_v31 = vpop.f32.mrf.mxu1 }
 0x673   : > { %v11213_v12 = vadd.f32 %v5717_v4, %v5605_v1 }
 0x674   : > { %5428 = vmatmul.f32.gmra.mxu0 %v10743_v26  ;;  %v11216_v57 = vadd.f32 %v5494_v31, %v5382_v29  ;;  %5541 = vmatmul.f32.gmra.mxu1 %v10746_v52 }
 0x675   : > { %5654 = vmatmul.f32.gmra.mxu2 %v10743_v26 }
 0x676   : > { %5767 = vmatmul.f32.gmra.mxu3 %v10746_v52  ;;  %v4806_v52 = vmul.f32 %v11156_v55, %v10788_v17 }
 0x678   : > { %v5607_v38 = vpop.f32.mrf.mxu2 }
 0x679   : > { %v5608_v36 = vadd.f32 %v5607_v38, %v4799_v25  ;;  %v5720_v58 = vpop.f32.mrf.mxu3  ;;  %v5384_v5 = vpop.f32.mrf.mxu0  ;;  %v4748_v25 = vmul.f32 %v10619_v28, %v10441_v2 }
 0x67a   : > { %v5385_v60 = vadd.f32 %v5384_v5, %v4802_v27  ;;  %v5497_v23 = vpop.f32.mrf.mxu1  ;;  %v4750_v27 = vmul.f32 %v11156_v55, %v10441_v2  ;;  %v4807_v5 = vmul.f32 %v11070_v46, %v10788_v17 }
 0x67b   : > { %v11225_v48 = vadd.f32 %v5720_v58, %v5608_v36  ;;  %v5780_v36 = vld [vmem:[#allocation13] sm:$0xf] }
 0x67c   : > { %5431 = vmatmul.f32.gmra.mxu0 %v10769_v59  ;;  %v11228_v41 = vadd.f32 %v5497_v23, %v5385_v60  ;;  %5544 = vmatmul.f32.gmra.mxu1 %v10772_v14  ;;  %v5346_v58 = vadd.f32 %v11059_v0, %v4750_v27  ;;  %v4810_v23 = vmul.f32 %v11156_v55, %v10814_v24  ;;  %v12250_v27 = vld [vmem:[#allocation63_spill] sm:$0xff] }
 0x67d   : > { %5657 = vmatmul.f32.gmra.mxu2 %v10769_v59  ;;  %v4894_v59 = vadd.f32 %v12247_v37, %v4748_v25 }
 0x67e   : > { %5770 = vmatmul.f32.gmra.mxu3 %v10772_v14  ;;  %v5459_v17 = vadd.f32 %v11061_v18, %v5346_v58  ;;  %v12251_v18 = vld [vmem:[#allocation78_spill] sm:$0xff] }
 0x680   : > { %v5610_v26 = vpop.f32.mrf.mxu2 }
 0x681   : > { %v5611_v1 = vadd.f32 %v5610_v26, %v4803_v42  ;;  %v5723_v4 = vpop.f32.mrf.mxu3  ;;  %v5387_v33 = vpop.f32.mrf.mxu0  ;;  %v12248_v42 = vld [vmem:[#allocation62_spill] sm:$0xff] }
 0x682   : > { %v5388_v29 = vadd.f32 %v5387_v33, %v4806_v52  ;;  %v5500_v31 = vpop.f32.mrf.mxu1  ;;  %v5007_v26 = vadd.f32 %v12248_v42, %v4894_v59  ;;  %v11256_v52 = vperm.slane %v5780_v36, 0 }
 0x683   : > { %v11239_v38 = vadd.f32 %v5723_v4, %v5611_v1 }
 0x684   : > { %5434 = vmatmul.f32.gmra.mxu0 %v10795_v22  ;;  %v11242_v14 = vadd.f32 %v5500_v31, %v5388_v29  ;;  %5547 = vmatmul.f32.gmra.mxu1 %v10798_v20  ;;  %v11263_v29 = vperm.slane %v5780_v36, 2  ;;  %v11265_v31 = vperm.slane %v5780_v36, 3  ;;  %v5790_v59 = vadd.f32 %v11256_v52, %v5007_v26 }
 0x685   : > { %5660 = vmatmul.f32.gmra.mxu2 %v10795_v22  ;;  %v11258_v22 = vperm.slane %v5780_v36, 1  ;;  %v4811_v26 = vmul.f32 %v11070_v46, %v10814_v24 }
 0x686   : > { %5773 = vmatmul.f32.gmra.mxu3 %v10798_v20  ;;  %v4752_v20 = vmul.f32 %v10619_v28, %v10469_v63  ;;  %v5792_v58 = vadd.f32 %v11263_v29, %v5459_v17  ;;  %v4756_v17 = vmul.f32 %v10619_v28, %v10495_v13 }
 0x687   : > { %v5791_v36 = vadd.f32 %v11258_v22, %v12251_v18 }
 0x688   : > { %v5613_v60 = vpop.f32.mrf.mxu2 }
 0x689   : > { %v5614_v1 = vadd.f32 %v5613_v60, %v4807_v5  ;;  %v5726_v2 = vpop.f32.mrf.mxu3  ;;  %v5390_v4 = vpop.f32.mrf.mxu0  ;;  %v4897_v5 = vadd.f32 %v12250_v27, %v4752_v20  ;;  %v4754_v60 = vmul.f32 %v11156_v55, %v10469_v63  ;;  %v4814_v63 = vmul.f32 %v11156_v55, %v10833_v50 }
 0x68a   : > { %v5391_v0 = vadd.f32 %v5390_v4, %v4810_v23  ;;  %v5503_v33 = vpop.f32.mrf.mxu1  ;;  %v5793_v23 = vadd.f32 %v11265_v31, %v11080_v10 }
 0x68b   : > { %v11267_v25 = vadd.f32 %v5726_v2, %v5614_v1  ;;  %v5349_v42 = vadd.f32 %v11076_v45, %v4754_v60  ;;  %v12252_v2 = vld [vmem:[#allocation77_spill] sm:$0xff]  ;;  %v5920_v45 = vmax.f32 %v5792_v58, 0.0 }
 0x68c   : > { %5437 = vmatmul.f32.gmra.mxu0 %v10821_v32  ;;  %v11270_v37 = vadd.f32 %v5503_v33, %v5391_v0  ;;  %5550 = vmatmul.f32.gmra.mxu1 %v10823_v6  ;;  %v5919_v33 = vmax.f32 %v5791_v36, 0.0  ;;  %v5921_v60 = vmax.f32 %v5793_v23, 0.0  ;;  %v4758_v36 = vmul.f32 %v11156_v55, %v10495_v13  ;;  %v12255_v13 = vld [vmem:[#allocation80_spill] sm:$0xff] }
 0x68d   : > { %5663 = vmatmul.f32.gmra.mxu2 %v10821_v32  ;;  %v5918_v32 = vmax.f32 %v5790_v59, 0.0  ;;  %v5462_v24 = vadd.f32 %v11078_v34, %v5349_v42  ;;  %v5797_v23 = vadd.f32 %v11265_v31, %v11092_v49 }
 0x68e   : > { %12249 = vst [vmem:[#allocation92_spill] sm:$0xff] %v11270_v37  ;;  %5776 = vmatmul.f32.gmra.mxu3 %v10823_v6  ;;  %v5010_v6 = vadd.f32 %v12252_v2, %v4897_v5  ;;  %v12253_v5 = vld [vmem:[#allocation64_spill] sm:$0xff]  ;;  %v5352_v42 = vadd.f32 %v11088_v30, %v4758_v36  ;;  %v4818_v2 = vmul.f32 %v11156_v55, %v10847_v39  ;;  %v12256_v30 = vld [vmem:[#allocation61_spill] sm:$0xff] }
 0x68f   : > { %v5796_v34 = vadd.f32 %v11263_v29, %v5462_v24  ;;  %v5925_v24 = vmax.f32 %v5797_v23, 0.0  ;;  %v12257_v36 = vld [vmem:[#allocation65_spill] sm:$0xff] }
 0x690   : > { %v5616_v1 = vpop.f32.mrf.mxu2  ;;  %v5794_v59 = vadd.f32 %v11256_v52, %v5010_v6 }
 0x691   : > { %v5617_v4 = vadd.f32 %v5616_v1, %v4811_v26  ;;  %v5729_v20 = vpop.f32.mrf.mxu3  ;;  %v5393_v0 = vpop.f32.mrf.mxu0  ;;  %v4900_v26 = vadd.f32 %v12253_v5, %v4756_v17  ;;  %v12254_v1 = vld [vmem:[#allocation81_spill] sm:$0xff]  ;;  %v4760_v17 = vmul.f32 %v10619_v28, %v10521_v16 }
 0x692   : > { %v5394_v10 = vadd.f32 %v5393_v0, %v4814_v63  ;;  %v5506_v27 = vpop.f32.mrf.mxu1  ;;  %v5795_v58 = vadd.f32 %v11258_v22, %v12254_v1  ;;  %v4815_v63 = vmul.f32 %v11070_v46, %v10833_v50  ;;  %v5924_v50 = vmax.f32 %v5796_v34, 0.0 }
 0x693   : > { %v11293_v18 = vadd.f32 %v5729_v20, %v5617_v4  ;;  %v5013_v6 = vadd.f32 %v12255_v13, %v4900_v26  ;;  %v4762_v1 = vmul.f32 %v11156_v55, %v10521_v16  ;;  %v5801_v34 = vadd.f32 %v11265_v31, %v11104_v35  ;;  %v12259_v13 = vld [vmem:[#allocation44_spill] sm:$0xff]  ;;  %v12260_v16 = vld [vmem:[#allocation82_spill] sm:$0xff] }
 0x694   : > { %6130 = vmatmul.f32.vlgmr.msra.gmra.mxu0 %v5918_v32  ;;  %v11295_v37 = vadd.f32 %v5506_v27, %v5394_v10  ;;  %6243 = vmatmul.f32.vlgmr.msra.gmra.mxu1 %v5919_v33  ;;  %v5922_v33 = vmax.f32 %v5794_v59, 0.0  ;;  %v5923_v27 = vmax.f32 %v5795_v58, 0.0  ;;  %v4903_v59 = vadd.f32 %v12257_v36, %v4760_v17  ;;  %v12258_v58 = vld [vmem:[#allocation83_spill] sm:$0xff]  ;;  %v12261_v36 = vld [vmem:[#allocation66_spill] sm:$0xff] }
 0x695   : > { %6356 = vmatmul.f32.vlgmr.msra.gmra.mxu2 %v5920_v45  ;;  %v5465_v45 = vadd.f32 %v12256_v30, %v5352_v42  ;;  %v5798_v26 = vadd.f32 %v11256_v52, %v5013_v6  ;;  %v5799_v42 = vadd.f32 %v11258_v22, %v12258_v58  ;;  %v5355_v23 = vadd.f32 %v11100_v15, %v4762_v1  ;;  %v12262_v1 = vld [vmem:[#allocation85_spill] sm:$0xff] }
 0x696   : > { %6469 = vmatmul.f32.vlgmr.msra.gmra.mxu3 %v5921_v60  ;;  %v4822_v6 = vmul.f32 %v11156_v55, %v12259_v13 }
 0x697   : > { %v5926_v17 = vmax.f32 %v5798_v26, 0.0  ;;  %v5468_v15 = vadd.f32 %v11102_v7, %v5355_v23  ;;  %v5803_v7 = vadd.f32 %v11258_v22, %v12262_v1  ;;  %v4823_v23 = vmul.f32 %v11070_v46, %v12259_v13  ;;  %v12268_v1 = vld [vmem:[#allocation87_spill] sm:$0xff] }
 0x698   : > { %v5619_v32 = vpop.f32.mrf.mxu2 }
 0x699   : > { %v5620_v4 = vadd.f32 %v5619_v32, %v4815_v63  ;;  %v5732_v20 = vpop.f32.mrf.mxu3  ;;  %v5396_v0 = vpop.f32.mrf.mxu0  ;;  %v5800_v63 = vadd.f32 %v11263_v29, %v5465_v45  ;;  %v4819_v32 = vmul.f32 %v11070_v46, %v10847_v39  ;;  %v5929_v45 = vmax.f32 %v5801_v34, 0.0 }
 0x69a   : > { %v5397_v10 = vadd.f32 %v5396_v0, %v4818_v2  ;;  %v5509_v49 = vpop.f32.mrf.mxu1  ;;  %v5804_v58 = vadd.f32 %v11263_v29, %v5468_v15 }
 0x69b   : > { %v11315_v60 = vadd.f32 %v5732_v20, %v5620_v4  ;;  %v5016_v4 = vadd.f32 %v12260_v16, %v4903_v59  ;;  %v5928_v39 = vmax.f32 %v5800_v63, 0.0  ;;  %v4766_v59 = vmul.f32 %v11156_v55, %v10547_v9  ;;  %v12263_v63 = vld [vmem:[#allocation34_spill] sm:$0xff] }
 0x69c   : > { %6133 = vmatmul.f32.gmra.mxu0 %v5922_v33  ;;  %v11317_v5 = vadd.f32 %v5509_v49, %v5397_v10  ;;  %6246 = vmatmul.f32.gmra.mxu1 %v5923_v27  ;;  %v4764_v10 = vmul.f32 %v10619_v28, %v10547_v9  ;;  %v5927_v27 = vmax.f32 %v5799_v42, 0.0  ;;  %v5805_v42 = vadd.f32 %v11265_v31, %v11116_v43  ;;  %v12265_v9 = vld [vmem:[#allocation84_spill] sm:$0xff] }
 0x69d   : > { %6359 = vmatmul.f32.gmra.mxu2 %v5924_v50  ;;  %v5358_v34 = vadd.f32 %v12263_v63, %v4766_v59  ;;  %v5932_v13 = vmax.f32 %v5804_v58, 0.0  ;;  %v4770_v59 = vmul.f32 %v11156_v55, %v10573_v51  ;;  %v5809_v58 = vadd.f32 %v11265_v31, %v11128_v62 }
 0x69e   : > { %6472 = vmatmul.f32.gmra.mxu3 %v5925_v24  ;;  %v5802_v24 = vadd.f32 %v11256_v52, %v5016_v4  ;;  %v4906_v26 = vadd.f32 %v12261_v36, %v4764_v10 }
 0x6a0   : > { %v5622_v2 = vpop.f32.mrf.mxu2  ;;  %v5019_v16 = vadd.f32 %v12265_v9, %v4906_v26  ;;  %v12267_v26 = vld [vmem:[#allocation67_spill] sm:$0xff] }
 0x6a1   : > { %v5623_v20 = vadd.f32 %v5622_v2, %v4819_v32  ;;  %v5735_v0 = vpop.f32.mrf.mxu3  ;;  %v5399_v33 = vpop.f32.mrf.mxu0  ;;  %v12264_v2 = vld [vmem:[#allocation46_spill] sm:$0xff] }
 0x6a2   : > { %v5400_v49 = vadd.f32 %v5399_v33, %v4822_v6  ;;  %v5512_v35 = vpop.f32.mrf.mxu1  ;;  %v4826_v6 = vmul.f32 %v11156_v55, %v12264_v2  ;;  %v5930_v33 = vmax.f32 %v5802_v24, 0.0  ;;  %v5806_v36 = vadd.f32 %v11256_v52, %v5019_v16 }
 0x6a3   : > { %v11337_v30 = vadd.f32 %v5735_v0, %v5623_v20 }
 0x6a4   : > { %6136 = vmatmul.f32.gmra.mxu0 %v5926_v17  ;;  %v11339_v50 = vadd.f32 %v5512_v35, %v5400_v49  ;;  %6249 = vmatmul.f32.gmra.mxu1 %v5927_v27  ;;  %v4768_v17 = vmul.f32 %v10619_v28, %v10573_v51  ;;  %v5931_v49 = vmax.f32 %v5803_v7, 0.0  ;;  %v12266_v35 = vld [vmem:[#allocation79_spill] sm:$0xff]  ;;  %v5807_v7 = vadd.f32 %v11258_v22, %v12268_v1  ;;  %v12270_v51 = vld [vmem:[#allocation86_spill] sm:$0xff] }
 0x6a5   : > { %6362 = vmatmul.f32.gmra.mxu2 %v5928_v39  ;;  %v5471_v27 = vadd.f32 %v12266_v35, %v5358_v34  ;;  %v5933_v39 = vmax.f32 %v5805_v42, 0.0  ;;  %v5361_v42 = vadd.f32 %v11124_v44, %v4770_v59  ;;  %v4827_v34 = vmul.f32 %v11070_v46, %v12264_v2  ;;  %v12273_v1 = vld [vmem:[#allocation119_spill] sm:$0xff] }
 0x6a6   : > { %6475 = vmatmul.f32.gmra.mxu3 %v5929_v45  ;;  %v4909_v24 = vadd.f32 %v12267_v26, %v4768_v17  ;;  %v12272_v26 = vld [vmem:[#allocation89_spill] sm:$0xff]  ;;  %v5813_v59 = vadd.f32 %v11265_v31, %v11140_v19 }
 0x6a7   : > { %v5808_v63 = vadd.f32 %v11263_v29, %v5471_v27  ;;  %v5474_v44 = vadd.f32 %v11126_v61, %v5361_v42  ;;  %v5811_v61 = vadd.f32 %v11258_v22, %v12272_v26  ;;  %v12274_v42 = vld [vmem:[#allocation50_spill] sm:$0xff] }
 0x6a8   : > { %v5625_v32 = vpop.f32.mrf.mxu2  ;;  %v5022_v9 = vadd.f32 %v12270_v51, %v4909_v24 }
 0x6a9   : > { %v5626_v4 = vadd.f32 %v5625_v32, %v4823_v23  ;;  %v5738_v20 = vpop.f32.mrf.mxu3  ;;  %v5402_v0 = vpop.f32.mrf.mxu0  ;;  %v12269_v32 = vld [vmem:[#allocation48_spill] sm:$0xff]  ;;  %v5936_v2 = vmax.f32 %v5808_v63, 0.0  ;;  %v5812_v24 = vadd.f32 %v11263_v29, %v5474_v44  ;;  %v5941_v44 = vmax.f32 %v5813_v59, 0.0  ;;  %v12281_v59 = vld [vmem:[#allocation121_spill] sm:$0xff] }
 0x6aa   : > { %v5403_v10 = vadd.f32 %v5402_v0, %v4826_v6  ;;  %v5515_v43 = vpop.f32.mrf.mxu1  ;;  %v4830_v6 = vmul.f32 %v11156_v55, %v12269_v32  ;;  %v5934_v0 = vmax.f32 %v5806_v36, 0.0  ;;  %v5810_v27 = vadd.f32 %v11256_v52, %v5022_v9 }
 0x6ab   : > { %v11359_v15 = vadd.f32 %v5738_v20, %v5626_v4  ;;  %v4774_v36 = vmul.f32 %v11156_v55, %v10599_v47  ;;  %v4831_v63 = vmul.f32 %v11070_v46, %v12269_v32  ;;  %v5940_v32 = vmax.f32 %v5812_v24, 0.0 }
 0x6ac   : > { %6139 = vmatmul.f32.gmra.mxu0 %v5930_v33  ;;  %v11361_v45 = vadd.f32 %v5515_v43, %v5403_v10  ;;  %6252 = vmatmul.f32.gmra.mxu1 %v5931_v49  ;;  %v4772_v33 = vmul.f32 %v10619_v28, %v10599_v47  ;;  %v5935_v10 = vmax.f32 %v5807_v7, 0.0  ;;  %v5937_v49 = vmax.f32 %v5809_v58, 0.0  ;;  %v12275_v47 = vld [vmem:[#allocation88_spill] sm:$0xff] }
 0x6ad   : > { %6365 = vmatmul.f32.gmra.mxu2 %v5932_v13  ;;  %v12271_v13 = vld [vmem:[#allocation27_spill] sm:$0xff]  ;;  %v5364_v7 = vadd.f32 %v12273_v1, %v4774_v36 }
 0x6ae   : > { %6478 = vmatmul.f32.gmra.mxu3 %v5933_v39  ;;  %v4912_v39 = vadd.f32 %v12271_v13, %v4772_v33  ;;  %v5939_v33 = vmax.f32 %v5811_v61, 0.0  ;;  %v12278_v13 = vld [vmem:[#allocation30_spill] sm:$0xff]  ;;  %v12280_v61 = vld [vmem:[#allocation123_spill] sm:$0xff] }
 0x6af   : > { %v5817_v24 = vadd.f32 %v11265_v31, %v12280_v61 }
 0x6b0   : > { %v5628_v23 = vpop.f32.mrf.mxu2 }
 0x6b1   : > { %v5629_v16 = vadd.f32 %v5628_v23, %v4827_v34  ;;  %v5741_v4 = vpop.f32.mrf.mxu3  ;;  %v5405_v20 = vpop.f32.mrf.mxu0  ;;  %v4834_v34 = vmul.f32 %v11156_v55, %v12274_v42  ;;  %v5025_v23 = vadd.f32 %v12275_v47, %v4912_v39  ;;  %v12279_v39 = vld [vmem:[#allocation91_spill] sm:$0xff]  ;;  %v12283_v47 = vld [vmem:[#allocation90_spill] sm:$0xff] }
 0x6b2   : > { %v5406_v17 = vadd.f32 %v5405_v20, %v4830_v6  ;;  %v5518_v62 = vpop.f32.mrf.mxu1  ;;  %v5815_v36 = vadd.f32 %v11258_v22, %v12279_v39 }
 0x6b3   : > { %v11381_v43 = vadd.f32 %v5741_v4, %v5629_v16  ;;  %v5938_v16 = vmax.f32 %v5810_v27, 0.0  ;;  %v12276_v4 = vld [vmem:[#allocation29_spill] sm:$0xff] }
 0x6b4   : > { %6142 = vmatmul.f32.gmra.mxu0 %v5934_v0  ;;  %v11383_v35 = vadd.f32 %v5518_v62, %v5406_v17  ;;  %6255 = vmatmul.f32.gmra.mxu1 %v5935_v10  ;;  %v4776_v20 = vmul.f32 %v10619_v28, %v12276_v4  ;;  %v12277_v17 = vld [vmem:[#allocation120_spill] sm:$0xff]  ;;  %v4778_v28 = vmul.f32 %v11156_v55, %v12276_v4 }
 0x6b5   : > { %6368 = vmatmul.f32.gmra.mxu2 %v5936_v2  ;;  %v5477_v62 = vadd.f32 %v12277_v17, %v5364_v7  ;;  %v4835_v7 = vmul.f32 %v11070_v46, %v12274_v42  ;;  %v5945_v42 = vmax.f32 %v5817_v24, 0.0 }
 0x6b6   : > { %6481 = vmatmul.f32.gmra.mxu3 %v5937_v49  ;;  %v5814_v49 = vadd.f32 %v11256_v52, %v5025_v23  ;;  %v4915_v27 = vadd.f32 %v12278_v13, %v4776_v20  ;;  %v5367_v1 = vadd.f32 %v12281_v59, %v4778_v28  ;;  %v12285_v13 = vld [vmem:[#allocation94_spill] sm:$0xff]  ;;  %v5821_v28 = vadd.f32 %v11265_v31, %v11165_v21 }
 0x6b7   : > { %v5816_v26 = vadd.f32 %v11263_v29, %v5477_v62 }
 0x6b8   : > { %v5631_v58 = vpop.f32.mrf.mxu2  ;;  %v5028_v23 = vadd.f32 %v12283_v47, %v4915_v27 }
 0x6b9   : > { %v5632_v6 = vadd.f32 %v5631_v58, %v4831_v63  ;;  %v5744_v51 = vpop.f32.mrf.mxu3  ;;  %v5408_v9 = vpop.f32.mrf.mxu0  ;;  %v12282_v58 = vld [vmem:[#allocation52_spill] sm:$0xff]  ;;  %v5944_v62 = vmax.f32 %v5816_v26, 0.0  ;;  %v12286_v26 = vld [vmem:[#allocation54_spill] sm:$0xff] }
 0x6ba   : > { %v5409_v0 = vadd.f32 %v5408_v9, %v4834_v34  ;;  %v5521_v19 = vpop.f32.mrf.mxu1  ;;  %v4838_v34 = vmul.f32 %v11156_v55, %v12282_v58  ;;  %v4839_v39 = vmul.f32 %v11070_v46, %v12282_v58  ;;  %v4842_v61 = vmul.f32 %v11156_v55, %v12286_v26  ;;  %v12287_v58 = vld [vmem:[#allocation95_spill] sm:$0xff] }
 0x6bb   : > { %v11403_v10 = vadd.f32 %v5744_v51, %v5632_v6 }
 0x6bc   : > { %6145 = vmatmul.f32.gmra.mxu0 %v5938_v16  ;;  %v11405_v2 = vadd.f32 %v5521_v19, %v5409_v0  ;;  %6258 = vmatmul.f32.gmra.mxu1 %v5939_v33  ;;  %v5942_v16 = vmax.f32 %v5814_v49, 0.0  ;;  %v5943_v0 = vmax.f32 %v5815_v36, 0.0  ;;  %v12284_v19 = vld [vmem:[#allocation122_spill] sm:$0xff]  ;;  %v5819_v49 = vadd.f32 %v11258_v22, %v12285_v13 }
 0x6bd   : > { %6371 = vmatmul.f32.gmra.mxu2 %v5940_v32  ;;  %v5480_v33 = vadd.f32 %v12284_v19, %v5367_v1  ;;  %v4843_v19 = vmul.f32 %v11070_v46, %v12286_v26  ;;  %v12290_v26 = vld [vmem:[#allocation96_spill] sm:$0xff] }
 0x6be   : > { %6484 = vmatmul.f32.gmra.mxu3 %v5941_v44  ;;  %v5818_v44 = vadd.f32 %v11256_v52, %v5028_v23  ;;  %v5947_v47 = vmax.f32 %v5819_v49, 0.0 }
 0x6bf   : > { %v5820_v27 = vadd.f32 %v11263_v29, %v5480_v33 }
 0x6c0   : > { %v5634_v63 = vpop.f32.mrf.mxu2 }
 0x6c1   : > { %v5635_v6 = vadd.f32 %v5634_v63, %v4835_v7  ;;  %v5747_v51 = vpop.f32.mrf.mxu3  ;;  %v5411_v9 = vpop.f32.mrf.mxu0  ;;  %v5946_v7 = vmax.f32 %v5818_v44, 0.0 }
 0x6c2   : > { %v5412_v4 = vadd.f32 %v5411_v9, %v4838_v34  ;;  %v5524_v20 = vpop.f32.mrf.mxu1  ;;  %v5822_v9 = vadd.f32 %v11256_v52, %v12287_v58 }
 0x6c3   : > { %v11423_v17 = vadd.f32 %v5747_v51, %v5635_v6  ;;  %v5948_v6 = vmax.f32 %v5820_v27, 0.0  ;;  %v5949_v51 = vmax.f32 %v5821_v28, 0.0 }
 0x6c4   : > { %6148 = vmatmul.f32.gmra.mxu0 %v5942_v16  ;;  %v11425_v32 = vadd.f32 %v5524_v20, %v5412_v4  ;;  %6261 = vmatmul.f32.gmra.mxu1 %v5943_v0  ;;  %v12288_v16 = vld [vmem:[#allocation37_spill] sm:$0xff]  ;;  %v5824_v20 = vadd.f32 %v11263_v29, %v11168_v40  ;;  %v5825_v0 = vadd.f32 %v11265_v31, %v11177_v3  ;;  %v5950_v27 = vmax.f32 %v5822_v9, 0.0 }
 0x6c5   : > { %6374 = vmatmul.f32.gmra.mxu2 %v5944_v62  ;;  %v5823_v4 = vadd.f32 %v11258_v22, %v12288_v16  ;;  %v12289_v62 = vld [vmem:[#allocation68_spill] sm:$0xff] }
 0x6c6   : > { %6487 = vmatmul.f32.gmra.mxu3 %v5945_v42  ;;  %v4846_v42 = vmul.f32 %v11156_v55, %v12289_v62  ;;  %v5952_v40 = vmax.f32 %v5824_v20, 0.0 }
 0x6c8   : > { %v5637_v36 = vpop.f32.mrf.mxu2 }
 0x6c9   : > { %v5638_v24 = vadd.f32 %v5637_v36, %v4839_v39  ;;  %v5750_v59 = vpop.f32.mrf.mxu3  ;;  %v5414_v1 = vpop.f32.mrf.mxu0  ;;  %v5951_v36 = vmax.f32 %v5823_v4, 0.0 }
 0x6ca   : > { %v5415_v63 = vadd.f32 %v5414_v1, %v4842_v61  ;;  %v5527_v34 = vpop.f32.mrf.mxu1  ;;  %v12291_v1 = vld [vmem:[#allocation28_spill] sm:$0xff] }
 0x6cb   : > { %v11437_v23 = vadd.f32 %v5750_v59, %v5638_v24  ;;  %v5953_v24 = vmax.f32 %v5825_v0, 0.0  ;;  %v5826_v59 = vadd.f32 %v11256_v52, %v12290_v26 }
 0x6cc   : > { %6151 = vmatmul.f32.gmra.mxu0 %v5946_v7  ;;  %v11439_v21 = vadd.f32 %v5527_v34, %v5415_v63  ;;  %6264 = vmatmul.f32.gmra.mxu1 %v5947_v47  ;;  %v5827_v7 = vadd.f32 %v11258_v22, %v12291_v1  ;;  %v5828_v63 = vadd.f32 %v11263_v29, %v11180_v56 }
 0x6cd   : > { %6377 = vmatmul.f32.gmra.mxu2 %v5948_v6  ;;  %v5829_v34 = vadd.f32 %v11265_v31, %v11189_v53  ;;  %v4847_v47 = vmul.f32 %v11070_v46, %v12289_v62  ;;  %v5954_v20 = vmax.f32 %v5826_v59, 0.0  ;;  %v12293_v62 = vld [vmem:[#allocation97_spill] sm:$0xff] }
 0x6ce   : > { %6490 = vmatmul.f32.gmra.mxu3 %v5949_v51  ;;  %v12292_v51 = vld [vmem:[#allocation69_spill] sm:$0xff]  ;;  %v5956_v56 = vmax.f32 %v5828_v63, 0.0 }
 0x6cf   : > { %v4850_v58 = vmul.f32 %v11156_v55, %v12292_v51 }
 0x6d0   : > { %v5640_v33 = vpop.f32.mrf.mxu2 }
 0x6d1   : > { %v5641_v44 = vadd.f32 %v5640_v33, %v4843_v19  ;;  %v5753_v13 = vpop.f32.mrf.mxu3  ;;  %v5417_v49 = vpop.f32.mrf.mxu0  ;;  %v5955_v33 = vmax.f32 %v5827_v7, 0.0 }
 0x6d2   : > { %v5418_v28 = vadd.f32 %v5417_v49, %v4846_v42  ;;  %v5530_v39 = vpop.f32.mrf.mxu1  ;;  %v12294_v49 = vld [vmem:[#allocation33_spill] sm:$0xff] }
 0x6d3   : > { %v11453_v61 = vadd.f32 %v5753_v13, %v5641_v44  ;;  %v5957_v44 = vmax.f32 %v5829_v34, 0.0  ;;  %v5830_v13 = vadd.f32 %v11256_v52, %v12293_v62 }
 0x6d4   : > { %6154 = vmatmul.f32.gmra.mxu0 %v5950_v27  ;;  %v11455_v3 = vadd.f32 %v5530_v39, %v5418_v28  ;;  %6267 = vmatmul.f32.gmra.mxu1 %v5951_v36  ;;  %v5831_v27 = vadd.f32 %v11258_v22, %v12294_v49  ;;  %v5832_v28 = vadd.f32 %v11263_v29, %v11192_v54 }
 0x6d5   : > { %6380 = vmatmul.f32.gmra.mxu2 %v5952_v40  ;;  %v5833_v39 = vadd.f32 %v11265_v31, %v11201_v11  ;;  %v4851_v36 = vmul.f32 %v11070_v46, %v12292_v51  ;;  %v5958_v63 = vmax.f32 %v5830_v13, 0.0  ;;  %v12296_v51 = vld [vmem:[#allocation98_spill] sm:$0xff] }
 0x6d6   : > { %6493 = vmatmul.f32.gmra.mxu3 %v5953_v24  ;;  %v12295_v24 = vld [vmem:[#allocation71_spill] sm:$0xff]  ;;  %v5960_v54 = vmax.f32 %v5832_v28, 0.0 }
 0x6d7   : > { %v4854_v26 = vmul.f32 %v11156_v55, %v12295_v24 }
 0x6d8   : > { %v5643_v6 = vpop.f32.mrf.mxu2 }
 0x6d9   : > { %v5644_v9 = vadd.f32 %v5643_v6, %v4847_v47  ;;  %v5756_v16 = vpop.f32.mrf.mxu3  ;;  %v5420_v4 = vpop.f32.mrf.mxu0  ;;  %v5959_v6 = vmax.f32 %v5831_v27, 0.0 }
 0x6da   : > { %v5421_v0 = vadd.f32 %v5420_v4, %v4850_v58  ;;  %v5533_v19 = vpop.f32.mrf.mxu1  ;;  %v12297_v4 = vld [vmem:[#allocation32_spill] sm:$0xff] }
 0x6db   : > { %v11469_v42 = vadd.f32 %v5756_v16, %v5644_v9  ;;  %v5961_v9 = vmax.f32 %v5833_v39, 0.0  ;;  %v5834_v16 = vadd.f32 %v11256_v52, %v12296_v51 }
 0x6dc   : > { %6157 = vmatmul.f32.gmra.mxu0 %v5954_v20  ;;  %v11471_v53 = vadd.f32 %v5533_v19, %v5421_v0  ;;  %6270 = vmatmul.f32.gmra.mxu1 %v5955_v33  ;;  %v5835_v20 = vadd.f32 %v11258_v22, %v12297_v4  ;;  %v5836_v0 = vadd.f32 %v11263_v29, %v11204_v8 }
 0x6dd   : > { %6383 = vmatmul.f32.gmra.mxu2 %v5956_v56  ;;  %v5837_v19 = vadd.f32 %v11265_v31, %v11213_v12  ;;  %v4855_v33 = vmul.f32 %v11070_v46, %v12295_v24  ;;  %v5962_v28 = vmax.f32 %v5834_v16, 0.0  ;;  %v12299_v24 = vld [vmem:[#allocation99_spill] sm:$0xff] }
 0x6de   : > { %6496 = vmatmul.f32.gmra.mxu3 %v5957_v44  ;;  %v12298_v44 = vld [vmem:[#allocation72_spill] sm:$0xff]  ;;  %v5964_v8 = vmax.f32 %v5836_v0, 0.0 }
 0x6df   : > { %v4858_v62 = vmul.f32 %v11156_v55, %v12298_v44 }
 0x6e0   : > { %v5646_v40 = vpop.f32.mrf.mxu2 }
 0x6e1   : > { %v5647_v59 = vadd.f32 %v5646_v40, %v4851_v36  ;;  %v5759_v1 = vpop.f32.mrf.mxu3  ;;  %v5423_v7 = vpop.f32.mrf.mxu0  ;;  %v5963_v40 = vmax.f32 %v5835_v20, 0.0 }
 0x6e2   : > { %v5424_v34 = vadd.f32 %v5423_v7, %v4854_v26  ;;  %v5536_v47 = vpop.f32.mrf.mxu1  ;;  %v12300_v7 = vld [vmem:[#allocation38_spill] sm:$0xff] }
 0x6e3   : > { %v11485_v58 = vadd.f32 %v5759_v1, %v5647_v59  ;;  %v5965_v59 = vmax.f32 %v5837_v19, 0.0  ;;  %v5838_v1 = vadd.f32 %v11256_v52, %v12299_v24 }
 0x6e4   : > { %6160 = vmatmul.f32.gmra.mxu0 %v5958_v63  ;;  %v11487_v11 = vadd.f32 %v5536_v47, %v5424_v34  ;;  %6273 = vmatmul.f32.gmra.mxu1 %v5959_v6  ;;  %v5839_v63 = vadd.f32 %v11258_v22, %v12300_v7  ;;  %v5840_v34 = vadd.f32 %v11263_v29, %v11216_v57 }
 0x6e5   : > { %6386 = vmatmul.f32.gmra.mxu2 %v5960_v54  ;;  %v5841_v47 = vadd.f32 %v11265_v31, %v11225_v48  ;;  %v4859_v6 = vmul.f32 %v11070_v46, %v12298_v44  ;;  %v5966_v0 = vmax.f32 %v5838_v1, 0.0  ;;  %v12302_v44 = vld [vmem:[#allocation100_spill] sm:$0xff] }
 0x6e6   : > { %6499 = vmatmul.f32.gmra.mxu3 %v5961_v9  ;;  %v12301_v9 = vld [vmem:[#allocation73_spill] sm:$0xff]  ;;  %v5968_v57 = vmax.f32 %v5840_v34, 0.0 }
 0x6e7   : > { %v4862_v51 = vmul.f32 %v11156_v55, %v12301_v9 }
 0x6e8   : > { %v5649_v56 = vpop.f32.mrf.mxu2 }
 0x6e9   : > { %v5650_v13 = vadd.f32 %v5649_v56, %v4855_v33  ;;  %v5762_v49 = vpop.f32.mrf.mxu3  ;;  %v5426_v27 = vpop.f32.mrf.mxu0  ;;  %v5967_v56 = vmax.f32 %v5839_v63, 0.0 }
 0x6ea   : > { %v5427_v39 = vadd.f32 %v5426_v27, %v4858_v62  ;;  %v5539_v36 = vpop.f32.mrf.mxu1  ;;  %v12303_v27 = vld [vmem:[#allocation31_spill] sm:$0xff] }
 0x6eb   : > { %v11501_v26 = vadd.f32 %v5762_v49, %v5650_v13  ;;  %v5969_v13 = vmax.f32 %v5841_v47, 0.0  ;;  %v5842_v49 = vadd.f32 %v11256_v52, %v12302_v44 }
 0x6ec   : > { %6163 = vmatmul.f32.gmra.mxu0 %v5962_v28  ;;  %v11503_v12 = vadd.f32 %v5539_v36, %v5427_v39  ;;  %6276 = vmatmul.f32.gmra.mxu1 %v5963_v40  ;;  %v5843_v28 = vadd.f32 %v11258_v22, %v12303_v27  ;;  %v5844_v39 = vadd.f32 %v11263_v29, %v11228_v41 }
 0x6ed   : > { %6389 = vmatmul.f32.gmra.mxu2 %v5964_v8  ;;  %v5845_v36 = vadd.f32 %v11265_v31, %v11239_v38  ;;  %v4863_v40 = vmul.f32 %v11070_v46, %v12301_v9  ;;  %v12304_v8 = vld [vmem:[#allocation74_spill] sm:$0xff]  ;;  %v5970_v34 = vmax.f32 %v5842_v49, 0.0  ;;  %v12305_v9 = vld [vmem:[#allocation101_spill] sm:$0xff] }
 0x6ee   : > { %6502 = vmatmul.f32.gmra.mxu3 %v5965_v59  ;;  %v4866_v59 = vmul.f32 %v11156_v55, %v12304_v8  ;;  %v5972_v41 = vmax.f32 %v5844_v39, 0.0 }
 0x6f0   : > { %v5652_v54 = vpop.f32.mrf.mxu2 }
 0x6f1   : > { %v5653_v16 = vadd.f32 %v5652_v54, %v4859_v6  ;;  %v5765_v4 = vpop.f32.mrf.mxu3  ;;  %v5429_v20 = vpop.f32.mrf.mxu0  ;;  %v5971_v54 = vmax.f32 %v5843_v28, 0.0 }
 0x6f2   : > { %v5430_v19 = vadd.f32 %v5429_v20, %v4862_v51  ;;  %v5542_v33 = vpop.f32.mrf.mxu1  ;;  %v12306_v20 = vld [vmem:[#allocation36_spill] sm:$0xff] }
 0x6f3   : > { %v11517_v62 = vadd.f32 %v5765_v4, %v5653_v16  ;;  %v5973_v16 = vmax.f32 %v5845_v36, 0.0  ;;  %v5846_v4 = vadd.f32 %v11256_v52, %v12305_v9 }
 0x6f4   : > { %6166 = vmatmul.f32.gmra.mxu0 %v5966_v0  ;;  %v11519_v48 = vadd.f32 %v5542_v33, %v5430_v19  ;;  %6279 = vmatmul.f32.gmra.mxu1 %v5967_v56  ;;  %v5847_v0 = vadd.f32 %v11258_v22, %v12306_v20  ;;  %v4867_v19 = vmul.f32 %v11070_v46, %v12304_v8 }
 0x6f5   : > { %6392 = vmatmul.f32.gmra.mxu2 %v5968_v57  ;;  %v5848_v33 = vadd.f32 %v11263_v29, %v11242_v14  ;;  %v5849_v56 = vadd.f32 %v11265_v31, %v11267_v25  ;;  %v12307_v57 = vld [vmem:[#allocation76_spill] sm:$0xff]  ;;  %v5974_v39 = vmax.f32 %v5846_v4, 0.0  ;;  %v12308_v25 = vld [vmem:[#allocation102_spill] sm:$0xff] }
 0x6f6   : > { %6505 = vmatmul.f32.gmra.mxu3 %v5969_v13  ;;  %v4870_v13 = vmul.f32 %v11156_v55, %v12307_v57 }
 0x6f7   : > { %v5976_v8 = vmax.f32 %v5848_v33, 0.0 }
 0x6f8   : > { %v5655_v24 = vpop.f32.mrf.mxu2 }
 0x6f9   : > { %v5656_v1 = vadd.f32 %v5655_v24, %v4863_v40  ;;  %v5768_v7 = vpop.f32.mrf.mxu3  ;;  %v5432_v63 = vpop.f32.mrf.mxu0 }
 0x6fa   : > { %v5433_v47 = vadd.f32 %v5432_v63, %v4866_v59  ;;  %v5545_v6 = vpop.f32.mrf.mxu1  ;;  %v5975_v59 = vmax.f32 %v5847_v0, 0.0  ;;  %v12309_v63 = vld [vmem:[#allocation103_spill] sm:$0xff] }
 0x6fb   : > { %v11533_v51 = vadd.f32 %v5768_v7, %v5656_v1  ;;  %v5977_v1 = vmax.f32 %v5849_v56, 0.0  ;;  %v5850_v7 = vadd.f32 %v11256_v52, %v12308_v25 }
 0x6fc   : > { %6169 = vmatmul.f32.gmra.mxu0 %v5970_v34  ;;  %v11535_v38 = vadd.f32 %v5545_v6, %v5433_v47  ;;  %6282 = vmatmul.f32.gmra.mxu1 %v5971_v54  ;;  %v5851_v34 = vadd.f32 %v11258_v22, %v12309_v63  ;;  %v4871_v47 = vmul.f32 %v11070_v46, %v12307_v57  ;;  %v12310_v6 = vld [vmem:[#allocation92_spill] sm:$0xff] }
 0x6fd   : > { %6395 = vmatmul.f32.gmra.mxu2 %v5972_v41  ;;  %v5852_v54 = vadd.f32 %v11263_v29, %v12310_v6  ;;  %v5853_v41 = vadd.f32 %v11265_v31, %v11293_v18  ;;  %v5978_v33 = vmax.f32 %v5850_v7, 0.0  ;;  %v12312_v18 = vld [vmem:[#allocation40_spill] sm:$0xff] }
 0x6fe   : > { %6508 = vmatmul.f32.gmra.mxu3 %v5973_v16  ;;  %v12311_v16 = vld [vmem:[#allocation60_spill] sm:$0xff] }
 0x6ff   : > { %v4874_v9 = vmul.f32 %v11156_v55, %v12311_v16  ;;  %v5980_v57 = vmax.f32 %v5852_v54, 0.0  ;;  %v12313_v55 = vld [vmem:[#allocation43_spill] sm:$0xff] }
 0x700   : > { %v5658_v44 = vpop.f32.mrf.mxu2 }
 0x701   : > { %v5659_v49 = vadd.f32 %v5658_v44, %v4867_v19  ;;  %v5771_v27 = vpop.f32.mrf.mxu3  ;;  %v5435_v28 = vpop.f32.mrf.mxu0  ;;  %v5979_v44 = vmax.f32 %v5851_v34, 0.0 }
 0x702   : > { %v5436_v36 = vadd.f32 %v5435_v28, %v4870_v13  ;;  %v5548_v40 = vpop.f32.mrf.mxu1 }
 0x703   : > { %v11549_v24 = vadd.f32 %v5771_v27, %v5659_v49  ;;  %v5981_v27 = vmax.f32 %v5853_v41, 0.0 }
 0x704   : > { %6172 = vmatmul.f32.gmra.mxu0 %v5974_v39  ;;  %v11551_v14 = vadd.f32 %v5548_v40, %v5436_v36  ;;  %6285 = vmatmul.f32.gmra.mxu1 %v5975_v59  ;;  %v5854_v39 = vadd.f32 %v11256_v52, %v12312_v18  ;;  %v5855_v36 = vadd.f32 %v11258_v22, %v12313_v55 }
 0x705   : > { %6398 = vmatmul.f32.gmra.mxu2 %v5976_v8  ;;  %v4875_v40 = vmul.f32 %v11070_v46, %v12311_v16  ;;  %v5856_v59 = vadd.f32 %v11263_v29, %v11295_v37  ;;  %v5857_v8 = vadd.f32 %v11265_v31, %v11315_v60 }
 0x706   : > { %6511 = vmatmul.f32.gmra.mxu3 %v5977_v1  ;;  %v11579_v1 = vld [vmem:[#allocation16] ss:$0 sm:$0xff]  ;;  %v5983_v54 = vmax.f32 %v5855_v36, 0.0 }
 0x707   : > { %v5984_v16 = vmax.f32 %v5856_v59, 0.0  ;;  %v5985_v37 = vmax.f32 %v5857_v8, 0.0 }
 0x708   : > { %v5661_v4 = vpop.f32.mrf.mxu2 }
 0x709   : > { %v5662_v20 = vadd.f32 %v5661_v4, %v4871_v47  ;;  %v5774_v0 = vpop.f32.mrf.mxu3  ;;  %v5438_v19 = vpop.f32.mrf.mxu0  ;;  %v5982_v47 = vmax.f32 %v5854_v39, 0.0  ;;  %v12315_v4 = vld [vmem:[#allocation105_spill] sm:$0xff] }
 0x70a   : > { %v5439_v56 = vadd.f32 %v5438_v19, %v4874_v9  ;;  %v5551_v13 = vpop.f32.mrf.mxu1  ;;  %v12314_v9 = vld [vmem:[#allocation104_spill] sm:$0xff]  ;;  %v5861_v19 = vadd.f32 %v11265_v31, %v11337_v30  ;;  %v12317_v30 = vld [vmem:[#allocation106_spill] sm:$0xff] }
 0x70b   : > { %v11565_v49 = vadd.f32 %v5774_v0, %v5662_v20  ;;  %v5858_v60 = vadd.f32 %v11256_v52, %v12314_v9  ;;  %v5859_v20 = vadd.f32 %v11258_v22, %v12315_v4  ;;  %v5860_v0 = vadd.f32 %v11263_v29, %v11317_v5  ;;  %v12316_v5 = vld [vmem:[#allocation45_spill] sm:$0xff] }
 0x70c   : > { %6175 = vmatmul.f32.gmra.mxu0 %v5978_v33  ;;  %v11567_v28 = vadd.f32 %v5551_v13, %v5439_v56  ;;  %6288 = vmatmul.f32.gmra.mxu1 %v5979_v44  ;;  %v5989_v59 = vmax.f32 %v5861_v19, 0.0  ;;  %v5862_v8 = vadd.f32 %v11256_v52, %v12316_v5 }
 0x70d   : > { %6401 = vmatmul.f32.gmra.mxu2 %v5980_v57  ;;  %v5987_v39 = vmax.f32 %v5859_v20, 0.0 }
 0x70e   : > { %6514 = vmatmul.f32.gmra.mxu3 %v5981_v27  ;;  %v5986_v27 = vmax.f32 %v5858_v60, 0.0 }
 0x710   : > { %v5664_v25 = vpop.f32.mrf.mxu2 }
 0x711   : > { %v5665_v7 = vadd.f32 %v5664_v25, %v4875_v40  ;;  %v5777_v63 = vpop.f32.mrf.mxu3  ;;  %v6131_v34 = vpop.f32.mrf.mxu0  ;;  %v5988_v40 = vmax.f32 %v5860_v0, 0.0  ;;  %v5863_v25 = vadd.f32 %v11258_v22, %v12317_v30 }
 0x712   : > { %v6244_v6 = vpop.f32.mrf.mxu1  ;;  %v6132_v46 = vadd.f32 %v11579_v1, %v6131_v34 }
 0x713   : > { %v11581_v41 = vadd.f32 %v5777_v63, %v5665_v7  ;;  %v5864_v7 = vadd.f32 %v11263_v29, %v11339_v50  ;;  %v5865_v63 = vadd.f32 %v11265_v31, %v11359_v15  ;;  %v5991_v9 = vmax.f32 %v5863_v25, 0.0  ;;  %v12318_v50 = vld [vmem:[#allocation47_spill] sm:$0xff] }
 0x714   : > { %6178 = vmatmul.f32.gmra.mxu0 %v5982_v47  ;;  %6291 = vmatmul.f32.gmra.mxu1 %v5983_v54  ;;  %v6245_v33 = vadd.f32 %v6244_v6, %v6132_v46  ;;  %v5866_v19 = vadd.f32 %v11256_v52, %v12318_v50  ;;  %v12319_v15 = vld [vmem:[#allocation107_spill] sm:$0xff] }
 0x715   : > { %6404 = vmatmul.f32.gmra.mxu2 %v5984_v16  ;;  %v5990_v16 = vmax.f32 %v5862_v8, 0.0  ;;  %v5992_v20 = vmax.f32 %v5864_v7, 0.0  ;;  %v5993_v0 = vmax.f32 %v5865_v63, 0.0  ;;  %v5872_v63 = vadd.f32 %v11263_v29, %v11383_v35  ;;  %v12322_v35 = vld [vmem:[#allocation51_spill] sm:$0xff] }
 0x716   : > { %6517 = vmatmul.f32.gmra.mxu3 %v5985_v37 }
 0x718   : > { %v6357_v56 = vpop.f32.mrf.mxu2 }
 0x719   : > { %v6358_v13 = vadd.f32 %v6357_v56, %v6245_v33  ;;  %v6470_v44 = vpop.f32.mrf.mxu3  ;;  %v6134_v57 = vpop.f32.mrf.mxu0  ;;  %v5867_v33 = vadd.f32 %v11258_v22, %v12319_v15  ;;  %v5868_v56 = vadd.f32 %v11263_v29, %v11361_v45  ;;  %v12320_v45 = vld [vmem:[#allocation49_spill] sm:$0xff] }
 0x71a   : > { %v6247_v18 = vpop.f32.mrf.mxu1  ;;  %v6135_v36 = vadd.f32 %v11579_v1, %v6134_v57  ;;  %v5870_v25 = vadd.f32 %v11256_v52, %v12320_v45 }
 0x71b   : > { %v6471_v55 = vadd.f32 %v6470_v44, %v6358_v13  ;;  %v5869_v13 = vadd.f32 %v11265_v31, %v11381_v43  ;;  %v5996_v8 = vmax.f32 %v5868_v56, 0.0  ;;  %v12321_v43 = vld [vmem:[#allocation108_spill] sm:$0xff]  ;;  %v5877_v56 = vadd.f32 %v11265_v31, %v11423_v17  ;;  %v12325_v17 = vld [vmem:[#allocation110_spill] sm:$0xff] }
 0x71c   : > { %6181 = vmatmul.f32.gmra.mxu0 %v5986_v27  ;;  %6294 = vmatmul.f32.gmra.mxu1 %v5987_v39  ;;  %v6248_v34 = vadd.f32 %v6247_v18, %v6135_v36  ;;  %v5871_v7 = vadd.f32 %v11258_v22, %v12321_v43  ;;  %v5879_v45 = vadd.f32 %v11258_v22, %v12325_v17 }
 0x71d   : > { %6566 = vst [vmem:[%s11596_s6] sm:$0xff] %v6471_v55  ;;  %6407 = vmatmul.f32.gmra.mxu2 %v5988_v40  ;;  %v5994_v55 = vmax.f32 %v5866_v19, 0.0  ;;  %v5995_v40 = vmax.f32 %v5867_v33, 0.0  ;;  %v5997_v30 = vmax.f32 %v5869_v13, 0.0  ;;  %v5874_v19 = vadd.f32 %v11256_v52, %v12322_v35 }
 0x71e   : > { %6520 = vmatmul.f32.gmra.mxu3 %v5989_v59  ;;  %v5876_v33 = vadd.f32 %v11263_v29, %v11405_v2  ;;  %v12324_v2 = vld [vmem:[#allocation53_spill] sm:$0xff]  ;;  %v5881_v43 = vadd.f32 %v11265_v31, %v11437_v23  ;;  %v12327_v23 = vld [vmem:[#allocation111_spill] sm:$0xff]  ;;  %v5885_v35 = vadd.f32 %v11265_v31, %v11453_v61  ;;  %v12329_v61 = vld [vmem:[#allocation112_spill] sm:$0xff] }
 0x720   : > { %v6360_v47 = vpop.f32.mrf.mxu2 }
 0x721   : > { %v6361_v6 = vadd.f32 %v6360_v47, %v6248_v34  ;;  %v6473_v54 = vpop.f32.mrf.mxu3  ;;  %v6137_v46 = vpop.f32.mrf.mxu0  ;;  %v5873_v34 = vadd.f32 %v11265_v31, %v11403_v10  ;;  %v12323_v10 = vld [vmem:[#allocation109_spill] sm:$0xff] }
 0x722   : > { %v6250_v37 = vpop.f32.mrf.mxu1  ;;  %v6138_v4 = vadd.f32 %v11579_v1, %v6137_v46  ;;  %v5875_v15 = vadd.f32 %v11258_v22, %v12323_v10 }
 0x723   : > { %v6474_v60 = vadd.f32 %v6473_v54, %v6361_v6  ;;  %v6001_v50 = vmax.f32 %v5873_v34, 0.0 }
 0x724   : > { %6184 = vmatmul.f32.gmra.mxu0 %v5990_v16  ;;  %6297 = vmatmul.f32.gmra.mxu1 %v5991_v9  ;;  %v6251_v44 = vadd.f32 %v6250_v37, %v6138_v4  ;;  %v5998_v37 = vmax.f32 %v5870_v25, 0.0  ;;  %v5880_v25 = vadd.f32 %v11263_v29, %v11425_v32  ;;  %v12326_v32 = vld [vmem:[#allocation55_spill] sm:$0xff] }
 0x725   : > { %6567 = vst [vmem:[%s11596_s6 + $0x8] sm:$0xff] %v6474_v60  ;;  %6410 = vmatmul.f32.gmra.mxu2 %v5992_v20  ;;  %v5999_v60 = vmax.f32 %v5871_v7, 0.0 }
 0x726   : > { %6523 = vmatmul.f32.gmra.mxu3 %v5993_v0  ;;  %v6000_v0 = vmax.f32 %v5872_v63, 0.0 }
 0x728   : > { %v6363_v57 = vpop.f32.mrf.mxu2 }
 0x729   : > { %v6364_v27 = vadd.f32 %v6363_v57, %v6251_v44  ;;  %v6476_v18 = vpop.f32.mrf.mxu3  ;;  %v6140_v39 = vpop.f32.mrf.mxu0 }
 0x72a   : > { %v6253_v36 = vpop.f32.mrf.mxu1  ;;  %v6141_v5 = vadd.f32 %v11579_v1, %v6140_v39  ;;  %v6002_v39 = vmax.f32 %v5874_v19, 0.0 }
 0x72b   : > { %v6477_v59 = vadd.f32 %v6476_v18, %v6364_v27 }
 0x72c   : > { %6187 = vmatmul.f32.gmra.mxu0 %v5994_v55  ;;  %6300 = vmatmul.f32.gmra.mxu1 %v5995_v40  ;;  %v6254_v47 = vadd.f32 %v6253_v36, %v6141_v5  ;;  %v6003_v36 = vmax.f32 %v5875_v15, 0.0  ;;  %v6004_v5 = vmax.f32 %v5876_v33, 0.0 }
 0x72d   : > { %6568 = vst [vmem:[%s11596_s6 + $0x10] sm:$0xff] %v6477_v59  ;;  %6413 = vmatmul.f32.gmra.mxu2 %v5996_v8  ;;  %v6005_v8 = vmax.f32 %v5877_v56, 0.0 }
 0x72e   : > { %6526 = vmatmul.f32.gmra.mxu3 %v5997_v30  ;;  %v5878_v30 = vadd.f32 %v11256_v52, %v12324_v2 }
 0x730   : > { %v6366_v6 = vpop.f32.mrf.mxu2 }
 0x731   : > { %v6367_v54 = vadd.f32 %v6366_v6, %v6254_v47  ;;  %v6479_v46 = vpop.f32.mrf.mxu3  ;;  %v6143_v16 = vpop.f32.mrf.mxu0 }
 0x732   : > { %v6256_v9 = vpop.f32.mrf.mxu1  ;;  %v6144_v20 = vadd.f32 %v11579_v1, %v6143_v16  ;;  %v6007_v16 = vmax.f32 %v5879_v45, 0.0 }
 0x733   : > { %v6480_v4 = vadd.f32 %v6479_v46, %v6367_v54  ;;  %v6006_v54 = vmax.f32 %v5878_v30, 0.0 }
 0x734   : > { %6190 = vmatmul.f32.gmra.mxu0 %v5998_v37  ;;  %6303 = vmatmul.f32.gmra.mxu1 %v5999_v60  ;;  %v6257_v13 = vadd.f32 %v6256_v9, %v6144_v20  ;;  %v6008_v60 = vmax.f32 %v5880_v25, 0.0  ;;  %v5882_v20 = vadd.f32 %v11256_v52, %v12326_v32 }
 0x735   : > { %6569 = vst [vmem:[%s11596_s6 + $0x18] sm:$0xff] %v6480_v4  ;;  %6416 = vmatmul.f32.gmra.mxu2 %v6000_v0  ;;  %v6009_v4 = vmax.f32 %v5881_v43, 0.0  ;;  %v5883_v0 = vadd.f32 %v11258_v22, %v12327_v23 }
 0x736   : > { %6529 = vmatmul.f32.gmra.mxu3 %v6001_v50  ;;  %v5884_v50 = vadd.f32 %v11263_v29, %v11439_v21  ;;  %v12328_v21 = vld [vmem:[#allocation56_spill] sm:$0xff] }
 0x738   : > { %v6369_v44 = vpop.f32.mrf.mxu2 }
 0x739   : > { %v6370_v57 = vadd.f32 %v6369_v44, %v6257_v13  ;;  %v6482_v27 = vpop.f32.mrf.mxu3  ;;  %v6146_v18 = vpop.f32.mrf.mxu0  ;;  %v6010_v13 = vmax.f32 %v5882_v20, 0.0 }
 0x73a   : > { %v6259_v55 = vpop.f32.mrf.mxu1  ;;  %v6147_v59 = vadd.f32 %v11579_v1, %v6146_v18 }
 0x73b   : > { %v6483_v40 = vadd.f32 %v6482_v27, %v6370_v57  ;;  %v6011_v57 = vmax.f32 %v5883_v0, 0.0 }
 0x73c   : > { %6193 = vmatmul.f32.gmra.mxu0 %v6002_v39  ;;  %6306 = vmatmul.f32.gmra.mxu1 %v6003_v36  ;;  %v6260_v7 = vadd.f32 %v6259_v55, %v6147_v59  ;;  %v6012_v39 = vmax.f32 %v5884_v50, 0.0  ;;  %v6013_v55 = vmax.f32 %v5885_v35, 0.0  ;;  %v5886_v36 = vadd.f32 %v11256_v52, %v12328_v21 }
 0x73d   : > { %6570 = vst [vmem:[%s11596_s6 + $0x20] sm:$0xff] %v6483_v40  ;;  %6419 = vmatmul.f32.gmra.mxu2 %v6004_v5  ;;  %v5887_v40 = vadd.f32 %v11258_v22, %v12329_v61  ;;  %v5888_v59 = vadd.f32 %v11263_v29, %v11455_v3  ;;  %v5889_v5 = vadd.f32 %v11265_v31, %v11469_v42  ;;  %v12330_v3 = vld [vmem:[#allocation70_spill] sm:$0xff]  ;;  %v12331_v42 = vld [vmem:[#allocation113_spill] sm:$0xff] }
 0x73e   : > { %6532 = vmatmul.f32.gmra.mxu3 %v6005_v8  ;;  %v6014_v25 = vmax.f32 %v5886_v36, 0.0 }
 0x740   : > { %v6372_v63 = vpop.f32.mrf.mxu2 }
 0x741   : > { %v6373_v34 = vadd.f32 %v6372_v63, %v6260_v7  ;;  %v6485_v47 = vpop.f32.mrf.mxu3  ;;  %v6149_v6 = vpop.f32.mrf.mxu0  ;;  %v6015_v7 = vmax.f32 %v5887_v40, 0.0 }
 0x742   : > { %v6262_v46 = vpop.f32.mrf.mxu1  ;;  %v6150_v9 = vadd.f32 %v11579_v1, %v6149_v6  ;;  %v6017_v6 = vmax.f32 %v5889_v5, 0.0 }
 0x743   : > { %v6486_v37 = vadd.f32 %v6485_v47, %v6373_v34  ;;  %v6016_v47 = vmax.f32 %v5888_v59, 0.0 }
 0x744   : > { %6196 = vmatmul.f32.gmra.mxu0 %v6006_v54  ;;  %6309 = vmatmul.f32.gmra.mxu1 %v6007_v16  ;;  %v6263_v19 = vadd.f32 %v6262_v46, %v6150_v9  ;;  %v5890_v54 = vadd.f32 %v11256_v52, %v12330_v3  ;;  %v5891_v46 = vadd.f32 %v11258_v22, %v12331_v42 }
 0x745   : > { %6571 = vst [vmem:[%s11596_s6 + $0x28] sm:$0xff] %v6486_v37  ;;  %6422 = vmatmul.f32.gmra.mxu2 %v6008_v60  ;;  %v5892_v16 = vadd.f32 %v11263_v29, %v11471_v53  ;;  %v5893_v37 = vadd.f32 %v11265_v31, %v11485_v58  ;;  %v12332_v53 = vld [vmem:[#allocation57_spill] sm:$0xff]  ;;  %v12333_v58 = vld [vmem:[#allocation114_spill] sm:$0xff] }
 0x746   : > { %6535 = vmatmul.f32.gmra.mxu3 %v6009_v4  ;;  %v6018_v23 = vmax.f32 %v5890_v54, 0.0  ;;  %v6019_v50 = vmax.f32 %v5891_v46, 0.0 }
 0x748   : > { %v6375_v10 = vpop.f32.mrf.mxu2 }
 0x749   : > { %v6376_v15 = vadd.f32 %v6375_v10, %v6263_v19  ;;  %v6488_v33 = vpop.f32.mrf.mxu3  ;;  %v6152_v56 = vpop.f32.mrf.mxu0  ;;  %v6020_v10 = vmax.f32 %v5892_v16, 0.0 }
 0x74a   : > { %v6265_v44 = vpop.f32.mrf.mxu1  ;;  %v6153_v18 = vadd.f32 %v11579_v1, %v6152_v56  ;;  %v5895_v56 = vadd.f32 %v11258_v22, %v12333_v58 }
 0x74b   : > { %v6489_v27 = vadd.f32 %v6488_v33, %v6376_v15  ;;  %v6021_v15 = vmax.f32 %v5893_v37, 0.0  ;;  %v5894_v33 = vadd.f32 %v11256_v52, %v12332_v53 }
 0x74c   : > { %6199 = vmatmul.f32.gmra.mxu0 %v6010_v13  ;;  %6312 = vmatmul.f32.gmra.mxu1 %v6011_v57  ;;  %v6266_v8 = vadd.f32 %v6265_v44, %v6153_v18  ;;  %v5896_v13 = vadd.f32 %v11263_v29, %v11487_v11  ;;  %v5897_v44 = vadd.f32 %v11265_v31, %v11501_v26  ;;  %v6023_v61 = vmax.f32 %v5895_v56, 0.0  ;;  %v12334_v11 = vld [vmem:[#allocation58_spill] sm:$0xff]  ;;  %v12335_v26 = vld [vmem:[#allocation115_spill] sm:$0xff] }
 0x74d   : > { %6572 = vst [vmem:[%s11596_s6 + $0x30] sm:$0xff] %v6489_v27  ;;  %6425 = vmatmul.f32.gmra.mxu2 %v6012_v39  ;;  %v6022_v21 = vmax.f32 %v5894_v33, 0.0 }
 0x74e   : > { %6538 = vmatmul.f32.gmra.mxu3 %v6013_v55  ;;  %v6024_v5 = vmax.f32 %v5896_v13, 0.0 }
 0x750   : > { %v6378_v2 = vpop.f32.mrf.mxu2 }
 0x751   : > { %v6379_v30 = vadd.f32 %v6378_v2, %v6266_v8  ;;  %v6491_v17 = vpop.f32.mrf.mxu3  ;;  %v6155_v45 = vpop.f32.mrf.mxu0  ;;  %v6025_v8 = vmax.f32 %v5897_v44, 0.0  ;;  %v5898_v2 = vadd.f32 %v11256_v52, %v12334_v11  ;;  %v5908_v44 = vadd.f32 %v11263_v29, %v11535_v38  ;;  %v12340_v38 = vld [vmem:[#allocation35_spill] sm:$0xff] }
 0x752   : > { %v6268_v43 = vpop.f32.mrf.mxu1  ;;  %v6156_v34 = vadd.f32 %v11579_v1, %v6155_v45  ;;  %v5901_v45 = vadd.f32 %v11265_v31, %v11517_v62  ;;  %v12337_v62 = vld [vmem:[#allocation116_spill] sm:$0xff] }
 0x753   : > { %v6492_v63 = vadd.f32 %v6491_v17, %v6379_v30  ;;  %v5899_v30 = vadd.f32 %v11258_v22, %v12335_v26  ;;  %v5900_v17 = vadd.f32 %v11263_v29, %v11503_v12  ;;  %v12336_v12 = vld [vmem:[#allocation59_spill] sm:$0xff] }
 0x754   : > { %6202 = vmatmul.f32.gmra.mxu0 %v6014_v25  ;;  %6315 = vmatmul.f32.gmra.mxu1 %v6015_v7  ;;  %v6269_v9 = vadd.f32 %v6268_v43, %v6156_v34  ;;  %v6029_v16 = vmax.f32 %v5901_v45, 0.0  ;;  %v5902_v37 = vadd.f32 %v11256_v52, %v12336_v12 }
 0x755   : > { %6573 = vst [vmem:[%s11596_s6 + $0x38] sm:$0xff] %v6492_v63  ;;  %6428 = vmatmul.f32.gmra.mxu2 %v6016_v47  ;;  %v6026_v47 = vmax.f32 %v5898_v2, 0.0  ;;  %v6027_v3 = vmax.f32 %v5899_v30, 0.0  ;;  %v6028_v46 = vmax.f32 %v5900_v17, 0.0  ;;  %v5910_v2 = vadd.f32 %v11256_v52, %v12340_v38 }
 0x756   : > { %6541 = vmatmul.f32.gmra.mxu3 %v6017_v6  ;;  %v5912_v30 = vadd.f32 %v11263_v29, %v11551_v14  ;;  %v5913_v17 = vadd.f32 %v11265_v31, %v11565_v49  ;;  %v12342_v14 = vld [vmem:[#allocation42_spill] sm:$0xff]  ;;  %v12343_v49 = vld [vmem:[#allocation41_spill] sm:$0xff] }
 0x757   : > { %v5915_v12 = vadd.f32 %v11258_v22, %v12343_v49 }
 0x758   : > { %v6381_v60 = vpop.f32.mrf.mxu2 }
 0x759   : > { %v6382_v4 = vadd.f32 %v6381_v60, %v6269_v9  ;;  %v6494_v32 = vpop.f32.mrf.mxu3  ;;  %v6158_v20 = vpop.f32.mrf.mxu0  ;;  %v5903_v9 = vadd.f32 %v11258_v22, %v12337_v62  ;;  %v5904_v60 = vadd.f32 %v11263_v29, %v11519_v48  ;;  %v12338_v48 = vld [vmem:[#allocation75_spill] sm:$0xff]  ;;  %v5917_v62 = vadd.f32 %v11265_v31, %v11581_v41 }
 0x75a   : > { %v6271_v0 = vpop.f32.mrf.mxu1  ;;  %v6159_v19 = vadd.f32 %v11579_v1, %v6158_v20  ;;  %v5906_v56 = vadd.f32 %v11256_v52, %v12338_v48 }
 0x75b   : > { %v6495_v35 = vadd.f32 %v6494_v32, %v6382_v4  ;;  %v5905_v4 = vadd.f32 %v11265_v31, %v11533_v51  ;;  %v6032_v33 = vmax.f32 %v5904_v60, 0.0  ;;  %v12339_v51 = vld [vmem:[#allocation117_spill] sm:$0xff] }
 0x75c   : > { %6205 = vmatmul.f32.gmra.mxu0 %v6018_v23  ;;  %6318 = vmatmul.f32.gmra.mxu1 %v6019_v50  ;;  %v6272_v57 = vadd.f32 %v6271_v0, %v6159_v19  ;;  %v5907_v13 = vadd.f32 %v11258_v22, %v12339_v51 }
 0x75d   : > { %6574 = vst [vmem:[%s11596_s6 + $0x40] sm:$0xff] %v6495_v35  ;;  %6431 = vmatmul.f32.gmra.mxu2 %v6020_v10  ;;  %v6030_v35 = vmax.f32 %v5902_v37, 0.0  ;;  %v6031_v10 = vmax.f32 %v5903_v9, 0.0  ;;  %v6033_v58 = vmax.f32 %v5905_v4, 0.0  ;;  %v5916_v37 = vadd.f32 %v11263_v29, %v11567_v28 }
 0x75e   : > { %6544 = vmatmul.f32.gmra.mxu3 %v6021_v15 }
 0x760   : > { %v6384_v27 = vpop.f32.mrf.mxu2 }
 0x761   : > { %v6385_v18 = vadd.f32 %v6384_v27, %v6272_v57  ;;  %v6497_v39 = vpop.f32.mrf.mxu3  ;;  %v6161_v55 = vpop.f32.mrf.mxu0  ;;  %v5909_v57 = vadd.f32 %v11265_v31, %v11549_v24  ;;  %v12341_v24 = vld [vmem:[#allocation118_spill] sm:$0xff] }
 0x762   : > { %v6274_v36 = vpop.f32.mrf.mxu1  ;;  %v6162_v59 = vadd.f32 %v11579_v1, %v6161_v55  ;;  %v5911_v26 = vadd.f32 %v11258_v22, %v12341_v24  ;;  %v6044_v22 = vmax.f32 %v5916_v37, 0.0 }
 0x763   : > { %v6498_v40 = vadd.f32 %v6497_v39, %v6385_v18  ;;  %v6037_v11 = vmax.f32 %v5909_v57, 0.0 }
 0x764   : > { %6208 = vmatmul.f32.gmra.mxu0 %v6022_v21  ;;  %6321 = vmatmul.f32.gmra.mxu1 %v6023_v61  ;;  %v6275_v25 = vadd.f32 %v6274_v36, %v6162_v59  ;;  %v6034_v36 = vmax.f32 %v5906_v56, 0.0 }
 0x765   : > { %6575 = vst [vmem:[%s11596_s6 + $0x48] sm:$0xff] %v6498_v40  ;;  %6434 = vmatmul.f32.gmra.mxu2 %v6024_v5  ;;  %v6035_v40 = vmax.f32 %v5907_v13, 0.0 }
 0x766   : > { %6547 = vmatmul.f32.gmra.mxu3 %v6025_v8  ;;  %v6036_v8 = vmax.f32 %v5908_v44, 0.0 }
 0x768   : > { %v6387_v43 = vpop.f32.mrf.mxu2 }
 0x769   : > { %v6388_v7 = vadd.f32 %v6387_v43, %v6275_v25  ;;  %v6500_v63 = vpop.f32.mrf.mxu3  ;;  %v6164_v34 = vpop.f32.mrf.mxu0 }
 0x76a   : > { %v6277_v6 = vpop.f32.mrf.mxu1  ;;  %v6165_v42 = vadd.f32 %v11579_v1, %v6164_v34  ;;  %v6038_v34 = vmax.f32 %v5910_v2, 0.0 }
 0x76b   : > { %v6501_v54 = vadd.f32 %v6500_v63, %v6388_v7 }
 0x76c   : > { %6211 = vmatmul.f32.gmra.mxu0 %v6026_v47  ;;  %6324 = vmatmul.f32.gmra.mxu1 %v6027_v3  ;;  %v6278_v32 = vadd.f32 %v6277_v6, %v6165_v42  ;;  %v6039_v6 = vmax.f32 %v5911_v26, 0.0  ;;  %v6040_v42 = vmax.f32 %v5912_v30, 0.0 }
 0x76d   : > { %6576 = vst [vmem:[%s11596_s6 + $0x50] sm:$0xff] %v6501_v54  ;;  %6437 = vmatmul.f32.gmra.mxu2 %v6028_v46  ;;  %v6041_v46 = vmax.f32 %v5913_v17, 0.0 }
 0x76e   : > { %6550 = vmatmul.f32.gmra.mxu3 %v6029_v16  ;;  %v5914_v16 = vadd.f32 %v11256_v52, %v12342_v14 }
 0x770   : > { %v6390_v20 = vpop.f32.mrf.mxu2 }
 0x771   : > { %v6391_v23 = vadd.f32 %v6390_v20, %v6278_v32  ;;  %v6503_v0 = vpop.f32.mrf.mxu3  ;;  %v6167_v50 = vpop.f32.mrf.mxu0 }
 0x772   : > { %v6280_v19 = vpop.f32.mrf.mxu1  ;;  %v6168_v53 = vadd.f32 %v11579_v1, %v6167_v50 }
 0x773   : > { %v6504_v15 = vadd.f32 %v6503_v0, %v6391_v23  ;;  %v6042_v23 = vmax.f32 %v5914_v16, 0.0  ;;  %v6043_v0 = vmax.f32 %v5915_v12, 0.0 }
 0x774   : > { %6214 = vmatmul.f32.gmra.mxu0 %v6030_v35  ;;  %6327 = vmatmul.f32.gmra.mxu1 %v6031_v10  ;;  %v6281_v27 = vadd.f32 %v6280_v19, %v6168_v53  ;;  %v6045_v19 = vmax.f32 %v5917_v62, 0.0 }
 0x775   : > { %6577 = vst [vmem:[%s11596_s6 + $0x58] sm:$0xff] %v6504_v15  ;;  %6440 = vmatmul.f32.gmra.mxu2 %v6032_v33 }
 0x776   : > { %6553 = vmatmul.f32.gmra.mxu3 %v6033_v58 }
 0x778   : > { %v6393_v18 = vpop.f32.mrf.mxu2 }
 0x779   : > { %v6394_v39 = vadd.f32 %v6393_v18, %v6281_v27  ;;  %v6506_v55 = vpop.f32.mrf.mxu3  ;;  %v6170_v21 = vpop.f32.mrf.mxu0 }
 0x77a   : > { %v6283_v61 = vpop.f32.mrf.mxu1  ;;  %v6171_v5 = vadd.f32 %v11579_v1, %v6170_v21 }
 0x77b   : > { %v6507_v59 = vadd.f32 %v6506_v55, %v6394_v39 }
 0x77c   : > { %6217 = vmatmul.f32.gmra.mxu0 %v6034_v36  ;;  %6330 = vmatmul.f32.gmra.mxu1 %v6035_v40  ;;  %v6284_v45 = vadd.f32 %v6283_v61, %v6171_v5 }
 0x77d   : > { %6578 = vst [vmem:[%s11596_s6 + $0x60] sm:$0xff] %v6507_v59  ;;  %6443 = vmatmul.f32.gmra.mxu2 %v6036_v8 }
 0x77e   : > { %6556 = vmatmul.f32.gmra.mxu3 %v6037_v11 }
 0x780   : > { %v6396_v25 = vpop.f32.mrf.mxu2 }
 0x781   : > { %v6397_v43 = vadd.f32 %v6396_v25, %v6284_v45  ;;  %v6509_v7 = vpop.f32.mrf.mxu3  ;;  %v6173_v63 = vpop.f32.mrf.mxu0 }
 0x782   : > { %v6286_v47 = vpop.f32.mrf.mxu1  ;;  %v6174_v54 = vadd.f32 %v11579_v1, %v6173_v63 }
 0x783   : > { %v6510_v3 = vadd.f32 %v6509_v7, %v6397_v43 }
 0x784   : > { %6220 = vmatmul.f32.gmra.mxu0 %v6038_v34  ;;  %6333 = vmatmul.f32.gmra.mxu1 %v6039_v6  ;;  %v6287_v9 = vadd.f32 %v6286_v47, %v6174_v54 }
 0x785   : > { %6579 = vst [vmem:[%s11596_s6 + $0x68] sm:$0xff] %v6510_v3  ;;  %6446 = vmatmul.f32.gmra.mxu2 %v6040_v42 }
 0x786   : > { %6559 = vmatmul.f32.gmra.mxu3 %v6041_v46 }
 0x788   : > { %v6399_v60 = vpop.f32.mrf.mxu2 }
 0x789   : > { %v6400_v4 = vadd.f32 %v6399_v60, %v6287_v9  ;;  %v6512_v32 = vpop.f32.mrf.mxu3  ;;  %v6176_v20 = vpop.f32.mrf.mxu0 }
 0x78a   : > { %v6289_v52 = vpop.f32.mrf.mxu1  ;;  %v6177_v35 = vadd.f32 %v11579_v1, %v6176_v20 }
 0x78b   : > { %v6513_v50 = vadd.f32 %v6512_v32, %v6400_v4 }
 0x78c   : > { %6223 = vmatmul.f32.gmra.mxu0 %v6042_v23  ;;  %6336 = vmatmul.f32.gmra.mxu1 %v6043_v0  ;;  %v6290_v29 = vadd.f32 %v6289_v52, %v6177_v35 }
 0x78d   : > { %6580 = vst [vmem:[%s11596_s6 + $0x70] sm:$0xff] %v6513_v50  ;;  %6449 = vmatmul.f32.gmra.mxu2 %v6044_v22 }
 0x78e   : > { %6562 = vmatmul.f32.gmra.mxu3 %v6045_v19 }
 0x790   : > { %v6402_v31 = vpop.f32.mrf.mxu2 }
 0x791   : > { %v6403_v28 = vadd.f32 %v6402_v31, %v6290_v29  ;;  %v6515_v41 = vpop.f32.mrf.mxu3  ;;  %v6179_v10 = vpop.f32.mrf.mxu0 }
 0x792   : > { %v6292_v15 = vpop.f32.mrf.mxu1  ;;  %v6180_v33 = vadd.f32 %v11579_v1, %v6179_v10 }
 0x793   : > { %v6516_v53 = vadd.f32 %v6515_v41, %v6403_v28 }
 0x794   : > { %v6293_v58 = vadd.f32 %v6292_v15, %v6180_v33 }
 0x795   : > { %6581 = vst [vmem:[%s11596_s6 + $0x78] sm:$0xff] %v6516_v53 }
 0x798   : > { %v6405_v48 = vpop.f32.mrf.mxu2 }
 0x799   : > { %v6406_v56 = vadd.f32 %v6405_v48, %v6293_v58  ;;  %v6518_v51 = vpop.f32.mrf.mxu3  ;;  %v6182_v13 = vpop.f32.mrf.mxu0 }
 0x79a   : > { %v6295_v44 = vpop.f32.mrf.mxu1  ;;  %v6183_v27 = vadd.f32 %v11579_v1, %v6182_v13 }
 0x79b   : > { %v6519_v57 = vadd.f32 %v6518_v51, %v6406_v56 }
 0x79c   : > { %v6296_v18 = vadd.f32 %v6295_v44, %v6183_v27 }
 0x79d   : > { %6582 = vst [vmem:[%s11596_s6 + $0x80] sm:$0xff] %v6519_v57 }
 0x7a0   : > { %v6408_v39 = vpop.f32.mrf.mxu2 }
 0x7a1   : > { %v6409_v55 = vadd.f32 %v6408_v39, %v6296_v18  ;;  %v6521_v21 = vpop.f32.mrf.mxu3  ;;  %v6185_v36 = vpop.f32.mrf.mxu0 }
 0x7a2   : > { %v6298_v61 = vpop.f32.mrf.mxu1  ;;  %v6186_v59 = vadd.f32 %v11579_v1, %v6185_v36 }
 0x7a3   : > { %v6522_v40 = vadd.f32 %v6521_v21, %v6409_v55 }
 0x7a4   : > { %v6299_v5 = vadd.f32 %v6298_v61, %v6186_v59 }
 0x7a5   : > { %6583 = vst [vmem:[%s11596_s6 + $0x88] sm:$0xff] %v6522_v40 }
 0x7a8   : > { %v6411_v8 = vpop.f32.mrf.mxu2 }
 0x7a9   : > { %v6412_v11 = vadd.f32 %v6411_v8, %v6299_v5  ;;  %v6524_v38 = vpop.f32.mrf.mxu3  ;;  %v6188_v2 = vpop.f32.mrf.mxu0 }
 0x7aa   : > { %v6301_v24 = vpop.f32.mrf.mxu1  ;;  %v6189_v30 = vadd.f32 %v11579_v1, %v6188_v2 }
 0x7ab   : > { %v6525_v26 = vadd.f32 %v6524_v38, %v6412_v11 }
 0x7ac   : > { %v6302_v17 = vadd.f32 %v6301_v24, %v6189_v30 }
 0x7ad   : > { %6584 = vst [vmem:[%s11596_s6 + $0x90] sm:$0xff] %v6525_v26 }
 0x7b0   : > { %v6414_v45 = vpop.f32.mrf.mxu2 }
 0x7b1   : > { %v6415_v25 = vadd.f32 %v6414_v45, %v6302_v17  ;;  %v6527_v43 = vpop.f32.mrf.mxu3  ;;  %v6191_v7 = vpop.f32.mrf.mxu0 }
 0x7b2   : > { %v6304_v63 = vpop.f32.mrf.mxu1  ;;  %v6192_v47 = vadd.f32 %v11579_v1, %v6191_v7 }
 0x7b3   : > { %v6528_v34 = vadd.f32 %v6527_v43, %v6415_v25 }
 0x7b4   : > { %v6305_v6 = vadd.f32 %v6304_v63, %v6192_v47 }
 0x7b5   : > { %6585 = vst [vmem:[%s11596_s6 + $0x98] sm:$0xff] %v6528_v34 }
 0x7b8   : > { %v6417_v3 = vpop.f32.mrf.mxu2 }
 0x7b9   : > { %v6418_v54 = vadd.f32 %v6417_v3, %v6305_v6  ;;  %v6530_v42 = vpop.f32.mrf.mxu3  ;;  %v6194_v46 = vpop.f32.mrf.mxu0 }
 0x7ba   : > { %v6307_v14 = vpop.f32.mrf.mxu1  ;;  %v6195_v49 = vadd.f32 %v11579_v1, %v6194_v46 }
 0x7bb   : > { %v6531_v16 = vadd.f32 %v6530_v42, %v6418_v54 }
 0x7bc   : > { %v6308_v12 = vadd.f32 %v6307_v14, %v6195_v49 }
 0x7bd   : > { %6586 = vst [vmem:[%s11596_s6 + $0xa0] sm:$0xff] %v6531_v16 }
 0x7c0   : > { %v6420_v37 = vpop.f32.mrf.mxu2 }
 0x7c1   : > { %v6421_v62 = vadd.f32 %v6420_v37, %v6308_v12  ;;  %v6533_v9 = vpop.f32.mrf.mxu3  ;;  %v6197_v60 = vpop.f32.mrf.mxu0 }
 0x7c2   : > { %v6310_v4 = vpop.f32.mrf.mxu1  ;;  %v6198_v20 = vadd.f32 %v11579_v1, %v6197_v60 }
 0x7c3   : > { %v6534_v32 = vadd.f32 %v6533_v9, %v6421_v62 }
 0x7c4   : > { %v6311_v23 = vadd.f32 %v6310_v4, %v6198_v20 }
 0x7c5   : > { %6587 = vst [vmem:[%s11596_s6 + $0xa8] sm:$0xff] %v6534_v32 }
 0x7c8   : > { %v6423_v52 = vpop.f32.mrf.mxu2 }
 0x7c9   : > { %v6424_v0 = vadd.f32 %v6423_v52, %v6311_v23  ;;  %v6536_v50 = vpop.f32.mrf.mxu3  ;;  %v6200_v35 = vpop.f32.mrf.mxu0 }
 0x7ca   : > { %v6313_v22 = vpop.f32.mrf.mxu1  ;;  %v6201_v29 = vadd.f32 %v11579_v1, %v6200_v35 }
 0x7cb   : > { %v6537_v19 = vadd.f32 %v6536_v50, %v6424_v0 }
 0x7cc   : > { %v6314_v31 = vadd.f32 %v6313_v22, %v6201_v29 }
 0x7cd   : > { %6588 = vst [vmem:[%s11596_s6 + $0xb0] sm:$0xff] %v6537_v19 }
 0x7d0   : > { %v6426_v28 = vpop.f32.mrf.mxu2 }
 0x7d1   : > { %v6427_v41 = vadd.f32 %v6426_v28, %v6314_v31  ;;  %v6539_v10 = vpop.f32.mrf.mxu3  ;;  %v6203_v15 = vpop.f32.mrf.mxu0 }
 0x7d2   : > { %v6316_v53 = vpop.f32.mrf.mxu1  ;;  %v6204_v58 = vadd.f32 %v11579_v1, %v6203_v15 }
 0x7d3   : > { %v6540_v33 = vadd.f32 %v6539_v10, %v6427_v41 }
 0x7d4   : > { %v6317_v48 = vadd.f32 %v6316_v53, %v6204_v58 }
 0x7d5   : > { %6589 = vst [vmem:[%s11596_s6 + $0xb8] sm:$0xff] %v6540_v33 }
 0x7d8   : > { %v6429_v56 = vpop.f32.mrf.mxu2 }
 0x7d9   : > { %v6430_v51 = vadd.f32 %v6429_v56, %v6317_v48  ;;  %v6542_v13 = vpop.f32.mrf.mxu3  ;;  %v6206_v44 = vpop.f32.mrf.mxu0 }
 0x7da   : > { %v6319_v57 = vpop.f32.mrf.mxu1  ;;  %v6207_v18 = vadd.f32 %v11579_v1, %v6206_v44 }
 0x7db   : > { %v6543_v27 = vadd.f32 %v6542_v13, %v6430_v51 }
 0x7dc   : > { %v6320_v39 = vadd.f32 %v6319_v57, %v6207_v18 }
 0x7dd   : > { %6590 = vst [vmem:[%s11596_s6 + $0xc0] sm:$0xff] %v6543_v27 }
 0x7e0   : > { %v6432_v55 = vpop.f32.mrf.mxu2 }
 0x7e1   : > { %v6433_v21 = vadd.f32 %v6432_v55, %v6320_v39  ;;  %v6545_v36 = vpop.f32.mrf.mxu3  ;;  %v6209_v61 = vpop.f32.mrf.mxu0 }
 0x7e2   : > { %v6322_v40 = vpop.f32.mrf.mxu1  ;;  %v6210_v5 = vadd.f32 %v11579_v1, %v6209_v61 }
 0x7e3   : > { %v6546_v59 = vadd.f32 %v6545_v36, %v6433_v21 }
 0x7e4   : > { %v6323_v8 = vadd.f32 %v6322_v40, %v6210_v5 }
 0x7e5   : > { %6591 = vst [vmem:[%s11596_s6 + $0xc8] sm:$0xff] %v6546_v59 }
 0x7e8   : > { %v6435_v11 = vpop.f32.mrf.mxu2 }
 0x7e9   : > { %v6436_v38 = vadd.f32 %v6435_v11, %v6323_v8  ;;  %v6548_v2 = vpop.f32.mrf.mxu3  ;;  %v6212_v24 = vpop.f32.mrf.mxu0 }
 0x7ea   : > { %v6325_v26 = vpop.f32.mrf.mxu1  ;;  %v6213_v17 = vadd.f32 %v11579_v1, %v6212_v24 }
 0x7eb   : > { %v6549_v30 = vadd.f32 %v6548_v2, %v6436_v38 }
 0x7ec   : > { %v6326_v45 = vadd.f32 %v6325_v26, %v6213_v17 }
 0x7ed   : > { %6592 = vst [vmem:[%s11596_s6 + $0xd0] sm:$0xff] %v6549_v30 }
 0x7f0   : > { %v6438_v25 = vpop.f32.mrf.mxu2 }
 0x7f1   : > { %v6439_v43 = vadd.f32 %v6438_v25, %v6326_v45  ;;  %v6551_v7 = vpop.f32.mrf.mxu3  ;;  %v6215_v63 = vpop.f32.mrf.mxu0 }
 0x7f2   : > { %v6328_v34 = vpop.f32.mrf.mxu1  ;;  %v6216_v6 = vadd.f32 %v11579_v1, %v6215_v63 }
 0x7f3   : > { %v6552_v47 = vadd.f32 %v6551_v7, %v6439_v43 }
 0x7f4   : > { %v6329_v3 = vadd.f32 %v6328_v34, %v6216_v6 }
 0x7f5   : > { %6593 = vst [vmem:[%s11596_s6 + $0xd8] sm:$0xff] %v6552_v47 }
 0x7f8   : > { %v6441_v54 = vpop.f32.mrf.mxu2 }
 0x7f9   : > { %v6442_v42 = vadd.f32 %v6441_v54, %v6329_v3  ;;  %v6554_v46 = vpop.f32.mrf.mxu3  ;;  %v6218_v14 = vpop.f32.mrf.mxu0 }
 0x7fa   : > { %v6331_v16 = vpop.f32.mrf.mxu1  ;;  %v6219_v12 = vadd.f32 %v11579_v1, %v6218_v14 }
 0x7fb   : > { %v6555_v49 = vadd.f32 %v6554_v46, %v6442_v42 }
 0x7fc   : > { %v6332_v37 = vadd.f32 %v6331_v16, %v6219_v12 }
 0x7fd   : > { %6594 = vst [vmem:[%s11596_s6 + $0xe0] sm:$0xff] %v6555_v49 }
 0x800   : > { %v6444_v62 = vpop.f32.mrf.mxu2 }
 0x801   : > { %v6445_v9 = vadd.f32 %v6444_v62, %v6332_v37  ;;  %v6557_v60 = vpop.f32.mrf.mxu3  ;;  %v6221_v4 = vpop.f32.mrf.mxu0 }
 0x802   : > { %v6222_v20 = vadd.f32 %v11579_v1, %v6221_v4  ;;  %v6334_v23 = vpop.f32.mrf.mxu1 }
 0x803   : > { %v6558_v32 = vadd.f32 %v6557_v60, %v6445_v9 }
 0x804   : > { %v6335_v52 = vadd.f32 %v6334_v23, %v6222_v20 }
 0x805   : > { %6595 = vst [vmem:[%s11596_s6 + $0xe8] sm:$0xff] %v6558_v32 }
 0x808   : > { %v6447_v0 = vpop.f32.mrf.mxu2 }
 0x809   : > { %v6448_v50 = vadd.f32 %v6447_v0, %v6335_v52  ;;  %v6560_v35 = vpop.f32.mrf.mxu3  ;;  %v6224_v22 = vpop.f32.mrf.mxu0 }
 0x80a   : > { %v6225_v29 = vadd.f32 %v11579_v1, %v6224_v22  ;;  %v6337_v31 = vpop.f32.mrf.mxu1 }
 0x80b   : > { %v6561_v19 = vadd.f32 %v6560_v35, %v6448_v50 }
 0x80c   : > { %v6338_v28 = vadd.f32 %v6337_v31, %v6225_v29 }
 0x80d   : > { %6596 = vst [vmem:[%s11596_s6 + $0xf0] sm:$0xff] %v6561_v19 }
 0x810   : > { %v6450_v41 = vpop.f32.mrf.mxu2 }
 0x811   : > { %v6451_v10 = vadd.f32 %v6450_v41, %v6338_v28  ;;  %v6563_v15 = vpop.f32.mrf.mxu3 }
 0x813   : > { %v6564_v53 = vadd.f32 %v6563_v15, %v6451_v10 }
 0x815   : > { %6597 = vst [vmem:[%s11596_s6 + $0xf8] sm:$0xff] %v6564_v53 }
 0x816   : > { %7649 = shalt.err (!%p7646_p9)
}
 0x817   : > { %s7726_s15 = smov 128   ;;  %s7727_s27 = smov 8  }
 0x818   : > { %6861 = dma.vmem_to_hbm [thread:$0]  (%p7885_p13), %s6612_s5, 4096, %s6614_s9, %s6599_s20, %s7726_s15, %s7726_s15, %s7727_s27  }
 0x819 PF: > { %p6911_p10 = scmp.ge.s32.totalorder %s7708_s16, 2  ;;  %s6628_s17 = sand.u32 1, %s7696_s13  }
 0x81a   : > { %s6629_s7 = scalar_lea.sflag [#allocation4], %s6628_s17 }
 0x81b   : > { %p6893_p11 = pnand %p6911_p10, %p7893_p4 }
 0x81d   : > { %p6894_p0 = pneg %p6893_p11 }
 0x81f   : > { %7691 = dma.done.wait (%p6894_p0), %s6629_s7, 4096  }
 0x820   : > { %7693 = vsyncadd (%p6894_p0), %s6629_s7, 4294963200  ;;  %s12344_s8 = sld [smem:[#allocation25_spill]]  ;;  %p29_p2 = scmp.ge.s32.totalorder %s7861_s22, 6  }
 0x821   : > { %s12345_s15 = sld [smem:[#allocation26_spill]]  ;;  %s12346_s13 = smov %s7700_s14 }
 0x822   : > { %s12348_s16 = smov %s7861_s22  ;;  %31 = sbr.rel (!%p29_p2) target bundleno = 19 (0x13), region = 149 }
 0x826   : > { %s12347_s14 = smov %s12344_s8 }
 0x827   :  { %6635 = vsyncpa [#allocation3], 1 }
 0x828   :  { %6637 = vsyncpa [#allocation3 + $0x1], 1 }
 0x829   :  { %6638 = vsyncpa [#allocation6], 1 }
 0x82a   :  { %6640 = vsyncpa [#allocation6 + $0x1], 1 }
 0x82b   :  { %6641 = vsyncpa [#allocation9], 1 }
 0x82c   :  { %6642 = vsyncpa [#allocation12], 1 }
 0x82d   :  { %6643 = vsyncpa [#allocation15], 1 }
 0x82e   :  { %6644 = vsyncpa [#allocation4], 1 }
 0x82f   :  { %6646 = vsyncpa [#allocation4 + $0x1], 1 }

</bundles_post_ra>
